<compile_context>
chip_gen: v5e
topology: v5e:2x2
jax: 0.10.0
libtpu: 0.0.40
codegen_flags: <defaults>
</compile_context>

<pallas_src>
import functools

import jax
import jax.numpy as jnp
from jax import lax
from jax.experimental import pallas as pl
from jax.experimental.pallas import tpu as pltpu

LN_EPS = 1e-5                      # nn.LayerNorm default
_INV_SQRT2 = 0.7071067811865476    # hoisted 1/sqrt(2)


def _round_up(a, b):
    return ((a + b - 1) // b) * b


def _vmem_capacity_bytes():
    """Physical VMEM of the current generation (conservative fallback)."""
    try:
        info = pltpu.get_tpu_info()
        cap = getattr(info, "vmem_capacity_bytes", None)
        if cap:
            return int(cap)
    except Exception:
        pass
    return 64 * 1024 * 1024       # v7x is the smallest (64 MiB per core)


def _pick_hidden_tile(h, max_th=2048):
    """Largest 128-aligned divisor of h not exceeding max_th (else h)."""
    if h <= max_th:
        return h
    t = (max_th // 128) * 128
    while t >= 128:
        if h % t == 0:
            return t
        t -= 128
    return h


def _spec(shape, index_map, *, buffers=None):
    """BlockSpec with an optional explicit buffer count.

    buffers=1 single-buffers grid-invariant operands (no double VMEM
    residency).  Falls back to a default spec on jax versions without
    BlockSpec.pipeline_mode.
    """
    if buffers is not None and hasattr(pl, "Buffered"):
        try:
            return pl.BlockSpec(shape, index_map,
                                pipeline_mode=pl.Buffered(buffers))
        except TypeError:
            pass
    return pl.BlockSpec(shape, index_map)


def mlp_block_kernel(x_ref, w1_ref, b1_ref, w2_ref, b2_ref, o_ref,
                     xn_ref, acc_ref):
    """One (tm, E) row tile x one (tH) hidden tile of the fused MLP block."""
    h_step = pl.program_id(1)
    n_h = pl.num_programs(1)

    # ---- LayerNorm (normalization only; affine folded into W1'/b1') --------
    # Computed once per row tile, cached as bf16 for all hidden tiles.
    @pl.when(h_step == 0)
    def _():
        x = x_ref[...].astype(jnp.float32)                       # (tm, E)
        mean = jnp.mean(x, axis=-1, keepdims=True)
        centered = x - mean
        var = jnp.mean(centered * centered, axis=-1, keepdims=True)
        xn_ref[...] = (centered * lax.rsqrt(var + LN_EPS)).astype(jnp.bfloat16)
        acc_ref[...] = jnp.zeros_like(acc_ref)

    # ---- Linear 1 slice on the MXU: bf16 operands, f32 accumulation --------
    h = jnp.dot(xn_ref[...], w1_ref[...],
                preferred_element_type=jnp.float32)               # (tm, tH)
    h = h + b1_ref[...].astype(jnp.float32)

    # ---- GELU (exact erf form — nn.GELU default numerics), cast to bf16 ----
    g = (0.5 * h * (1.0 + lax.erf(h * _INV_SQRT2))).astype(jnp.bfloat16)

    # Dropout: identity in eval mode.

    # ---- Linear 2 slice: accumulate (tm, tH) @ (tH, E) into f32 scratch ----
    acc_ref[...] += jnp.dot(g, w2_ref[...],
                            preferred_element_type=jnp.float32)   # (tm, E)

    # ---- finalize: second bias + store ------------------------------------
    @pl.when(h_step == n_h - 1)
    def _():
        o_ref[...] = (acc_ref[...]
                      + b2_ref[...].astype(jnp.float32)).astype(o_ref.dtype)


@functools.partial(jax.jit,
                   static_argnames=("tm", "th", "buffered_invariants"))
def mlp_block(x, gamma, beta, w1, b1, w2, b2, *, tm=256, th=None,
              buffered_invariants=True):
    """x: (B, S, E) -> (B, S, E).  tm: row tile; th: hidden tile (None=auto)."""
    B, S, E = x.shape
    H = w1.shape[1]
    M = B * S
    assert tm % 8 == 0

    # --- row tile: shrink so the parallel grid length >= 2 (two v7x TCs), ---
    # --- keep a sublane multiple, and pad M up to a tile multiple. ----------
    tm_eff = min(tm, _round_up(M, 8))
    while tm_eff > 8 and pl.cdiv(M, tm_eff) < 2:
        tm_eff //= 2
    tm_eff = max(8, _round_up(tm_eff, 8))
    n_i = pl.cdiv(M, tm_eff)
    M_pad = n_i * tm_eff

    # --- hidden tile ---------------------------------------------------------
    th_eff = _pick_hidden_tile(H) if th is None else th
    assert H % th_eff == 0, "hidden tile must divide mlp_size"
    n_h = H // th_eff

    f32 = jnp.float32
    x2d = x.reshape(M, E)
    if M_pad != M:
        # Zero rows normalize to zero (0 * rsqrt(eps)); sliced off at the end.
        x2d = jnp.pad(x2d, ((0, M_pad - M), (0, 0)))

    # --- fold the LayerNorm affine into the first linear (f32, then bf16) ---
    w1f = w1.astype(f32)
    w1p = (gamma.astype(f32)[:, None] * w1f).astype(jnp.bfloat16)   # (E, H)
    b1p = (beta.astype(f32) @ w1f + b1.astype(f32)).reshape(1, H)   # (1, H) f32
    w2b = w2.astype(jnp.bfloat16)                                   # (H, E)
    b2p = b2.astype(f32).reshape(1, E)                              # (1, E) f32

    # Grid-invariant operands get a single VMEM buffer; streamed (H-tiled)
    # operands keep the default double-buffering.
    inv_buf = 1 if buffered_invariants else None
    w_buf_spec = inv_buf if n_h == 1 else None
    w_buf = 1 if (n_h == 1 and buffered_invariants) else 2

    # --- generation-aware VMEM budget ----------------------------------------
    x_bytes = x.dtype.itemsize
    vmem_needed = (
        2 * tm_eff * E * x_bytes                    # x tile (double buffered)
        + 2 * tm_eff * E * x_bytes                  # out tile (double buffered)
        + w_buf * (E * th_eff + th_eff * E) * 2     # bf16 W1'/W2 blocks
        + w_buf * th_eff * 4 + E * 4                # b1' block + b2
        + tm_eff * E * (2 + 4)                      # xn (bf16) + acc (f32) scratch
        + tm_eff * th_eff * (4 + 2)                 # live h (f32) + g (bf16)
        + 2 * tm_eff * E * 4                        # LayerNorm temporaries
    )
    vmem_cap = _vmem_capacity_bytes()
    vmem_limit = int(min(max(int(1.25 * vmem_needed), 32 * 1024 * 1024),
                         int(0.75 * vmem_cap)))

    weight_bytes = (E * H + H * E) * 2 + (H + E) * 4
    cost = pl.CostEstimate(
        flops=int(4 * M_pad * E * H),
        transcendentals=int(M_pad * H),                # erf per hidden act
        bytes_accessed=int(2 * M_pad * E * x_bytes
                           + (weight_bytes if n_h == 1
                              else n_i * weight_bytes)),
    )

    grid_spec = pltpu.PrefetchScalarGridSpec(
        num_scalar_prefetch=0,
        grid=(n_i, n_h),
        in_specs=[
            pl.BlockSpec((tm_eff, E), lambda i, h: (i, 0)),               # x rows
            _spec((E, th_eff), lambda i, h: (0, h), buffers=w_buf_spec),  # W1' bf16
            _spec((1, th_eff), lambda i, h: (0, h), buffers=w_buf_spec),  # b1' f32
            _spec((th_eff, E), lambda i, h: (h, 0), buffers=w_buf_spec),  # W2  bf16
            _spec((1, E), lambda i, h: (0, 0), buffers=inv_buf),          # b2  f32
        ],
        out_specs=pl.BlockSpec((tm_eff, E), lambda i, h: (i, 0)),
        scratch_shapes=[
            pltpu.VMEM((tm_eff, E), jnp.bfloat16),   # cached normalized x
            pltpu.VMEM((tm_eff, E), jnp.float32),    # output accumulator
        ],
    )

    out2d = pl.pallas_call(
        mlp_block_kernel,
        out_shape=jax.ShapeDtypeStruct((M_pad, E), x.dtype),
        grid_spec=grid_spec,
        compiler_params=pltpu.CompilerParams(
            dimension_semantics=("parallel", "arbitrary"),
            vmem_limit_bytes=vmem_limit,
        ),
        cost_estimate=cost,
    )(x2d, w1p, b1p, w2b, b2p)

    return out2d[:M].reshape(B, S, E)


def reference(x, gamma, beta, w1, b1, w2, b2):
    """Pure-JAX f32 reference for correctness checking."""
    xf = x.astype(jnp.float32)
    mean = jnp.mean(xf, axis=-1, keepdims=True)
    var = jnp.mean((xf - mean) ** 2, axis=-1, keepdims=True)
    xn = (xf - mean) / jnp.sqrt(var + LN_EPS) * gamma + beta
    h = xn @ w1 + b1
    g = 0.5 * h * (1.0 + lax.erf(h * _INV_SQRT2))
    return (g @ w2 + b2).astype(x.dtype)


def init_params(key, embed_dim, mlp_size, dtype=jnp.float32):
    """Deterministic synthetic params (PyTorch-style uniform fan-in init)."""
    k1, k2, k3, k4, k5, k6 = jax.random.split(key, 6)
    lim1 = 1.0 / jnp.sqrt(embed_dim)
    lim2 = 1.0 / jnp.sqrt(mlp_size)
    # Non-trivial LayerNorm affine so the host-side fold is actually tested.
    gamma = 1.0 + 0.1 * jax.random.normal(k5, (embed_dim,), dtype)
    beta = 0.1 * jax.random.normal(k6, (embed_dim,), dtype)
    # Stored as (in, out) for row-major matmul in the kernel.
    w1 = jax.random.uniform(k1, (embed_dim, mlp_size), dtype, -lim1, lim1)
    b1 = jax.random.uniform(k2, (mlp_size,), dtype, -lim1, lim1)
    w2 = jax.random.uniform(k3, (mlp_size, embed_dim), dtype, -lim2, lim2)
    b2 = jax.random.uniform(k4, (embed_dim,), dtype, -lim2, lim2)
    return gamma, beta, w1, b1, w2, b2


if __name__ == "__main__":
    # Small shapes consistent with the module (embed/mlp dims scaled down,
    # lane-aligned).  S=125 makes M = B*S = 250, which is NOT a tile multiple
    # (like real ViT's seq len 197) -> exercises row padding; th=256 with
    # H=512 gives a 2-step hidden grid -> exercises the accumulation path.
    B, S, E, H = 2, 125, 256, 512

    key = jax.random.PRNGKey(0)
    kx, kp = jax.random.split(key)
    x = jax.random.normal(kx, (B, S, E), jnp.float32)
    gamma, beta, w1, b1, w2, b2 = init_params(kp, E, H)

    run = functools.partial(mlp_block, x, gamma, beta, w1, b1, w2, b2,
                            tm=256, th=256)
    try:
        out = jax.block_until_ready(run())
    except Exception:
        # Fallback for jax versions without BlockSpec pipeline_mode support.
        out = jax.block_until_ready(run(buffered_invariants=False))

    ref = reference(x, gamma, beta, w1, b1, w2, b2)
    assert out.shape == (B, S, E)
    # bf16 matmul operands (f32 accumulation) vs. pure-f32 reference.
    assert jnp.allclose(out, ref, atol=5e-2, rtol=5e-2), "mismatch vs reference"

    print("KERNEL_OK")
</pallas_src>

<mosaic_0001>
module attributes {stable_mosaic.version = 11 : i64} {
  func.func @mlp_block_kernel(%arg0: i32, %arg1: i32, %arg2: memref<128x256xf32, #tpu.memory_space<vmem>>, %arg3: memref<256x256xbf16, #tpu.memory_space<vmem>>, %arg4: memref<1x256xf32, #tpu.memory_space<vmem>>, %arg5: memref<256x256xbf16, #tpu.memory_space<vmem>>, %arg6: memref<1x256xf32, #tpu.memory_space<vmem>>, %arg7: memref<128x256xf32, #tpu.memory_space<vmem>>, %arg8: memref<128x256xbf16, #tpu.memory_space<vmem>>, %arg9: memref<128x256xf32, #tpu.memory_space<vmem>>) attributes {dimension_semantics = [#tpu.dimension_semantics<parallel>, #tpu.dimension_semantics<arbitrary>], iteration_bounds = array<i64: 2, 2>, scalar_prefetch = 0 : i64, scratch_operands = 2 : i64, tpu.core_type = #tpu.core_type<tc>, window_params = [{transform_indices = @transform_0, window_bounds = array<i64: 128, 256>}, {transform_indices = @transform_1, window_bounds = array<i64: 256, 256>}, {transform_indices = @transform_2, window_bounds = array<i64: 1, 256>}, {transform_indices = @transform_3, window_bounds = array<i64: 256, 256>}, {pipeline_mode = #tpu.pipeline_mode<synchronous>, transform_indices = @transform_4, window_bounds = array<i64: 1, 256>}, {transform_indices = @transform_5, window_bounds = array<i64: 128, 256>}]} {
    %c0_i32 = arith.constant 0 : i32
    %0 = arith.cmpi eq, %arg1, %c0_i32 : i32
    %1 = arith.extui %0 : i1 to i32
    %c0_i32_0 = arith.constant 0 : i32
    %2 = arith.cmpi ne, %1, %c0_i32_0 : i32
    scf.if %2 {
      %c0_17 = arith.constant 0 : index
      %c0_18 = arith.constant 0 : index
      %26 = vector.load %arg2[%c0_17, %c0_18] : memref<128x256xf32, #tpu.memory_space<vmem>>, vector<128x256xf32>
      %cst_19 = arith.constant dense<0.000000e+00> : vector<128xf32>
      %27 = vector.multi_reduction <add>, %26, %cst_19 [1] : vector<128x256xf32> to vector<128xf32>
      %28 = vector.shape_cast %27 : vector<128xf32> to vector<128x1xf32>
      %cst_20 = arith.constant 2.560000e+02 : f32
      %29 = vector.broadcast %cst_20 : f32 to vector<128x1xf32>
      %30 = arith.divf %28, %29 : vector<128x1xf32>
      %31 = vector.broadcast %30 : vector<128x1xf32> to vector<128x256xf32>
      %32 = arith.subf %26, %31 : vector<128x256xf32>
      %33 = arith.mulf %32, %32 : vector<128x256xf32>
      %cst_21 = arith.constant dense<0.000000e+00> : vector<128xf32>
      %34 = vector.multi_reduction <add>, %33, %cst_21 [1] : vector<128x256xf32> to vector<128xf32>
      %35 = vector.shape_cast %34 : vector<128xf32> to vector<128x1xf32>
      %cst_22 = arith.constant 2.560000e+02 : f32
      %36 = vector.broadcast %cst_22 : f32 to vector<128x1xf32>
      %37 = arith.divf %35, %36 : vector<128x1xf32>
      %cst_23 = arith.constant 9.99999974E-6 : f32
      %38 = vector.broadcast %cst_23 : f32 to vector<128x1xf32>
      %39 = arith.addf %37, %38 : vector<128x1xf32>
      %40 = math.rsqrt %39 : vector<128x1xf32>
      %41 = vector.broadcast %40 : vector<128x1xf32> to vector<128x256xf32>
      %42 = arith.mulf %32, %41 : vector<128x256xf32>
      %43 = arith.truncf %42 : vector<128x256xf32> to vector<128x256xbf16>
      %c0_24 = arith.constant 0 : index
      %c0_25 = arith.constant 0 : index
      %44 = vector.load %arg8[%c0_24, %c0_25] : memref<128x256xbf16, #tpu.memory_space<vmem>>, vector<128x256xbf16>
      tpu.vector_store %arg8[%c0_24, %c0_25], %43 {strides = array<i32>} : memref<128x256xbf16, #tpu.memory_space<vmem>>, vector<128x256xbf16>,
      %cst_26 = arith.constant 0.000000e+00 : f32
      %45 = vector.broadcast %cst_26 : f32 to vector<128x256xf32>
      %c0_27 = arith.constant 0 : index
      %c0_28 = arith.constant 0 : index
      %46 = vector.load %arg9[%c0_27, %c0_28] : memref<128x256xf32, #tpu.memory_space<vmem>>, vector<128x256xf32>
      tpu.vector_store %arg9[%c0_27, %c0_28], %45 {strides = array<i32>} : memref<128x256xf32, #tpu.memory_space<vmem>>, vector<128x256xf32>,
    } else {
    }
    %c0 = arith.constant 0 : index
    %c0_1 = arith.constant 0 : index
    %3 = vector.load %arg8[%c0, %c0_1] : memref<128x256xbf16, #tpu.memory_space<vmem>>, vector<128x256xbf16>
    %c0_2 = arith.constant 0 : index
    %c0_3 = arith.constant 0 : index
    %4 = vector.load %arg3[%c0_2, %c0_3] : memref<256x256xbf16, #tpu.memory_space<vmem>>, vector<256x256xbf16>
    %cst = arith.constant dense<0.000000e+00> : vector<128x256xf32>
    %5 = tpu.matmul %3, %4, %cst {dimension_numbers = #tpu.dot_dimension_numbers<[1], [0], [0], [1], [0, 0, 1, 1], [], []>} : vector<128x256xbf16>, vector<256x256xbf16>, vector<128x256xf32> -> vector<128x256xf32>
    %c0_4 = arith.constant 0 : index
    %c0_5 = arith.constant 0 : index
    %6 = vector.load %arg4[%c0_4, %c0_5] : memref<1x256xf32, #tpu.memory_space<vmem>>, vector<1x256xf32>
    %7 = vector.broadcast %6 : vector<1x256xf32> to vector<128x256xf32>
    %8 = arith.addf %5, %7 : vector<128x256xf32>
    %cst_6 = arith.constant 5.000000e-01 : f32
    %9 = vector.broadcast %cst_6 : f32 to vector<128x256xf32>
    %10 = arith.mulf %9, %8 : vector<128x256xf32>
    %cst_7 = arith.constant 0.707106769 : f32
    %11 = vector.broadcast %cst_7 : f32 to vector<128x256xf32>
    %12 = arith.mulf %8, %11 : vector<128x256xf32>
    %13 = math.erf %12 : vector<128x256xf32>
    %cst_8 = arith.constant 1.000000e+00 : f32
    %14 = vector.broadcast %cst_8 : f32 to vector<128x256xf32>
    %15 = arith.addf %14, %13 : vector<128x256xf32>
    %16 = arith.mulf %10, %15 : vector<128x256xf32>
    %17 = arith.truncf %16 : vector<128x256xf32> to vector<128x256xbf16>
    %c0_9 = arith.constant 0 : index
    %c0_10 = arith.constant 0 : index
    %18 = vector.load %arg9[%c0_9, %c0_10] : memref<128x256xf32, #tpu.memory_space<vmem>>, vector<128x256xf32>
    %c0_11 = arith.constant 0 : index
    %c0_12 = arith.constant 0 : index
    %19 = vector.load %arg5[%c0_11, %c0_12] : memref<256x256xbf16, #tpu.memory_space<vmem>>, vector<256x256xbf16>
    %cst_13 = arith.constant dense<0.000000e+00> : vector<128x256xf32>
    %20 = tpu.matmul %17, %19, %cst_13 {dimension_numbers = #tpu.dot_dimension_numbers<[1], [0], [0], [1], [0, 0, 1, 1], [], []>} : vector<128x256xbf16>, vector<256x256xbf16>, vector<128x256xf32> -> vector<128x256xf32>
    %21 = arith.addf %18, %20 : vector<128x256xf32>
    %c0_14 = arith.constant 0 : index
    %c0_15 = arith.constant 0 : index
    %22 = vector.load %arg9[%c0_14, %c0_15] : memref<128x256xf32, #tpu.memory_space<vmem>>, vector<128x256xf32>
    tpu.vector_store %arg9[%c0_14, %c0_15], %21 {strides = array<i32>} : memref<128x256xf32, #tpu.memory_space<vmem>>, vector<128x256xf32>,
    %c1_i32 = arith.constant 1 : i32
    %23 = arith.cmpi eq, %arg1, %c1_i32 : i32
    %24 = arith.extui %23 : i1 to i32
    %c0_i32_16 = arith.constant 0 : i32
    %25 = arith.cmpi ne, %24, %c0_i32_16 : i32
    scf.if %25 {
      %c0_17 = arith.constant 0 : index
      %c0_18 = arith.constant 0 : index
      %26 = vector.load %arg9[%c0_17, %c0_18] : memref<128x256xf32, #tpu.memory_space<vmem>>, vector<128x256xf32>
      %c0_19 = arith.constant 0 : index
      %c0_20 = arith.constant 0 : index
      %27 = vector.load %arg6[%c0_19, %c0_20] : memref<1x256xf32, #tpu.memory_space<vmem>>, vector<1x256xf32>
      %28 = vector.broadcast %27 : vector<1x256xf32> to vector<128x256xf32>
      %29 = arith.addf %26, %28 : vector<128x256xf32>
      %c0_21 = arith.constant 0 : index
      %c0_22 = arith.constant 0 : index
      %30 = vector.load %arg7[%c0_21, %c0_22] : memref<128x256xf32, #tpu.memory_space<vmem>>, vector<128x256xf32>
      tpu.vector_store %arg7[%c0_21, %c0_22], %29 {strides = array<i32>} : memref<128x256xf32, #tpu.memory_space<vmem>>, vector<128x256xf32>,
    } else {
    }
    return
  }
  func.func @transform_0(%arg0: i32, %arg1: i32) -> (i32, i32) {
    %c0_i32 = arith.constant 0 : i32
    %c0_i32_0 = arith.constant 0 : i32
    return %arg0, %c0_i32 : i32, i32
  }
  func.func @transform_1(%arg0: i32, %arg1: i32) -> (i32, i32) {
    %c0_i32 = arith.constant 0 : i32
    %c0_i32_0 = arith.constant 0 : i32
    return %c0_i32, %arg1 : i32, i32
  }
  func.func @transform_2(%arg0: i32, %arg1: i32) -> (i32, i32) {
    %c0_i32 = arith.constant 0 : i32
    %c0_i32_0 = arith.constant 0 : i32
    return %c0_i32, %arg1 : i32, i32
  }
  func.func @transform_3(%arg0: i32, %arg1: i32) -> (i32, i32) {
    %c0_i32 = arith.constant 0 : i32
    %c0_i32_0 = arith.constant 0 : i32
    return %arg1, %c0_i32 : i32, i32
  }
  func.func @transform_4(%arg0: i32, %arg1: i32) -> (i32, i32) {
    %c0_i32 = arith.constant 0 : i32
    %c0_i32_0 = arith.constant 0 : i32
    %c0_i32_1 = arith.constant 0 : i32
    return %c0_i32, %c0_i32_0 : i32, i32
  }
  func.func @transform_5(%arg0: i32, %arg1: i32) -> (i32, i32) {
    %c0_i32 = arith.constant 0 : i32
    %c0_i32_0 = arith.constant 0 : i32
    return %arg0, %c0_i32 : i32, i32
  }
}

module attributes {stable_mosaic.version = 11 : i64} {
  func.func @mlp_block_kernel(%arg0: i32, %arg1: i32, %arg2: memref<128x256xf32, #tpu.memory_space<vmem>>, %arg3: memref<256x256xbf16, #tpu.memory_space<vmem>>, %arg4: memref<1x256xf32, #tpu.memory_space<vmem>>, %arg5: memref<256x256xbf16, #tpu.memory_space<vmem>>, %arg6: memref<1x256xf32, #tpu.memory_space<vmem>>, %arg7: memref<128x256xf32, #tpu.memory_space<vmem>>, %arg8: memref<128x256xbf16, #tpu.memory_space<vmem>>, %arg9: memref<128x256xf32, #tpu.memory_space<vmem>>) attributes {dimension_semantics = [#tpu.dimension_semantics<parallel>, #tpu.dimension_semantics<arbitrary>], iteration_bounds = array<i64: 2, 2>, scalar_prefetch = 0 : i64, scratch_operands = 2 : i64, tpu.core_type = #tpu.core_type<tc>, window_params = [{transform_indices = @transform_0, window_bounds = array<i64: 128, 256>}, {transform_indices = @transform_1, window_bounds = array<i64: 256, 256>}, {transform_indices = @transform_2, window_bounds = array<i64: 1, 256>}, {transform_indices = @transform_3, window_bounds = array<i64: 256, 256>}, {pipeline_mode = #tpu.pipeline_mode<synchronous>, transform_indices = @transform_4, window_bounds = array<i64: 1, 256>}, {transform_indices = @transform_5, window_bounds = array<i64: 128, 256>}]} {
    %c0_i32 = arith.constant 0 : i32
    %0 = arith.cmpi eq, %arg1, %c0_i32 : i32
    %1 = arith.extui %0 : i1 to i32
    %c0_i32_0 = arith.constant 0 : i32
    %2 = arith.cmpi ne, %1, %c0_i32_0 : i32
    scf.if %2 {
      %c0_17 = arith.constant 0 : index
      %c0_18 = arith.constant 0 : index
      %26 = vector.load %arg2[%c0_17, %c0_18] : memref<128x256xf32, #tpu.memory_space<vmem>>, vector<128x256xf32>
      %cst_19 = arith.constant dense<0.000000e+00> : vector<128xf32>
      %27 = vector.multi_reduction <add>, %26, %cst_19 [1] : vector<128x256xf32> to vector<128xf32>
      %28 = vector.shape_cast %27 : vector<128xf32> to vector<128x1xf32>
      %cst_20 = arith.constant 2.560000e+02 : f32
      %29 = vector.broadcast %cst_20 : f32 to vector<128x1xf32>
      %30 = arith.divf %28, %29 : vector<128x1xf32>
      %31 = vector.broadcast %30 : vector<128x1xf32> to vector<128x256xf32>
      %32 = arith.subf %26, %31 : vector<128x256xf32>
      %33 = arith.mulf %32, %32 : vector<128x256xf32>
      %cst_21 = arith.constant dense<0.000000e+00> : vector<128xf32>
      %34 = vector.multi_reduction <add>, %33, %cst_21 [1] : vector<128x256xf32> to vector<128xf32>
      %35 = vector.shape_cast %34 : vector<128xf32> to vector<128x1xf32>
      %cst_22 = arith.constant 2.560000e+02 : f32
      %36 = vector.broadcast %cst_22 : f32 to vector<128x1xf32>
      %37 = arith.divf %35, %36 : vector<128x1xf32>
      %cst_23 = arith.constant 9.99999974E-6 : f32
      %38 = vector.broadcast %cst_23 : f32 to vector<128x1xf32>
      %39 = arith.addf %37, %38 : vector<128x1xf32>
      %40 = math.rsqrt %39 : vector<128x1xf32>
      %41 = vector.broadcast %40 : vector<128x1xf32> to vector<128x256xf32>
      %42 = arith.mulf %32, %41 : vector<128x256xf32>
      %43 = arith.truncf %42 : vector<128x256xf32> to vector<128x256xbf16>
      %c0_24 = arith.constant 0 : index
      %c0_25 = arith.constant 0 : index
      %44 = vector.load %arg8[%c0_24, %c0_25] : memref<128x256xbf16, #tpu.memory_space<vmem>>, vector<128x256xbf16>
      tpu.vector_store %arg8[%c0_24, %c0_25], %43 {strides = array<i32>} : memref<128x256xbf16, #tpu.memory_space<vmem>>, vector<128x256xbf16>,
      %cst_26 = arith.constant 0.000000e+00 : f32
      %45 = vector.broadcast %cst_26 : f32 to vector<128x256xf32>
      %c0_27 = arith.constant 0 : index
      %c0_28 = arith.constant 0 : index
      %46 = vector.load %arg9[%c0_27, %c0_28] : memref<128x256xf32, #tpu.memory_space<vmem>>, vector<128x256xf32>
      tpu.vector_store %arg9[%c0_27, %c0_28], %45 {strides = array<i32>} : memref<128x256xf32, #tpu.memory_space<vmem>>, vector<128x256xf32>,
    } else {
    }
    %c0 = arith.constant 0 : index
    %c0_1 = arith.constant 0 : index
    %3 = vector.load %arg8[%c0, %c0_1] : memref<128x256xbf16, #tpu.memory_space<vmem>>, vector<128x256xbf16>
    %c0_2 = arith.constant 0 : index
    %c0_3 = arith.constant 0 : index
    %4 = vector.load %arg3[%c0_2, %c0_3] : memref<256x256xbf16, #tpu.memory_space<vmem>>, vector<256x256xbf16>
    %cst = arith.constant dense<0.000000e+00> : vector<128x256xf32>
    %5 = tpu.matmul %3, %4, %cst {dimension_numbers = #tpu.dot_dimension_numbers<[1], [0], [0], [1], [0, 0, 1, 1], [], []>} : vector<128x256xbf16>, vector<256x256xbf16>, vector<128x256xf32> -> vector<128x256xf32>
    %c0_4 = arith.constant 0 : index
    %c0_5 = arith.constant 0 : index
    %6 = vector.load %arg4[%c0_4, %c0_5] : memref<1x256xf32, #tpu.memory_space<vmem>>, vector<1x256xf32>
    %7 = vector.broadcast %6 : vector<1x256xf32> to vector<128x256xf32>
    %8 = arith.addf %5, %7 : vector<128x256xf32>
    %cst_6 = arith.constant 5.000000e-01 : f32
    %9 = vector.broadcast %cst_6 : f32 to vector<128x256xf32>
    %10 = arith.mulf %9, %8 : vector<128x256xf32>
    %cst_7 = arith.constant 0.707106769 : f32
    %11 = vector.broadcast %cst_7 : f32 to vector<128x256xf32>
    %12 = arith.mulf %8, %11 : vector<128x256xf32>
    %13 = math.erf %12 : vector<128x256xf32>
    %cst_8 = arith.constant 1.000000e+00 : f32
    %14 = vector.broadcast %cst_8 : f32 to vector<128x256xf32>
    %15 = arith.addf %14, %13 : vector<128x256xf32>
    %16 = arith.mulf %10, %15 : vector<128x256xf32>
    %17 = arith.truncf %16 : vector<128x256xf32> to vector<128x256xbf16>
    %c0_9 = arith.constant 0 : index
    %c0_10 = arith.constant 0 : index
    %18 = vector.load %arg9[%c0_9, %c0_10] : memref<128x256xf32, #tpu.memory_space<vmem>>, vector<128x256xf32>
    %c0_11 = arith.constant 0 : index
    %c0_12 = arith.constant 0 : index
    %19 = vector.load %arg5[%c0_11, %c0_12] : memref<256x256xbf16, #tpu.memory_space<vmem>>, vector<256x256xbf16>
    %cst_13 = arith.constant dense<0.000000e+00> : vector<128x256xf32>
    %20 = tpu.matmul %17, %19, %cst_13 {dimension_numbers = #tpu.dot_dimension_numbers<[1], [0], [0], [1], [0, 0, 1, 1], [], []>} : vector<128x256xbf16>, vector<256x256xbf16>, vector<128x256xf32> -> vector<128x256xf32>
    %21 = arith.addf %18, %20 : vector<128x256xf32>
    %c0_14 = arith.constant 0 : index
    %c0_15 = arith.constant 0 : index
    %22 = vector.load %arg9[%c0_14, %c0_15] : memref<128x256xf32, #tpu.memory_space<vmem>>, vector<128x256xf32>
    tpu.vector_store %arg9[%c0_14, %c0_15], %21 {strides = array<i32>} : memref<128x256xf32, #tpu.memory_space<vmem>>, vector<128x256xf32>,
    %c1_i32 = arith.constant 1 : i32
    %23 = arith.cmpi eq, %arg1, %c1_i32 : i32
    %24 = arith.extui %23 : i1 to i32
    %c0_i32_16 = arith.constant 0 : i32
    %25 = arith.cmpi ne, %24, %c0_i32_16 : i32
    scf.if %25 {
      %c0_17 = arith.constant 0 : index
      %c0_18 = arith.constant 0 : index
      %26 = vector.load %arg9[%c0_17, %c0_18] : memref<128x256xf32, #tpu.memory_space<vmem>>, vector<128x256xf32>
      %c0_19 = arith.constant 0 : index
      %c0_20 = arith.constant 0 : index
      %27 = vector.load %arg6[%c0_19, %c0_20] : memref<1x256xf32, #tpu.memory_space<vmem>>, vector<1x256xf32>
      %28 = vector.broadcast %27 : vector<1x256xf32> to vector<128x256xf32>
      %29 = arith.addf %26, %28 : vector<128x256xf32>
      %c0_21 = arith.constant 0 : index
      %c0_22 = arith.constant 0 : index
      %30 = vector.load %arg7[%c0_21, %c0_22] : memref<128x256xf32, #tpu.memory_space<vmem>>, vector<128x256xf32>
      tpu.vector_store %arg7[%c0_21, %c0_22], %29 {strides = array<i32>} : memref<128x256xf32, #tpu.memory_space<vmem>>, vector<128x256xf32>,
    } else {
    }
    return
  }
  func.func @transform_0(%arg0: i32, %arg1: i32) -> (i32, i32) {
    %c0_i32 = arith.constant 0 : i32
    %c0_i32_0 = arith.constant 0 : i32
    return %arg0, %c0_i32 : i32, i32
  }
  func.func @transform_1(%arg0: i32, %arg1: i32) -> (i32, i32) {
    %c0_i32 = arith.constant 0 : i32
    %c0_i32_0 = arith.constant 0 : i32
    return %c0_i32, %arg1 : i32, i32
  }
  func.func @transform_2(%arg0: i32, %arg1: i32) -> (i32, i32) {
    %c0_i32 = arith.constant 0 : i32
    %c0_i32_0 = arith.constant 0 : i32
    return %c0_i32, %arg1 : i32, i32
  }
  func.func @transform_3(%arg0: i32, %arg1: i32) -> (i32, i32) {
    %c0_i32 = arith.constant 0 : i32
    %c0_i32_0 = arith.constant 0 : i32
    return %arg1, %c0_i32 : i32, i32
  }
  func.func @transform_4(%arg0: i32, %arg1: i32) -> (i32, i32) {
    %c0_i32 = arith.constant 0 : i32
    %c0_i32_0 = arith.constant 0 : i32
    %c0_i32_1 = arith.constant 0 : i32
    return %c0_i32, %c0_i32_0 : i32, i32
  }
  func.func @transform_5(%arg0: i32, %arg1: i32) -> (i32, i32) {
    %c0_i32 = arith.constant 0 : i32
    %c0_i32_0 = arith.constant 0 : i32
    return %arg0, %c0_i32 : i32, i32
  }
}

</mosaic_0001>

<bundles_post_ra>
// kernel: mlp_block.1
= control target key start
LH: loop header
LB: loop body
LE: loop exit
PB: predicated region body
PF: predicated region fallthrough
CT: control target
= control target key end

     0   :  { %s4293_s18 = smov 0   ;;  %s4295_s19 = smov 0   ;;  %s6765_s0 = inlined_call_operand.vmem [shape: f32[256,256], index: 0, kind: input, shape index: {}]   ;;  %s6766_s1 = inlined_call_operand.vmem [shape: bf16[256,512], index: 1, kind: input, shape index: {}]   ;;  %s6767_s2 = inlined_call_operand.vmem [shape: f32[1,512], index: 2, kind: input, shape index: {}]   ;;  %s6768_s3 = inlined_call_operand.vmem [shape: bf16[512,256], index: 3, kind: input, shape index: {}]   ;;  %s6769_s4 = inlined_call_operand.vmem [shape: f32[1,256], index: 4, kind: input, shape index: {}]   ;;  %s6770_s5 = inlined_call_operand.vmem [shape: f32[256,256], index: 5, kind: output, shape index: {}]  }
   0x1   :  { %s4297_s20 = smov 0   ;;  %s4299_s21 = smov 0  }
   0x2   :  { %s4301_s22 = smov 0   ;;  %s4303_s23 = smov 0  }
   0x3   :  { %s4305_s24 = smov 0  }
   0x4 LB: > { %s24_s25 = sadd.s32 1, %s4251_s22  ;;  %s27_s26 = sadd.s32 1, %s4255_s23  ;;  %s4259_s24 = sphi %s4305_s24, %s15_s24   ;;  %s4255_s23 = sphi %s4303_s23, %s6887_s23   ;;  %s4251_s22 = sphi %s4301_s22, %s6886_s22   ;;  %s4247_s21 = sphi %s4299_s21, %s6885_s21   ;;  %s4243_s20 = sphi %s4297_s20, %s6884_s20   ;;  %s4239_s19 = sphi %s4295_s19, %s6883_s19   ;;  %s4235_s18 = sphi %s4293_s18, %s6882_s18  }
   0x5   : > { %p25_p0 = scmp.ge.s32.totalorder %s24_s25, 2  ;;  %s60_s27 = sadd.s32 1, %s4239_s19 }
   0x6   : > { %p67_p1 = scmp.ne.s32.totalorder %s4239_s19, %s4235_s18  ;;  %p68_p2 = scmp.eq.s32.totalorder %s4259_s24, 0 }
   0x7   : > { %s6889_s25 = smov (%p25_p0, %s24_s25), 0  ;;  %s6891_s26 = smov (!%p25_p0, %s27_s26), %s4255_s23 }
   0x8   : > { %s57_s28 = ssub.s32 %s4251_s22, %s6889_s25  ;;  %p69_p3 = por %p68_p2, %p67_p1 }
   0x9   : > { %p29_p4 = scmp.ge.s32.totalorder %s6891_s26, 2  ;;  %p58_p5 = scmp.eq.s32.totalorder %s57_s28, 0 }
   0xa   : > { %p3593_p6 = scmp.ge.s32.totalorder %s4259_s24, 4 }
   0xb   : > { %s6893_s26 = smov (%p29_p4, %s6891_s26), 0 }
   0xc   : > { %s4342_s29 = scalar_select %p58_p5, %s4239_s19, %s60_s27  }
   0xd   : > { %195 = sbr.rel (%p3593_p6) target bundleno = 54 (0x36), region = 20 }
  0x12   : > { %208 = sbr.rel (!%p69_p3) target bundleno = 54 (0x36), region = 28  ;;  %s210_s30 = sand.u32 (%p69_p3), 1, %s4239_s19  }
  0x13   : > { %s3965_s6 = sshll.u32 (%p69_p3), %s4251_s22, 3  ;;  %s3594_s7 = sshll.u32 (%p69_p3), %s210_s30, 8 }
  0x14   : > { %s4350_s10 = scalar_lea.vmem (%p69_p3), %s6766_s1, %s3965_s6  ;;  %s4355_s11 = scalar_lea.vmem (%p69_p3), [#allocation4], %s3594_s7 }
  0x15   : > { %v306_v0 = vld [vmem:[%s4350_s10] sm:$0xff] (%p69_p3)  ;;  %v308_v1 = vld [vmem:[%s4350_s10 + $0x10] sm:$0xff] (%p69_p3) }
  0x16   : > { %v310_v2 = vld [vmem:[%s4350_s10 + $0x20] sm:$0xff] (%p69_p3)  ;;  %307 = vst [vmem:[%s4355_s11] sm:$0xff] (%p69_p3), %v306_v0  ;;  %v312_v3 = vld [vmem:[%s4350_s10 + $0x30] sm:$0xff] (%p69_p3) }
  0x17   : > { %309 = vst [vmem:[%s4355_s11 + $0x8] sm:$0xff] %v308_v1  ;;  %v314_v4 = vld [vmem:[%s4350_s10 + $0x40] sm:$0xff]  ;;  %v316_v5 = vld [vmem:[%s4350_s10 + $0x50] sm:$0xff] }
  0x18   : > { %311 = vst [vmem:[%s4355_s11 + $0x10] sm:$0xff] %v310_v2  ;;  %v318_v6 = vld [vmem:[%s4350_s10 + $0x60] sm:$0xff]  ;;  %v320_v7 = vld [vmem:[%s4350_s10 + $0x70] sm:$0xff] }
  0x19   : > { %313 = vst [vmem:[%s4355_s11 + $0x18] sm:$0xff] %v312_v3  ;;  %v322_v8 = vld [vmem:[%s4350_s10 + $0x80] sm:$0xff]  ;;  %v324_v9 = vld [vmem:[%s4350_s10 + $0x90] sm:$0xff] }
  0x1a   : > { %315 = vst [vmem:[%s4355_s11 + $0x20] sm:$0xff] %v314_v4  ;;  %v326_v10 = vld [vmem:[%s4350_s10 + $0xa0] sm:$0xff]  ;;  %v328_v11 = vld [vmem:[%s4350_s10 + $0xb0] sm:$0xff] }
  0x1b   : > { %317 = vst [vmem:[%s4355_s11 + $0x28] sm:$0xff] %v316_v5  ;;  %v330_v12 = vld [vmem:[%s4350_s10 + $0xc0] sm:$0xff]  ;;  %v332_v13 = vld [vmem:[%s4350_s10 + $0xd0] sm:$0xff] }
  0x1c   : > { %319 = vst [vmem:[%s4355_s11 + $0x30] sm:$0xff] %v318_v6  ;;  %v334_v14 = vld [vmem:[%s4350_s10 + $0xe0] sm:$0xff]  ;;  %v336_v15 = vld [vmem:[%s4350_s10 + $0xf0] sm:$0xff] }
  0x1d   : > { %321 = vst [vmem:[%s4355_s11 + $0x38] sm:$0xff] %v320_v7  ;;  %v338_v16 = vld [vmem:[%s4350_s10 + $0x100] sm:$0xff]  ;;  %v340_v17 = vld [vmem:[%s4350_s10 + $0x110] sm:$0xff] }
  0x1e   : > { %323 = vst [vmem:[%s4355_s11 + $0x40] sm:$0xff] %v322_v8  ;;  %v342_v18 = vld [vmem:[%s4350_s10 + $0x120] sm:$0xff]  ;;  %v344_v19 = vld [vmem:[%s4350_s10 + $0x130] sm:$0xff] }
  0x1f   : > { %325 = vst [vmem:[%s4355_s11 + $0x48] sm:$0xff] %v324_v9  ;;  %v346_v20 = vld [vmem:[%s4350_s10 + $0x140] sm:$0xff]  ;;  %v348_v21 = vld [vmem:[%s4350_s10 + $0x150] sm:$0xff] }
  0x20   : > { %327 = vst [vmem:[%s4355_s11 + $0x50] sm:$0xff] %v326_v10  ;;  %v350_v22 = vld [vmem:[%s4350_s10 + $0x160] sm:$0xff]  ;;  %v352_v23 = vld [vmem:[%s4350_s10 + $0x170] sm:$0xff] }
  0x21   : > { %329 = vst [vmem:[%s4355_s11 + $0x58] sm:$0xff] %v328_v11  ;;  %v354_v24 = vld [vmem:[%s4350_s10 + $0x180] sm:$0xff]  ;;  %v356_v25 = vld [vmem:[%s4350_s10 + $0x190] sm:$0xff] }
  0x22   : > { %331 = vst [vmem:[%s4355_s11 + $0x60] sm:$0xff] %v330_v12  ;;  %v358_v26 = vld [vmem:[%s4350_s10 + $0x1a0] sm:$0xff]  ;;  %v360_v27 = vld [vmem:[%s4350_s10 + $0x1b0] sm:$0xff] }
  0x23   : > { %333 = vst [vmem:[%s4355_s11 + $0x68] sm:$0xff] %v332_v13  ;;  %v362_v28 = vld [vmem:[%s4350_s10 + $0x1c0] sm:$0xff]  ;;  %v364_v29 = vld [vmem:[%s4350_s10 + $0x1d0] sm:$0xff] }
  0x24   : > { %335 = vst [vmem:[%s4355_s11 + $0x70] sm:$0xff] %v334_v14  ;;  %v366_v30 = vld [vmem:[%s4350_s10 + $0x1e0] sm:$0xff]  ;;  %v368_v31 = vld [vmem:[%s4350_s10 + $0x1f0] sm:$0xff] }
  0x25   : > { %337 = vst [vmem:[%s4355_s11 + $0x78] sm:$0xff] %v336_v15 }
  0x26   : > { %339 = vst [vmem:[%s4355_s11 + $0x80] sm:$0xff] %v338_v16 }
  0x27   : > { %341 = vst [vmem:[%s4355_s11 + $0x88] sm:$0xff] %v340_v17 }
  0x28   : > { %343 = vst [vmem:[%s4355_s11 + $0x90] sm:$0xff] %v342_v18 }
  0x29   : > { %345 = vst [vmem:[%s4355_s11 + $0x98] sm:$0xff] %v344_v19 }
  0x2a   : > { %347 = vst [vmem:[%s4355_s11 + $0xa0] sm:$0xff] %v346_v20 }
  0x2b   : > { %349 = vst [vmem:[%s4355_s11 + $0xa8] sm:$0xff] %v348_v21 }
  0x2c   : > { %351 = vst [vmem:[%s4355_s11 + $0xb0] sm:$0xff] %v350_v22 }
  0x2d   : > { %353 = vst [vmem:[%s4355_s11 + $0xb8] sm:$0xff] %v352_v23 }
  0x2e   : > { %355 = vst [vmem:[%s4355_s11 + $0xc0] sm:$0xff] %v354_v24 }
  0x2f   : > { %357 = vst [vmem:[%s4355_s11 + $0xc8] sm:$0xff] %v356_v25 }
  0x30   : > { %359 = vst [vmem:[%s4355_s11 + $0xd0] sm:$0xff] %v358_v26 }
  0x31   : > { %361 = vst [vmem:[%s4355_s11 + $0xd8] sm:$0xff] %v360_v27 }
  0x32   : > { %363 = vst [vmem:[%s4355_s11 + $0xe0] sm:$0xff] %v362_v28 }
  0x33   : > { %365 = vst [vmem:[%s4355_s11 + $0xe8] sm:$0xff] %v364_v29 }
  0x34   : > { %367 = vst [vmem:[%s4355_s11 + $0xf0] sm:$0xff] %v366_v30 }
  0x35   : > { %369 = vst [vmem:[%s4355_s11 + $0xf8] sm:$0xff] %v368_v31 }
  0x36 PF: > { %p3597_p7 = scmp.ge.s32.totalorder %s4259_s24, 1  ;;  %p392_p8 = scmp.lt.s32.totalorder %s4259_s24, 5 }
  0x38   : > { %p393_p9 = pnand %p3597_p7, %p392_p8 }
  0x3a   : > { %396 = sbr.rel (%p393_p9) target bundleno = 1152 (0x480), region = 74 }
  0x3f   : > { %s399_s12 = sand.u32 1, %s4235_s18   ;;  %s3599_s13 = sshll.u32 %s4247_s21, 4 }
  0x40   : > { %s3598_s14 = sshll.u32 %s399_s12, 8  ;;  %p444_p10 = scmp.lt.s32.totalorder %s3599_s13, 31 }
  0x41   : > { %s3602_s15 = sshll.u32 %s4243_s20, 1  ;;  %s3603_s16 = sshll.u32 %s4243_s20, 5 }
  0x42   : > { %s6895_s13 = smov (!%p444_p10, %s3599_s13), 31  ;;  %p452_p11 = scmp.lt.s32.totalorder %s3602_s15, 3 }
  0x43   : > { %s3966_s17 = sshll.u32 %s6895_s13, 4  ;;  %p457_p12 = scmp.lt.s32.totalorder %s3603_s16, 63 }
  0x44   : > { %s4427_s30 = scalar_lea.vmem %s6765_s0, %s3966_s17  ;;  %s4432_s8 = scalar_lea.vmem %s6770_s5, %s3966_s17 }
  0x45   : > { %s6897_s15 = smov (!%p452_p11, %s3602_s15), 3  ;;  %s6899_s16 = smov (!%p457_p12, %s3603_s16), 63 }
  0x46   : > { %s454_s9 = scalar_lea.vmem %s6767_s2, %s6897_s15  ;;  %s3967_s10 = sshll.u32 %s6899_s16, 3 }
  0x47   : > { %s4443_s13 = scalar_lea.vmem %s6768_s3, %s3967_s10  ;;  %s4445_s27 = scalar_lea.vmem [#allocation4], %s3598_s14 }
  0x48   : > { %p3609_p13 = scmp.ne.s32.totalorder %s4243_s20, 0 }
  0x4a   : > { %473 = sbr.rel (%p3609_p13) target bundleno = 414 (0x19e), region = 82 }
  0x4f   : > { %v4449_v32 = vld [vmem:[%s4427_s30 + $0x40] sm:$0xff]  ;;  %v4452_v33 = vld [vmem:[%s4427_s30 + $0x48] sm:$0xff]  ;;  %v4473_v41 = vld [vmem:[%s4427_s30 + $0x50] sm:$0xff]  ;;  %v4261_v16 = vmov 256.0  }
  0x50   : > { %v4455_v34 = vld [vmem:[%s4427_s30 + $0x20] sm:$0xff]  ;;  %v518_v35 = vadd.f32 %v4452_v33, %v4449_v32  ;;  %v4460_v36 = vld [vmem:[%s4427_s30 + $0x28] sm:$0xff]  ;;  %v4476_v42 = vld [vmem:[%s4427_s30 + $0x58] sm:$0xff]  ;;  %4107 = vrcp.f32 %v4261_v16 }
  0x51   : > { %v4463_v37 = vld [vmem:[%s4427_s30] sm:$0xff]  ;;  %v4466_v38 = vld [vmem:[%s4427_s30 + $0x8] sm:$0xff]  ;;  %v512_v39 = vadd.f32 %v4460_v36, %v4455_v34  ;;  %v4479_v43 = vld [vmem:[%s4427_s30 + $0x30] sm:$0xff]  ;;  %v521_v47 = vadd.f32 %v4476_v42, %v4473_v41 }
  0x52   : > { %v506_v40 = vadd.f32 %v4466_v38, %v4463_v37  ;;  %519 = vadd.xlane.f32.xlu2 %v518_v35  ;;  %v4482_v44 = vld [vmem:[%s4427_s30 + $0x38] sm:$0xff]  ;;  %v4485_v45 = vld [vmem:[%s4427_s30 + $0x10] sm:$0xff]  ;;  %v4497_v50 = vld [vmem:[%s4427_s30 + $0x80] sm:$0xff] }
  0x53   : > { %513 = vadd.xlane.f32.xlu1 %v512_v39  ;;  %v4488_v46 = vld [vmem:[%s4427_s30 + $0x18] sm:$0xff]  ;;  %v515_v48 = vadd.f32 %v4482_v44, %v4479_v43  ;;  %v4500_v51 = vld [vmem:[%s4427_s30 + $0x88] sm:$0xff]  ;;  %v4503_v52 = vld [vmem:[%s4427_s30 + $0x60] sm:$0xff] }
  0x54   : > { %507 = vadd.xlane.f32.xlu0 %v506_v40  ;;  %v509_v49 = vadd.f32 %v4488_v46, %v4485_v45  ;;  %v4506_v53 = vld [vmem:[%s4427_s30 + $0x68] sm:$0xff]  ;;  %v4509_v54 = vld [vmem:[%s4427_s30 + $0x70] sm:$0xff]  ;;  %v4512_v55 = vld [vmem:[%s4427_s30 + $0x78] sm:$0xff]  ;;  %v530_v56 = vadd.f32 %v4500_v51, %v4497_v50 }
  0x55   : > { %v524_v57 = vadd.f32 %v4506_v53, %v4503_v52  ;;  %v527_v58 = vadd.f32 %v4512_v55, %v4509_v54  ;;  %v4521_v59 = vld [vmem:[%s4427_s30 + $0xb0] sm:$0xff]  ;;  %v4524_v60 = vld [vmem:[%s4427_s30 + $0xb8] sm:$0xff]  ;;  %v4533_v63 = vld [vmem:[%s4427_s30 + $0xa0] sm:$0xff] }
  0x56   : > { %v4527_v61 = vld [vmem:[%s4427_s30 + $0x90] sm:$0xff]  ;;  %v4530_v62 = vld [vmem:[%s4427_s30 + $0x98] sm:$0xff]  ;;  %v4536_v0 = vld [vmem:[%s4427_s30 + $0xa8] sm:$0xff]  ;;  %v539_v1 = vadd.f32 %v4524_v60, %v4521_v59  ;;  %v4108_v17 = vpop.eup %4107 }
  0x57   : > { %v533_v2 = vadd.f32 %v4530_v62, %v4527_v61  ;;  %v536_v3 = vadd.f32 %v4536_v0, %v4533_v63  ;;  %v4545_v4 = vld [vmem:[%s4427_s30 + $0xe0] sm:$0xff]  ;;  %v4548_v5 = vld [vmem:[%s4427_s30 + $0xe8] sm:$0xff]  ;;  %v4557_v8 = vld [vmem:[%s4427_s30 + $0xd0] sm:$0xff]  ;;  %v555_v18 = vmul.f32 256.0, %v4108_v17  ;;  %vm559_vm0 = vweird.f32 %v4108_v17 }
  0x58   : > { %v4551_v6 = vld [vmem:[%s4427_s30 + $0xc0] sm:$0xff]  ;;  %v4554_v7 = vld [vmem:[%s4427_s30 + $0xc8] sm:$0xff]  ;;  %v4560_v9 = vld [vmem:[%s4427_s30 + $0xd8] sm:$0xff]  ;;  %v548_v10 = vadd.f32 %v4548_v5, %v4545_v4 }
  0x59   : > { %v542_v11 = vadd.f32 %v4554_v7, %v4551_v6  ;;  %v545_v12 = vadd.f32 %v4560_v9, %v4557_v8  ;;  %v4569_v13 = vld [vmem:[%s4427_s30 + $0xf0] sm:$0xff]  ;;  %v4572_v14 = vld [vmem:[%s4427_s30 + $0xf8] sm:$0xff]  ;;  %v556_v19 = vsub.f32 1.0, %v555_v18 }
  0x5a   : > { %522 = vadd.xlane.f32.xlu2 %v521_v47  ;;  %v551_v15 = vadd.f32 %v4572_v14, %v4569_v13 }
  0x5b   : > { %516 = vadd.xlane.f32.xlu1 %v515_v48  ;;  %v557_v20 = vmul.f32 %v4108_v17, %v556_v19 }
  0x5c   : > { %510 = vadd.xlane.f32.xlu0 %v509_v49 }
  0x5d   : > { %v558_v21 = vadd.f32 %v4108_v17, %v557_v20 }
  0x5f   : > { %v4576_v22 = vsel %vm559_vm0, %v4108_v17, %v558_v21 }
  0x62   : > { %531 = vadd.xlane.f32.xlu2 %v530_v56 }
  0x63   : > { %528 = vadd.xlane.f32.xlu1 %v527_v58 }
  0x64   : > { %525 = vadd.xlane.f32.xlu0 %v524_v57 }
  0x6a   : > { %540 = vadd.xlane.f32.xlu2 %v539_v1 }
  0x6b   : > { %537 = vadd.xlane.f32.xlu1 %v536_v3 }
  0x6c   : > { %534 = vadd.xlane.f32.xlu0 %v533_v2 }
  0x72   : > { %549 = vadd.xlane.f32.xlu2 %v548_v10 }
  0x73   : > { %546 = vadd.xlane.f32.xlu1 %v545_v12 }
  0x74   : > { %543 = vadd.xlane.f32.xlu0 %v542_v11 }
  0x7c   : > { %552 = vadd.xlane.f32.xlu0 %v551_v15 }
  0xc5   : > { %v520_v23 = vpop.xlane.xlu2 %519 }
  0xc6   : > { %v514_v24 = vpop.xlane.xlu1 %513  ;;  %v565_v12 = vmul.f32 %v4576_v22, %v520_v23 }
  0xc7   : > { %v508_v25 = vpop.xlane.xlu0 %507  ;;  %v563_v26 = vmul.f32 %v4576_v22, %v514_v24 }
  0xc8   : > { %v561_v27 = vmul.f32 %v4576_v22, %v508_v25  ;;  %v4635_v19 = vsub.f32 %v4449_v32, %v565_v12  ;;  %v4638_v20 = vsub.f32 %v4452_v33, %v565_v12 }
  0xc9   : > { %v4581_v28 = vsub.f32 %v4455_v34, %v563_v26  ;;  %v4584_v29 = vsub.f32 %v4460_v36, %v563_v26 }
  0xca   : > { %v4587_v30 = vsub.f32 %v4463_v37, %v561_v27  ;;  %v4590_v31 = vsub.f32 %v4466_v38, %v561_v27 }
  0xcb   : > { %v613_v35 = vmul.f32 %v4581_v28, %v4581_v28  ;;  %v614_v39 = vmul.f32 %v4584_v29, %v4584_v29 }
  0xcc   : > { %v609_v40 = vmul.f32 %v4587_v30, %v4587_v30  ;;  %v610_v34 = vmul.f32 %v4590_v31, %v4590_v31 }
  0xcd   : > { %v523_v36 = vpop.xlane.xlu2 %522  ;;  %v647_v47 = vadd.f32 %v614_v39, %v613_v35 }
  0xce   : > { %v641_v48 = vadd.f32 %v610_v34, %v609_v40  ;;  %v566_v37 = vmul.f32 %v4576_v22, %v523_v36  ;;  %v517_v49 = vpop.xlane.xlu1 %516 }
  0xcf   : > { %v511_v38 = vpop.xlane.xlu0 %510  ;;  %v564_v56 = vmul.f32 %v4576_v22, %v517_v49  ;;  %648 = vadd.xlane.f32.xlu0 %v647_v47 }
  0xd0   : > { %v562_v57 = vmul.f32 %v4576_v22, %v511_v38  ;;  %642 = vadd.xlane.f32.xlu1 %v641_v48  ;;  %v4604_v58 = vsub.f32 %v4473_v41, %v566_v37  ;;  %v4607_v1 = vsub.f32 %v4476_v42, %v566_v37 }
  0xd1   : > { %v4610_v2 = vsub.f32 %v4479_v43, %v564_v56  ;;  %v4613_v3 = vsub.f32 %v4482_v44, %v564_v56 }
  0xd2   : > { %v4616_v10 = vsub.f32 %v4485_v45, %v562_v57  ;;  %v4619_v11 = vsub.f32 %v4488_v46, %v562_v57  ;;  %v619_v41 = vmul.f32 %v4604_v58, %v4604_v58  ;;  %v620_v42 = vmul.f32 %v4607_v1, %v4607_v1 }
  0xd3   : > { %v615_v43 = vmul.f32 %v4610_v2, %v4610_v2  ;;  %v616_v44 = vmul.f32 %v4613_v3, %v4613_v3 }
  0xd4   : > { %v611_v45 = vmul.f32 %v4616_v10, %v4616_v10  ;;  %v612_v46 = vmul.f32 %v4619_v11, %v4619_v11  ;;  %v656_v15 = vadd.f32 %v620_v42, %v619_v41 }
  0xd5   : > { %v532_v16 = vpop.xlane.xlu2 %531  ;;  %v650_v17 = vadd.f32 %v616_v44, %v615_v43 }
  0xd6   : > { %v644_v18 = vadd.f32 %v612_v46, %v611_v45  ;;  %v569_v21 = vmul.f32 %v4576_v22, %v532_v16  ;;  %v529_v24 = vpop.xlane.xlu1 %528 }
  0xd7   : > { %v526_v23 = vpop.xlane.xlu0 %525  ;;  %657 = vadd.xlane.f32.xlu0 %v656_v15  ;;  %v568_v32 = vmul.f32 %v4576_v22, %v529_v24 }
  0xd8   : > { %v567_v25 = vmul.f32 %v4576_v22, %v526_v23  ;;  %651 = vadd.xlane.f32.xlu1 %v650_v17  ;;  %v4643_v26 = vsub.f32 %v4497_v50, %v569_v21  ;;  %v4646_v27 = vsub.f32 %v4500_v51, %v569_v21  ;;  %645 = vadd.xlane.f32.xlu2 %v644_v18 }
  0xd9   : > { %v617_v50 = vmul.f32 %v4635_v19, %v4635_v19  ;;  %v618_v51 = vmul.f32 %v4638_v20, %v4638_v20  ;;  %v4671_v36 = vsub.f32 %v4512_v55, %v568_v32 }
  0xda   : > { %v4650_v33 = vsub.f32 %v4503_v52, %v567_v25  ;;  %v4653_v35 = vsub.f32 %v4506_v53, %v567_v25  ;;  %v625_v39 = vmul.f32 %v4643_v26, %v4643_v26  ;;  %v626_v40 = vmul.f32 %v4646_v27, %v4646_v27 }
  0xdb   : > { %v4668_v53 = vsub.f32 %v4509_v54, %v568_v32  ;;  %v653_v56 = vadd.f32 %v618_v51, %v617_v50  ;;  %v624_v43 = vmul.f32 %v4671_v36, %v4671_v36 }
  0xdc   : > { %v621_v34 = vmul.f32 %v4650_v33, %v4650_v33  ;;  %v622_v52 = vmul.f32 %v4653_v35, %v4653_v35  ;;  %v665_v47 = vadd.f32 %v626_v40, %v625_v39 }
  0xdd   : > { %v541_v48 = vpop.xlane.xlu2 %540  ;;  %v623_v42 = vmul.f32 %v4668_v53, %v4668_v53 }
  0xde   : > { %v659_v37 = vadd.f32 %v622_v52, %v621_v34  ;;  %v572_v49 = vmul.f32 %v4576_v22, %v541_v48  ;;  %v538_v57 = vpop.xlane.xlu1 %537 }
  0xdf   : > { %v535_v38 = vpop.xlane.xlu0 %534  ;;  %666 = vadd.xlane.f32.xlu0 %v665_v47  ;;  %v571_v41 = vmul.f32 %v4576_v22, %v538_v57  ;;  %v662_v17 = vadd.f32 %v624_v43, %v623_v42 }
  0xe0   : > { %v570_v12 = vmul.f32 %v4576_v22, %v535_v38  ;;  %660 = vadd.xlane.f32.xlu1 %v659_v37  ;;  %v4677_v54 = vsub.f32 %v4521_v59, %v572_v49  ;;  %v4680_v55 = vsub.f32 %v4524_v60, %v572_v49  ;;  %654 = vadd.xlane.f32.xlu2 %v653_v56 }
  0xe1   : > { %v4697_v46 = vsub.f32 %v4533_v63, %v571_v41 }
  0xe2   : > { %v4687_v44 = vsub.f32 %v4527_v61, %v570_v12  ;;  %v4690_v45 = vsub.f32 %v4530_v62, %v570_v12  ;;  %v631_v59 = vmul.f32 %v4677_v54, %v4677_v54  ;;  %v632_v60 = vmul.f32 %v4680_v55, %v4680_v55 }
  0xe3   : > { %v4704_v61 = vsub.f32 %v4536_v0, %v571_v41  ;;  %v629_v32 = vmul.f32 %v4697_v46, %v4697_v46 }
  0xe4   : > { %v627_v15 = vmul.f32 %v4687_v44, %v4687_v44  ;;  %v628_v16 = vmul.f32 %v4690_v45, %v4690_v45  ;;  %v674_v62 = vadd.f32 %v632_v60, %v631_v59 }
  0xe5   : > { %v550_v18 = vpop.xlane.xlu2 %549  ;;  %v630_v50 = vmul.f32 %v4704_v61, %v4704_v61 }
  0xe6   : > { %v668_v21 = vadd.f32 %v628_v16, %v627_v15  ;;  %v575_v23 = vmul.f32 %v4576_v22, %v550_v18  ;;  %v547_v25 = vpop.xlane.xlu1 %546 }
  0xe7   : > { %v544_v24 = vpop.xlane.xlu0 %543  ;;  %675 = vadd.xlane.f32.xlu0 %v674_v62  ;;  %v574_v40 = vmul.f32 %v4576_v22, %v547_v25  ;;  %v671_v37 = vadd.f32 %v630_v50, %v629_v32 }
  0xe8   : > { %v573_v63 = vmul.f32 %v4576_v22, %v544_v24  ;;  %669 = vadd.xlane.f32.xlu1 %v668_v21  ;;  %v4711_v39 = vsub.f32 %v4545_v4, %v575_v23  ;;  %v4714_v0 = vsub.f32 %v4548_v5, %v575_v23  ;;  %663 = vadd.xlane.f32.xlu2 %v662_v17 }
  0xe9   : > { %v4734_v48 = vsub.f32 %v4557_v8, %v574_v40 }
  0xea   : > { %v4720_v51 = vsub.f32 %v4551_v6, %v573_v63  ;;  %v4723_v34 = vsub.f32 %v4554_v7, %v573_v63  ;;  %v637_v52 = vmul.f32 %v4711_v39, %v4711_v39  ;;  %v638_v4 = vmul.f32 %v4714_v0, %v4714_v0 }
  0xeb   : > { %v4737_v6 = vsub.f32 %v4560_v9, %v574_v40  ;;  %v635_v57 = vmul.f32 %v4734_v48, %v4734_v48 }
  0xec   : > { %v633_v5 = vmul.f32 %v4720_v51, %v4720_v51  ;;  %v634_v47 = vmul.f32 %v4723_v34, %v4723_v34  ;;  %v683_v7 = vadd.f32 %v638_v4, %v637_v52 }
  0xed   : > { %v636_v12 = vmul.f32 %v4737_v6, %v4737_v6 }
  0xee   : > { %v677_v49 = vadd.f32 %v634_v47, %v633_v5 }
  0xef   : > { %v553_v38 = vpop.xlane.xlu0 %552  ;;  %684 = vadd.xlane.f32.xlu0 %v683_v7  ;;  %v680_v43 = vadd.f32 %v636_v12, %v635_v57 }
  0xf0   : > { %v576_v56 = vmul.f32 %v4576_v22, %v553_v38  ;;  %678 = vadd.xlane.f32.xlu1 %v677_v49  ;;  %672 = vadd.xlane.f32.xlu2 %v671_v37 }
  0xf2   : > { %v4745_v8 = vsub.f32 %v4569_v13, %v576_v56  ;;  %v4748_v9 = vsub.f32 %v4572_v14, %v576_v56 }
  0xf4   : > { %v639_v41 = vmul.f32 %v4745_v8, %v4745_v8  ;;  %v640_v42 = vmul.f32 %v4748_v9, %v4748_v9 }
  0xf6   : > { %v686_v59 = vadd.f32 %v640_v42, %v639_v41 }
  0xf8   : > { %687 = vadd.xlane.f32.xlu1 %v686_v59  ;;  %681 = vadd.xlane.f32.xlu2 %v680_v43 }
 0x142   : > { %v649_v15 = vpop.xlane.xlu0 %648 }
 0x143   : > { %v643_v60 = vpop.xlane.xlu1 %642  ;;  %v691_v13 = vmul.f32 %v649_v15, %v4576_v22 }
 0x144   : > { %v689_v16 = vmul.f32 %v643_v60, %v4576_v22 }
 0x145   : > { %v707_v17 = vadd.f32 1e-05, %v691_v13 }
 0x146   : > { %v705_v62 = vadd.f32 1e-05, %v689_v16 }
 0x147   : > { %vm747_vm4 = vweird.f32 %v707_v17 }
 0x148   : > { %4109 = vrsqrt.f32 %v705_v62  ;;  %vm727_vm2 = vweird.f32 %v705_v62 }
 0x149   : > { %4111 = vrsqrt.f32 %v707_v17 }
 0x14a   : > { %v658_v18 = vpop.xlane.xlu0 %657 }
 0x14b   : > { %v652_v14 = vpop.xlane.xlu1 %651  ;;  %v646_v23 = vpop.xlane.xlu2 %645  ;;  %v694_v24 = vmul.f32 %v658_v18, %v4576_v22 }
 0x14c   : > { %v692_v21 = vmul.f32 %v652_v14, %v4576_v22  ;;  %v690_v25 = vmul.f32 %v646_v23, %v4576_v22 }
 0x14d   : > { %v4761_v40 = vadd.f32 1e-05, %v694_v24 }
 0x14e   : > { %v4110_v63 = vpop.eup %4109  ;;  %v4759_v32 = vadd.f32 1e-05, %v692_v21  ;;  %v4763_v4 = vadd.f32 1e-05, %v690_v25 }
 0x14f   : > { %v4112_v50 = vpop.eup %4111  ;;  %v722_v52 = vmul.f32 %v4110_v63, %v705_v62  ;;  %vm728_vm1 = vweird.f32 %v4110_v63  ;;  %vm777_vm8 = vweird.f32 %v4761_v40 }
 0x150   : > { %v742_v5 = vmul.f32 %v4112_v50, %v707_v17  ;;  %4113 = vrsqrt.f32 %v4759_v32  ;;  %vm748_vm3 = vweird.f32 %v4112_v50  ;;  %vm757_vm5 = vweird.f32 %v4759_v32  ;;  %vm729_vm6 = vmor %vm727_vm2, %vm728_vm1 }
 0x151   : > { %v723_v47 = vmul.f32 %v4110_v63, %v722_v52  ;;  %4115 = vrsqrt.f32 %v4763_v4  ;;  %vm749_vm7 = vmor %vm747_vm4, %vm748_vm3  ;;  %vm737_vm13 = vweird.f32 %v4763_v4 }
 0x152   : > { %v743_v7 = vmul.f32 %v4112_v50, %v742_v5  ;;  %4117 = vrsqrt.f32 %v4761_v40  ;;  %v667_v38 = vpop.xlane.xlu0 %666 }
 0x153   : > { %v724_v37 = vmul.f32 0.5, %v723_v47  ;;  %v661_v49 = vpop.xlane.xlu1 %660  ;;  %v655_v57 = vpop.xlane.xlu2 %654  ;;  %v697_v43 = vmul.f32 %v667_v38, %v4576_v22 }
 0x154   : > { %v744_v56 = vmul.f32 0.5, %v743_v7  ;;  %v695_v12 = vmul.f32 %v661_v49, %v4576_v22  ;;  %v693_v42 = vmul.f32 %v655_v57, %v4576_v22 }
 0x155   : > { %v725_v41 = vsub.f32 1.5, %v724_v37  ;;  %v4780_v5 = vadd.f32 1e-05, %v697_v43 }
 0x156   : > { %v4114_v59 = vpop.eup %4113  ;;  %v745_v60 = vsub.f32 1.5, %v744_v56  ;;  %v4771_v15 = vadd.f32 1e-05, %v695_v12  ;;  %v4776_v24 = vadd.f32 1e-05, %v693_v42 }
 0x157   : > { %v4116_v16 = vpop.eup %4115  ;;  %v726_v13 = vmul.f32 %v4110_v63, %v725_v41  ;;  %v752_v14 = vmul.f32 %v4114_v59, %v4759_v32  ;;  %vm758_vm9 = vweird.f32 %v4114_v59 }
 0x158   : > { %v4118_v18 = vpop.eup %4117  ;;  %v746_v21 = vmul.f32 %v4112_v50, %v745_v60  ;;  %v732_v23 = vmul.f32 %v4116_v16, %v4763_v4  ;;  %4119 = vrsqrt.f32 %v4771_v15  ;;  %vm738_vm10 = vweird.f32 %v4116_v16  ;;  %vm759_vm12 = vmor %vm757_vm5, %vm758_vm9 }
 0x159   : > { %v730_v62 = vsel %vm729_vm6, %v4110_v63, %v726_v13  ;;  %v753_v25 = vmul.f32 %v4114_v59, %v752_v14  ;;  %v772_v52 = vmul.f32 %v4118_v18, %v4761_v40  ;;  %4121 = vrsqrt.f32 %v4776_v24  ;;  %vm739_vm14 = vmor %vm737_vm13, %vm738_vm10 }
 0x15a   : > { %v881_v17 = vmul.f32 %v730_v62, %v4587_v30  ;;  %v882_v47 = vmul.f32 %v730_v62, %v4590_v31  ;;  %v750_v7 = vsel %vm749_vm7, %v4112_v50, %v746_v21  ;;  %v733_v37 = vmul.f32 %v4116_v16, %v732_v23  ;;  %v676_v60 = vpop.xlane.xlu0 %675 }
 0x15b   : > { %v885_v49 = vmul.f32 %v750_v7, %v4581_v28  ;;  %v886_v38 = vmul.f32 %v750_v7, %v4584_v29  ;;  %v754_v56 = vmul.f32 0.5, %v753_v25  ;;  %v773_v57 = vmul.f32 %v4118_v18, %v772_v52  ;;  %v670_v12 = vpop.xlane.xlu1 %669  ;;  %v664_v42 = vpop.xlane.xlu2 %663 }
 0x15c   : > { %v913_v63 = vpack.c.bf16 %v882_v47, %v881_v17  ;;  %v734_v41 = vmul.f32 0.5, %v733_v37  ;;  %4123 = vrsqrt.f32 %v4780_v5  ;;  %v696_v29 = vmul.f32 %v664_v42, %v4576_v22 }
 0x15d   : > { %v915_v43 = vpack.c.bf16 %v886_v38, %v885_v49  ;;  %v755_v30 = vsub.f32 1.5, %v754_v56  ;;  %v774_v31 = vmul.f32 0.5, %v773_v57  ;;  %vm778_vm11 = vweird.f32 %v4118_v18 }
 0x15e   : > { %v4788_v50 = vpop.eup %4119  ;;  %929 = vst [vmem:[#allocation2] sm:$0xff] %v913_v63  ;;  %v735_v28 = vsub.f32 1.5, %v734_v41  ;;  %v4797_v62 = vadd.f32 1e-05, %v696_v29  ;;  %v698_v25 = vmul.f32 %v670_v12, %v4576_v22  ;;  %v700_v7 = vmul.f32 %v676_v60, %v4576_v22  ;;  %vm779_vm15 = vmor %vm777_vm8, %vm778_vm11 }
 0x15f   : > { %931 = vst [vmem:[#allocation2 + $0x10] sm:$0xff] %v915_v43  ;;  %v756_v13 = vmul.f32 %v4114_v59, %v755_v30  ;;  %v775_v14 = vsub.f32 1.5, %v774_v31  ;;  %v782_v21 = vmul.f32 %v4788_v50, %v4771_v15  ;;  %v4122_v37 = vpop.eup %4121  ;;  %vm767_vm0 = vweird.f32 %v4776_v24 }
 0x160   : > { %v736_v23 = vmul.f32 %v4116_v16, %v735_v28  ;;  %4125 = vrsqrt.f32 %v4797_v62  ;;  %v762_v57 = vmul.f32 %v4122_v37, %v4776_v24  ;;  %vm787_vm1 = vweird.f32 %v4771_v15 }
 0x161   : > { %v760_v52 = vsel %vm759_vm12, %v4114_v59, %v756_v13  ;;  %v776_v17 = vmul.f32 %v4118_v18, %v775_v14  ;;  %v783_v47 = vmul.f32 %v4788_v50, %v782_v21  ;;  %vm788_vm2 = vweird.f32 %v4788_v50 }
 0x162   : > { %v887_v49 = vmul.f32 %v760_v52, %v4610_v2  ;;  %v888_v32 = vmul.f32 %v760_v52, %v4613_v3  ;;  %v740_v38 = vsel %vm739_vm14, %v4116_v16, %v736_v23  ;;  %v4124_v12 = vpop.eup %4123  ;;  %v763_v40 = vmul.f32 %v4122_v37, %v762_v57  ;;  %vm789_vm4 = vmor %vm787_vm1, %vm788_vm2 }
 0x163   : > { %v883_v4 = vmul.f32 %v740_v38, %v4616_v10  ;;  %v884_v59 = vmul.f32 %v740_v38, %v4619_v11  ;;  %v780_v56 = vsel %vm779_vm15, %v4118_v18, %v776_v17  ;;  %v784_v41 = vmul.f32 0.5, %v783_v47  ;;  %v673_v43 = vpop.xlane.xlu2 %672  ;;  %v679_v10 = vpop.xlane.xlu1 %678 }
 0x164   : > { %v916_v63 = vpack.c.bf16 %v888_v32, %v887_v49  ;;  %v891_v2 = vmul.f32 %v780_v56, %v4604_v58  ;;  %v892_v3 = vmul.f32 %v780_v56, %v4607_v1  ;;  %v802_v42 = vmul.f32 %v4124_v12, %v4780_v5  ;;  %v685_v49 = vpop.xlane.xlu0 %684 }
 0x165   : > { %v914_v16 = vpack.c.bf16 %v884_v59, %v883_v4  ;;  %v4818_v18 = vadd.f32 1e-05, %v698_v25  ;;  %v764_v58 = vmul.f32 0.5, %v763_v40  ;;  %v785_v1 = vsub.f32 1.5, %v784_v41 }
 0x166   : > { %932 = vst [vmem:[#allocation2 + $0x18] sm:$0xff] %v916_v63  ;;  %v918_v11 = vpack.c.bf16 %v892_v3, %v891_v2  ;;  %v803_v30 = vmul.f32 %v4124_v12, %v802_v42  ;;  %v4820_v31 = vadd.f32 1e-05, %v700_v7  ;;  %v4126_v28 = vpop.eup %4125  ;;  %vm768_vm3 = vweird.f32 %v4122_v37 }
 0x167   : > { %930 = vst [vmem:[#allocation2 + $0x8] sm:$0xff] %v914_v16  ;;  %4127 = vrsqrt.f32 %v4818_v18  ;;  %v699_v29 = vmul.f32 %v673_v43, %v4576_v22  ;;  %v701_v60 = vmul.f32 %v679_v10, %v4576_v22  ;;  %v765_v13 = vsub.f32 1.5, %v764_v58  ;;  %vm769_vm7 = vmor %vm767_vm0, %vm768_vm3 }
 0x168   : > { %934 = vst [vmem:[#allocation2 + $0x28] sm:$0xff] %v918_v11  ;;  %v786_v14 = vmul.f32 %v4788_v50, %v785_v1  ;;  %v804_v21 = vmul.f32 0.5, %v803_v30  ;;  %v792_v23 = vmul.f32 %v4126_v28, %v4797_v62  ;;  %vm807_vm5 = vweird.f32 %v4780_v5 }
 0x169   : > { %vm808_vm6 = vweird.f32 %v4124_v12  ;;  %4129 = vrsqrt.f32 %v4820_v31  ;;  %v4833_v25 = vadd.f32 1e-05, %v699_v29  ;;  %v766_v52 = vmul.f32 %v4122_v37, %v765_v13 }
 0x16a   : > { %v790_v17 = vsel %vm789_vm4, %v4788_v50, %v786_v14  ;;  %v805_v47 = vsub.f32 1.5, %v804_v21  ;;  %v793_v7 = vmul.f32 %v4126_v28, %v792_v23  ;;  %vm797_vm8 = vweird.f32 %v4797_v62  ;;  %vm809_vm9 = vmor %vm807_vm5, %vm808_vm6 }
 0x16b   : > { %v893_v15 = vmul.f32 %v790_v17, %v4650_v33  ;;  %v894_v32 = vmul.f32 %v790_v17, %v4653_v35  ;;  %4131 = vrsqrt.f32 %v4833_v25  ;;  %v770_v38 = vsel %vm769_vm7, %v4122_v37, %v766_v52  ;;  %v682_v3 = vpop.xlane.xlu2 %681  ;;  %v688_v30 = vpop.xlane.xlu1 %687 }
 0x16c   : > { %v806_v4 = vmul.f32 %v4124_v12, %v805_v47  ;;  %v794_v59 = vmul.f32 0.5, %v793_v7  ;;  %v4843_v56 = vadd.f32 1e-05, %v701_v60  ;;  %v889_v57 = vmul.f32 %v770_v38, %v4635_v19 }
 0x16d   : > { %v4128_v50 = vpop.eup %4127  ;;  %v890_v63 = vmul.f32 %v770_v38, %v4638_v20  ;;  %v919_v24 = vpack.c.bf16 %v894_v32, %v893_v15  ;;  %v703_v33 = vmul.f32 %v685_v49, %v4576_v22  ;;  %vm798_vm10 = vweird.f32 %v4126_v28 }
 0x16e   : > { %v810_v35 = vsel %vm809_vm9, %v4124_v12, %v806_v4  ;;  %v795_v2 = vsub.f32 1.5, %v794_v59  ;;  %v812_v37 = vmul.f32 %v4128_v50, %v4818_v18  ;;  %4133 = vrsqrt.f32 %v4843_v56  ;;  %vm799_vm12 = vmor %vm797_vm8, %vm798_vm10 }
 0x16f   : > { %v4130_v16 = vpop.eup %4129  ;;  %v917_v40 = vpack.c.bf16 %v890_v63, %v889_v57  ;;  %935 = vst [vmem:[#allocation2 + $0x30] sm:$0xff] %v919_v24  ;;  %v897_v19 = vmul.f32 %v810_v35, %v4643_v26  ;;  %v898_v20 = vmul.f32 %v810_v35, %v4646_v27  ;;  %vm817_vm11 = vweird.f32 %v4818_v18 }
 0x170   : > { %v796_v41 = vmul.f32 %v4126_v28, %v795_v2  ;;  %v813_v5 = vmul.f32 %v4128_v50, %v812_v37  ;;  %v832_v12 = vmul.f32 %v4130_v16, %v4820_v31  ;;  %vm837_vm13 = vweird.f32 %v4820_v31 }
 0x171   : > { %v4132_v42 = vpop.eup %4131  ;;  %933 = vst [vmem:[#allocation2 + $0x20] sm:$0xff] %v917_v40  ;;  %v921_v43 = vpack.c.bf16 %v898_v20, %v897_v19  ;;  %v4861_v26 = vadd.f32 1e-05, %v703_v33  ;;  %v702_v27 = vmul.f32 %v682_v3, %v4576_v22  ;;  %vm818_vm14 = vweird.f32 %v4128_v50 }
 0x172   : > { %v800_v10 = vsel %vm799_vm12, %v4126_v28, %v796_v41  ;;  %v814_v11 = vmul.f32 0.5, %v813_v5  ;;  %v833_v58 = vmul.f32 %v4130_v16, %v832_v12  ;;  %v822_v1 = vmul.f32 %v4132_v42, %v4833_v25  ;;  %vm819_vm0 = vmor %vm817_vm11, %vm818_vm14 }
 0x173   : > { %937 = vst [vmem:[#allocation2 + $0x40] sm:$0xff] %v921_v43  ;;  %v895_v29 = vmul.f32 %v800_v10, %v4668_v53  ;;  %v896_v60 = vmul.f32 %v800_v10, %v4671_v36  ;;  %4135 = vrsqrt.f32 %v4861_v26  ;;  %vm838_vm15 = vweird.f32 %v4130_v16 }
 0x174   : > { %v815_v62 = vsub.f32 1.5, %v814_v11  ;;  %v834_v13 = vmul.f32 0.5, %v833_v58  ;;  %v823_v14 = vmul.f32 %v4132_v42, %v822_v1  ;;  %v4134_v21 = vpop.eup %4133  ;;  %v4868_v28 = vadd.f32 1e-05, %v702_v27  ;;  %vm839_vm2 = vmor %vm837_vm13, %vm838_vm15 }
 0x175   : > { %v920_v23 = vpack.c.bf16 %v896_v60, %v895_v29  ;;  %v704_v52 = vmul.f32 %v688_v30, %v4576_v22  ;;  %v842_v53 = vmul.f32 %v4134_v21, %v4843_v56  ;;  %v4262_v49 = vmov 0.0  }
 0x176   : > { %v816_v17 = vmul.f32 %v4128_v50, %v815_v62  ;;  %v835_v47 = vsub.f32 1.5, %v834_v13  ;;  %v824_v7 = vmul.f32 0.5, %v823_v14  ;;  %945 = vst [vmem:[#allocation3 + $0xb0] sm:$0xff] %v4262_v49  ;;  %vm828_vm1 = vweird.f32 %v4132_v42 }
 0x177   : > { %936 = vst [vmem:[#allocation2 + $0x38] sm:$0xff] %v920_v23  ;;  %4137 = vrsqrt.f32 %v4868_v28  ;;  %v4877_v36 = vadd.f32 1e-05, %v704_v52  ;;  %v843_v38 = vmul.f32 %v4134_v21, %v842_v53  ;;  %vm827_vm3 = vweird.f32 %v4833_v25 }
 0x178   : > { %v820_v15 = vsel %vm819_vm0, %v4128_v50, %v816_v17  ;;  %v836_v22 = vmul.f32 %v4130_v16, %v835_v47  ;;  %v825_v32 = vsub.f32 1.5, %v824_v7  ;;  %946 = vst [vmem:[#allocation3] sm:$0xff] %v4262_v49  ;;  %vm829_vm4 = vmor %vm827_vm3, %vm828_vm1  ;;  %vm848_vm5 = vweird.f32 %v4134_v21 }
 0x179   : > { %v4136_v4 = vpop.eup %4135  ;;  %v899_v59 = vmul.f32 %v820_v15, %v4687_v44  ;;  %v900_v57 = vmul.f32 %v820_v15, %v4690_v45  ;;  %4139 = vrsqrt.f32 %v4877_v36  ;;  %947 = vst [vmem:[#allocation3 + $0xd8] sm:$0xff] %v4262_v49  ;;  %v844_v63 = vmul.f32 0.5, %v843_v38 }
 0x17a   : > { %v840_v18 = vsel %vm839_vm2, %v4130_v16, %v836_v22  ;;  %v826_v50 = vmul.f32 %v4132_v42, %v825_v32  ;;  %v862_v24 = vmul.f32 %v4136_v4, %v4861_v26  ;;  %948 = vst [vmem:[#allocation3 + $0x18] sm:$0xff] %v4262_v49  ;;  %vm847_vm6 = vweird.f32 %v4843_v56 }
 0x17b   : > { %v922_v44 = vpack.c.bf16 %v900_v57, %v899_v59  ;;  %v903_v45 = vmul.f32 %v840_v18, %v4677_v54  ;;  %v904_v33 = vmul.f32 %v840_v18, %v4680_v55  ;;  %949 = vst [vmem:[#allocation3 + $0x50] sm:$0xff] %v4262_v49  ;;  %v845_v25 = vsub.f32 1.5, %v844_v63  ;;  %vm849_vm7 = vmor %vm847_vm6, %vm848_vm5 }
 0x17c   : > { %v830_v31 = vsel %vm829_vm4, %v4132_v42, %v826_v50  ;;  %v863_v35 = vmul.f32 %v4136_v4, %v862_v24  ;;  %950 = vst [vmem:[#allocation3 + $0x68] sm:$0xff] %v4262_v49  ;;  %vm867_vm8 = vweird.f32 %v4861_v26  ;;  %vm868_vm9 = vweird.f32 %v4136_v4 }
 0x17d   : > { %v4138_v2 = vpop.eup %4137  ;;  %938 = vst [vmem:[#allocation2 + $0x48] sm:$0xff] %v922_v44  ;;  %v924_v37 = vpack.c.bf16 %v904_v33, %v903_v45  ;;  %v901_v3 = vmul.f32 %v830_v31, %v4697_v46  ;;  %v902_v16 = vmul.f32 %v830_v31, %v4704_v61  ;;  %v846_v54 = vmul.f32 %v4134_v21, %v845_v25  ;;  %vm869_vm10 = vmor %vm867_vm8, %vm868_vm9 }
 0x17e   : > { %v864_v55 = vmul.f32 0.5, %v863_v35  ;;  %v852_v40 = vmul.f32 %v4138_v2, %v4868_v28  ;;  %951 = vst [vmem:[#allocation3 + $0x30] sm:$0xff] %v4262_v49  ;;  %vm858_vm11 = vweird.f32 %v4138_v2  ;;  %vm857_vm12 = vweird.f32 %v4868_v28 }
 0x17f   : > { %v4140_v19 = vpop.eup %4139  ;;  %940 = vst [vmem:[#allocation2 + $0x58] sm:$0xff] %v924_v37  ;;  %v923_v20 = vpack.c.bf16 %v902_v16, %v901_v3  ;;  %v850_v41 = vsel %vm849_vm7, %v4134_v21, %v846_v54  ;;  %vm859_vm14 = vmor %vm857_vm12, %vm858_vm11  ;;  %vm877_vm15 = vweird.f32 %v4877_v36 }
 0x180   : > { %v865_v46 = vsub.f32 1.5, %v864_v55  ;;  %v853_v5 = vmul.f32 %v4138_v2, %v852_v40  ;;  %v872_v61 = vmul.f32 %v4140_v19, %v4877_v36  ;;  %952 = vst [vmem:[#allocation3 + $0x48] sm:$0xff] %v4262_v49  ;;  %v905_v56 = vmul.f32 %v850_v41, %v4720_v51 }
 0x181   : > { %939 = vst [vmem:[#allocation2 + $0x50] sm:$0xff] %v923_v20  ;;  %v906_v12 = vmul.f32 %v850_v41, %v4723_v34  ;;  %vm878_vm13 = vweird.f32 %v4140_v19 }
 0x182   : > { %v866_v42 = vmul.f32 %v4136_v4, %v865_v46  ;;  %v854_v43 = vmul.f32 0.5, %v853_v5  ;;  %v873_v27 = vmul.f32 %v4140_v19, %v872_v61  ;;  %953 = vst [vmem:[#allocation3 + $0x80] sm:$0xff] %v4262_v49  ;;  %vm879_vm0 = vmor %vm877_vm15, %vm878_vm13 }
 0x183   : > { %v925_v10 = vpack.c.bf16 %v906_v12, %v905_v56  ;;  %954 = vst [vmem:[#allocation3 + $0x88] sm:$0xff] %v4262_v49 }
 0x184   : > { %v870_v11 = vsel %vm869_vm10, %v4136_v4, %v866_v42  ;;  %v855_v58 = vsub.f32 1.5, %v854_v43  ;;  %v874_v1 = vmul.f32 0.5, %v873_v27  ;;  %955 = vst [vmem:[#allocation3 + $0xe8] sm:$0xff] %v4262_v49 }
 0x185   : > { %941 = vst [vmem:[#allocation2 + $0x60] sm:$0xff] %v925_v10  ;;  %v909_v51 = vmul.f32 %v870_v11, %v4711_v39  ;;  %v910_v34 = vmul.f32 %v870_v11, %v4714_v0 }
 0x186   : > { %v856_v30 = vmul.f32 %v4138_v2, %v855_v58  ;;  %v875_v29 = vsub.f32 1.5, %v874_v1  ;;  %956 = vst [vmem:[#allocation3 + $0xb8] sm:$0xff] %v4262_v49 }
 0x187   : > { %v927_v26 = vpack.c.bf16 %v910_v34, %v909_v51  ;;  %957 = vst [vmem:[#allocation3 + $0x60] sm:$0xff] %v4262_v49 }
 0x188   : > { %v860_v60 = vsel %vm859_vm14, %v4138_v2, %v856_v30  ;;  %v876_v62 = vmul.f32 %v4140_v19, %v875_v29  ;;  %958 = vst [vmem:[#allocation3 + $0xf0] sm:$0xff] %v4262_v49 }
 0x189   : > { %943 = vst [vmem:[#allocation2 + $0x70] sm:$0xff] %v927_v26  ;;  %v907_v39 = vmul.f32 %v860_v60, %v4734_v48  ;;  %v908_v0 = vmul.f32 %v860_v60, %v4737_v6 }
 0x18a   : > { %v880_v13 = vsel %vm879_vm0, %v4140_v19, %v876_v62  ;;  %959 = vst [vmem:[#allocation3 + $0x8] sm:$0xff] %v4262_v49 }
 0x18b   : > { %v926_v14 = vpack.c.bf16 %v908_v0, %v907_v39  ;;  %v911_v21 = vmul.f32 %v880_v13, %v4745_v8  ;;  %v912_v23 = vmul.f32 %v880_v13, %v4748_v9  ;;  %960 = vst [vmem:[#allocation3 + $0x78] sm:$0xff] %v4262_v49 }
 0x18c   : > { %961 = vst [vmem:[#allocation3 + $0x38] sm:$0xff] %v4262_v49 }
 0x18d   : > { %942 = vst [vmem:[#allocation2 + $0x68] sm:$0xff] %v926_v14  ;;  %v928_v28 = vpack.c.bf16 %v912_v23, %v911_v21 }
 0x18e   : > { %962 = vst [vmem:[#allocation3 + $0x58] sm:$0xff] %v4262_v49 }
 0x18f   : > { %944 = vst [vmem:[#allocation2 + $0x78] sm:$0xff] %v928_v28 }
 0x190   : > { %963 = vst [vmem:[#allocation3 + $0x40] sm:$0xff] %v4262_v49 }
 0x191   : > { %964 = vst [vmem:[#allocation3 + $0xc8] sm:$0xff] %v4262_v49 }
 0x192   : > { %965 = vst [vmem:[#allocation3 + $0xe0] sm:$0xff] %v4262_v49 }
 0x193   : > { %966 = vst [vmem:[#allocation3 + $0x90] sm:$0xff] %v4262_v49 }
 0x194   : > { %967 = vst [vmem:[#allocation3 + $0x70] sm:$0xff] %v4262_v49 }
 0x195   : > { %968 = vst [vmem:[#allocation3 + $0xc0] sm:$0xff] %v4262_v49 }
 0x196   : > { %969 = vst [vmem:[#allocation3 + $0xa8] sm:$0xff] %v4262_v49 }
 0x197   : > { %970 = vst [vmem:[#allocation3 + $0xd0] sm:$0xff] %v4262_v49 }
 0x198   : > { %971 = vst [vmem:[#allocation3 + $0x10] sm:$0xff] %v4262_v49 }
 0x199   : > { %972 = vst [vmem:[#allocation3 + $0x28] sm:$0xff] %v4262_v49 }
 0x19a   : > { %973 = vst [vmem:[#allocation3 + $0xa0] sm:$0xff] %v4262_v49 }
 0x19b   : > { %974 = vst [vmem:[#allocation3 + $0xf8] sm:$0xff] %v4262_v49 }
 0x19c   : > { %975 = vst [vmem:[#allocation3 + $0x20] sm:$0xff] %v4262_v49 }
 0x19d   : > { %976 = vst [vmem:[#allocation3 + $0x98] sm:$0xff] %v4262_v49 }
 0x19e PF: > { %v3732_v48 = vld [vmem:[%s4445_s27 + $0x70] sm:$0xf]  ;;  %v4000_v6 = vld [vmem:[%s4445_s27 + $0x74] sm:$0xf0]  ;;  %v3999_v17 = vld [vmem:[%s4445_s27 + $0x74] sm:$0xf] }
 0x19f   : > { %v3796_v8 = vld [vmem:[%s4445_s27 + $0xf0] sm:$0xf]  ;;  %v3733_v9 = vor.u32 %v4000_v6, %v3732_v48  ;;  %v4016_v52 = vld [vmem:[%s4445_s27 + $0xf4] sm:$0xf0]  ;;  %v3734_v47 = vld [vmem:[%s4445_s27 + $0x78] sm:$0xf0] }
 0x1a0   : > { %v3797_v7 = vor.u32 %v4016_v52, %v3796_v8  ;;  %v3737_v53 = vor.u32 %v3999_v17, %v3734_v47  ;;  %v4015_v49 = vld [vmem:[%s4445_s27 + $0xf4] sm:$0xf]  ;;  %v3798_v36 = vld [vmem:[%s4445_s27 + $0xf8] sm:$0xf0]  ;;  %v3724_v15 = vld [vmem:[%s4445_s27 + $0x60] sm:$0xf] }
 0x1a1   : > { %1271 = vmatpush.bf16.msra.mxu0 %v3733_v9  ;;  %v3801_v22 = vor.u32 %v4015_v49, %v3798_v36  ;;  %v3998_v32 = vld [vmem:[%s4445_s27 + $0x64] sm:$0xf0]  ;;  %v3788_v38 = vld [vmem:[%s4445_s27 + $0xe0] sm:$0xf]  ;;  %v3997_v18 = vld [vmem:[%s4445_s27 + $0x64] sm:$0xf] }
 0x1a2   : > { %v4014_v4 = vld [vmem:[%s4445_s27 + $0xe4] sm:$0xf0]  ;;  %1320 = vmatpush.bf16.msra.mxu1 %v3797_v7  ;;  %1369 = vmatpush.bf16.msra.mxu2 %v3737_v53  ;;  %v3725_v59 = vor.u32 %v3998_v32, %v3724_v15  ;;  %v3726_v50 = vld [vmem:[%s4445_s27 + $0x68] sm:$0xf0]  ;;  %v4013_v63 = vld [vmem:[%s4445_s27 + $0xe4] sm:$0xf] }
 0x1a3   : > { %v3789_v57 = vor.u32 %v4014_v4, %v3788_v38  ;;  %1418 = vmatpush.bf16.msra.mxu3 %v3801_v22  ;;  %v3729_v24 = vor.u32 %v3997_v18, %v3726_v50  ;;  %v3790_v44 = vld [vmem:[%s4445_s27 + $0xe8] sm:$0xf0]  ;;  %v3716_v45 = vld [vmem:[%s4445_s27 + $0x50] sm:$0xf]  ;;  %v3996_v33 = vld [vmem:[%s4445_s27 + $0x54] sm:$0xf0] }
 0x1a4   : > { %v3793_v31 = vor.u32 %v4013_v63, %v3790_v44  ;;  %v3780_v25 = vld [vmem:[%s4445_s27 + $0xd0] sm:$0xf]  ;;  %v4012_v35 = vld [vmem:[%s4445_s27 + $0xd4] sm:$0xf0]  ;;  %v3995_v2 = vld [vmem:[%s4445_s27 + $0x54] sm:$0xf]  ;;  %v3717_v37 = vor.u32 %v3996_v33, %v3716_v45 }
 0x1a5   : > { %1272 = vmatpush.bf16.msra.mxu0 %v3725_v59  ;;  %v3718_v3 = vld [vmem:[%s4445_s27 + $0x58] sm:$0xf0]  ;;  %v4011_v16 = vld [vmem:[%s4445_s27 + $0xd4] sm:$0xf]  ;;  %v3781_v55 = vor.u32 %v4012_v35, %v3780_v25  ;;  %v3708_v19 = vld [vmem:[%s4445_s27 + $0x40] sm:$0xf] }
 0x1a6   : > { %v3782_v54 = vld [vmem:[%s4445_s27 + $0xd8] sm:$0xf0]  ;;  %1321 = vmatpush.bf16.msra.mxu1 %v3789_v57  ;;  %1370 = vmatpush.bf16.msra.mxu2 %v3729_v24  ;;  %v3721_v40 = vor.u32 %v3995_v2, %v3718_v3  ;;  %v3994_v20 = vld [vmem:[%s4445_s27 + $0x44] sm:$0xf0]  ;;  %v3772_v41 = vld [vmem:[%s4445_s27 + $0xc0] sm:$0xf] }
 0x1a7   : > { %1419 = vmatpush.bf16.msra.mxu3 %v3793_v31  ;;  %v3785_v46 = vor.u32 %v4011_v16, %v3782_v54  ;;  %v4010_v5 = vld [vmem:[%s4445_s27 + $0xc4] sm:$0xf0]  ;;  %v3993_v61 = vld [vmem:[%s4445_s27 + $0x44] sm:$0xf]  ;;  %v3710_v56 = vld [vmem:[%s4445_s27 + $0x48] sm:$0xf0]  ;;  %v3709_v43 = vor.u32 %v3994_v20, %v3708_v19 }
 0x1a8   : > { %v4009_v12 = vld [vmem:[%s4445_s27 + $0xc4] sm:$0xf]  ;;  %v3774_v42 = vld [vmem:[%s4445_s27 + $0xc8] sm:$0xf0]  ;;  %v3773_v27 = vor.u32 %v4010_v5, %v3772_v41  ;;  %v3713_v10 = vor.u32 %v3993_v61, %v3710_v56  ;;  %v3700_v11 = vld [vmem:[%s4445_s27 + $0x30] sm:$0xf] }
 0x1a9   : > { %1273 = vmatpush.bf16.msra.mxu0 %v3717_v37  ;;  %v3992_v58 = vld [vmem:[%s4445_s27 + $0x34] sm:$0xf0]  ;;  %v3764_v1 = vld [vmem:[%s4445_s27 + $0xb0] sm:$0xf]  ;;  %v3777_v51 = vor.u32 %v4009_v12, %v3774_v42  ;;  %v3991_v30 = vld [vmem:[%s4445_s27 + $0x34] sm:$0xf] }
 0x1aa   : > { %1322 = vmatpush.bf16.msra.mxu1 %v3781_v55  ;;  %1371 = vmatpush.bf16.msra.mxu2 %v3721_v40  ;;  %v4008_v34 = vld [vmem:[%s4445_s27 + $0xb4] sm:$0xf0]  ;;  %v3702_v29 = vld [vmem:[%s4445_s27 + $0x38] sm:$0xf0]  ;;  %v4007_v26 = vld [vmem:[%s4445_s27 + $0xb4] sm:$0xf]  ;;  %v3701_v62 = vor.u32 %v3992_v58, %v3700_v11 }
 0x1ab   : > { %1420 = vmatpush.bf16.msra.mxu3 %v3785_v46  ;;  %v3766_v60 = vld [vmem:[%s4445_s27 + $0xb8] sm:$0xf0]  ;;  %v3765_v39 = vor.u32 %v4008_v34, %v3764_v1  ;;  %v3705_v0 = vor.u32 %v3991_v30, %v3702_v29  ;;  %v3692_v13 = vld [vmem:[%s4445_s27 + $0x20] sm:$0xf]  ;;  %v3990_v14 = vld [vmem:[%s4445_s27 + $0x24] sm:$0xf0] }
 0x1ac   : > { %v3756_v21 = vld [vmem:[%s4445_s27 + $0xa0] sm:$0xf]  ;;  %v3769_v23 = vor.u32 %v4007_v26, %v3766_v60  ;;  %v4006_v28 = vld [vmem:[%s4445_s27 + $0xa4] sm:$0xf0]  ;;  %v3989_v48 = vld [vmem:[%s4445_s27 + $0x24] sm:$0xf]  ;;  %v3693_v52 = vor.u32 %v3990_v14, %v3692_v13 }
 0x1ad   : > { %1274 = vmatpush.bf16.msra.mxu0 %v3709_v43  ;;  %v3694_v6 = vld [vmem:[%s4445_s27 + $0x28] sm:$0xf0]  ;;  %v4005_v8 = vld [vmem:[%s4445_s27 + $0xa4] sm:$0xf]  ;;  %v3757_v17 = vor.u32 %v4006_v28, %v3756_v21  ;;  %v3684_v7 = vld [vmem:[%s4445_s27 + $0x10] sm:$0xf] }
 0x1ae   : > { %1323 = vmatpush.bf16.msra.mxu1 %v3773_v27  ;;  %1372 = vmatpush.bf16.msra.mxu2 %v3713_v10  ;;  %v3758_v9 = vld [vmem:[%s4445_s27 + $0xa8] sm:$0xf0]  ;;  %v3697_v47 = vor.u32 %v3989_v48, %v3694_v6  ;;  %v3988_v53 = vld [vmem:[%s4445_s27 + $0x14] sm:$0xf0]  ;;  %v3748_v49 = vld [vmem:[%s4445_s27 + $0x90] sm:$0xf] }
 0x1af   : > { %1421 = vmatpush.bf16.msra.mxu3 %v3777_v51  ;;  %v3761_v36 = vor.u32 %v4005_v8, %v3758_v9  ;;  %v4004_v15 = vld [vmem:[%s4445_s27 + $0x94] sm:$0xf0]  ;;  %v3987_v22 = vld [vmem:[%s4445_s27 + $0x14] sm:$0xf]  ;;  %v3686_v32 = vld [vmem:[%s4445_s27 + $0x18] sm:$0xf0]  ;;  %v3685_v59 = vor.u32 %v3988_v53, %v3684_v7 }
 0x1b0   : > { %v4003_v38 = vld [vmem:[%s4445_s27 + $0x94] sm:$0xf]  ;;  %v3750_v4 = vld [vmem:[%s4445_s27 + $0x98] sm:$0xf0]  ;;  %v3749_v57 = vor.u32 %v4004_v15, %v3748_v49  ;;  %v3689_v18 = vor.u32 %v3987_v22, %v3686_v32  ;;  %v3676_v50 = vld [vmem:[%s4445_s27] sm:$0xf] }
 0x1b1   : > { %1275 = vmatpush.bf16.msra.mxu0 %v3701_v62  ;;  %v3986_v63 = vld [vmem:[%s4445_s27 + $0x4] sm:$0xf0]  ;;  %v3740_v24 = vld [vmem:[%s4445_s27 + $0x80] sm:$0xf]  ;;  %v3753_v44 = vor.u32 %v4003_v38, %v3750_v4  ;;  %v3985_v33 = vld [vmem:[%s4445_s27 + $0x4] sm:$0xf] }
 0x1b2   : > { %1324 = vmatpush.bf16.msra.mxu1 %v3765_v39  ;;  %1373 = vmatpush.bf16.msra.mxu2 %v3705_v0  ;;  %v4002_v45 = vld [vmem:[%s4445_s27 + $0x84] sm:$0xf0]  ;;  %v3678_v31 = vld [vmem:[%s4445_s27 + $0x8] sm:$0xf0]  ;;  %v4001_v25 = vld [vmem:[%s4445_s27 + $0x84] sm:$0xf]  ;;  %v3677_v2 = vor.u32 %v3986_v63, %v3676_v50 }
 0x1b3   : > { %1422 = vmatpush.bf16.msra.mxu3 %v3769_v23  ;;  %v3742_v35 = vld [vmem:[%s4445_s27 + $0x88] sm:$0xf0]  ;;  %v3612_v37 = vld [vmem:[#allocation2] sm:$0xf]  ;;  %v3970_v3 = vld [vmem:[#allocation2 + $0x4] sm:$0xf0]  ;;  %v3741_v16 = vor.u32 %v4002_v45, %v3740_v24  ;;  %v3681_v54 = vor.u32 %v3985_v33, %v3678_v31 }
 0x1b4   : > { %v3969_v55 = vld [vmem:[#allocation2 + $0x4] sm:$0xf]  ;;  %v3614_v40 = vld [vmem:[#allocation2 + $0x8] sm:$0xf0]  ;;  %v3745_v19 = vor.u32 %v4001_v25, %v3742_v35  ;;  %v3613_v20 = vor.u32 %v3970_v3, %v3612_v37  ;;  %v3620_v46 = vld [vmem:[#allocation2 + $0x10] sm:$0xf] }
 0x1b5   : > { %1276 = vmatpush.bf16.msra.mxu0 %v3693_v52  ;;  %v3617_v41 = vor.u32 %v3969_v55, %v3614_v40  ;;  %v3972_v5 = vld [vmem:[#allocation2 + $0x14] sm:$0xf0]  ;;  %v3971_v61 = vld [vmem:[#allocation2 + $0x14] sm:$0xf]  ;;  %v3622_v56 = vld [vmem:[#allocation2 + $0x18] sm:$0xf0] }
 0x1b6   : > { %1325 = vmatpush.bf16.msra.mxu1 %v3757_v17  ;;  %1374 = vmatpush.bf16.msra.mxu2 %v3697_v47  ;;  %v3621_v12 = vor.u32 %v3972_v5, %v3620_v46  ;;  %v3625_v42 = vor.u32 %v3971_v61, %v3622_v56  ;;  %v3628_v43 = vld [vmem:[#allocation2 + $0x20] sm:$0xf]  ;;  %v3974_v27 = vld [vmem:[#allocation2 + $0x24] sm:$0xf0]  ;;  %v3973_v10 = vld [vmem:[#allocation2 + $0x24] sm:$0xf] }
 0x1b7   : > { %1423 = vmatpush.bf16.msra.mxu3 %v3761_v36  ;;  %v3630_v11 = vld [vmem:[#allocation2 + $0x28] sm:$0xf0]  ;;  %v3629_v58 = vor.u32 %v3974_v27, %v3628_v43  ;;  %v4031_v51 = vld [vmem:[%s4443_s13 + $0x74] sm:$0xf]  ;;  %v3894_v34 = vld [vmem:[%s4443_s13 + $0x78] sm:$0xf0] }
 0x1b8   : > { %v3633_v1 = vor.u32 %v3973_v10, %v3630_v11  ;;  %v4047_v30 = vld [vmem:[%s4443_s13 + $0xf4] sm:$0xf]  ;;  %v3897_v29 = vor.u32 %v4031_v51, %v3894_v34  ;;  %v3958_v26 = vld [vmem:[%s4443_s13 + $0xf8] sm:$0xf0]  ;;  %v3892_v60 = vld [vmem:[%s4443_s13 + $0x70] sm:$0xf] }
 0x1b9   : > { %1277 = vmatpush.bf16.msra.mxu0 %v3685_v59  ;;  %v4032_v62 = vld [vmem:[%s4443_s13 + $0x74] sm:$0xf0]  ;;  %v3961_v39 = vor.u32 %v4047_v30, %v3958_v26  ;;  %v3956_v13 = vld [vmem:[%s4443_s13 + $0xf0] sm:$0xf]  ;;  %v3975_v48 = vld [vmem:[#allocation2 + $0x34] sm:$0xf] }
 0x1ba   : > { %1326 = vmatpush.bf16.msra.mxu1 %v3749_v57  ;;  %1375 = vmatpush.bf16.msra.mxu2 %v3689_v18  ;;  %v3893_v0 = vor.u32 %v4032_v62, %v3892_v60  ;;  %v4048_v14 = vld [vmem:[%s4443_s13 + $0xf4] sm:$0xf0]  ;;  %v3636_v23 = vld [vmem:[#allocation2 + $0x30] sm:$0xf]  ;;  %v3638_v6 = vld [vmem:[#allocation2 + $0x38] sm:$0xf0] }
 0x1bb   : > { %1424 = vmatpush.bf16.msra.mxu3 %v3753_v44  ;;  %v3957_v21 = vor.u32 %v4048_v14, %v3956_v13  ;;  %v3976_v28 = vld [vmem:[#allocation2 + $0x34] sm:$0xf0]  ;;  %v3641_v9 = vor.u32 %v3975_v48, %v3638_v6  ;;  %v4029_v52 = vld [vmem:[%s4443_s13 + $0x64] sm:$0xf]  ;;  %v3886_v17 = vld [vmem:[%s4443_s13 + $0x68] sm:$0xf0] }
 0x1bc   : > { %v3637_v8 = vor.u32 %v3976_v28, %v3636_v23  ;;  %v4045_v47 = vld [vmem:[%s4443_s13 + $0xe4] sm:$0xf]  ;;  %v3889_v7 = vor.u32 %v4029_v52, %v3886_v17  ;;  %v3950_v53 = vld [vmem:[%s4443_s13 + $0xe8] sm:$0xf0]  ;;  %v3884_v49 = vld [vmem:[%s4443_s13 + $0x60] sm:$0xf] }
 0x1bd   : > { %1278 = vmatpush.bf16.msra.mxu0 %v3677_v2  ;;  %v4030_v36 = vld [vmem:[%s4443_s13 + $0x64] sm:$0xf0]  ;;  %v3953_v15 = vor.u32 %v4045_v47, %v3950_v53  ;;  %v3948_v32 = vld [vmem:[%s4443_s13 + $0xe0] sm:$0xf]  ;;  %v3977_v18 = vld [vmem:[#allocation2 + $0x44] sm:$0xf] }
 0x1be   : > { %1327 = vmatpush.bf16.msra.mxu1 %v3741_v16  ;;  %1376 = vmatpush.bf16.msra.mxu2 %v3681_v54  ;;  %v3885_v22 = vor.u32 %v4030_v36, %v3884_v49  ;;  %v4046_v38 = vld [vmem:[%s4443_s13 + $0xe4] sm:$0xf0]  ;;  %v3644_v59 = vld [vmem:[#allocation2 + $0x40] sm:$0xf]  ;;  %v3646_v50 = vld [vmem:[#allocation2 + $0x48] sm:$0xf0] }
 0x1bf   : > { %1425 = vmatpush.bf16.msra.mxu3 %v3745_v19  ;;  %v3949_v4 = vor.u32 %v4046_v38, %v3948_v32  ;;  %v3978_v57 = vld [vmem:[#allocation2 + $0x44] sm:$0xf0]  ;;  %v3649_v24 = vor.u32 %v3977_v18, %v3646_v50  ;;  %v4027_v44 = vld [vmem:[%s4443_s13 + $0x54] sm:$0xf]  ;;  %v3878_v45 = vld [vmem:[%s4443_s13 + $0x58] sm:$0xf0] }
 0x1c0   : > { %1279 = vmatmul.bf16.vlgmr.msra.gmra.mxu0 %v3613_v20  ;;  %v3645_v63 = vor.u32 %v3978_v57, %v3644_v59  ;;  %v4043_v33 = vld [vmem:[%s4443_s13 + $0xd4] sm:$0xf]  ;;  %v3881_v31 = vor.u32 %v4027_v44, %v3878_v45  ;;  %v3942_v25 = vld [vmem:[%s4443_s13 + $0xd8] sm:$0xf0]  ;;  %v3876_v35 = vld [vmem:[%s4443_s13 + $0x50] sm:$0xf] }
 0x1c1   : > { %1328 = vmatmul.bf16.vlgmr.msra.gmra.mxu1 %v3617_v41  ;;  %1377 = vmatmul.bf16.vlgmr.msra.gmra.mxu2 %v3613_v20  ;;  %v4028_v2 = vld [vmem:[%s4443_s13 + $0x54] sm:$0xf0]  ;;  %v3945_v37 = vor.u32 %v4043_v33, %v3942_v25  ;;  %v3940_v16 = vld [vmem:[%s4443_s13 + $0xd0] sm:$0xf]  ;;  %v3979_v20 = vld [vmem:[#allocation2 + $0x54] sm:$0xf] }
 0x1c2   : > { %1426 = vmatmul.bf16.vlgmr.msra.gmra.mxu3 %v3617_v41  ;;  %3213 = vmatpush.bf16.msrb.mxu2 %v3897_v29  ;;  %v3877_v3 = vor.u32 %v4028_v2, %v3876_v35  ;;  %v4044_v54 = vld [vmem:[%s4443_s13 + $0xd4] sm:$0xf0]  ;;  %v3652_v40 = vld [vmem:[#allocation2 + $0x50] sm:$0xf]  ;;  %v3654_v41 = vld [vmem:[#allocation2 + $0x58] sm:$0xf0] }
 0x1c3   : > { %3262 = vmatpush.bf16.msrb.mxu3 %v3961_v39  ;;  %3115 = vmatpush.bf16.msrb.mxu0 %v3893_v0  ;;  %v3941_v55 = vor.u32 %v4044_v54, %v3940_v16  ;;  %v3980_v19 = vld [vmem:[#allocation2 + $0x54] sm:$0xf0]  ;;  %v3657_v5 = vor.u32 %v3979_v20, %v3654_v41  ;;  %v4025_v61 = vld [vmem:[%s4443_s13 + $0x44] sm:$0xf]  ;;  %v3870_v56 = vld [vmem:[%s4443_s13 + $0x48] sm:$0xf0] }
 0x1c4   : > { %3164 = vmatpush.bf16.msrb.mxu1 %v3957_v21  ;;  %v3653_v46 = vor.u32 %v3980_v19, %v3652_v40  ;;  %v3934_v43 = vld [vmem:[%s4443_s13 + $0xc8] sm:$0xf0]  ;;  %v3868_v27 = vld [vmem:[%s4443_s13 + $0x40] sm:$0xf]  ;;  %v4026_v10 = vld [vmem:[%s4443_s13 + $0x44] sm:$0xf0] }
 0x1c5   : > { %v4042_v51 = vld [vmem:[%s4443_s13 + $0xc4] sm:$0xf0]  ;;  %v3660_v30 = vld [vmem:[#allocation2 + $0x60] sm:$0xf]  ;;  %v3981_v26 = vld [vmem:[#allocation2 + $0x64] sm:$0xf] }
 0x1c6   : > { %3214 = vmatpush.bf16.msrb.mxu2 %v3889_v7  ;;  %v3982_v29 = vld [vmem:[#allocation2 + $0x64] sm:$0xf0]  ;;  %v3662_v60 = vld [vmem:[#allocation2 + $0x68] sm:$0xf0]  ;;  %v3668_v0 = vld [vmem:[#allocation2 + $0x70] sm:$0xf] }
 0x1c7   : > { %3263 = vmatpush.bf16.msrb.mxu3 %v3953_v15  ;;  %3116 = vmatpush.bf16.msrb.mxu0 %v3885_v22  ;;  %v3661_v62 = vor.u32 %v3982_v29, %v3660_v30  ;;  %v3665_v39 = vor.u32 %v3981_v26, %v3662_v60  ;;  %v3984_v13 = vld [vmem:[#allocation2 + $0x74] sm:$0xf0]  ;;  %v3983_v14 = vld [vmem:[#allocation2 + $0x74] sm:$0xf]  ;;  %v3670_v21 = vld [vmem:[#allocation2 + $0x78] sm:$0xf0] }
 0x1c8   : > { %3165 = vmatpush.bf16.msrb.mxu1 %v3949_v4  ;;  %v3669_v23 = vor.u32 %v3984_v13, %v3668_v0  ;;  %v3673_v28 = vor.u32 %v3983_v14, %v3670_v21  ;;  %v1025_v48 = vld [vmem:[%s454_s9] sm:$0x3]  ;;  %v3862_v16 = vld [vmem:[%s4443_s13 + $0x38] sm:$0xf0]  ;;  %v3924_v29 = vld [vmem:[%s4443_s13 + $0xb0] sm:$0xf] }
 0x1c9   : > { %v5041_v6 = vperm.slane %v1025_v48, 0  ;;  %v5049_v7 = vperm.slane %v1025_v48, 1  ;;  %v4040_v60 = vld [vmem:[%s4443_s13 + $0xb4] sm:$0xf0]  ;;  %p3962_p0 = scmp.ne.s32.totalorder %s4243_s20, 1 }
 0x1ca   : > { %3215 = vmatpush.bf16.msrb.mxu2 %v3881_v31  ;;  %v3925_v0 = vor.u32 %v4040_v60, %v3924_v29 }
 0x1cb   : > { %3264 = vmatpush.bf16.msrb.mxu3 %v3945_v37  ;;  %3117 = vmatpush.bf16.msrb.mxu0 %v3877_v3  ;;  %v4023_v3 = vld [vmem:[%s4443_s13 + $0x34] sm:$0xf] }
 0x1cc   : > { %3166 = vmatpush.bf16.msrb.mxu1 %v3941_v55  ;;  %v3865_v55 = vor.u32 %v4023_v3, %v3862_v16  ;;  %v4021_v3 = vld [vmem:[%s4443_s13 + $0x24] sm:$0xf]  ;;  %v3854_v16 = vld [vmem:[%s4443_s13 + $0x28] sm:$0xf0] }
 0x1d0   : > { %1284 = vmatmul.bf16.gmra.mxu0 %v3621_v12 }
 0x1d1   : > { %1333 = vmatmul.bf16.gmra.mxu1 %v3625_v42  ;;  %1382 = vmatmul.bf16.gmra.mxu2 %v3621_v12  ;;  %v4041_v12 = vld [vmem:[%s4443_s13 + $0xc4] sm:$0xf] }
 0x1d2   : > { %1431 = vmatmul.bf16.gmra.mxu3 %v3625_v42  ;;  %v3873_v42 = vor.u32 %v4025_v61, %v3870_v56  ;;  %v3937_v11 = vor.u32 %v4041_v12, %v3934_v43  ;;  %v4039_v61 = vld [vmem:[%s4443_s13 + $0xb4] sm:$0xf]  ;;  %v3926_v12 = vld [vmem:[%s4443_s13 + $0xb8] sm:$0xf0] }
 0x1d3   : > { %v3929_v43 = vor.u32 %v4039_v61, %v3926_v12  ;;  %v3857_v12 = vor.u32 %v4021_v3, %v3854_v16 }
 0x1d4   : > { %3216 = vmatpush.bf16.msrb.mxu2 %v3873_v42  ;;  %3265 = vmatpush.bf16.msrb.mxu3 %v3937_v11 }
 0x1d8   : > { %3217 = vmatpush.bf16.msrb.mxu2 %v3865_v55  ;;  %3266 = vmatpush.bf16.msrb.mxu3 %v3929_v43  ;;  %v4037_v55 = vld [vmem:[%s4443_s13 + $0xa4] sm:$0xf] }
 0x1dc   : > { %3218 = vmatpush.bf16.msrb.mxu2 %v3857_v12 }
 0x1e0   : > { %1289 = vmatmul.bf16.gmra.mxu0 %v3629_v58 }
 0x1e1   : > { %1338 = vmatmul.bf16.gmra.mxu1 %v3633_v1  ;;  %1387 = vmatmul.bf16.gmra.mxu2 %v3629_v58  ;;  %v3869_v58 = vor.u32 %v4026_v10, %v3868_v27  ;;  %v3860_v27 = vld [vmem:[%s4443_s13 + $0x30] sm:$0xf]  ;;  %v4024_v10 = vld [vmem:[%s4443_s13 + $0x34] sm:$0xf0] }
 0x1e2   : > { %1436 = vmatmul.bf16.gmra.mxu3 %v3633_v1  ;;  %v3932_v1 = vld [vmem:[%s4443_s13 + $0xc0] sm:$0xf] }
 0x1e3   : > { %v3933_v34 = vor.u32 %v4042_v51, %v3932_v1  ;;  %3118 = vmatpush.bf16.msrb.mxu0 %v3869_v58  ;;  %v3861_v51 = vor.u32 %v4024_v10, %v3860_v27  ;;  %v3852_v10 = vld [vmem:[%s4443_s13 + $0x20] sm:$0xf] }
 0x1e5   : > { %3167 = vmatpush.bf16.msrb.mxu1 %v3933_v34 }
 0x1e7   : > { %3119 = vmatpush.bf16.msrb.mxu0 %v3861_v51  ;;  %v4022_v51 = vld [vmem:[%s4443_s13 + $0x24] sm:$0xf0] }
 0x1e9   : > { %3168 = vmatpush.bf16.msrb.mxu1 %v3925_v0  ;;  %v3853_v0 = vor.u32 %v4022_v51, %v3852_v10 }
 0x1eb   : > { %3120 = vmatpush.bf16.msrb.mxu0 %v3853_v0  ;;  %v3908_v0 = vld [vmem:[%s4443_s13 + $0x90] sm:$0xf] }
 0x1f0   : > { %1294 = vmatmul.bf16.gmra.mxu0 %v3637_v8 }
 0x1f1   : > { %1343 = vmatmul.bf16.gmra.mxu1 %v3641_v9  ;;  %1392 = vmatmul.bf16.gmra.mxu2 %v3637_v8 }
 0x1f2   : > { %1441 = vmatmul.bf16.gmra.mxu3 %v3641_v9 }
 0x200   : > { %1299 = vmatmul.bf16.gmra.mxu0 %v3645_v63 }
 0x201   : > { %1348 = vmatmul.bf16.gmra.mxu1 %v3649_v24  ;;  %1397 = vmatmul.bf16.gmra.mxu2 %v3645_v63 }
 0x202   : > { %1446 = vmatmul.bf16.gmra.mxu3 %v3649_v24 }
 0x210   : > { %1304 = vmatmul.bf16.gmra.mxu0 %v3653_v46 }
 0x211   : > { %1353 = vmatmul.bf16.gmra.mxu1 %v3657_v5  ;;  %1402 = vmatmul.bf16.gmra.mxu2 %v3653_v46 }
 0x212   : > { %1451 = vmatmul.bf16.gmra.mxu3 %v3657_v5 }
 0x220   : > { %1309 = vmatmul.bf16.gmra.mxu0 %v3661_v62 }
 0x221   : > { %1358 = vmatmul.bf16.gmra.mxu1 %v3665_v39  ;;  %1407 = vmatmul.bf16.gmra.mxu2 %v3661_v62 }
 0x222   : > { %1456 = vmatmul.bf16.gmra.mxu3 %v3665_v39 }
 0x230   : > { %1314 = vmatmul.bf16.gmra.mxu0 %v3669_v23 }
 0x231   : > { %1363 = vmatmul.bf16.gmra.mxu1 %v3673_v28  ;;  %1412 = vmatmul.bf16.gmra.mxu2 %v3669_v23 }
 0x232   : > { %1461 = vmatmul.bf16.gmra.mxu3 %v3673_v28 }
 0x23d   : > { %v1280_v8 = vpop.f32.mrf.mxu0 }
 0x23e   : > { %v1281_v9 = vadd.f32 %v1280_v8, %v5041_v6  ;;  %v1329_v52 = vpop.f32.mrf.mxu1 }
 0x240   : > { %v5044_v17 = vadd.f32 %v1329_v52, %v1281_v9 }
 0x242   : > { %v5047_v47 = vmul.f32 0.70710677, %v5044_v17 }
 0x244   : > { %v1378_v53 = vpop.f32.mrf.mxu2  ;;  %v1531_v36 = vmul.f32 %v5047_v47, %v5047_v47 }
 0x245   : > { %v1282_v49 = vpop.f32.mrf.mxu0  ;;  %v1379_v22 = vadd.f32 %v1378_v53, %v5049_v7  ;;  %v1427_v32 = vpop.f32.mrf.mxu3 }
 0x246   : > { %v1283_v15 = vadd.f32 %v1282_v49, %v5041_v6  ;;  %v1331_v38 = vpop.f32.mrf.mxu1  ;;  %v5057_v59 = vmin.f32 %v1531_v36, 16.0 }
 0x247   : > { %v5059_v57 = vadd.f32 %v1427_v32, %v1379_v22 }
 0x248   : > { %v5055_v4 = vadd.f32 %v1331_v38, %v1283_v15  ;;  %v1544_v24 = vmul.f32 3.8918573e-05, %v5057_v59  ;;  %v1533_v8 = vmul.f32 2.1237322e-06, %v5057_v59 }
 0x249   : > { %v5069_v45 = vmul.f32 0.70710677, %v5059_v57 }
 0x24a   : > { %v5062_v18 = vmul.f32 0.70710677, %v5055_v4  ;;  %v1545_v25 = vadd.f32 0.001143296, %v1544_v24  ;;  %v1534_v15 = vadd.f32 0.00028619796, %v1533_v8 }
 0x24b   : > { %v1571_v37 = vmul.f32 %v5069_v45, %v5069_v45 }
 0x24c   : > { %v1380_v50 = vpop.f32.mrf.mxu2  ;;  %v1611_v63 = vmul.f32 %v5062_v18, %v5062_v18  ;;  %v1546_v40 = vmul.f32 %v1545_v25, %v5057_v59  ;;  %v1535_v24 = vmul.f32 %v1534_v15, %v5057_v59 }
 0x24d   : > { %v1381_v44 = vadd.f32 %v1380_v50, %v5049_v7  ;;  %v1429_v31 = vpop.f32.mrf.mxu3  ;;  %v5085_v41 = vmin.f32 %v1571_v37, 16.0  ;;  %v1285_v27 = vpop.f32.mrf.mxu0 }
 0x24e   : > { %v5071_v33 = vmin.f32 %v1611_v63, 16.0  ;;  %v1547_v56 = vadd.f32 0.014752088, %v1546_v40  ;;  %v3918_v40 = vld [vmem:[%s4443_s13 + $0xa8] sm:$0xf0] }
 0x24f   : > { %v5074_v2 = vadd.f32 %v1429_v31, %v1381_v44  ;;  %v1584_v42 = vmul.f32 3.8918573e-05, %v5085_v41  ;;  %v1573_v44 = vmul.f32 2.1237322e-06, %v5085_v41 }
 0x250   : > { %v1624_v35 = vmul.f32 3.8918573e-05, %v5071_v33  ;;  %v1548_v1 = vmul.f32 %v1547_v56, %v5057_v59  ;;  %v1613_v9 = vmul.f32 2.1237322e-06, %v5071_v33 }
 0x251   : > { %v5083_v20 = vmul.f32 0.70710677, %v5074_v2  ;;  %v1585_v34 = vadd.f32 0.001143296, %v1584_v42  ;;  %v3921_v42 = vor.u32 %v4037_v55, %v3918_v40 }
 0x252   : > { %v1625_v54 = vadd.f32 0.001143296, %v1624_v35  ;;  %v1549_v62 = vadd.f32 0.112945676, %v1548_v1  ;;  %v1614_v22 = vadd.f32 0.00028619796, %v1613_v9  ;;  %v1334_v9 = vpop.f32.mrf.mxu1 }
 0x253   : > { %v1651_v46 = vmul.f32 %v5083_v20, %v5083_v20  ;;  %v1586_v13 = vmul.f32 %v1585_v34, %v5085_v41  ;;  %3267 = vmatpush.bf16.msrb.mxu3 %v3921_v42  ;;  %v3916_v34 = vld [vmem:[%s4443_s13 + $0xa0] sm:$0xf] }
 0x254   : > { %v1626_v19 = vmul.f32 %v1625_v54, %v5071_v33  ;;  %v1550_v23 = vmul.f32 %v1549_v62, %v5057_v59  ;;  %v1615_v31 = vmul.f32 %v1614_v22, %v5071_v33  ;;  %v1383_v22 = vpop.f32.mrf.mxu2 }
 0x255   : > { %v5094_v11 = vmin.f32 %v1651_v46, 16.0  ;;  %v1587_v28 = vadd.f32 0.014752088, %v1586_v13  ;;  %v1574_v46 = vadd.f32 0.00028619796, %v1573_v44 }
 0x256   : > { %v1627_v5 = vadd.f32 0.014752088, %v1626_v19  ;;  %v1551_v53 = vadd.f32 0.4994258, %v1550_v23  ;;  %v1536_v19 = vadd.f32 0.0036580483, %v1535_v24 }
 0x257   : > { %v1664_v30 = vmul.f32 3.8918573e-05, %v5094_v11  ;;  %v1588_v49 = vmul.f32 %v1587_v28, %v5085_v41  ;;  %v1653_v61 = vmul.f32 2.1237322e-06, %v5094_v11  ;;  %v1575_v1 = vmul.f32 %v1574_v46, %v5085_v41  ;;  %v4019_v24 = vld [vmem:[%s4443_s13 + $0x14] sm:$0xf]  ;;  %v1432_v46 = vpop.f32.mrf.mxu3 }
 0x258   : > { %v1628_v58 = vmul.f32 %v1627_v5, %v5071_v33  ;;  %v1552_v50 = vmul.f32 %v1551_v53, %v5057_v59  ;;  %v1616_v5 = vadd.f32 0.0036580483, %v1615_v31  ;;  %v3846_v44 = vld [vmem:[%s4443_s13 + $0x18] sm:$0xf0] }
 0x259   : > { %v1665_v39 = vadd.f32 0.001143296, %v1664_v30  ;;  %v1589_v63 = vadd.f32 0.112945676, %v1588_v49  ;;  %v4038_v30 = vld [vmem:[%s4443_s13 + $0xa4] sm:$0xf0]  ;;  %v3849_v55 = vor.u32 %v4019_v24, %v3846_v44 }
 0x25a   : > { %v1629_v26 = vadd.f32 0.112945676, %v1628_v58  ;;  %v5117_v37 = vadd.f32 1.0, %v1552_v50  ;;  %v1537_v58 = vmul.f32 %v1536_v19, %v5057_v59  ;;  %v1617_v29 = vmul.f32 %v1616_v5, %v5071_v33  ;;  %v5153_v50 = vpop.f32.mrf.mxu0  ;;  %v4035_v5 = vld [vmem:[%s4443_s13 + $0x94] sm:$0xf] }
 0x25b   : > { %v1666_v21 = vmul.f32 %v1665_v39, %v5094_v11  ;;  %v1590_v54 = vmul.f32 %v1589_v63, %v5085_v41  ;;  %v3917_v13 = vor.u32 %v4038_v30, %v3916_v34  ;;  %v1576_v23 = vadd.f32 0.0036580483, %v1575_v1  ;;  %3219 = vmatpush.bf16.msrb.mxu2 %v3849_v55  ;;  %v4020_v1 = vld [vmem:[%s4443_s13 + $0x14] sm:$0xf0] }
 0x25c   : > { %v1630_v14 = vmul.f32 %v1629_v26, %v5071_v33  ;;  %v1654_v26 = vadd.f32 0.00028619796, %v1653_v61  ;;  %v1618_v28 = vadd.f32 0.05243302, %v1617_v29  ;;  %v3910_v61 = vld [vmem:[%s4443_s13 + $0x98] sm:$0xf0]  ;;  %vm1559_vm4 = vweird.f32 %v5117_v37 }
 0x25d   : > { %v1667_v48 = vadd.f32 0.014752088, %v1666_v21  ;;  %v1591_v43 = vadd.f32 0.4994258, %v1590_v54  ;;  %v1538_v21 = vadd.f32 0.05243302, %v1537_v58  ;;  %3169 = vmatpush.bf16.msrb.mxu1 %v3917_v13  ;;  %v1577_v15 = vmul.f32 %v1576_v23, %v5085_v41 }
 0x25e   : > { %v1631_v52 = vadd.f32 0.4994258, %v1630_v14  ;;  %v3844_v58 = vld [vmem:[%s4443_s13 + $0x10] sm:$0xf]  ;;  %v1565_v34 = vand.u32 2147483648, %v5117_v37  ;;  %v3913_v29 = vor.u32 %v4035_v5, %v3910_v61  ;;  %v1288_v5 = vadd.f32 %v5153_v50, %v5041_v6 }
 0x25f   : > { %v1668_v36 = vmul.f32 %v1667_v48, %v5094_v11  ;;  %v1592_v39 = vmul.f32 %v1591_v43, %v5085_v41  ;;  %v1655_v48 = vmul.f32 %v1654_v26, %v5094_v11  ;;  %v1578_v16 = vadd.f32 0.05243302, %v1577_v15  ;;  %v5168_v43 = vpop.f32.mrf.mxu1  ;;  %v4036_v13 = vld [vmem:[%s4443_s13 + $0x94] sm:$0xf0] }
 0x260   : > { %v1632_v32 = vmul.f32 %v1631_v52, %v5071_v33  ;;  %3268 = vmatpush.bf16.msrb.mxu3 %v3913_v29  ;;  %v5241_v50 = vmul.f32 0.5, %v5055_v4 }
 0x261   : > { %v1669_v38 = vadd.f32 0.112945676, %v1668_v36  ;;  %v5147_v49 = vadd.f32 1.0, %v1592_v39  ;;  %v1539_v36 = vmul.f32 %v1538_v21, %v5057_v59  ;;  %v1579_v10 = vmul.f32 %v1578_v16, %v5085_v41  ;;  %v5183_v39 = vpop.f32.mrf.mxu2 }
 0x262   : > { %v5114_v25 = vadd.f32 1.0, %v1632_v32  ;;  %v1619_v32 = vmul.f32 %v1618_v28, %v5071_v33  ;;  %v1566_v16 = vor.u32 1.1754944e-38, %v1565_v34 }
 0x263   : > { %v1670_v35 = vmul.f32 %v1669_v38, %v5094_v11  ;;  %v1656_v38 = vadd.f32 0.0036580483, %v1655_v48  ;;  %v1540_v3 = vadd.f32 0.18741608, %v1539_v36  ;;  %v3845_v48 = vor.u32 %v4020_v1, %v3844_v58 }
 0x264   : > { %4141 = vrcp.f32 %v5114_v25  ;;  %v1620_v54 = vadd.f32 0.18741608, %v1619_v32  ;;  %v1645_v23 = vand.u32 2147483648, %v5114_v25  ;;  %vm1639_vm3 = vweird.f32 %v5114_v25 }
 0x265   : > { %v1671_v56 = vadd.f32 0.4994258, %v1670_v35  ;;  %4143 = vrcp.f32 %v5117_v37  ;;  %v1286_v35 = vadd.f32 %v1285_v27, %v5041_v6  ;;  %v1657_v19 = vmul.f32 %v1656_v38, %v5094_v11  ;;  %3121 = vmatpush.bf16.msrb.mxu0 %v3845_v48  ;;  %v4017_v48 = vld [vmem:[%s4443_s13 + $0x4] sm:$0xf] }
 0x266   : > { %v1541_v27 = vmul.f32 %v1540_v3, %v5057_v59  ;;  %v1621_v30 = vmul.f32 %v1620_v54, %v5071_v33  ;;  %v5192_v33 = vpop.f32.mrf.mxu0  ;;  %v1563_v36 = vand.u32 2147483647, %v5117_v37  ;;  %v1384_v32 = vadd.f32 %v1383_v22, %v5049_v7 }
 0x267   : > { %v1672_v60 = vmul.f32 %v1671_v56, %v5094_v11  ;;  %v5166_v42 = vadd.f32 %v1334_v9, %v1286_v35  ;;  %v1580_v9 = vadd.f32 0.18741608, %v1579_v10  ;;  %v3909_v38 = vor.u32 %v4036_v13, %v3908_v0 }
 0x268   : > { %v1646_v35 = vor.u32 1.1754944e-38, %v1645_v23  ;;  %vm1564_vm8 = vcmp.eq.f32.partialorder %v1563_v36, 8.507059e+37  ;;  %vm1599_vm9 = vweird.f32 %v5147_v49  ;;  %v1605_v0 = vand.u32 2147483648, %v5147_v49 }
 0x269   : > { %v5141_v8 = vadd.f32 1.0, %v1672_v60  ;;  %v1658_v60 = vadd.f32 0.05243302, %v1657_v19  ;;  %v5190_v28 = vmul.f32 0.70710677, %v5166_v42  ;;  %3170 = vmatpush.bf16.msrb.mxu1 %v3909_v38  ;;  %v1581_v54 = vmul.f32 %v1580_v9, %v5085_v41  ;;  %v1388_v29 = vpop.f32.mrf.mxu2 }
 0x26a   : > { %v5135_v62 = vpop.eup %4141  ;;  %v5225_v19 = vadd.f32 %v1432_v46, %v1384_v32  ;;  %v5234_v41 = vmul.f32 0.5, %v5044_v17  ;;  %v5246_v17 = vadd.f32 %v5168_v43, %v1288_v5  ;;  %v3838_v9 = vld [vmem:[%s4443_s13 + $0x8] sm:$0xf0]  ;;  %v1386_v32 = vadd.f32 %v5183_v39, %v5049_v7 }
 0x26b   : > { %v5138_v14 = vpop.eup %4143  ;;  %v1635_v52 = vmul.f32 %v5135_v62, %v5114_v25  ;;  %4145 = vrcp.f32 %v5141_v8  ;;  %vm1640_vm2 = vweird.f32 %v5135_v62  ;;  %v1659_v24 = vmul.f32 %v1658_v60, %v5094_v11 }
 0x26c   : > { %v1555_v53 = vmul.f32 %v5138_v14, %v5117_v37  ;;  %4147 = vrcp.f32 %v5147_v49  ;;  %vm1560_vm1 = vweird.f32 %v5138_v14  ;;  %vm5202_vm5 = vmor %vm1639_vm3, %vm1640_vm2  ;;  %v1691_v3 = vmul.f32 %v5190_v28, %v5190_v28 }
 0x26d   : > { %v1636_v63 = vsub.f32 1.0, %v1635_v52  ;;  %vm5209_vm6 = vmor %vm1559_vm4, %vm1560_vm1  ;;  %v1582_v46 = vadd.f32 1.1283791, %v1581_v54  ;;  %v5252_v4 = vmul.f32 0.70710677, %v5225_v19  ;;  %vm1679_vm12 = vweird.f32 %v5141_v8 }
 0x26e   : > { %v1556_v31 = vsub.f32 1.0, %v1555_v53  ;;  %v1643_v53 = vand.u32 2147483647, %v5114_v25  ;;  %v1622_v25 = vadd.f32 1.1283791, %v1621_v30  ;;  %v5237_v1 = vmin.f32 %v1691_v3, 16.0 }
 0x26f   : > { %v1637_v40 = vmul.f32 %v5135_v62, %v1636_v63  ;;  %v1683_v13 = vand.u32 2147483647, %v5141_v8  ;;  %v5272_v15 = vmul.f32 0.70710677, %v5246_v17  ;;  %v1291_v63 = vadd.f32 %v5192_v33, %v5041_v6  ;;  %v3836_v54 = vld [vmem:[%s4443_s13] sm:$0xf] }
 0x270   : > { %v1557_v12 = vmul.f32 %v5138_v14, %v1556_v31  ;;  %v1542_v31 = vadd.f32 1.1283791, %v1541_v27  ;;  %vm1644_vm7 = vcmp.eq.f32.partialorder %v1643_v53, 8.507059e+37  ;;  %v1660_v27 = vadd.f32 0.18741608, %v1659_v24 }
 0x271   : > { %v5163_v56 = vpop.eup %4145  ;;  %v1638_v26 = vadd.f32 %v5135_v62, %v1637_v40  ;;  %v5223_v40 = vpop.f32.mrf.mxu3  ;;  %v1693_v23 = vmul.f32 2.1237322e-06, %v5237_v1  ;;  %v4033_v24 = vld [vmem:[%s4443_s13 + $0x84] sm:$0xf]  ;;  %vm1684_vm0 = vcmp.eq.f32.partialorder %v1683_v13, 8.507059e+37 }
 0x272   : > { %v5174_v51 = vpop.eup %4147  ;;  %v1675_v59 = vmul.f32 %v5163_v56, %v5141_v8  ;;  %v1558_v21 = vadd.f32 %v5138_v14, %v1557_v12  ;;  %v1623_v12 = vmul.f32 %v1622_v25, %v5062_v18  ;;  %v1543_v58 = vmul.f32 %v1542_v31, %v5047_v47  ;;  %v1292_v47 = vpop.f32.mrf.mxu0 }
 0x273   : > { %v1595_v52 = vmul.f32 %v5174_v51, %v5147_v49  ;;  %v1642_v37 = vsel %vm5202_vm5, %v5135_v62, %v1638_v26  ;;  %v1603_v18 = vand.u32 2147483647, %v5147_v49  ;;  %v1661_v60 = vmul.f32 %v1660_v27, %v5094_v11  ;;  %v3900_v27 = vld [vmem:[%s4443_s13 + $0x80] sm:$0xf] }
 0x274   : > { %v1676_v44 = vsub.f32 1.0, %v1675_v59  ;;  %v1562_v22 = vsel %vm5209_vm6, %v5138_v14, %v1558_v21  ;;  %v1647_v62 = vsel %vm1644_vm7, %v1646_v35, %v1642_v37  ;;  %v5229_v14 = vpop.f32.mrf.mxu1  ;;  %vm1680_vm10 = vweird.f32 %v5163_v56 }
 0x275   : > { %v1596_v55 = vsub.f32 1.0, %v1595_v52  ;;  %v1567_v61 = vsel %vm1564_vm8, %v1566_v16, %v1562_v22  ;;  %v1648_v30 = vmul.f32 %v1647_v62, %v1623_v12  ;;  %v1685_v21 = vand.u32 2147483648, %v5141_v8  ;;  %vm5267_vm14 = vmor %vm1679_vm12, %vm1680_vm10 }
 0x276   : > { %v1677_v10 = vmul.f32 %v5163_v56, %v1676_v44  ;;  %v1568_v26 = vmul.f32 %v1567_v61, %v1543_v58  ;;  %vm1600_vm11 = vweird.f32 %v5174_v51  ;;  %vm5263_vm13 = vcmp.eq.f32.partialorder %v1603_v18, 8.507059e+37  ;;  %v3902_v44 = vld [vmem:[%s4443_s13 + $0x88] sm:$0xf0] }
 0x277   : > { %v1597_v34 = vmul.f32 %v5174_v51, %v1596_v55  ;;  %v3804_v11 = vclamps-f32 %v1648_v30, 1.0  ;;  %v1662_v38 = vadd.f32 1.1283791, %v1661_v60  ;;  %v1389_v25 = vadd.f32 %v1388_v29, %v5049_v7  ;;  %vm5288_vm15 = vmor %vm1599_vm9, %vm1600_vm11  ;;  %v4018_v55 = vld [vmem:[%s4443_s13 + $0x4] sm:$0xf0]  ;;  %v1390_v29 = vpop.f32.mrf.mxu2 }
 0x278   : > { %v1678_v59 = vadd.f32 %v5163_v56, %v1677_v10  ;;  %v3802_v52 = vclamps-f32 %v1568_v26, 1.0  ;;  %v1606_v31 = vor.u32 1.1754944e-38, %v1605_v0  ;;  %v1694_v22 = vadd.f32 0.00028619796, %v1693_v23  ;;  %v4034_v10 = vld [vmem:[%s4443_s13 + $0x84] sm:$0xf0] }
 0x279   : > { %v1598_v43 = vadd.f32 %v5174_v51, %v1597_v34  ;;  %v1437_v37 = vpop.f32.mrf.mxu3  ;;  %v3841_v35 = vor.u32 %v4017_v48, %v3838_v9  ;;  %v2813_v16 = vadd.f32 1.0, %v3804_v11  ;;  %v1731_v49 = vmul.f32 %v5252_v4, %v5252_v4 }
 0x27a   : > { %v1682_v8 = vsel %vm5267_vm14, %v5163_v56, %v1678_v59  ;;  %v1686_v56 = vor.u32 1.1754944e-38, %v1685_v21  ;;  %v2811_v62 = vadd.f32 1.0, %v3802_v52  ;;  %v5300_v61 = vadd.f32 %v5223_v40, %v1386_v32  ;;  %v1295_v60 = vpop.f32.mrf.mxu0 }
 0x27b   : > { %v1602_v3 = vsel %vm5288_vm15, %v5174_v51, %v1598_v43  ;;  %3220 = vmatpush.bf16.msrb.mxu2 %v3841_v35  ;;  %v3905_v12 = vor.u32 %v4033_v24, %v3902_v44  ;;  %v1663_v58 = vmul.f32 %v1662_v38, %v5083_v20  ;;  %v1771_v51 = vmul.f32 %v5272_v15, %v5272_v15 }
 0x27c   : > { %v1341_v33 = vpop.f32.mrf.mxu1  ;;  %v1687_v5 = vsel %vm1684_vm0, %v1686_v56, %v1682_v8  ;;  %v5308_v34 = vadd.f32 %v5229_v14, %v1291_v63  ;;  %v5310_v30 = vadd.f32 %v1437_v37, %v1389_v25  ;;  %v1583_v26 = vmul.f32 %v1582_v46, %v5069_v45 }
 0x27d   : > { %v1607_v40 = vsel %vm5263_vm13, %v1606_v31, %v1602_v3  ;;  %v1293_v18 = vadd.f32 %v1292_v47, %v5041_v6  ;;  %3269 = vmatpush.bf16.msrb.mxu3 %v3905_v12  ;;  %v3837_v59 = vor.u32 %v4018_v55, %v3836_v54  ;;  %v2845_v20 = vmul.f32 %v2813_v16, %v5241_v50 }
 0x27e   : > { %v1688_v0 = vmul.f32 %v1687_v5, %v1663_v58  ;;  %v5317_v13 = vmin.f32 %v1731_v49, 16.0  ;;  %v3901_v14 = vor.u32 %v4034_v10, %v3900_v27  ;;  %v2843_v21 = vmul.f32 %v2811_v62, %v5234_v41 }
 0x27f   : > { %v1695_v23 = vmul.f32 %v1694_v22, %v5237_v1  ;;  %v5322_v45 = vmul.f32 0.70710677, %v5300_v61  ;;  %3122 = vmatpush.bf16.msrb.mxu0 %v3837_v59  ;;  %v1608_v46 = vmul.f32 %v1607_v40, %v1583_v26  ;;  %v5324_v43 = vmin.f32 %v1771_v51, 16.0  ;;  %v1393_v56 = vpop.f32.mrf.mxu2 }
 0x280   : > { %v5327_v47 = vmul.f32 0.70710677, %v5308_v34  ;;  %v5330_v50 = vmul.f32 0.70710677, %v5310_v30  ;;  %3171 = vmatpush.bf16.msrb.mxu1 %v3901_v14  ;;  %v5332_v11 = vadd.f32 %v1341_v33, %v1293_v18  ;;  %v1391_v41 = vadd.f32 %v1390_v29, %v5049_v7 }
 0x281   : > { %v3805_v48 = vclamps-f32 %v1688_v0, 1.0  ;;  %v1733_v9 = vmul.f32 2.1237322e-06, %v5317_v13  ;;  %v1439_v52 = vpop.f32.mrf.mxu3  ;;  %v2875_v53 = vpack.c.bf16 %v2845_v20, %v2843_v21  ;;  %v1696_v36 = vadd.f32 0.0036580483, %v1695_v23 }
 0x282   : > { %v1811_v32 = vmul.f32 %v5322_v45, %v5322_v45  ;;  %v3803_v8 = vclamps-f32 %v1608_v46, 1.0  ;;  %v1773_v63 = vmul.f32 2.1237322e-06, %v5324_v43  ;;  %v1851_v25 = vmul.f32 %v5327_v47, %v5327_v47  ;;  %v1297_v16 = vpop.f32.mrf.mxu0 }
 0x283   : > { %v1891_v37 = vmul.f32 %v5330_v50, %v5330_v50  ;;  %3123 = vmatmul.bf16.vlgmr.msrb.gmra.mxu0 %v2875_v53  ;;  %3221 = vmatmul.bf16.vlgmr.msrb.gmra.mxu2 %v2875_v53  ;;  %v5344_v24 = vmul.f32 0.70710677, %v5332_v11  ;;  %v5346_v44 = vadd.f32 %v1439_v52, %v1391_v41  ;;  %v2814_v39 = vadd.f32 1.0, %v3805_v48 }
 0x284   : > { %v1344_v38 = vpop.f32.mrf.mxu1  ;;  %v1734_v31 = vadd.f32 0.00028619796, %v1733_v9  ;;  %v1470_v22 = vmul.f32 0.5, %v5074_v2  ;;  %v1697_v33 = vmul.f32 %v1696_v36, %v5237_v1  ;;  %v5350_v35 = vmin.f32 %v1811_v32, 16.0 }
 0x285   : > { %v1296_v3 = vadd.f32 %v1295_v60, %v5041_v6  ;;  %v2812_v49 = vadd.f32 1.0, %v3803_v8  ;;  %v1774_v54 = vadd.f32 0.00028619796, %v1773_v63  ;;  %v5353_v55 = vmin.f32 %v1851_v25, 16.0 }
 0x286   : > { %v5355_v62 = vmin.f32 %v1891_v37, 16.0  ;;  %v1931_v5 = vmul.f32 %v5344_v24, %v5344_v24  ;;  %v5360_v12 = vmul.f32 0.70710677, %v5346_v44  ;;  %v1394_v2 = vadd.f32 %v1393_v56, %v5049_v7 }
 0x287   : > { %v1468_v27 = vmul.f32 0.5, %v5059_v57  ;;  %v2846_v10 = vmul.f32 %v2814_v39, %v1470_v22  ;;  %v1735_v58 = vmul.f32 %v1734_v31, %v5317_v13  ;;  %v1298_v51 = vadd.f32 %v1297_v16, %v5041_v6  ;;  %v1395_v22 = vpop.f32.mrf.mxu2 }
 0x288   : > { %6789 = vst [vmem:[#allocation5_spill] sm:$0xff] %v5355_v62  ;;  %v1698_v29 = vadd.f32 0.05243302, %v1697_v33  ;;  %v1813_v26 = vmul.f32 2.1237322e-06, %v5350_v35  ;;  %v5367_v40 = vadd.f32 %v1344_v38, %v1296_v3  ;;  %v1775_v60 = vmul.f32 %v1774_v54, %v5324_v43 }
 0x289   : > { %v2844_v18 = vmul.f32 %v2812_v49, %v1468_v27  ;;  %v1853_v59 = vmul.f32 2.1237322e-06, %v5353_v55  ;;  %v1893_v20 = vmul.f32 2.1237322e-06, %v5355_v62  ;;  %v1442_v0 = vpop.f32.mrf.mxu3  ;;  %v5372_v14 = vmin.f32 %v1931_v5, 16.0 }
 0x28a   : > { %v1971_v57 = vmul.f32 %v5360_v12, %v5360_v12  ;;  %v5376_v21 = vadd.f32 %v1442_v0, %v1394_v2  ;;  %v1736_v46 = vadd.f32 0.0036580483, %v1735_v58  ;;  %v1814_v9 = vadd.f32 0.00028619796, %v1813_v26 }
 0x28b   : > { %v2876_v48 = vpack.c.bf16 %v2846_v10, %v2844_v18  ;;  %v5381_v52 = vmul.f32 0.70710677, %v5367_v40  ;;  %v1699_v53 = vmul.f32 %v1698_v29, %v5237_v1  ;;  %v1776_v36 = vadd.f32 0.0036580483, %v1775_v60 }
 0x28c   : > { %v1346_v23 = vpop.f32.mrf.mxu1  ;;  %v1854_v32 = vadd.f32 0.00028619796, %v1853_v59  ;;  %v1894_v38 = vadd.f32 0.00028619796, %v1893_v20  ;;  %v1933_v8 = vmul.f32 2.1237322e-06, %v5372_v14  ;;  %v1737_v37 = vmul.f32 %v1736_v46, %v5317_v13  ;;  %v1300_v59 = vpop.f32.mrf.mxu0 }
 0x28d   : > { %v5378_v41 = vadd.f32 %v1346_v23, %v1298_v51  ;;  %3172 = vmatmul.bf16.vlgmr.msrb.gmra.mxu1 %v2876_v48  ;;  %3270 = vmatmul.bf16.vlgmr.msrb.gmra.mxu3 %v2876_v48  ;;  %v5385_v63 = vmin.f32 %v1971_v57, 16.0  ;;  %v5388_v25 = vmul.f32 0.70710677, %v5376_v21  ;;  %v1815_v31 = vmul.f32 %v1814_v9, %v5350_v35 }
 0x28e   : > { %v2011_v56 = vmul.f32 %v5381_v52, %v5381_v52  ;;  %v1700_v33 = vadd.f32 0.18741608, %v1699_v53  ;;  %v1777_v3 = vmul.f32 %v1776_v36, %v5324_v43  ;;  %v1855_v16 = vmul.f32 %v1854_v32, %v5353_v55 }
 0x28f   : > { %v5392_v39 = vmul.f32 0.70710677, %v5378_v41  ;;  %v1895_v49 = vmul.f32 %v1894_v38, %v5355_v62  ;;  %v1934_v54 = vadd.f32 0.00028619796, %v1933_v8  ;;  %v1973_v5 = vmul.f32 2.1237322e-06, %v5385_v63 }
 0x290   : > { %v2051_v2 = vmul.f32 %v5388_v25, %v5388_v25  ;;  %v1738_v27 = vadd.f32 0.05243302, %v1737_v37  ;;  %v1396_v58 = vadd.f32 %v1395_v22, %v5049_v7  ;;  %v1816_v51 = vadd.f32 0.0036580483, %v1815_v31 }
 0x291   : > { %v2091_v10 = vmul.f32 %v5392_v39, %v5392_v39  ;;  %v5406_v29 = vmin.f32 %v2011_v56, 16.0  ;;  %v1701_v26 = vmul.f32 %v1700_v33, %v5237_v1  ;;  %v1778_v18 = vadd.f32 0.05243302, %v1777_v3  ;;  %v1444_v46 = vpop.f32.mrf.mxu3 }
 0x292   : > { %v1856_v60 = vadd.f32 0.0036580483, %v1855_v16  ;;  %v1896_v20 = vadd.f32 0.0036580483, %v1895_v49  ;;  %v1935_v0 = vmul.f32 %v1934_v54, %v5372_v14  ;;  %v1974_v57 = vadd.f32 0.00028619796, %v1973_v5 }
 0x293   : > { %v5410_v23 = vmin.f32 %v2051_v2, 16.0  ;;  %v1739_v48 = vmul.f32 %v1738_v27, %v5317_v13  ;;  %v5413_v9 = vmin.f32 %v2091_v10, 16.0  ;;  %v5415_v53 = vadd.f32 %v1444_v46, %v1396_v58  ;;  %v1398_v46 = vpop.f32.mrf.mxu2 }
 0x294   : > { %v1817_v36 = vmul.f32 %v1816_v51, %v5350_v35  ;;  %v2013_v32 = vmul.f32 2.1237322e-06, %v5406_v29  ;;  %v1301_v38 = vadd.f32 %v1300_v59, %v5041_v6  ;;  %v5421_v8 = vmul.f32 0.5, %v5166_v42  ;;  %v1349_v42 = vpop.f32.mrf.mxu1 }
 0x295   : > { %6790 = vst [vmem:[#allocation6_spill] sm:$0xff] %v5410_v23  ;;  %v1702_v37 = vadd.f32 1.1283791, %v1701_v26  ;;  %v1779_v31 = vmul.f32 %v1778_v18, %v5324_v43  ;;  %v1857_v56 = vmul.f32 %v1856_v60, %v5353_v55  ;;  %v1897_v22 = vmul.f32 %v1896_v20, %v5355_v62 }
 0x296   : > { %6791 = vst [vmem:[#allocation7_spill] sm:$0xff] %v5413_v9  ;;  %v1936_v33 = vadd.f32 0.0036580483, %v1935_v0  ;;  %v1975_v3 = vmul.f32 %v1974_v57, %v5385_v63  ;;  %v2053_v16 = vmul.f32 2.1237322e-06, %v5410_v23  ;;  %v5433_v2 = vmul.f32 0.5, %v5225_v19 }
 0x297   : > { %v1740_v49 = vadd.f32 0.18741608, %v1739_v48  ;;  %v2093_v54 = vmul.f32 2.1237322e-06, %v5413_v9  ;;  %v5430_v5 = vmul.f32 0.70710677, %v5415_v53  ;;  %v5435_v58 = vadd.f32 %v1349_v42, %v1301_v38 }
 0x298   : > { %v1818_v27 = vadd.f32 0.05243302, %v1817_v36  ;;  %v2014_v10 = vadd.f32 0.00028619796, %v2013_v32  ;;  %v5438_v51 = vmul.f32 0.5, %v5246_v17  ;;  %v5441_v18 = vmul.f32 0.5, %v5300_v61 }
 0x299   : > { %v1780_v26 = vadd.f32 0.18741608, %v1779_v31  ;;  %v1858_v60 = vadd.f32 0.05243302, %v1857_v56  ;;  %v1898_v59 = vadd.f32 0.05243302, %v1897_v22  ;;  %v1937_v20 = vmul.f32 %v1936_v33, %v5372_v14 }
 0x29a   : > { %v1976_v0 = vadd.f32 0.0036580483, %v1975_v3  ;;  %v2054_v57 = vadd.f32 0.00028619796, %v2053_v16  ;;  %v5445_v19 = vmul.f32 %v1702_v37, %v5190_v28  ;;  %v1741_v48 = vmul.f32 %v1740_v49, %v5317_v13 }
 0x29b   : > { %v2094_v36 = vadd.f32 0.00028619796, %v2093_v54  ;;  %v2131_v17 = vmul.f32 %v5430_v5, %v5430_v5  ;;  %v1819_v32 = vmul.f32 %v1818_v27, %v5350_v35  ;;  %v5452_v61 = vmul.f32 0.5, %v5308_v34 }
 0x29c   : > { %v2015_v38 = vmul.f32 %v2014_v10, %v5406_v29  ;;  %v5456_v31 = vmul.f32 0.70710677, %v5435_v58  ;;  %v1781_v56 = vmul.f32 %v1780_v26, %v5324_v43  ;;  %v1859_v28 = vmul.f32 %v1858_v60, %v5353_v55 }
 0x29d   : > { %6792 = vst [vmem:[#allocation8_spill] sm:$0xff] %v5452_v61  ;;  %v5461_v37 = vmul.f32 0.5, %v5310_v30  ;;  %v1399_v22 = vadd.f32 %v1398_v46, %v5049_v7  ;;  %v1899_v33 = vmul.f32 %v1898_v59, %v5355_v62  ;;  %v1938_v3 = vadd.f32 0.05243302, %v1937_v20  ;;  %v1447_v59 = vpop.f32.mrf.mxu3 }
 0x29e   : > { %v1977_v34 = vmul.f32 %v1976_v0, %v5385_v63  ;;  %v2055_v16 = vmul.f32 %v2054_v57, %v5410_v23  ;;  %v1742_v49 = vadd.f32 1.1283791, %v1741_v48  ;;  %v2095_v54 = vmul.f32 %v2094_v36, %v5413_v9 }
 0x29f   : > { %6793 = vst [vmem:[#allocation9_spill] sm:$0xff] %v5461_v37  ;;  %v5468_v42 = vmin.f32 %v2131_v17, 16.0  ;;  %v1704_v27 = vmul.f32 3.8918573e-05, %v5237_v1  ;;  %v1820_v10 = vadd.f32 0.18741608, %v1819_v32  ;;  %v2171_v60 = vmul.f32 %v5456_v31, %v5456_v31  ;;  %v1302_v37 = vpop.f32.mrf.mxu0 }
 0x2a0   : > { %v5472_v30 = vmul.f32 0.5, %v5332_v11  ;;  %v2016_v26 = vadd.f32 0.0036580483, %v2015_v38  ;;  %v1782_v20 = vadd.f32 1.1283791, %v1781_v56  ;;  %v5477_v57 = vmul.f32 0.5, %v5346_v44 }
 0x2a1   : > { %v1860_v0 = vadd.f32 0.18741608, %v1859_v28  ;;  %v5479_v46 = vadd.f32 %v1447_v59, %v1399_v22  ;;  %v1900_v48 = vadd.f32 0.18741608, %v1899_v33  ;;  %v1939_v36 = vmul.f32 %v1938_v3, %v5372_v14 }
 0x2a2   : > { %6794 = vst [vmem:[#allocation10_spill] sm:$0xff] %v5472_v30  ;;  %v1978_v17 = vadd.f32 0.05243302, %v1977_v34  ;;  %v2056_v32 = vadd.f32 0.0036580483, %v2055_v16  ;;  %v5483_v11 = vmul.f32 %v1742_v49, %v5252_v4  ;;  %v1821_v56 = vmul.f32 %v1820_v10, %v5350_v35 }
 0x2a3   : > { %6795 = vst [vmem:[#allocation11_spill] sm:$0xff] %v5477_v57  ;;  %v2096_v38 = vadd.f32 0.0036580483, %v2095_v54  ;;  %v2133_v30 = vmul.f32 2.1237322e-06, %v5468_v42  ;;  %v5488_v44 = vmul.f32 0.5, %v5367_v40  ;;  %v2017_v28 = vmul.f32 %v2016_v26, %v5406_v29 }
 0x2a4   : > { %v1705_v61 = vadd.f32 0.001143296, %v1704_v27  ;;  %v5491_v22 = vmin.f32 %v2171_v60, 16.0  ;;  %v1861_v33 = vmul.f32 %v1860_v0, %v5353_v55  ;;  %v5495_v3 = vmul.f32 0.70710677, %v5479_v46 }
 0x2a5   : > { %6796 = vst [vmem:[#allocation12_spill] sm:$0xff] %v5488_v44  ;;  %v1303_v4 = vadd.f32 %v1302_v37, %v5041_v6  ;;  %v1901_v16 = vmul.f32 %v1900_v48, %v5355_v62  ;;  %v1940_v49 = vadd.f32 0.18741608, %v1939_v36  ;;  %v1979_v54 = vmul.f32 %v1978_v17, %v5385_v63  ;;  %v1351_v48 = vpop.f32.mrf.mxu1 }
 0x2a6   : > { %v1706_v34 = vmul.f32 %v1705_v61, %v5237_v1  ;;  %v5502_v40 = vmul.f32 0.5, %v5376_v21  ;;  %v2057_v27 = vmul.f32 %v2056_v32, %v5410_v23  ;;  %v2097_v10 = vmul.f32 %v2096_v38, %v5413_v9 }
 0x2a7   : > { %v2134_v26 = vadd.f32 0.00028619796, %v2133_v30  ;;  %v5507_v59 = vmul.f32 %v1782_v20, %v5272_v15  ;;  %v2018_v37 = vadd.f32 0.05243302, %v2017_v28  ;;  %v2173_v61 = vmul.f32 2.1237322e-06, %v5491_v22 }
 0x2a8   : > { %6797 = vst [vmem:[#allocation13_spill] sm:$0xff] %v5502_v40  ;;  %v1707_v60 = vadd.f32 0.014752088, %v1706_v34  ;;  %v2184_v0 = vmul.f32 3.8918573e-05, %v5491_v22  ;;  %v2211_v21 = vmul.f32 %v5495_v3, %v5495_v3  ;;  %v5513_v40 = vadd.f32 %v1351_v48, %v1303_v4 }
 0x2a9   : > { %v1822_v36 = vadd.f32 1.1283791, %v1821_v56  ;;  %v1862_v17 = vadd.f32 1.1283791, %v1861_v33  ;;  %v1902_v32 = vadd.f32 1.1283791, %v1901_v16  ;;  %v1941_v30 = vmul.f32 %v1940_v49, %v5372_v14 }
 0x2aa   : > { %v1980_v38 = vadd.f32 0.18741608, %v1979_v54  ;;  %v1708_v15 = vmul.f32 %v1707_v60, %v5237_v1  ;;  %v2058_v20 = vadd.f32 0.05243302, %v2057_v27  ;;  %v2098_v28 = vadd.f32 0.05243302, %v2097_v10 }
 0x2ab   : > { %v2135_v34 = vmul.f32 %v2134_v26, %v5468_v42  ;;  %v1784_v44 = vmul.f32 3.8918573e-05, %v5324_v43  ;;  %v2019_v56 = vmul.f32 %v2018_v37, %v5406_v29  ;;  %v2174_v33 = vadd.f32 0.00028619796, %v2173_v61 }
 0x2ac   : > { %v2185_v57 = vadd.f32 0.001143296, %v2184_v0  ;;  %v1709_v62 = vadd.f32 0.112945676, %v1708_v15  ;;  %v5521_v4 = vmul.f32 %v1822_v36, %v5322_v45  ;;  %v5524_v16 = vmul.f32 0.5, %v5378_v41 }
 0x2ad   : > { %v5526_v49 = vmin.f32 %v2211_v21, 16.0  ;;  %v5529_v54 = vmul.f32 0.70710677, %v5513_v40  ;;  %v5532_v27 = vmul.f32 %v1862_v17, %v5327_v47  ;;  %v5535_v10 = vmul.f32 %v1902_v32, %v5330_v50  ;;  %v1400_v17 = vpop.f32.mrf.mxu2 }
 0x2ae   : > { %6798 = vst [vmem:[#allocation14_spill] sm:$0xff] %v5524_v16  ;;  %v1942_v26 = vadd.f32 1.1283791, %v1941_v30  ;;  %v1981_v60 = vmul.f32 %v1980_v38, %v5385_v63  ;;  %v2059_v45 = vmul.f32 %v2058_v20, %v5410_v23  ;;  %v2136_v37 = vadd.f32 0.0036580483, %v2135_v34 }
 0x2af   : > { %v1710_v41 = vmul.f32 %v1709_v62, %v5237_v1  ;;  %v1785_v61 = vadd.f32 0.001143296, %v1784_v44  ;;  %v2020_v0 = vadd.f32 0.18741608, %v2019_v56  ;;  %v2099_v48 = vmul.f32 %v2098_v28, %v5413_v9 }
 0x2b0   : > { %v2175_v36 = vmul.f32 %v2174_v33, %v5491_v22  ;;  %v2186_v47 = vmul.f32 %v2185_v57, %v5491_v22  ;;  %v5544_v50 = vmul.f32 0.5, %v5415_v53  ;;  %v2224_v21 = vmul.f32 3.8918573e-05, %v5526_v49 }
 0x2b1   : > { %v2251_v32 = vmul.f32 %v5529_v54, %v5529_v54  ;;  %v1711_v30 = vadd.f32 0.4994258, %v1710_v41  ;;  %v1982_v38 = vadd.f32 1.1283791, %v1981_v60  ;;  %v5550_v62 = vmul.f32 0.5, %v5435_v58 }
 0x2b2   : > { %6799 = vst [vmem:[#allocation15_spill] sm:$0xff] %v5544_v50  ;;  %v1786_v44 = vmul.f32 %v1785_v61, %v5324_v43  ;;  %v1744_v15 = vmul.f32 3.8918573e-05, %v5317_v13  ;;  %v2060_v20 = vadd.f32 0.18741608, %v2059_v45  ;;  %v2137_v57 = vmul.f32 %v2136_v37, %v5468_v42  ;;  %v1449_v37 = vpop.f32.mrf.mxu3 }
 0x2b3   : > { %v1401_v53 = vadd.f32 %v1400_v17, %v5049_v7  ;;  %v1712_v28 = vmul.f32 %v1711_v30, %v5237_v1  ;;  %v2021_v34 = vmul.f32 %v2020_v0, %v5406_v29  ;;  %v2100_v56 = vadd.f32 0.18741608, %v2099_v48 }
 0x2b4   : > { %v2176_v33 = vadd.f32 0.0036580483, %v2175_v36  ;;  %v2187_v41 = vadd.f32 0.014752088, %v2186_v47  ;;  %v2213_v60 = vmul.f32 2.1237322e-06, %v5526_v49  ;;  %v5564_v45 = vmul.f32 %v1942_v26, %v5344_v24 }
 0x2b5   : > { %v2225_v58 = vadd.f32 0.001143296, %v2224_v21  ;;  %v5559_v50 = vmin.f32 %v2251_v32, 16.0  ;;  %v5561_v61 = vadd.f32 1.0, %v1712_v28  ;;  %v1787_v16 = vadd.f32 0.014752088, %v1786_v44 }
 0x2b6   : > { %v1745_v17 = vadd.f32 0.001143296, %v1744_v15  ;;  %v1824_v1 = vmul.f32 3.8918573e-05, %v5350_v35  ;;  %v5568_v0 = vmul.f32 %v1982_v38, %v5360_v12  ;;  %v2138_v48 = vadd.f32 0.05243302, %v2137_v57 }
 0x2b7   : > { %v5570_v36 = vadd.f32 %v1449_v37, %v1401_v53  ;;  %4149 = vrcp.f32 %v5561_v61  ;;  %v2022_v47 = vadd.f32 1.1283791, %v2021_v34  ;;  %v2061_v21 = vmul.f32 %v2060_v20, %v5410_v23 }
 0x2b8   : > { %v2188_v32 = vmul.f32 %v2187_v41, %v5491_v22  ;;  %v5576_v24 = vmul.f32 0.5, %v5479_v46  ;;  %v2101_v26 = vmul.f32 %v2100_v56, %v5413_v9  ;;  %v2177_v30 = vmul.f32 %v2176_v33, %v5491_v22 }
 0x2b9   : > { %v1788_v12 = vmul.f32 %v1787_v16, %v5324_v43  ;;  %v1746_v38 = vmul.f32 %v1745_v17, %v5317_v13  ;;  %v2214_v44 = vadd.f32 0.00028619796, %v2213_v60  ;;  %v2226_v15 = vmul.f32 %v2225_v58, %v5526_v49  ;;  %v1305_v17 = vpop.f32.mrf.mxu0 }
 0x2ba   : > { %6800 = vst [vmem:[#allocation16_spill] sm:$0xff] %v5576_v24  ;;  %v2253_v57 = vmul.f32 2.1237322e-06, %v5559_v50  ;;  %v1825_v53 = vadd.f32 0.001143296, %v1824_v1  ;;  %v2139_v20 = vmul.f32 %v2138_v48, %v5468_v42  ;;  %v5589_v56 = vmul.f32 %v2022_v47, %v5381_v52 }
 0x2bb   : > { %v5586_v28 = vmul.f32 0.70710677, %v5570_v36  ;;  %v1789_v46 = vadd.f32 0.112945676, %v1788_v12  ;;  %v1747_v34 = vadd.f32 0.014752088, %v1746_v38  ;;  %v2215_v12 = vmul.f32 %v2214_v44, %v5526_v49 }
 0x2bc   : > { %6801 = vst [vmem:[#allocation17_spill] sm:$0xff] %v5589_v56  ;;  %v2062_v33 = vadd.f32 1.1283791, %v2061_v21  ;;  %v2189_v16 = vadd.f32 0.112945676, %v2188_v32  ;;  %v5592_v41 = vmul.f32 0.5, %v5513_v40  ;;  %v1826_v48 = vmul.f32 %v1825_v53, %v5350_v35 }
 0x2bd   : > { %v5594_v60 = vpop.eup %4149  ;;  %v2178_v58 = vadd.f32 0.05243302, %v2177_v30  ;;  %v2264_v37 = vmul.f32 3.8918573e-05, %v5559_v50  ;;  %v1790_v1 = vmul.f32 %v1789_v46, %v5324_v43  ;;  %v2227_v38 = vadd.f32 0.014752088, %v2226_v15 }
 0x2be   : > { %6802 = vst [vmem:[#allocation18_spill] sm:$0xff] %v5592_v41  ;;  %v1715_v52 = vmul.f32 %v5594_v60, %v5561_v61  ;;  %v1748_v47 = vmul.f32 %v1747_v34, %v5317_v13  ;;  %v2102_v40 = vadd.f32 1.1283791, %v2101_v26  ;;  %v2140_v21 = vadd.f32 0.18741608, %v2139_v20 }
 0x2bf   : > { %v2254_v32 = vadd.f32 0.00028619796, %v2253_v57  ;;  %v2291_v30 = vmul.f32 %v5586_v28, %v5586_v28  ;;  %v2190_v56 = vmul.f32 %v2189_v16, %v5491_v22  ;;  %v1306_v46 = vadd.f32 %v1305_v17, %v5041_v6  ;;  %v1354_v16 = vpop.f32.mrf.mxu1 }
 0x2c0   : > { %v1716_v23 = vsub.f32 1.0, %v1715_v52  ;;  %v1791_v53 = vadd.f32 0.4994258, %v1790_v1  ;;  %v5608_v44 = vmul.f32 %v2062_v33, %v5388_v25  ;;  %v2265_v15 = vadd.f32 0.001143296, %v2264_v37 }
 0x2c1   : > { %v1749_v41 = vadd.f32 0.112945676, %v1748_v47  ;;  %v1827_v24 = vadd.f32 0.014752088, %v1826_v48  ;;  %v2179_v34 = vmul.f32 %v2178_v58, %v5491_v22  ;;  %v2216_v26 = vadd.f32 0.0036580483, %v2215_v12 }
 0x2c2   : > { %v2228_v57 = vmul.f32 %v2227_v38, %v5526_v49  ;;  %v1792_v20 = vmul.f32 %v1791_v53, %v5324_v43  ;;  %v5613_v9 = vmin.f32 %v2291_v30, 16.0  ;;  %v1717_v17 = vmul.f32 %v5594_v60, %v1716_v23 }
 0x2c3   : > { %v1750_v1 = vmul.f32 %v1749_v41, %v5317_v13  ;;  %v1828_v25 = vmul.f32 %v1827_v24, %v5350_v35  ;;  %v2141_v33 = vmul.f32 %v2140_v21, %v5468_v42  ;;  %v2191_v37 = vadd.f32 0.4994258, %v2190_v56 }
 0x2c4   : > { %v5619_v48 = vadd.f32 %v1354_v16, %v1306_v46  ;;  %v5621_v58 = vadd.f32 1.0, %v1792_v20  ;;  %v5624_v12 = vmul.f32 %v2102_v40, %v5392_v39  ;;  %v2255_v43 = vmul.f32 %v2254_v32, %v5559_v50 }
 0x2c5   : > { %v2266_v38 = vmul.f32 %v2265_v15, %v5559_v50  ;;  %v1751_v52 = vadd.f32 0.4994258, %v1750_v1  ;;  %v2180_v23 = vadd.f32 0.18741608, %v2179_v34  ;;  %v2229_v47 = vadd.f32 0.112945676, %v2228_v57 }
 0x2c6   : > { %4151 = vrcp.f32 %v5621_v58  ;;  %v1829_v24 = vadd.f32 0.112945676, %v1828_v25  ;;  %v2217_v41 = vmul.f32 %v2216_v26, %v5526_v49  ;;  %v2304_v56 = vmul.f32 3.8918573e-05, %v5613_v9 }
 0x2c7   : > { %v1718_v21 = vadd.f32 %v5594_v60, %v1717_v17  ;;  %vm1720_vm1 = vweird.f32 %v5594_v60  ;;  %v2142_v39 = vadd.f32 1.1283791, %v2141_v33  ;;  %v2192_v40 = vmul.f32 %v2191_v37, %v5491_v22 }
 0x2c8   : > { %v5635_v32 = vmul.f32 0.70710677, %v5619_v48  ;;  %v1725_v30 = vand.u32 2147483648, %v5561_v61  ;;  %v2256_v46 = vadd.f32 0.0036580483, %v2255_v43  ;;  %vm1719_vm2 = vweird.f32 %v5561_v61 }
 0x2c9   : > { %v1723_v53 = vand.u32 2147483647, %v5561_v61  ;;  %v1752_v15 = vmul.f32 %v1751_v52, %v5317_v13  ;;  %v2230_v34 = vmul.f32 %v2229_v47, %v5526_v49  ;;  %v2267_v26 = vadd.f32 0.014752088, %v2266_v38  ;;  %vm5645_vm3 = vmor %vm1719_vm2, %vm1720_vm1 }
 0x2ca   : > { %v5643_v57 = vmul.f32 0.5, %v5570_v36  ;;  %v1830_v16 = vmul.f32 %v1829_v24, %v5350_v35  ;;  %v2181_v17 = vmul.f32 %v2180_v23, %v5491_v22  ;;  %v2305_v1 = vadd.f32 0.001143296, %v2304_v56 }
 0x2cb   : > { %v1722_v61 = vsel %vm5645_vm3, %v5594_v60, %v1718_v21  ;;  %v5654_v13 = vadd.f32 1.0, %v1752_v15  ;;  %v5656_v33 = vadd.f32 1.0, %v2192_v40  ;;  %v2218_v36 = vadd.f32 0.05243302, %v2217_v41 }
 0x2cc   : > { %v4152_v25 = vpop.eup %4151  ;;  %v2331_v37 = vmul.f32 %v5635_v32, %v5635_v32  ;;  %v1726_v43 = vor.u32 1.1754944e-38, %v1725_v30  ;;  %v5661_v38 = vmul.f32 %v2142_v39, %v5430_v5  ;;  %v2257_v22 = vmul.f32 %v2256_v46, %v5559_v50 }
 0x2cd   : > { %vm1724_vm4 = vcmp.eq.f32.partialorder %v1723_v53, 8.507059e+37  ;;  %v1795_v52 = vmul.f32 %v4152_v25, %v5621_v58  ;;  %v2231_v23 = vadd.f32 0.4994258, %v2230_v34  ;;  %v2268_v60 = vmul.f32 %v2267_v26, %v5559_v50 }
 0x2ce   : > { %v1727_v47 = vsel %vm1724_vm4, %v1726_v43, %v1722_v61  ;;  %v1831_v24 = vadd.f32 0.4994258, %v1830_v16  ;;  %v2182_v56 = vadd.f32 1.1283791, %v2181_v17  ;;  %v2306_v41 = vmul.f32 %v2305_v1, %v5613_v9 }
 0x2cf   : > { %v1796_v21 = vsub.f32 1.0, %v1795_v52  ;;  %4153 = vrcp.f32 %v5654_v13  ;;  %v2219_v5 = vmul.f32 %v2218_v36, %v5526_v49  ;;  %v5670_v39 = vmin.f32 %v2331_v37, 16.0 }
 0x2d0   : > { %4155 = vrcp.f32 %v5656_v33  ;;  %v1805_v40 = vand.u32 2147483648, %v5621_v58  ;;  %v1728_v30 = vmul.f32 %v1727_v47, %v5445_v19  ;;  %vm1800_vm5 = vweird.f32 %v4152_v25 }
 0x2d1   : > { %v1797_v46 = vmul.f32 %v4152_v25, %v1796_v21  ;;  %v1803_v53 = vand.u32 2147483647, %v5621_v58  ;;  %v2232_v15 = vmul.f32 %v2231_v23, %v5526_v49  ;;  %v2269_v34 = vadd.f32 0.112945676, %v2268_v60 }
 0x2d2   : > { %v2293_v26 = vmul.f32 2.1237322e-06, %v5613_v9  ;;  %v1832_v20 = vmul.f32 %v1831_v24, %v5350_v35  ;;  %v2258_v16 = vadd.f32 0.05243302, %v2257_v22  ;;  %v2307_v17 = vadd.f32 0.014752088, %v2306_v41 }
 0x2d3   : > { %v1798_v1 = vadd.f32 %v4152_v25, %v1797_v46  ;;  %vm1799_vm6 = vweird.f32 %v5621_v58  ;;  %v5680_v61 = vmul.f32 %v2182_v56, %v5456_v31  ;;  %v2205_v19 = vand.u32 2147483648, %v5656_v33 }
 0x2d4   : > { %v2344_v36 = vmul.f32 3.8918573e-05, %v5670_v39  ;;  %vm1801_vm7 = vmor %vm1799_vm6, %vm1800_vm5  ;;  %v1806_v37 = vor.u32 1.1754944e-38, %v1805_v40  ;;  %v3806_v52 = vclamps-f32 %v1728_v30, 1.0  ;;  %vm1804_vm8 = vcmp.eq.f32.partialorder %v1803_v53, 8.507059e+37 }
 0x2d5   : > { %v5684_v43 = vpop.eup %4153  ;;  %v1802_v23 = vsel %vm1801_vm7, %v4152_v25, %v1798_v1  ;;  %v5686_v35 = vadd.f32 1.0, %v1832_v20  ;;  %v2220_v60 = vadd.f32 0.18741608, %v2219_v5  ;;  %v5690_v58 = vadd.f32 1.0, %v2232_v15  ;;  %v1403_v15 = vpop.f32.mrf.mxu2 }
 0x2d6   : > { %v5688_v22 = vpop.eup %4155  ;;  %v2270_v31 = vmul.f32 %v2269_v34, %v5559_v50  ;;  %v1807_v47 = vsel %vm1804_vm8, %v1806_v37, %v1802_v23  ;;  %v2203_v24 = vand.u32 2147483647, %v5656_v33  ;;  %v2308_v56 = vmul.f32 %v2307_v17, %v5613_v9  ;;  %v1307_v34 = vpop.f32.mrf.mxu0 }
 0x2d7   : > { %v1808_v41 = vmul.f32 %v1807_v47, %v5507_v59  ;;  %v1755_v25 = vmul.f32 %v5684_v43, %v5654_v13  ;;  %v2259_v21 = vmul.f32 %v2258_v16, %v5559_v50  ;;  %v2294_v40 = vadd.f32 0.00028619796, %v2293_v26 }
 0x2d8   : > { %v2345_v30 = vadd.f32 0.001143296, %v2344_v36  ;;  %4157 = vrcp.f32 %v5686_v35  ;;  %v5700_v5 = vor.u32 1.1754944e-38, %v2205_v19  ;;  %v2815_v53 = vadd.f32 1.0, %v3806_v52 }
 0x2d9   : > { %v3808_v46 = vclamps-f32 %v1808_v41, 1.0  ;;  %v1756_v20 = vsub.f32 1.0, %v1755_v25  ;;  %v2195_v17 = vmul.f32 %v5688_v22, %v5656_v33  ;;  %v2221_v59 = vmul.f32 %v2220_v60, %v5526_v49 }
 0x2da   : > { %4159 = vrcp.f32 %v5690_v58  ;;  %v2271_v1 = vadd.f32 0.4994258, %v2270_v31  ;;  %v2309_v16 = vadd.f32 0.112945676, %v2308_v56  ;;  %v1864_v19 = vmul.f32 3.8918573e-05, %v5353_v55 }
 0x2db   : > { %v2817_v26 = vadd.f32 1.0, %v3808_v46  ;;  %v1757_v36 = vmul.f32 %v5684_v43, %v1756_v20  ;;  %v2346_v37 = vmul.f32 %v2345_v30, %v5670_v39  ;;  %v1404_v52 = vadd.f32 %v1403_v15, %v5049_v7 }
 0x2dc   : > { %v1308_v23 = vadd.f32 %v1307_v34, %v5041_v6  ;;  %vm1760_vm9 = vweird.f32 %v5684_v43  ;;  %v2847_v47 = vmul.f32 %v2815_v53, %v5421_v8  ;;  %v1765_v31 = vand.u32 2147483648, %v5654_v13  ;;  %v1452_v8 = vpop.f32.mrf.mxu3 }
 0x2dd   : > { %v2849_v49 = vmul.f32 %v2817_v26, %v5438_v51  ;;  %v1758_v60 = vadd.f32 %v5684_v43, %v1757_v36  ;;  %v2260_v41 = vadd.f32 0.18741608, %v2259_v21  ;;  %v2295_v25 = vmul.f32 %v2294_v40, %v5613_v9  ;;  %v1356_v40 = vpop.f32.mrf.mxu1 }
 0x2de   : > { %v5716_v56 = vpop.eup %4157  ;;  %vm1759_vm10 = vweird.f32 %v5654_v13  ;;  %v1763_v30 = vand.u32 2147483647, %v5654_v13  ;;  %v2196_v46 = vsub.f32 1.0, %v2195_v17  ;;  %v2272_v15 = vmul.f32 %v2271_v1, %v5559_v50 }
 0x2df   : > { %v2877_v34 = vpack.c.bf16 %v2849_v49, %v2847_v47  ;;  %vm5722_vm11 = vmor %vm1759_vm10, %vm1760_vm9  ;;  %v1865_v53 = vadd.f32 0.001143296, %v1864_v19  ;;  %v2222_v26 = vadd.f32 1.1283791, %v2221_v59  ;;  %v5728_v21 = vadd.f32 %v1452_v8, %v1404_v52 }
 0x2e0   : > { %v5726_v20 = vpop.eup %4159  ;;  %v1762_v13 = vsel %vm5722_vm11, %v5684_v43, %v1758_v60  ;;  %v1835_v17 = vmul.f32 %v5716_v56, %v5686_v35  ;;  %v2310_v1 = vmul.f32 %v2309_v16, %v5613_v9  ;;  %v2347_v36 = vadd.f32 0.014752088, %v2346_v37 }
 0x2e1   : > { %3128 = vmatmul.bf16.gmra.mxu0 %v2877_v34  ;;  %3226 = vmatmul.bf16.gmra.mxu2 %v2877_v34  ;;  %v5736_v47 = vadd.f32 %v1356_v40, %v1308_v23  ;;  %v1766_v19 = vor.u32 1.1754944e-38, %v1765_v31  ;;  %vm2199_vm12 = vweird.f32 %v5656_v33  ;;  %vm2200_vm13 = vweird.f32 %v5688_v22 }
 0x2e2   : > { %v2261_v59 = vmul.f32 %v2260_v41, %v5559_v50  ;;  %v2296_v52 = vadd.f32 0.0036580483, %v2295_v25  ;;  %vm1764_vm14 = vcmp.eq.f32.partialorder %v1763_v30, 8.507059e+37  ;;  %v2197_v43 = vmul.f32 %v5688_v22, %v2196_v46  ;;  %vm5784_vm4 = vmor %vm2199_vm12, %vm2200_vm13 }
 0x2e3   : > { %v5742_v49 = vadd.f32 1.0, %v2272_v15  ;;  %v1767_v60 = vsel %vm1764_vm14, %v1766_v19, %v1762_v13  ;;  %v1866_v16 = vmul.f32 %v1865_v53, %v5353_v55  ;;  %v5746_v37 = vmul.f32 %v2222_v26, %v5495_v3 }
 0x2e4   : > { %v2235_v23 = vmul.f32 %v5726_v20, %v5690_v58  ;;  %v5751_v31 = vmul.f32 0.70710677, %v5728_v21  ;;  %v1836_v34 = vsub.f32 1.0, %v1835_v17  ;;  %v2311_v50 = vadd.f32 0.4994258, %v2310_v1 }
 0x2e5   : > { %v2348_v41 = vmul.f32 %v2347_v36, %v5670_v39  ;;  %v5755_v25 = vmul.f32 0.70710677, %v5736_v47  ;;  %v1845_v30 = vand.u32 2147483648, %v5686_v35  ;;  %vm5760_vm15 = vcmp.eq.f32.partialorder %v2203_v24, 8.507059e+37 }
 0x2e6   : > { %v1768_v46 = vmul.f32 %v1767_v60, %v5483_v11  ;;  %v1837_v15 = vmul.f32 %v5716_v56, %v1836_v34  ;;  %vm1840_vm0 = vweird.f32 %v5716_v56  ;;  %v1843_v8 = vand.u32 2147483647, %v5686_v35 }
 0x2e7   : > { %v2198_v51 = vadd.f32 %v5688_v22, %v2197_v43  ;;  %4161 = vrcp.f32 %v5742_v49  ;;  %v2297_v53 = vmul.f32 %v2296_v52, %v5613_v9  ;;  %v1867_v26 = vadd.f32 0.014752088, %v1866_v16 }
 0x2e8   : > { %v2236_v40 = vsub.f32 1.0, %v2235_v23  ;;  %v2371_v24 = vmul.f32 %v5751_v31, %v5751_v31  ;;  %v1838_v13 = vadd.f32 %v5716_v56, %v1837_v15  ;;  %vm1839_vm1 = vweird.f32 %v5686_v35 }
 0x2e9   : > { %v2312_v11 = vmul.f32 %v2311_v50, %v5613_v9  ;;  %v2333_v17 = vmul.f32 2.1237322e-06, %v5670_v39  ;;  %v2411_v1 = vmul.f32 %v5755_v25, %v5755_v25  ;;  %vm1841_vm2 = vmor %vm1839_vm1, %vm1840_vm0  ;;  %v1846_v36 = vor.u32 1.1754944e-38, %v1845_v30 }
 0x2ea   : > { %v2349_v19 = vadd.f32 0.112945676, %v2348_v41  ;;  %v3807_v52 = vclamps-f32 %v1768_v46, 1.0  ;;  %v1842_v43 = vsel %vm1841_vm2, %v5716_v56, %v1838_v13  ;;  %vm1844_vm3 = vcmp.eq.f32.partialorder %v1843_v8, 8.507059e+37 }
 0x2eb   : > { %v2243_v60 = vand.u32 2147483647, %v5690_v58  ;;  %v2298_v16 = vadd.f32 0.05243302, %v2297_v53  ;;  %v1847_v23 = vsel %vm1844_vm3, %v1846_v36, %v1842_v43  ;;  %v1868_v34 = vmul.f32 %v1867_v26, %v5353_v55 }
 0x2ec   : > { %v2202_v50 = vsel %vm5784_vm4, %v5688_v22, %v2198_v51  ;;  %v2237_v56 = vmul.f32 %v5726_v20, %v2236_v40  ;;  %v5794_v41 = vmin.f32 %v2371_v24, 16.0  ;;  %v1848_v33 = vmul.f32 %v1847_v23, %v5521_v4 }
 0x2ed   : > { %v5797_v30 = vpop.eup %4161  ;;  %v5799_v46 = vadd.f32 1.0, %v2312_v11  ;;  %v2334_v15 = vadd.f32 0.00028619796, %v2333_v17  ;;  %v5801_v8 = vmin.f32 %v2411_v1, 16.0  ;;  %v1869_v53 = vadd.f32 0.112945676, %v1868_v34 }
 0x2ee   : > { %v2245_v26 = vand.u32 2147483648, %v5690_v58  ;;  %v2350_v13 = vmul.f32 %v2349_v19, %v5670_v39  ;;  %v3809_v36 = vclamps-f32 %v1848_v33, 1.0  ;;  %v2816_v22 = vadd.f32 1.0, %v3807_v52 }
 0x2ef   : > { %v2207_v51 = vsel %vm5760_vm15, %v5700_v5, %v2202_v50  ;;  %vm2240_vm5 = vweird.f32 %v5726_v20  ;;  %v2262_v4 = vadd.f32 1.1283791, %v2261_v59  ;;  %v2299_v40 = vmul.f32 %v2298_v16, %v5613_v9 }
 0x2f0   : > { %v2275_v24 = vmul.f32 %v5797_v30, %v5742_v49  ;;  %v2384_v11 = vmul.f32 3.8918573e-05, %v5794_v41  ;;  %v2818_v17 = vadd.f32 1.0, %v3809_v36  ;;  %v1870_v1 = vmul.f32 %v1869_v53, %v5353_v55 }
 0x2f1   : > { %v2238_v19 = vadd.f32 %v5726_v20, %v2237_v56  ;;  %4163 = vrcp.f32 %v5799_v46  ;;  %v2335_v3 = vmul.f32 %v2334_v15, %v5670_v39  ;;  %v2424_v5 = vmul.f32 3.8918573e-05, %v5801_v8 }
 0x2f2   : > { %v2351_v52 = vadd.f32 0.4994258, %v2350_v13  ;;  %v2848_v59 = vmul.f32 %v2816_v22, %v5433_v2  ;;  %v2850_v43 = vmul.f32 %v2818_v17, %v5441_v18  ;;  %v1944_v35 = vmul.f32 3.8918573e-05, %v5372_v14  ;;  %v1454_v2 = vpop.f32.mrf.mxu3 }
 0x2f3   : > { %v2208_v16 = vmul.f32 %v2207_v51, %v5680_v61  ;;  %vm2239_vm6 = vweird.f32 %v5690_v58  ;;  %vm5823_vm7 = vcmp.eq.f32.partialorder %v2243_v60, 8.507059e+37  ;;  %v2300_v34 = vadd.f32 0.18741608, %v2299_v40 }
 0x2f4   : > { %v2276_v50 = vsub.f32 1.0, %v2275_v24  ;;  %v2385_v56 = vadd.f32 0.001143296, %v2384_v11  ;;  %v2878_v33 = vpack.c.bf16 %v2850_v43, %v2848_v59  ;;  %v1871_v15 = vadd.f32 0.4994258, %v1870_v1  ;;  %vm5829_vm8 = vmor %vm2239_vm6, %vm2240_vm5  ;;  %v1405_v24 = vpop.f32.mrf.mxu2 }
 0x2f5   : > { %v2246_v18 = vor.u32 1.1754944e-38, %v2245_v26  ;;  %v5834_v61 = vmul.f32 %v2262_v4, %v5529_v54  ;;  %v2336_v58 = vadd.f32 0.0036580483, %v2335_v3  ;;  %v2425_v60 = vadd.f32 0.001143296, %v2424_v5 }
 0x2f6   : > { %v2242_v53 = vsel %vm5829_vm8, %v5726_v20, %v2238_v19  ;;  %v2352_v13 = vmul.f32 %v2351_v52, %v5670_v39  ;;  %3177 = vmatmul.bf16.gmra.mxu1 %v2878_v33  ;;  %3275 = vmatmul.bf16.gmra.mxu3 %v2878_v33  ;;  %v1872_v36 = vmul.f32 %v1871_v15, %v5353_v55  ;;  %v1945_v22 = vadd.f32 0.001143296, %v1944_v35  ;;  %v6817_v35 = vld [vmem:[#allocation5_spill] sm:$0xff] }
 0x2f7   : > { %v5841_v51 = vpop.eup %4163  ;;  %v2283_v26 = vand.u32 2147483647, %v5742_v49  ;;  %v2285_v54 = vand.u32 2147483648, %v5742_v49  ;;  %v2301_v4 = vmul.f32 %v2300_v34, %v5613_v9  ;;  %v5847_v40 = vmul.f32 0.5, %v5619_v48 }
 0x2f8   : > { %v3818_v20 = vclamps-f32 %v2208_v16, 1.0  ;;  %v2277_v11 = vmul.f32 %v5797_v30, %v2276_v50  ;;  %v2386_v17 = vmul.f32 %v2385_v56, %v5794_v41  ;;  %v5851_v1 = vadd.f32 1.0, %v1872_v36 }
 0x2f9   : > { %v2247_v55 = vsel %vm5823_vm7, %v2246_v18, %v2242_v53  ;;  %v2337_v19 = vmul.f32 %v2336_v58, %v5670_v39  ;;  %v2426_v3 = vmul.f32 %v2425_v60, %v5801_v8  ;;  %v1946_v9 = vmul.f32 %v1945_v22, %v5372_v14  ;;  %v1310_v22 = vpop.f32.mrf.mxu0 }
 0x2fa   : > { %v2315_v48 = vmul.f32 %v5841_v51, %v5799_v46  ;;  %v5860_v5 = vadd.f32 1.0, %v2352_v13  ;;  %v1406_v52 = vadd.f32 %v1405_v24, %v5049_v7  ;;  %4165 = vrcp.f32 %v5851_v1 }
 0x2fb   : > { %vm2279_vm9 = vweird.f32 %v5742_v49  ;;  %vm5865_vm10 = vcmp.eq.f32.partialorder %v2283_v26, 8.507059e+37  ;;  %v2302_v43 = vadd.f32 1.1283791, %v2301_v4  ;;  %v1904_v16 = vmul.f32 3.8918573e-05, %v6817_v35 }
 0x2fc   : > { %v2827_v23 = vadd.f32 1.0, %v3818_v20  ;;  %v2278_v34 = vadd.f32 %v5797_v30, %v2277_v11  ;;  %vm2280_vm11 = vweird.f32 %v5797_v30  ;;  %v2387_v50 = vadd.f32 0.014752088, %v2386_v17 }
 0x2fd   : > { %v2248_v56 = vmul.f32 %v2247_v55, %v5746_v37  ;;  %v2338_v33 = vadd.f32 0.05243302, %v2337_v19  ;;  %v2427_v15 = vadd.f32 0.014752088, %v2426_v3  ;;  %v1947_v18 = vadd.f32 0.014752088, %v1946_v9  ;;  %vm5878_vm12 = vmor %vm2279_vm9, %vm2280_vm11 }
 0x2fe   : > { %v2286_v58 = vor.u32 1.1754944e-38, %v2285_v54  ;;  %v2316_v60 = vsub.f32 1.0, %v2315_v48  ;;  %4167 = vrcp.f32 %v5860_v5  ;;  %v5874_v53 = vadd.f32 %v1454_v2, %v1406_v52 }
 0x2ff   : > { %v5883_v36 = vmul.f32 %v2302_v43, %v5586_v28  ;;  %v2325_v37 = vand.u32 2147483648, %v5799_v46  ;;  %v1948_v26 = vmul.f32 %v1947_v18, %v5372_v14  ;;  %v1905_v54 = vadd.f32 0.001143296, %v1904_v16 }
 0x300   : > { %v5887_v4 = vpop.eup %4165  ;;  %v5890_v24 = vmul.f32 %v2827_v23, %v5550_v62  ;;  %v2282_v49 = vsel %vm5878_vm12, %v5797_v30, %v2278_v34  ;;  %v2373_v20 = vmul.f32 2.1237322e-06, %v5794_v41  ;;  %v2388_v28 = vmul.f32 %v2387_v50, %v5794_v41 }
 0x301   : > { %v3819_v11 = vclamps-f32 %v2248_v56, 1.0  ;;  %vm2319_vm13 = vweird.f32 %v5799_v46  ;;  %v2323_v17 = vand.u32 2147483647, %v5799_v46  ;;  %v2339_v55 = vmul.f32 %v2338_v33, %v5670_v39 }
 0x302   : > { %v2428_v19 = vmul.f32 %v2427_v15, %v5801_v8  ;;  %v2317_v62 = vmul.f32 %v5841_v51, %v2316_v60  ;;  %v5903_v3 = vmul.f32 0.70710677, %v5874_v53  ;;  %v1311_v30 = vadd.f32 %v1310_v22, %v5041_v6  ;;  %v1359_v15 = vpop.f32.mrf.mxu1 }
 0x303   : > { %v1875_v9 = vmul.f32 %v5887_v4, %v5851_v1  ;;  %v2287_v48 = vsel %vm5865_vm10, %v2286_v58, %v2282_v49  ;;  %v2326_v52 = vor.u32 1.1754944e-38, %v2325_v37  ;;  %v1949_v43 = vadd.f32 0.112945676, %v1948_v26 }
 0x304   : > { %v1906_v16 = vmul.f32 %v1905_v54, %v6817_v35  ;;  %v5911_v23 = vpop.eup %4167  ;;  %vm2320_vm14 = vweird.f32 %v5841_v51  ;;  %v2374_v34 = vadd.f32 0.00028619796, %v2373_v20  ;;  %v2389_v50 = vadd.f32 0.112945676, %v2388_v28 }
 0x305   : > { %v2413_v56 = vmul.f32 2.1237322e-06, %v5801_v8  ;;  %v2429_v33 = vadd.f32 0.112945676, %v2428_v19  ;;  %v1876_v2 = vsub.f32 1.0, %v1875_v9  ;;  %v1950_v18 = vmul.f32 %v1949_v43, %v5372_v14  ;;  %vm5943_vm0 = vmor %vm2319_vm13, %vm2320_vm14 }
 0x306   : > { %v1907_v60 = vadd.f32 0.014752088, %v1906_v16  ;;  %v2318_v59 = vadd.f32 %v5841_v51, %v2317_v62  ;;  %v2340_v58 = vadd.f32 0.18741608, %v2339_v55  ;;  %v2451_v13 = vmul.f32 %v5903_v3, %v5903_v3 }
 0x307   : > { %v5919_v37 = vadd.f32 %v1359_v15, %v1311_v30  ;;  %vm5921_vm15 = vcmp.eq.f32.partialorder %v2323_v17, 8.507059e+37  ;;  %v2355_v26 = vmul.f32 %v5911_v23, %v5860_v5  ;;  %v1951_v54 = vadd.f32 0.4994258, %v1950_v18 }
 0x308   : > { %v1908_v49 = vmul.f32 %v1907_v60, %v6817_v35  ;;  %v1984_v20 = vmul.f32 3.8918573e-05, %v5385_v63  ;;  %v5929_v28 = vadd.f32 1.0, %v3819_v11  ;;  %v2375_v55 = vmul.f32 %v2374_v34, %v5794_v41 }
 0x309   : > { %v2390_v19 = vmul.f32 %v2389_v50, %v5794_v41  ;;  %v2414_v62 = vadd.f32 0.00028619796, %v2413_v56  ;;  %v2430_v17 = vmul.f32 %v2429_v33, %v5801_v8  ;;  %v1877_v30 = vmul.f32 %v5887_v4, %v1876_v2 }
 0x30a   : > { %v1952_v9 = vmul.f32 %v1951_v54, %v5372_v14  ;;  %v1909_v43 = vadd.f32 0.112945676, %v1908_v49  ;;  %v5937_v16 = vmul.f32 %v2287_v48, %v5834_v61  ;;  %v2341_v34 = vmul.f32 %v2340_v58, %v5670_v39 }
 0x30b   : > { %v5948_v50 = vmin.f32 %v2451_v13, 16.0  ;;  %v5951_v56 = vmul.f32 0.70710677, %v5919_v37  ;;  %v2322_v14 = vsel %vm5943_vm0, %v5841_v51, %v2318_v59  ;;  %v2356_v61 = vsub.f32 1.0, %v2355_v26 }
 0x30c   : > { %v5956_v48 = vadd.f32 1.0, %v1952_v9  ;;  %v1985_v33 = vadd.f32 0.001143296, %v1984_v20  ;;  %v2376_v46 = vadd.f32 0.0036580483, %v2375_v55  ;;  %v2415_v2 = vmul.f32 %v2414_v62, %v5801_v8 }
 0x30d   : > { %v2391_v15 = vadd.f32 0.4994258, %v2390_v19  ;;  %v1910_v18 = vmul.f32 %v1909_v43, %v6817_v35  ;;  %v2431_v39 = vadd.f32 0.4994258, %v2430_v17  ;;  %v1878_v60 = vadd.f32 %v5887_v4, %v1877_v30 }
 0x30e   : > { %vm1880_vm1 = vweird.f32 %v5887_v4  ;;  %4169 = vrcp.f32 %v5956_v48  ;;  %v3820_v58 = vclamps-f32 %v5937_v16, 1.0  ;;  %v2464_v51 = vmul.f32 3.8918573e-05, %v5948_v50 }
 0x30f   : > { %v2491_v59 = vmul.f32 %v5951_v56, %v5951_v56  ;;  %v1885_v13 = vand.u32 2147483648, %v5851_v1  ;;  %vm1879_vm2 = vweird.f32 %v5851_v1  ;;  %v1883_v26 = vand.u32 2147483647, %v5851_v1 }
 0x310   : > { %v1911_v54 = vadd.f32 0.4994258, %v1910_v18  ;;  %v1986_v49 = vmul.f32 %v1985_v33, %v5385_v63  ;;  %v5973_v20 = vsel %vm5921_vm15, %v2326_v52, %v2322_v14  ;;  %v5975_v55 = vadd.f32 1.1283791, %v2341_v34  ;;  %vm5979_vm3 = vmor %vm1879_vm2, %vm1880_vm1 }
 0x311   : > { %v2357_v19 = vmul.f32 %v5911_v23, %v2356_v61  ;;  %v2377_v62 = vmul.f32 %v2376_v46, %v5794_v41  ;;  %v2392_v30 = vmul.f32 %v2391_v15, %v5794_v41  ;;  %v2416_v1 = vadd.f32 0.0036580483, %v2415_v2 }
 0x312   : > { %v2432_v9 = vmul.f32 %v2431_v39, %v5801_v8  ;;  %v1882_v52 = vsel %vm5979_vm3, %v5887_v4, %v1878_v60  ;;  %v2465_v22 = vadd.f32 0.001143296, %v2464_v51  ;;  %v5988_v43 = vmin.f32 %v2491_v59, 16.0 }
 0x313   : > { %v1886_v11 = vor.u32 1.1754944e-38, %v1885_v13  ;;  %v1912_v34 = vmul.f32 %v1911_v54, %v6817_v35  ;;  %vm2359_vm4 = vweird.f32 %v5860_v5  ;;  %v2363_v61 = vand.u32 2147483647, %v5860_v5 }
 0x314   : > { %v4170_v14 = vpop.eup %4169  ;;  %vm1884_vm5 = vcmp.eq.f32.partialorder %v1883_v26, 8.507059e+37  ;;  %v1987_v33 = vadd.f32 0.014752088, %v1986_v49  ;;  %v2358_v46 = vadd.f32 %v5911_v23, %v2357_v19  ;;  %vm2360_vm6 = vweird.f32 %v5911_v23 }
 0x315   : > { %v1887_v15 = vsel %vm1884_vm5, %v1886_v11, %v1882_v52  ;;  %v1955_v4 = vmul.f32 %v4170_v14, %v5956_v48  ;;  %v2378_v2 = vadd.f32 0.05243302, %v2377_v62  ;;  %v5996_v18 = vadd.f32 1.0, %v2392_v30  ;;  %vm6013_vm7 = vmor %vm2359_vm4, %vm2360_vm6 }
 0x316   : > { %v2417_v39 = vmul.f32 %v2416_v1, %v5801_v8  ;;  %v5999_v35 = vadd.f32 1.0, %v2432_v9  ;;  %v2466_v60 = vmul.f32 %v2465_v22, %v5948_v50  ;;  %v2504_v51 = vmul.f32 3.8918573e-05, %v5988_v43 }
 0x317   : > { %v1956_v59 = vsub.f32 1.0, %v1955_v4  ;;  %v6003_v13 = vadd.f32 1.0, %v1912_v34  ;;  %v1888_v26 = vmul.f32 %v1887_v15, %v5532_v27  ;;  %v1965_v54 = vand.u32 2147483648, %v5956_v48 }
 0x318   : > { %v1988_v49 = vmul.f32 %v1987_v33, %v5385_v63  ;;  %v2024_v19 = vmul.f32 3.8918573e-05, %v5406_v29  ;;  %vm1960_vm8 = vweird.f32 %v4170_v14  ;;  %v1963_v30 = vand.u32 2147483647, %v5956_v48 }
 0x319   : > { %v1957_v17 = vmul.f32 %v4170_v14, %v1956_v59  ;;  %4171 = vrcp.f32 %v6003_v13  ;;  %v2362_v27 = vsel %vm6013_vm7, %v5911_v23, %v2358_v46  ;;  %v2365_v1 = vand.u32 2147483648, %v5860_v5 }
 0x31a   : > { %v2379_v9 = vmul.f32 %v2378_v2, %v5794_v41  ;;  %v2418_v52 = vadd.f32 0.05243302, %v2417_v39  ;;  %4173 = vrcp.f32 %v5999_v35  ;;  %v2505_v22 = vadd.f32 0.001143296, %v2504_v51 }
 0x31b   : > { %v1958_v11 = vadd.f32 %v4170_v14, %v1957_v17  ;;  %vm1959_vm9 = vweird.f32 %v5956_v48  ;;  %4175 = vrcp.f32 %v5996_v18  ;;  %v2467_v34 = vadd.f32 0.014752088, %v2466_v60 }
 0x31c   : > { %vm1961_vm10 = vmor %vm1959_vm9, %vm1960_vm8  ;;  %v1966_v33 = vor.u32 1.1754944e-38, %v1965_v54  ;;  %v1989_v15 = vadd.f32 0.112945676, %v1988_v49  ;;  %v3810_v4 = vclamps-f32 %v1888_v26, 1.0  ;;  %vm1964_vm11 = vcmp.eq.f32.partialorder %v1963_v30, 8.507059e+37 }
 0x31d   : > { %v1962_v59 = vsel %vm1961_vm10, %v4170_v14, %v1958_v11  ;;  %v2025_v23 = vadd.f32 0.001143296, %v2024_v19  ;;  %v2366_v5 = vor.u32 1.1754944e-38, %v2365_v1  ;;  %v2380_v46 = vadd.f32 0.18741608, %v2379_v9 }
 0x31e   : > { %v2419_v2 = vmul.f32 %v2418_v52, %v5801_v8  ;;  %v1967_v39 = vsel %vm1964_vm11, %v1966_v33, %v1962_v59  ;;  %vm2364_vm12 = vcmp.eq.f32.partialorder %v2363_v61, 8.507059e+37  ;;  %v2506_v48 = vmul.f32 %v2505_v22, %v5988_v43 }
 0x31f   : > { %v6028_v62 = vpop.eup %4171  ;;  %v1968_v51 = vmul.f32 %v1967_v39, %v5564_v45  ;;  %v1990_v60 = vmul.f32 %v1989_v15, %v5385_v63  ;;  %v6035_v26 = vmul.f32 %v5973_v20, %v5883_v36  ;;  %v2367_v14 = vsel %vm2364_vm12, %v2366_v5, %v2362_v27 }
 0x320   : > { %v2468_v54 = vmul.f32 %v2467_v34, %v5948_v50  ;;  %v1915_v49 = vmul.f32 %v6028_v62, %v6003_v13  ;;  %v6040_v19 = vpop.eup %4173  ;;  %v2819_v61 = vadd.f32 1.0, %v3810_v4  ;;  %v2026_v1 = vmul.f32 %v2025_v23, %v5406_v29  ;;  %v6828_v23 = vld [vmem:[#allocation8_spill] sm:$0xff] }
 0x321   : > { %v3812_v17 = vclamps-f32 %v1968_v51, 1.0  ;;  %v1991_v30 = vadd.f32 0.4994258, %v1990_v60  ;;  %v6043_v45 = vpop.eup %4175  ;;  %v2343_v9 = vmul.f32 %v5975_v55, %v5635_v32  ;;  %v2381_v36 = vmul.f32 %v2380_v46, %v5794_v41  ;;  %v6829_v55 = vld [vmem:[#allocation10_spill] sm:$0xff]  ;;  %v1312_v51 = vpop.f32.mrf.mxu0 }
 0x322   : > { %v2420_v20 = vadd.f32 0.18741608, %v2419_v2  ;;  %v1916_v27 = vsub.f32 1.0, %v1915_v49  ;;  %v2453_v52 = vmul.f32 2.1237322e-06, %v5948_v50  ;;  %v2435_v15 = vmul.f32 %v6040_v19, %v5999_v35 }
 0x323   : > { %v2507_v22 = vadd.f32 0.014752088, %v2506_v48  ;;  %v2821_v11 = vadd.f32 1.0, %v3812_v17  ;;  %v1992_v34 = vmul.f32 %v1991_v30, %v5385_v63  ;;  %v6050_v33 = vmul.f32 %v2367_v14, %v2343_v9 }
 0x324   : > { %v2469_v4 = vadd.f32 0.112945676, %v2468_v54  ;;  %v1917_v59 = vmul.f32 %v6028_v62, %v1916_v27  ;;  %v2851_v32 = vmul.f32 %v2819_v61, %v6828_v23  ;;  %v2027_v46 = vadd.f32 0.014752088, %v2026_v1  ;;  %v1361_v23 = vpop.f32.mrf.mxu1 }
 0x325   : > { %v2853_v41 = vmul.f32 %v2821_v11, %v6829_v55  ;;  %v6057_v5 = vadd.f32 1.0, %v1992_v34  ;;  %v6059_v2 = vadd.f32 1.1283791, %v2381_v36  ;;  %v2395_v63 = vmul.f32 %v6043_v45, %v5996_v18 }
 0x326   : > { %v2403_v39 = vand.u32 2147483647, %v5996_v18  ;;  %v2421_v48 = vmul.f32 %v2420_v20, %v5801_v8  ;;  %v2454_v60 = vadd.f32 0.00028619796, %v2453_v52  ;;  %v2508_v14 = vmul.f32 %v2507_v22, %v5988_v43 }
 0x327   : > { %v2879_v54 = vpack.c.bf16 %v2853_v41, %v2851_v32  ;;  %4177 = vrcp.f32 %v6057_v5  ;;  %v2470_v49 = vmul.f32 %v2469_v4, %v5948_v50  ;;  %v2493_v17 = vmul.f32 2.1237322e-06, %v5988_v43 }
 0x328   : > { %v1918_v61 = vadd.f32 %v6028_v62, %v1917_v59  ;;  %vm1920_vm13 = vweird.f32 %v6028_v62  ;;  %v2436_v30 = vsub.f32 1.0, %v2435_v15  ;;  %v1313_v8 = vadd.f32 %v1312_v51, %v5041_v6 }
 0x329   : > { %3133 = vmatmul.bf16.gmra.mxu0 %v2879_v54  ;;  %3231 = vmatmul.bf16.gmra.mxu2 %v2879_v54  ;;  %v1925_v1 = vand.u32 2147483648, %v6003_v13  ;;  %v2028_v9 = vmul.f32 %v2027_v46, %v5406_v29  ;;  %v2405_v36 = vand.u32 2147483648, %v5996_v18  ;;  %v6075_v20 = vadd.f32 1.1283791, %v2421_v48 }
 0x32a   : > { %vm1919_vm14 = vweird.f32 %v6003_v13  ;;  %v1923_v27 = vand.u32 2147483647, %v6003_v13  ;;  %v2396_v52 = vsub.f32 1.0, %v2395_v63  ;;  %vm2439_vm15 = vweird.f32 %v5999_v35 }
 0x32b   : > { %v2455_v22 = vmul.f32 %v2454_v60, %v5948_v50  ;;  %v2509_v11 = vadd.f32 0.112945676, %v2508_v14  ;;  %vm6083_vm0 = vmor %vm1919_vm14, %vm1920_vm13  ;;  %v2443_v15 = vand.u32 2147483647, %v5999_v35  ;;  %v2471_v4 = vadd.f32 0.4994258, %v2470_v49 }
 0x32c   : > { %v2494_v59 = vadd.f32 0.00028619796, %v2493_v17  ;;  %v1922_v13 = vsel %vm6083_vm0, %v6028_v62, %v1918_v61  ;;  %v2437_v55 = vmul.f32 %v6040_v19, %v2436_v30  ;;  %v6092_v41 = vadd.f32 %v1361_v23, %v1313_v8 }
 0x32d   : > { %v4178_v32 = vpop.eup %4177  ;;  %v1926_v46 = vor.u32 1.1754944e-38, %v1925_v1  ;;  %v2029_v63 = vadd.f32 0.112945676, %v2028_v9  ;;  %vm2399_vm1 = vweird.f32 %v5996_v18  ;;  %vm2400_vm2 = vweird.f32 %v6043_v45 }
 0x32e   : > { %v2445_v48 = vand.u32 2147483648, %v5999_v35  ;;  %vm1924_vm3 = vcmp.eq.f32.partialorder %v1923_v27, 8.507059e+37  ;;  %v1995_v51 = vmul.f32 %v4178_v32, %v6057_v5  ;;  %v2397_v60 = vmul.f32 %v6043_v45, %v2396_v52  ;;  %v1408_v52 = vpop.f32.mrf.mxu2  ;;  %vm6142_vm12 = vmor %vm2399_vm1, %vm2400_vm2 }
 0x32f   : > { %v2456_v14 = vadd.f32 0.0036580483, %v2455_v22  ;;  %v2510_v62 = vmul.f32 %v2509_v11, %v5988_v43  ;;  %v1927_v54 = vsel %vm1924_vm3, %v1926_v46, %v1922_v13  ;;  %vm2440_vm4 = vweird.f32 %v6040_v19 }
 0x330   : > { %v2472_v49 = vmul.f32 %v2471_v4, %v5948_v50  ;;  %v2495_v17 = vmul.f32 %v2494_v59, %v5988_v43  ;;  %v1996_v61 = vsub.f32 1.0, %v1995_v51  ;;  %v2438_v30 = vadd.f32 %v6040_v19, %v2437_v55  ;;  %vm6125_vm8 = vmor %vm2439_vm15, %vm2440_vm4 }
 0x331   : > { %v6105_v8 = vmul.f32 0.70710677, %v6092_v41  ;;  %v2005_v1 = vand.u32 2147483648, %v6057_v5  ;;  %v2030_v9 = vmul.f32 %v2029_v63, %v5406_v29  ;;  %vm6109_vm5 = vcmp.eq.f32.partialorder %v2403_v39, 8.507059e+37 }
 0x332   : > { %v1928_v22 = vmul.f32 %v1927_v54, %v5535_v10  ;;  %v1997_v11 = vmul.f32 %v4178_v32, %v1996_v61  ;;  %vm2000_vm6 = vweird.f32 %v4178_v32  ;;  %v2003_v34 = vand.u32 2147483647, %v6057_v5 }
 0x333   : > { %v2398_v4 = vadd.f32 %v6043_v45, %v2397_v60  ;;  %vm6116_vm7 = vcmp.eq.f32.partialorder %v2443_v15, 8.507059e+37  ;;  %v2457_v23 = vmul.f32 %v2456_v14, %v5948_v50  ;;  %v2511_v13 = vadd.f32 0.4994258, %v2510_v62 }
 0x334   : > { %v6129_v10 = vadd.f32 1.0, %v2472_v49  ;;  %v2496_v55 = vadd.f32 0.0036580483, %v2495_v17  ;;  %v1998_v46 = vadd.f32 %v4178_v32, %v1997_v11  ;;  %vm1999_vm9 = vweird.f32 %v6057_v5 }
 0x335   : > { %v2442_v15 = vsel %vm6125_vm8, %v6040_v19, %v2438_v30  ;;  %v1409_v63 = vadd.f32 %v1408_v52, %v5049_v7  ;;  %v2571_v51 = vmul.f32 %v6105_v8, %v6105_v8  ;;  %vm2001_vm10 = vmor %vm1999_vm9, %vm2000_vm6  ;;  %v2006_v35 = vor.u32 1.1754944e-38, %v2005_v1  ;;  %v1457_v30 = vpop.f32.mrf.mxu3 }
 0x336   : > { %v3811_v60 = vclamps-f32 %v1928_v22, 1.0  ;;  %v2002_v14 = vsel %vm2001_vm10, %v4178_v32, %v1998_v46  ;;  %vm2004_vm11 = vcmp.eq.f32.partialorder %v2003_v34, 8.507059e+37  ;;  %v2031_v62 = vadd.f32 0.4994258, %v2030_v9 }
 0x337   : > { %v2446_v19 = vor.u32 1.1754944e-38, %v2445_v48  ;;  %v2458_v54 = vadd.f32 0.05243302, %v2457_v23  ;;  %v2512_v49 = vmul.f32 %v2511_v13, %v5988_v43  ;;  %v2007_v17 = vsel %vm2004_vm11, %v2006_v35, %v2002_v14  ;;  %v6840_v13 = vld [vmem:[#allocation7_spill] sm:$0xff]  ;;  %v1315_v14 = vpop.f32.mrf.mxu0 }
 0x338   : > { %v2402_v61 = vsel %vm6142_vm12, %v6043_v45, %v2398_v4  ;;  %4179 = vrcp.f32 %v6129_v10  ;;  %v2497_v32 = vmul.f32 %v2496_v55, %v5988_v43  ;;  %v2008_v1 = vmul.f32 %v2007_v17, %v5568_v0  ;;  %v6842_v35 = vld [vmem:[#allocation11_spill] sm:$0xff] }
 0x339   : > { %v2406_v9 = vor.u32 1.1754944e-38, %v2405_v36  ;;  %v2423_v48 = vmul.f32 %v6075_v20, %v5755_v25  ;;  %v2447_v52 = vsel %vm6116_vm7, %v2446_v19, %v2442_v15  ;;  %v6159_v22 = vadd.f32 %v1457_v30, %v1409_v63  ;;  %v6841_v63 = vld [vmem:[#allocation9_spill] sm:$0xff]  ;;  %v1410_v19 = vpop.f32.mrf.mxu2 }
 0x33a   : > { %v6161_v11 = vmin.f32 %v2571_v51, 16.0  ;;  %v3813_v45 = vclamps-f32 %v2008_v1, 1.0  ;;  %v2820_v34 = vadd.f32 1.0, %v3811_v60  ;;  %v2032_v4 = vmul.f32 %v2031_v62, %v5406_v29  ;;  %v6844_v1 = vld [vmem:[#allocation18_spill] sm:$0xff] }
 0x33b   : > { %v3821_v23 = vclamps-f32 %v6035_v26, 1.0  ;;  %v2407_v0 = vsel %vm6109_vm5, %v2406_v9, %v2402_v61  ;;  %v2459_v18 = vmul.f32 %v2458_v54, %v5948_v50  ;;  %v6168_v36 = vadd.f32 1.0, %v2512_v49  ;;  %v6843_v49 = vld [vmem:[#allocation16_spill] sm:$0xff] }
 0x33c   : > { %v2448_v25 = vmul.f32 %v2447_v52, %v2423_v48  ;;  %v2498_v20 = vadd.f32 0.05243302, %v2497_v32  ;;  %v2822_v59 = vadd.f32 1.0, %v3813_v45  ;;  %v2104_v39 = vmul.f32 3.8918573e-05, %v6840_v13 }
 0x33d   : > { %v2829_v55 = vadd.f32 1.0, %v3820_v58  ;;  %v3822_v46 = vclamps-f32 %v6050_v33, 1.0  ;;  %v2383_v29 = vmul.f32 %v6059_v2, %v5751_v31  ;;  %v6177_v26 = vmul.f32 0.70710677, %v6159_v22 }
 0x33e   : > { %v6179_v27 = vpop.eup %4179  ;;  %v2584_v15 = vmul.f32 3.8918573e-05, %v6161_v11  ;;  %v2852_v51 = vmul.f32 %v2820_v34, %v6841_v63  ;;  %v2854_v60 = vmul.f32 %v2822_v59, %v6842_v35  ;;  %v6184_v62 = vadd.f32 1.0, %v2032_v4  ;;  %v1459_v63 = vpop.f32.mrf.mxu3 }
 0x33f   : > { %v2830_v16 = vadd.f32 1.0, %v3821_v23  ;;  %v2408_v58 = vmul.f32 %v2407_v0, %v2383_v29  ;;  %v2460_v33 = vadd.f32 0.18741608, %v2459_v18  ;;  %4181 = vrcp.f32 %v6168_v36 }
 0x340   : > { %v3824_v31 = vclamps-f32 %v2448_v25, 1.0  ;;  %v2499_v2 = vmul.f32 %v2498_v20, %v5988_v43  ;;  %v2880_v5 = vpack.c.bf16 %v2854_v60, %v2852_v51  ;;  %v2105_v54 = vadd.f32 0.001143296, %v2104_v39  ;;  %v1364_v25 = vpop.f32.mrf.mxu1 }
 0x341   : > { %v6190_v17 = vmul.f32 %v5929_v28, %v6843_v49  ;;  %v2831_v61 = vadd.f32 1.0, %v3822_v46  ;;  %v2475_v32 = vmul.f32 %v6179_v27, %v6129_v10  ;;  %v1316_v30 = vadd.f32 %v1315_v14, %v5041_v6  ;;  %v6845_v46 = vld [vmem:[#allocation6_spill] sm:$0xff] }
 0x342   : > { %v6196_v9 = vmul.f32 %v2829_v55, %v6844_v1  ;;  %v2531_v48 = vmul.f32 %v6177_v26, %v6177_v26  ;;  %v2585_v52 = vadd.f32 0.001143296, %v2584_v15  ;;  %3182 = vmatmul.bf16.gmra.mxu1 %v2880_v5  ;;  %3280 = vmatmul.bf16.gmra.mxu3 %v2880_v5  ;;  %4183 = vrcp.f32 %v6184_v62 }
 0x343   : > { %v6202_v28 = vmul.f32 %v2830_v16, %v5643_v57  ;;  %v1489_v45 = vmul.f32 0.5, %v5736_v47  ;;  %v2461_v34 = vmul.f32 %v2460_v33, %v5948_v50  ;;  %v1411_v4 = vadd.f32 %v1410_v19, %v5049_v7 }
 0x344   : > { %v3823_v23 = vclamps-f32 %v2408_v58, 1.0  ;;  %v2833_v0 = vadd.f32 1.0, %v3824_v31  ;;  %v2500_v18 = vadd.f32 0.18741608, %v2499_v2  ;;  %v2106_v20 = vmul.f32 %v2105_v54, %v6840_v13 }
 0x345   : > { %v6208_v59 = vpop.eup %4181  ;;  %v6211_v39 = vmul.f32 %v2831_v61, %v5847_v40  ;;  %v2476_v55 = vsub.f32 1.0, %v2475_v32  ;;  %v6213_v57 = vadd.f32 %v1364_v25, %v1316_v30  ;;  %v2064_v47 = vmul.f32 3.8918573e-05, %v6845_v46 }
 0x346   : > { %v6217_v50 = vmul.f32 0.5, %v5874_v53  ;;  %v6219_v29 = vmin.f32 %v2531_v48, 16.0  ;;  %v2586_v15 = vmul.f32 %v2585_v52, %v6161_v11  ;;  %v2107_v51 = vadd.f32 0.014752088, %v2106_v20 }
 0x347   : > { %v2462_v35 = vadd.f32 1.1283791, %v2461_v34  ;;  %v6223_v60 = vmul.f32 0.5, %v5919_v37  ;;  %v6225_v40 = vadd.f32 %v1459_v63, %v1411_v4  ;;  %v2065_v14 = vadd.f32 0.001143296, %v2064_v47 }
 0x348   : > { %v6227_v16 = vpop.eup %4183  ;;  %v6229_v58 = vadd.f32 1.0, %v3823_v23  ;;  %v6231_v33 = vmul.f32 %v2833_v0, %v1489_v45  ;;  %v2501_v53 = vmul.f32 %v2500_v18, %v5988_v43  ;;  %v2515_v31 = vmul.f32 %v6208_v59, %v6168_v36 }
 0x349   : > { %v2477_v2 = vmul.f32 %v6179_v27, %v2476_v55  ;;  %v2483_v5 = vand.u32 2147483647, %v6129_v10  ;;  %v6239_v37 = vmul.f32 0.70710677, %v6213_v57  ;;  %v2108_v19 = vmul.f32 %v2107_v51, %v6840_v13  ;;  %v1413_v51 = vpop.f32.mrf.mxu2 }
 0x34a   : > { %v2485_v54 = vand.u32 2147483648, %v6129_v10  ;;  %v2544_v49 = vmul.f32 3.8918573e-05, %v6219_v29  ;;  %v2587_v61 = vadd.f32 0.014752088, %v2586_v15  ;;  %v2066_v32 = vmul.f32 %v2065_v14, %v6845_v46 }
 0x34b   : > { %v2463_v43 = vmul.f32 %v2462_v35, %v5903_v3  ;;  %vm2479_vm13 = vweird.f32 %v6129_v10  ;;  %v6248_v30 = vmul.f32 0.70710677, %v6225_v40  ;;  %v2035_v1 = vmul.f32 %v6227_v16, %v6184_v62 }
 0x34c   : > { %vm2480_vm14 = vweird.f32 %v6179_v27  ;;  %v2502_v48 = vadd.f32 1.1283791, %v2501_v53  ;;  %v2516_v52 = vsub.f32 1.0, %v2515_v31  ;;  %v2144_v45 = vmul.f32 3.8918573e-05, %v5468_v42 }
 0x34d   : > { %v2478_v34 = vadd.f32 %v6179_v27, %v2477_v2  ;;  %v2651_v4 = vmul.f32 %v6239_v37, %v6239_v37  ;;  %v2109_v3 = vadd.f32 0.112945676, %v2108_v19  ;;  %v2067_v23 = vadd.f32 0.014752088, %v2066_v32  ;;  %vm6270_vm0 = vmor %vm2479_vm13, %vm2480_vm14 }
 0x34e   : > { %vm6257_vm15 = vcmp.eq.f32.partialorder %v2483_v5, 8.507059e+37  ;;  %v2486_v18 = vor.u32 1.1754944e-38, %v2485_v54  ;;  %v2545_v25 = vadd.f32 0.001143296, %v2544_v49  ;;  %v2588_v20 = vmul.f32 %v2587_v61, %v6161_v11 }
 0x34f   : > { %v2611_v55 = vmul.f32 %v6248_v30, %v6248_v30  ;;  %v2036_v47 = vsub.f32 1.0, %v2035_v1  ;;  %v2110_v15 = vmul.f32 %v2109_v3, %v6840_v13  ;;  %v2068_v63 = vmul.f32 %v2067_v23, %v6845_v46 }
 0x350   : > { %v6275_v35 = vmul.f32 %v2502_v48, %v5951_v56  ;;  %v2517_v14 = vmul.f32 %v6208_v59, %v2516_v52  ;;  %v2533_v53 = vmul.f32 2.1237322e-06, %v6219_v29  ;;  %v2145_v31 = vadd.f32 0.001143296, %v2144_v45 }
 0x351   : > { %v2482_v2 = vsel %vm6270_vm0, %v6179_v27, %v2478_v34  ;;  %v6282_v5 = vmin.f32 %v2651_v4, 16.0  ;;  %v2111_v19 = vadd.f32 0.4994258, %v2110_v15  ;;  %v2069_v10 = vadd.f32 0.112945676, %v2068_v63 }
 0x352   : > { %v2523_v54 = vand.u32 2147483647, %v6168_v36  ;;  %v2546_v49 = vmul.f32 %v2545_v25, %v6219_v29  ;;  %v2573_v56 = vmul.f32 2.1237322e-06, %v6161_v11  ;;  %v2589_v61 = vadd.f32 0.112945676, %v2588_v20 }
 0x353   : > { %vm2519_vm1 = vweird.f32 %v6168_v36  ;;  %v2525_v32 = vand.u32 2147483648, %v6168_v36  ;;  %v6289_v1 = vmin.f32 %v2611_v55, 16.0  ;;  %v2037_v48 = vmul.f32 %v6227_v16, %v2036_v47 }
 0x354   : > { %v2112_v27 = vmul.f32 %v2111_v19, %v6840_v13  ;;  %v2487_v52 = vsel %vm6257_vm15, %v2486_v18, %v2482_v2  ;;  %vm2520_vm2 = vweird.f32 %v6208_v59  ;;  %v2070_v45 = vmul.f32 %v2069_v10, %v6845_v46 }
 0x355   : > { %v2146_v34 = vmul.f32 %v2145_v31, %v5468_v42  ;;  %v6299_v4 = vadd.f32 %v6208_v59, %v2517_v14  ;;  %v2534_v3 = vadd.f32 0.00028619796, %v2533_v53  ;;  %v2664_v23 = vmul.f32 3.8918573e-05, %v6282_v5  ;;  %v1317_v14 = vpop.f32.mrf.mxu0  ;;  %vm6333_vm6 = vmor %vm2519_vm1, %vm2520_vm2 }
 0x356   : > { %v6302_v25 = vadd.f32 1.0, %v2112_v27  ;;  %v2547_v20 = vadd.f32 0.014752088, %v2546_v49  ;;  %v2574_v55 = vadd.f32 0.00028619796, %v2573_v56  ;;  %v2590_v13 = vmul.f32 %v2589_v61, %v6161_v11 }
 0x357   : > { %v2071_v0 = vadd.f32 0.4994258, %v2070_v45  ;;  %v2624_v18 = vmul.f32 3.8918573e-05, %v6289_v1  ;;  %v2038_v47 = vadd.f32 %v6227_v16, %v2037_v48  ;;  %vm2040_vm3 = vweird.f32 %v6227_v16  ;;  %v1366_v45 = vpop.f32.mrf.mxu1 }
 0x358   : > { %4185 = vrcp.f32 %v6302_v25  ;;  %v6309_v15 = vmul.f32 %v2487_v52, %v2463_v43  ;;  %v2045_v63 = vand.u32 2147483648, %v6184_v62  ;;  %v2147_v31 = vadd.f32 0.014752088, %v2146_v34 }
 0x359   : > { %v2072_v53 = vmul.f32 %v2071_v0, %v6845_v46  ;;  %v2535_v2 = vmul.f32 %v2534_v3, %v6219_v29  ;;  %v2665_v19 = vadd.f32 0.001143296, %v2664_v23  ;;  %vm2039_vm4 = vweird.f32 %v6184_v62 }
 0x35a   : > { %v2043_v10 = vand.u32 2147483647, %v6184_v62  ;;  %v2548_v49 = vmul.f32 %v2547_v20, %v6219_v29  ;;  %v2575_v56 = vmul.f32 %v2574_v55, %v6161_v11  ;;  %vm6318_vm5 = vmor %vm2039_vm4, %vm2040_vm3  ;;  %v1318_v61 = vadd.f32 %v1317_v14, %v5041_v6 }
 0x35b   : > { %v6323_v48 = vadd.f32 1.0, %v2072_v53  ;;  %v2591_v46 = vadd.f32 0.4994258, %v2590_v13  ;;  %v2625_v27 = vadd.f32 0.001143296, %v2624_v18  ;;  %v2042_v52 = vsel %vm6318_vm5, %v6227_v16, %v2038_v47 }
 0x35c   : > { %v1414_v62 = vadd.f32 %v1413_v51, %v5049_v7  ;;  %v2046_v6 = vor.u32 1.1754944e-38, %v2045_v63  ;;  %v6337_v3 = vadd.f32 %v1366_v45, %v1318_v61  ;;  %v2148_v23 = vmul.f32 %v2147_v31, %v5468_v42  ;;  %v1462_v51 = vpop.f32.mrf.mxu3 }
 0x35d   : > { %4187 = vrcp.f32 %v6323_v48  ;;  %v2522_v16 = vsel %vm6333_vm6, %v6208_v59, %v6299_v4  ;;  %v2526_v55 = vor.u32 1.1754944e-38, %v2525_v32  ;;  %v2666_v13 = vmul.f32 %v2665_v19, %v6282_v5 }
 0x35e   : > { %v4186_v20 = vpop.eup %4185  ;;  %vm2044_vm7 = vcmp.eq.f32.partialorder %v2043_v10, 8.507059e+37  ;;  %v2549_v18 = vadd.f32 0.112945676, %v2548_v49  ;;  %v2536_v14 = vadd.f32 0.0036580483, %v2535_v2  ;;  %v2626_v53 = vmul.f32 %v2625_v27, %v6289_v1  ;;  %v6857_v2 = vld [vmem:[#allocation17_spill] sm:$0xff] }
 0x35f   : > { %v2047_v47 = vsel %vm2044_vm7, %v2046_v6, %v2042_v52  ;;  %v2115_v63 = vmul.f32 %v4186_v20, %v6302_v25  ;;  %v6349_v31 = vadd.f32 %v1462_v51, %v1414_v62  ;;  %v6352_v43 = vmul.f32 0.70710677, %v6337_v3 }
 0x360   : > { %vm6356_vm8 = vcmp.eq.f32.partialorder %v2523_v54, 8.507059e+37  ;;  %v2576_v32 = vadd.f32 0.0036580483, %v2575_v56  ;;  %v2592_v4 = vmul.f32 %v2591_v46, %v6161_v11  ;;  %v2149_v10 = vadd.f32 0.112945676, %v2148_v23 }
 0x361   : > { %6854 = vst [vmem:[#allocation5_spill] sm:$0xff] %v6349_v31  ;;  %v2116_v19 = vsub.f32 1.0, %v2115_v63  ;;  %v2667_v49 = vadd.f32 0.014752088, %v2666_v13  ;;  %v2048_v61 = vmul.f32 %v2047_v47, %v6857_v2  ;;  %v2125_v27 = vand.u32 2147483648, %v6302_v25 }
 0x362   : > { %v2731_v52 = vmul.f32 %v6352_v43, %v6352_v43  ;;  %v2550_v36 = vmul.f32 %v2549_v18, %v6219_v29  ;;  %vm2120_vm9 = vweird.f32 %v4186_v20  ;;  %v2123_v56 = vand.u32 2147483647, %v6302_v25 }
 0x363   : > { %v6365_v62 = vpop.eup %4187  ;;  %v2117_v54 = vmul.f32 %v4186_v20, %v2116_v19  ;;  %v2627_v45 = vadd.f32 0.014752088, %v2626_v53  ;;  %v6370_v46 = vmul.f32 0.70710677, %v6349_v31  ;;  %v6376_v23 = vadd.f32 1.0, %v2592_v4 }
 0x364   : > { %v6372_v34 = vmin.f32 %v2731_v52, 16.0  ;;  %v2075_v6 = vmul.f32 %v6365_v62, %v6323_v48  ;;  %vm2119_vm10 = vweird.f32 %v6302_v25  ;;  %v2150_v18 = vmul.f32 %v2149_v10, %v5468_v42 }
 0x365   : > { %6858 = vst [vmem:[#allocation8_spill] sm:$0xff] %v6370_v46  ;;  %v2118_v13 = vadd.f32 %v4186_v20, %v2117_v54  ;;  %v2577_v47 = vmul.f32 %v2576_v32, %v6161_v11  ;;  %v2668_v63 = vmul.f32 %v2667_v49, %v6282_v5  ;;  %v3814_v51 = vclamps-f32 %v2048_v61, 1.0  ;;  %vm2121_vm11 = vmor %vm2119_vm10, %vm2120_vm9 }
 0x366   : > { %v2126_v53 = vor.u32 1.1754944e-38, %v2125_v27  ;;  %vm2124_vm12 = vcmp.eq.f32.partialorder %v2123_v56, 8.507059e+37  ;;  %v2744_v2 = vmul.f32 3.8918573e-05, %v6372_v34  ;;  %v2151_v52 = vadd.f32 0.4994258, %v2150_v18 }
 0x367   : > { %v2122_v19 = vsel %vm2121_vm11, %v4186_v20, %v2118_v13  ;;  %v2628_v4 = vmul.f32 %v2627_v45, %v6289_v1  ;;  %v2691_v25 = vmul.f32 %v6370_v46, %v6370_v46  ;;  %v2076_v54 = vsub.f32 1.0, %v2075_v6 }
 0x368   : > { %v2127_v0 = vsel %vm2124_vm12, %v2126_v53, %v2122_v19  ;;  %v2551_v10 = vadd.f32 0.4994258, %v2550_v36  ;;  %4189 = vrcp.f32 %v6376_v23  ;;  %v2745_v49 = vadd.f32 0.001143296, %v2744_v2 }
 0x369   : > { %v2128_v32 = vmul.f32 %v2127_v0, %v5624_v12  ;;  %v6390_v20 = vsel %vm6356_vm8, %v2526_v55, %v2522_v16  ;;  %v2578_v61 = vadd.f32 0.05243302, %v2577_v47  ;;  %v2653_v27 = vmul.f32 2.1237322e-06, %v6282_v5 }
 0x36a   : > { %v2152_v56 = vmul.f32 %v2151_v52, %v5468_v42  ;;  %v2669_v45 = vadd.f32 0.112945676, %v2668_v63  ;;  %v2823_v18 = vadd.f32 1.0, %v3814_v51  ;;  %v2746_v6 = vmul.f32 %v2745_v49, %v6372_v34  ;;  %v6859_v52 = vld [vmem:[#allocation12_spill] sm:$0xff] }
 0x36b   : > { %v3816_v13 = vclamps-f32 %v2128_v32, 1.0  ;;  %v2629_v36 = vadd.f32 0.112945676, %v2628_v4  ;;  %v6395_v53 = vmin.f32 %v2691_v25, 16.0  ;;  %v2077_v12 = vmul.f32 %v6365_v62, %v2076_v54  ;;  %v6860_v25 = vld [vmem:[#allocation14_spill] sm:$0xff] }
 0x36c   : > { %v6398_v0 = vadd.f32 1.0, %v2152_v56  ;;  %v6401_v16 = vmul.f32 %v2536_v14, %v6219_v29  ;;  %v2552_v55 = vmul.f32 %v2551_v10, %v6219_v29  ;;  %v2747_v47 = vadd.f32 0.014752088, %v2746_v6 }
 0x36d   : > { %v2825_v59 = vadd.f32 1.0, %v3816_v13  ;;  %v2579_v42 = vmul.f32 %v2578_v61, %v6161_v11  ;;  %v2613_v63 = vmul.f32 2.1237322e-06, %v6289_v1  ;;  %v2654_v51 = vadd.f32 0.00028619796, %v2653_v27 }
 0x36e   : > { %4191 = vrcp.f32 %v6398_v0  ;;  %v6407_v19 = vpop.eup %4189  ;;  %v2670_v2 = vmul.f32 %v2669_v45, %v6282_v5  ;;  %v2855_v4 = vmul.f32 %v2823_v18, %v6859_v52  ;;  %v2748_v54 = vmul.f32 %v2747_v47, %v6372_v34 }
 0x36f   : > { %v2857_v14 = vmul.f32 %v2825_v59, %v6860_v25  ;;  %v2630_v10 = vmul.f32 %v2629_v36, %v6289_v1  ;;  %v2704_v32 = vmul.f32 3.8918573e-05, %v6395_v53  ;;  %v2078_v49 = vadd.f32 %v6365_v62, %v2077_v12  ;;  %v1415_v36 = vpop.f32.mrf.mxu2 }
 0x370   : > { %vm2080_vm13 = vweird.f32 %v6365_v62  ;;  %v6417_v61 = vadd.f32 1.0, %v2552_v55  ;;  %v2749_v56 = vadd.f32 0.112945676, %v2748_v54  ;;  %v2085_v45 = vand.u32 2147483648, %v6323_v48 }
 0x371   : > { %v2881_v27 = vpack.c.bf16 %v2857_v14, %v2855_v4  ;;  %v2595_v13 = vmul.f32 %v6407_v19, %v6376_v23  ;;  %v2614_v18 = vadd.f32 0.00028619796, %v2613_v63  ;;  %vm2079_vm14 = vweird.f32 %v6323_v48 }
 0x372   : > { %v2083_v6 = vand.u32 2147483647, %v6323_v48  ;;  %v2580_v59 = vadd.f32 0.18741608, %v2579_v42  ;;  %v2671_v47 = vadd.f32 0.4994258, %v2670_v2  ;;  %v2750_v12 = vmul.f32 %v2749_v56, %v6372_v34  ;;  %vm6427_vm15 = vmor %vm2079_vm14, %vm2080_vm13 }
 0x373   : > { %3138 = vmatmul.bf16.gmra.mxu0 %v2881_v27  ;;  %3236 = vmatmul.bf16.gmra.mxu2 %v2881_v27  ;;  %v1416_v52 = vadd.f32 %v1415_v36, %v5049_v7  ;;  %v2631_v4 = vadd.f32 0.4994258, %v2630_v10  ;;  %v2655_v25 = vmul.f32 %v2654_v51, %v6282_v5  ;;  %v2705_v48 = vadd.f32 0.001143296, %v2704_v32  ;;  %v1464_v10 = vpop.f32.mrf.mxu3 }
 0x374   : > { %v4192_v63 = vpop.eup %4191  ;;  %v2082_v42 = vsel %vm6427_vm15, %v6365_v62, %v2078_v49  ;;  %v2733_v2 = vmul.f32 2.1237322e-06, %v6372_v34  ;;  %v2751_v14 = vadd.f32 0.4994258, %v2750_v12  ;;  %v2086_v54 = vor.u32 1.1754944e-38, %v2085_v45 }
 0x375   : > { %v2155_v27 = vmul.f32 %v4192_v63, %v6398_v0  ;;  %4193 = vrcp.f32 %v6417_v61  ;;  %v2596_v56 = vsub.f32 1.0, %v2595_v13  ;;  %v2615_v7 = vmul.f32 %v2614_v18, %v6289_v1 }
 0x376   : > { %vm2084_vm0 = vcmp.eq.f32.partialorder %v2083_v6, 8.507059e+37  ;;  %v2672_v51 = vmul.f32 %v2671_v47, %v6282_v5  ;;  %v6441_v31 = vadd.f32 %v1464_v10, %v1416_v52  ;;  %v2581_v62 = vmul.f32 %v2580_v59, %v6161_v11 }
 0x377   : > { %v2087_v32 = vsel %vm2084_vm0, %v2086_v54, %v2082_v42  ;;  %v2156_v36 = vsub.f32 1.0, %v2155_v27  ;;  %v2632_v49 = vmul.f32 %v2631_v4, %v6289_v1  ;;  %v2656_v45 = vadd.f32 0.0036580483, %v2655_v25 }
 0x378   : > { %v2752_v12 = vmul.f32 %v2751_v14, %v6372_v34  ;;  %v2706_v55 = vmul.f32 %v2705_v48, %v6395_v53  ;;  %v2734_v13 = vadd.f32 0.00028619796, %v2733_v2  ;;  %v2165_v18 = vand.u32 2147483648, %v6398_v0 }
 0x379   : > { %v2157_v46 = vmul.f32 %v4192_v63, %v2156_v36  ;;  %vm2599_vm1 = vweird.f32 %v6376_v23  ;;  %v2088_v6 = vmul.f32 %v2087_v32, %v5608_v44  ;;  %vm2160_vm2 = vweird.f32 %v4192_v63 }
 0x37a   : > { %v2163_v47 = vand.u32 2147483647, %v6398_v0  ;;  %v6452_v11 = vmul.f32 0.70710677, %v6441_v31  ;;  %v2597_v59 = vmul.f32 %v6407_v19, %v2596_v56  ;;  %v2603_v52 = vand.u32 2147483647, %v6376_v23 }
 0x37b   : > { %v2616_v4 = vadd.f32 0.0036580483, %v2615_v7  ;;  %v6456_v25 = vadd.f32 1.0, %v2672_v51  ;;  %v6458_v48 = vpop.eup %4193  ;;  %v2657_v42 = vmul.f32 %v2656_v45, %v6282_v5  ;;  %v6461_v2 = vadd.f32 1.0, %v2752_v12 }
 0x37c   : > { %v2158_v44 = vadd.f32 %v4192_v63, %v2157_v46  ;;  %vm2159_vm3 = vweird.f32 %v6398_v0  ;;  %v2707_v14 = vadd.f32 0.014752088, %v2706_v55  ;;  %v2735_v54 = vmul.f32 %v2734_v13, %v6372_v34 }
 0x37d   : > { %vm2161_vm4 = vmor %vm2159_vm3, %vm2160_vm2  ;;  %v2166_v27 = vor.u32 1.1754944e-38, %v2165_v18  ;;  %v2771_v56 = vmul.f32 %v6452_v11, %v6452_v11  ;;  %v6467_v7 = vadd.f32 1.0, %v2632_v49  ;;  %v3815_v10 = vclamps-f32 %v2088_v6, 1.0 }
 0x37e   : > { %v2162_v51 = vsel %vm2161_vm4, %v4192_v63, %v2158_v44  ;;  %vm2164_vm5 = vcmp.eq.f32.partialorder %v2163_v47, 8.507059e+37  ;;  %4195 = vrcp.f32 %v6456_v25  ;;  %v2883_v46 = vpack.c.bf16 %v6196_v9, %v5890_v24 }
 0x37f   : > { %v2167_v32 = vsel %vm2164_vm5, %v2166_v27, %v2162_v51  ;;  %v6470_v36 = vmin.f32 %v2771_v56, 16.0  ;;  %v2598_v0 = vadd.f32 %v6407_v19, %v2597_v59  ;;  %vm2600_vm6 = vweird.f32 %v6407_v19 }
 0x380   : > { %4197 = vrcp.f32 %v6461_v2  ;;  %v2168_v49 = vmul.f32 %v2167_v32, %v5661_v38  ;;  %v2605_v45 = vand.u32 2147483648, %v6376_v23  ;;  %v2708_v63 = vmul.f32 %v2707_v14, %v6395_v53  ;;  %vm6488_vm7 = vmor %vm2599_vm1, %vm2600_vm6 }
 0x381   : > { %v2736_v12 = vadd.f32 0.0036580483, %v2735_v54  ;;  %v2784_v55 = vmul.f32 3.8918573e-05, %v6470_v36  ;;  %v2617_v13 = vmul.f32 %v2616_v4, %v6289_v1  ;;  %4199 = vrcp.f32 %v6467_v7 }
 0x382   : > { %v3817_v24 = vclamps-f32 %v2168_v49, 1.0  ;;  %v2824_v9 = vadd.f32 1.0, %v3815_v10  ;;  %v2528_v18 = vmul.f32 %v6390_v20, %v6275_v35  ;;  %v2538_v6 = vadd.f32 0.05243302, %v6401_v16  ;;  %v6865_v10 = vld [vmem:[#allocation13_spill] sm:$0xff] }
 0x383   : > { %v2658_v47 = vadd.f32 0.05243302, %v2657_v42  ;;  %v2785_v59 = vadd.f32 0.001143296, %v2784_v55  ;;  %3143 = vmatmul.bf16.gmra.mxu0 %v2883_v46  ;;  %3241 = vmatmul.bf16.gmra.mxu2 %v2883_v46  ;;  %v2555_v4 = vmul.f32 %v6458_v48, %v6417_v61  ;;  %v2582_v44 = vadd.f32 1.1283791, %v2581_v62 }
 0x384   : > { %v2602_v35 = vsel %vm6488_vm7, %v6407_v19, %v2598_v0  ;;  %v2826_v20 = vadd.f32 1.0, %v3817_v24  ;;  %v6497_v16 = vpop.eup %4195  ;;  %v2606_v23 = vor.u32 1.1754944e-38, %v2605_v45  ;;  %v2709_v14 = vadd.f32 0.112945676, %v2708_v63  ;;  %v6866_v62 = vld [vmem:[#allocation15_spill] sm:$0xff] }
 0x385   : > { %v2737_v54 = vmul.f32 %v2736_v12, %v6372_v34  ;;  %v2786_v42 = vmul.f32 %v2785_v59, %v6470_v36  ;;  %vm2604_vm8 = vcmp.eq.f32.partialorder %v2603_v52, 8.507059e+37  ;;  %v2618_v56 = vadd.f32 0.05243302, %v2617_v13 }
 0x386   : > { %v6501_v27 = vpop.eup %4197  ;;  %v2856_v51 = vmul.f32 %v2824_v9, %v6865_v10  ;;  %v2858_v32 = vmul.f32 %v2826_v20, %v6866_v62  ;;  %v6506_v46 = vmul.f32 0.5, %v6092_v41  ;;  %v2607_v19 = vsel %vm2604_vm8, %v2606_v23, %v2602_v35 }
 0x387   : > { %v2659_v0 = vmul.f32 %v2658_v47, %v6282_v5  ;;  %v2787_v49 = vadd.f32 0.014752088, %v2786_v42  ;;  %v6509_v45 = vpop.eup %4199  ;;  %v3826_v63 = vclamps-f32 %v2528_v18, 1.0  ;;  %v2583_v12 = vmul.f32 %v2582_v44, %v6105_v8 }
 0x388   : > { %v2675_v52 = vmul.f32 %v6497_v16, %v6456_v25  ;;  %v2882_v55 = vpack.c.bf16 %v2858_v32, %v2856_v51  ;;  %v2710_v13 = vmul.f32 %v2709_v14, %v6395_v53  ;;  %v2738_v24 = vadd.f32 0.05243302, %v2737_v54 }
 0x389   : > { %v2755_v41 = vmul.f32 %v6501_v27, %v6461_v2  ;;  %v2788_v9 = vmul.f32 %v2787_v49, %v6470_v36  ;;  %v2539_v38 = vmul.f32 %v2538_v6, %v6219_v29  ;;  %v2556_v47 = vsub.f32 1.0, %v2555_v4 }
 0x38a   : > { %v2608_v59 = vmul.f32 %v2607_v19, %v2583_v12  ;;  %v2619_v18 = vmul.f32 %v2618_v56, %v6289_v1  ;;  %3187 = vmatmul.bf16.gmra.mxu1 %v2882_v55  ;;  %3285 = vmatmul.bf16.gmra.mxu3 %v2882_v55  ;;  %v6867_v8 = vclamps-f32 %v6309_v15, 1.0  ;;  %v2635_v35 = vmul.f32 %v6509_v45, %v6467_v7 }
 0x38b   : > { %v2660_v20 = vadd.f32 0.18741608, %v2659_v0  ;;  %v2789_v23 = vadd.f32 0.112945676, %v2788_v9  ;;  %v2835_v14 = vadd.f32 1.0, %v3826_v63  ;;  %v2676_v54 = vsub.f32 1.0, %v2675_v52 }
 0x38c   : > { %v6522_v44 = vadd.f32 1.0, %v6867_v8  ;;  %v2693_v42 = vmul.f32 2.1237322e-06, %v6395_v53  ;;  %v2773_v6 = vmul.f32 2.1237322e-06, %v6470_v36  ;;  %v2739_v56 = vmul.f32 %v2738_v24, %v6372_v34 }
 0x38d   : > { %v2711_v4 = vadd.f32 0.4994258, %v2710_v13  ;;  %v2756_v10 = vsub.f32 1.0, %v2755_v41  ;;  %v2790_v51 = vmul.f32 %v2789_v23, %v6470_v36  ;;  %v2540_v15 = vadd.f32 0.18741608, %v2539_v38 }
 0x38e   : > { %v2557_v62 = vmul.f32 %v6458_v48, %v2556_v47  ;;  %v3828_v32 = vclamps-f32 %v2608_v59, 1.0  ;;  %v2620_v19 = vadd.f32 0.18741608, %v2619_v18  ;;  %v2636_v49 = vsub.f32 1.0, %v2635_v35 }
 0x38f   : > { %v2661_v0 = vmul.f32 %v2660_v20, %v6282_v5  ;;  %v2791_v63 = vadd.f32 0.4994258, %v2790_v51  ;;  %v2885_v12 = vpack.c.bf16 %v6231_v33, %v6211_v39  ;;  %v6535_v52 = vmul.f32 %v2835_v14, %v6223_v60 }
 0x390   : > { %v2677_v55 = vmul.f32 %v6497_v16, %v2676_v54  ;;  %v2694_v13 = vadd.f32 0.00028619796, %v2693_v42  ;;  %v2774_v24 = vadd.f32 0.00028619796, %v2773_v6  ;;  %v2712_v41 = vmul.f32 %v2711_v4, %v6395_v53 }
 0x391   : > { %v2740_v9 = vadd.f32 0.18741608, %v2739_v56  ;;  %v2757_v38 = vmul.f32 %v6501_v27, %v2756_v10  ;;  %v2792_v47 = vmul.f32 %v2791_v63, %v6470_v36  ;;  %v2541_v5 = vmul.f32 %v2540_v15, %v6219_v29 }
 0x392   : > { %v6543_v59 = vadd.f32 %v6458_v48, %v2557_v62  ;;  %v2565_v39 = vand.u32 2147483648, %v6417_v61  ;;  %v2837_v60 = vadd.f32 1.0, %v3828_v32  ;;  %v2621_v33 = vmul.f32 %v2620_v19, %v6289_v1 }
 0x393   : > { %v2637_v18 = vmul.f32 %v6509_v45, %v2636_v49  ;;  %v2662_v8 = vadd.f32 1.1283791, %v2661_v0  ;;  %v6548_v35 = vadd.f32 1.0, %v2792_v47  ;;  %3148 = vmatmul.bf16.gmra.mxu0 %v2885_v12  ;;  %3246 = vmatmul.bf16.gmra.mxu2 %v2885_v12  ;;  %vm2560_vm9 = vweird.f32 %v6458_v48 }
 0x394   : > { %v2678_v20 = vadd.f32 %v6497_v16, %v2677_v55  ;;  %vm2680_vm10 = vweird.f32 %v6497_v16  ;;  %v2695_v29 = vmul.f32 %v2694_v13, %v6395_v53  ;;  %v2775_v23 = vmul.f32 %v2774_v24, %v6470_v36 }
 0x395   : > { %v6555_v14 = vadd.f32 1.0, %v2712_v41  ;;  %v2741_v1 = vmul.f32 %v2740_v9, %v6372_v34  ;;  %v2758_v54 = vadd.f32 %v6501_v27, %v2757_v38  ;;  %vm2760_vm11 = vweird.f32 %v6501_v27 }
 0x396   : > { %vm2679_vm12 = vweird.f32 %v6456_v25  ;;  %v2685_v42 = vand.u32 2147483648, %v6456_v25  ;;  %v2765_v6 = vand.u32 2147483648, %v6461_v2  ;;  %v2884_v4 = vpack.c.bf16 %v6202_v28, %v6190_v17 }
 0x397   : > { %vm6565_vm13 = vmor %vm2679_vm12, %vm2680_vm10  ;;  %v2683_v10 = vand.u32 2147483647, %v6456_v25  ;;  %vm2759_vm14 = vweird.f32 %v6461_v2  ;;  %v2763_v34 = vand.u32 2147483647, %v6461_v2  ;;  %4201 = vrcp.f32 %v6548_v35 }
 0x398   : > { %v2638_v51 = vadd.f32 %v6509_v45, %v2637_v18  ;;  %vm2640_vm15 = vweird.f32 %v6509_v45  ;;  %v2682_v17 = vsel %vm6565_vm13, %v6497_v16, %v2678_v20  ;;  %vm6578_vm0 = vmor %vm2759_vm14, %vm2760_vm11  ;;  %v2776_v15 = vadd.f32 0.0036580483, %v2775_v23 }
 0x399   : > { %v2696_v25 = vadd.f32 0.0036580483, %v2695_v29  ;;  %4203 = vrcp.f32 %v6555_v14  ;;  %v2742_v62 = vadd.f32 1.1283791, %v2741_v1  ;;  %v2762_v2 = vsel %vm6578_vm0, %v6501_v27, %v2758_v54 }
 0x39a   : > { %v2869_v32 = vmul.f32 %v2837_v60, %v6506_v46  ;;  %v2645_v19 = vand.u32 2147483648, %v6467_v7  ;;  %v2686_v49 = vor.u32 1.1754944e-38, %v2685_v42  ;;  %v2766_v0 = vor.u32 1.1754944e-38, %v2765_v6  ;;  %3192 = vmatmul.bf16.gmra.mxu1 %v2884_v4  ;;  %3290 = vmatmul.bf16.gmra.mxu3 %v2884_v4 }
 0x39b   : > { %vm2639_vm1 = vweird.f32 %v6467_v7  ;;  %v2643_v16 = vand.u32 2147483647, %v6467_v7  ;;  %vm2684_vm2 = vcmp.eq.f32.partialorder %v2683_v10, 8.507059e+37  ;;  %vm2764_vm3 = vcmp.eq.f32.partialorder %v2763_v34, 8.507059e+37 }
 0x39c   : > { %v2622_v63 = vadd.f32 1.1283791, %v2621_v33  ;;  %vm6592_vm4 = vmor %vm2639_vm1, %vm2640_vm15  ;;  %v2687_v27 = vsel %vm2684_vm2, %v2686_v49, %v2682_v17  ;;  %v2767_v46 = vsel %vm2764_vm3, %v2766_v0, %v2762_v2  ;;  %v2777_v55 = vmul.f32 %v2776_v15, %v6470_v36  ;;  %v2891_v49 = vld [vmem:[#allocation3 + $0xb0] sm:$0xff]  ;;  %v3173_v0 = vpop.f32.mrf.mxu1 }
 0x39d   : > { %v6597_v13 = vpop.eup %4201  ;;  %v2642_v24 = vsel %vm6592_vm4, %v6509_v45, %v2638_v51  ;;  %v2663_v7 = vmul.f32 %v2662_v8, %v6239_v37  ;;  %v2697_v41 = vmul.f32 %v2696_v25, %v6395_v53  ;;  %v2743_v9 = vmul.f32 %v2742_v62, %v6352_v43 }
 0x39e   : > { %v2542_v38 = vadd.f32 1.1283791, %v2541_v5  ;;  %vm2559_vm5 = vweird.f32 %v6417_v61  ;;  %v2563_v47 = vand.u32 2147483647, %v6417_v61  ;;  %v2646_v60 = vor.u32 1.1754944e-38, %v2645_v19  ;;  %v3124_v19 = vpop.f32.mrf.mxu0 }
 0x39f   : > { %v6607_v33 = vpop.eup %4203  ;;  %vm6611_vm6 = vmor %vm2559_vm5, %vm2560_vm9  ;;  %vm2644_vm7 = vcmp.eq.f32.partialorder %v2643_v16, 8.507059e+37  ;;  %v2688_v37 = vmul.f32 %v2687_v27, %v2663_v7  ;;  %v2768_v45 = vmul.f32 %v2767_v46, %v2743_v9  ;;  %v2887_v8 = vpack.c.bf16 %v2869_v32, %v6535_v52  ;;  %v3222_v46 = vpop.f32.mrf.mxu2 }
 0x3a0   : > { %v2562_v43 = vsel %vm6611_vm6, %v6458_v48, %v6543_v59  ;;  %v2647_v5 = vsel %vm2644_vm7, %v2646_v60, %v2642_v24  ;;  %v2778_v20 = vadd.f32 0.05243302, %v2777_v55  ;;  %v2795_v29 = vmul.f32 %v6597_v13, %v6548_v35  ;;  %v2892_v55 = vld [vmem:[#allocation3] sm:$0xff]  ;;  %v3271_v24 = vpop.f32.mrf.mxu3 }
 0x3a1   : > { %v2566_v23 = vor.u32 1.1754944e-38, %v2565_v39  ;;  %v2623_v1 = vmul.f32 %v2622_v63, %v6248_v30  ;;  %v2698_v54 = vadd.f32 0.05243302, %v2697_v41  ;;  %v1488_v42 = vmul.f32 0.5, %v5728_v21 }
 0x3a2   : > { %v2866_v52 = vmul.f32 %v6522_v44, %v6217_v50  ;;  %vm2564_vm8 = vcmp.eq.f32.partialorder %v2563_v47, 8.507059e+37  ;;  %v2715_v48 = vmul.f32 %v6607_v33, %v6555_v14  ;;  %v3830_v4 = vclamps-f32 %v2688_v37, 1.0 }
 0x3a3   : > { %v2567_v59 = vsel %vm2564_vm8, %v2566_v23, %v2562_v43  ;;  %v2648_v6 = vmul.f32 %v2647_v5, %v2623_v1  ;;  %v3832_v56 = vclamps-f32 %v2768_v45, 1.0  ;;  %3153 = vmatmul.bf16.gmra.mxu0 %v2887_v8  ;;  %3251 = vmatmul.bf16.gmra.mxu2 %v2887_v8  ;;  %v2864_v61 = vmul.f32 %v6229_v58, %v1488_v42  ;;  %v2893_v42 = vld [vmem:[#allocation3 + $0xd8] sm:$0xff] }
 0x3a4   : > { %v2543_v30 = vmul.f32 %v2542_v38, %v6177_v26  ;;  %v2779_v39 = vmul.f32 %v2778_v20, %v6470_v36  ;;  %v2796_v21 = vsub.f32 1.0, %v2795_v29  ;;  %v2699_v10 = vmul.f32 %v2698_v54, %v6395_v53 }
 0x3a5   : > { %v2716_v44 = vsub.f32 1.0, %v2715_v48  ;;  %v2886_v34 = vpack.c.bf16 %v2866_v52, %v2864_v61  ;;  %v3829_v51 = vclamps-f32 %v2648_v6, 1.0  ;;  %v2839_v17 = vadd.f32 1.0, %v3830_v4  ;;  %v2894_v6 = vld [vmem:[#allocation3 + $0x18] sm:$0xff] }
 0x3a6   : > { %v2568_v50 = vmul.f32 %v2567_v59, %v2543_v30  ;;  %v2841_v28 = vadd.f32 1.0, %v3832_v56  ;;  %v2780_v15 = vadd.f32 0.18741608, %v2779_v39  ;;  %v2797_v25 = vmul.f32 %v6597_v13, %v2796_v21  ;;  %v3126_v54 = vpop.f32.mrf.mxu0 }
 0x3a7   : > { %v1495_v62 = vmul.f32 0.5, %v6213_v57  ;;  %v2700_v2 = vadd.f32 0.18741608, %v2699_v10  ;;  %v1497_v58 = vmul.f32 0.5, %v6337_v3  ;;  %v2717_v32 = vmul.f32 %v6607_v33, %v2716_v44  ;;  %v3224_v59 = vpop.f32.mrf.mxu2 }
 0x3a8   : > { %v3827_v26 = vclamps-f32 %v2568_v50, 1.0  ;;  %v2838_v16 = vadd.f32 1.0, %v3829_v51  ;;  %v3174_v27 = vadd.f32 %v3173_v0, %v3124_v19  ;;  %v2781_v57 = vmul.f32 %v2780_v15, %v6470_v36  ;;  %v3273_v4 = vpop.f32.mrf.mxu3  ;;  %v2895_v15 = vld [vmem:[#allocation3 + $0x50] sm:$0xff] }
 0x3a9   : > { %v2871_v63 = vmul.f32 %v2839_v17, %v1495_v62  ;;  %v2873_v12 = vmul.f32 %v2841_v28, %v1497_v58  ;;  %v2798_v7 = vadd.f32 %v6597_v13, %v2797_v25  ;;  %vm2800_vm9 = vweird.f32 %v6597_v13 }
 0x3aa   : > { %3197 = vmatmul.bf16.gmra.mxu1 %v2886_v34  ;;  %3295 = vmatmul.bf16.gmra.mxu3 %v2886_v34  ;;  %v3272_v3 = vadd.f32 %v3271_v24, %v3222_v46  ;;  %v2701_v41 = vmul.f32 %v2700_v2, %v6395_v53  ;;  %vm2720_vm10 = vweird.f32 %v6607_v33  ;;  %v2805_v9 = vand.u32 2147483648, %v6548_v35  ;;  %v2897_v24 = vld [vmem:[#allocation3 + $0x30] sm:$0xff] }
 0x3ab   : > { %v3311_v38 = vadd.f32 %v3174_v27, %v2891_v49  ;;  %v2718_v47 = vadd.f32 %v6607_v33, %v2717_v32  ;;  %vm2799_vm11 = vweird.f32 %v6548_v35  ;;  %v2803_v60 = vand.u32 2147483647, %v6548_v35 }
 0x3ac   : > { %v3312_v18 = vadd.f32 %v3272_v3, %v2892_v55  ;;  %v2836_v36 = vadd.f32 1.0, %v3827_v26  ;;  %v1494_v37 = vmul.f32 0.5, %v6225_v40  ;;  %v2725_v45 = vand.u32 2147483648, %v6555_v14  ;;  %vm6649_vm12 = vmor %vm2799_vm11, %vm2800_vm9 }
 0x3ad   : > { %v2889_v53 = vpack.c.bf16 %v2873_v12, %v2871_v63  ;;  %3343 = vst [vmem:[#allocation3 + $0xb0] sm:$0xff] %v3311_v38  ;;  %vm2719_vm13 = vweird.f32 %v6555_v14  ;;  %v2723_v43 = vand.u32 2147483647, %v6555_v14  ;;  %v2782_v5 = vadd.f32 1.1283791, %v2781_v57  ;;  %v6881_v12 = vld [vmem:[#allocation5_spill] sm:$0xff] }
 0x3ae   : > { %v2802_v35 = vsel %vm6649_vm12, %v6597_v13, %v2798_v7  ;;  %3344 = vst [vmem:[#allocation3] sm:$0xff] %v3312_v18  ;;  %v1492_v40 = vmul.f32 0.5, %v6159_v22  ;;  %vm6661_vm14 = vmor %vm2719_vm13, %vm2720_vm10  ;;  %v2806_v29 = vor.u32 1.1754944e-38, %v2805_v9  ;;  %v2870_v23 = vmul.f32 %v2838_v16, %v1494_v37  ;;  %v3175_v13 = vpop.f32.mrf.mxu1  ;;  %v3129_v28 = vpop.f32.mrf.mxu0  ;;  %v2899_v37 = vld [vmem:[#allocation3 + $0x80] sm:$0xff] }
 0x3af   : > { %v2702_v1 = vadd.f32 1.1283791, %v2701_v41  ;;  %v2722_v14 = vsel %vm6661_vm14, %v6607_v33, %v2718_v47  ;;  %vm2804_vm15 = vcmp.eq.f32.partialorder %v2803_v60, 8.507059e+37  ;;  %v2726_v52 = vor.u32 1.1754944e-38, %v2725_v45  ;;  %v6880_v33 = vld [vmem:[#allocation8_spill] sm:$0xff]  ;;  %v3227_v2 = vpop.f32.mrf.mxu2  ;;  %v2898_v41 = vld [vmem:[#allocation3 + $0x48] sm:$0xff] }
 0x3b0   : > { %v2807_v48 = vsel %vm2804_vm15, %v2806_v29, %v2802_v35  ;;  %v3176_v22 = vadd.f32 %v3175_v13, %v3126_v54  ;;  %v2868_v56 = vmul.f32 %v2836_v36, %v1492_v40  ;;  %vm2724_vm0 = vcmp.eq.f32.partialorder %v2723_v43, 8.507059e+37  ;;  %v3276_v58 = vpop.f32.mrf.mxu3  ;;  %v2900_v43 = vld [vmem:[#allocation3 + $0x88] sm:$0xff] }
 0x3b1   : > { %v2783_v61 = vmul.f32 %v2782_v5, %v6452_v11  ;;  %v3274_v30 = vadd.f32 %v3273_v4, %v3224_v59  ;;  %v2727_v39 = vsel %vm2724_vm0, %v2726_v52, %v2722_v14  ;;  %v2703_v10 = vmul.f32 %v2702_v1, %v6880_v33  ;;  %v2896_v11 = vld [vmem:[#allocation3 + $0x68] sm:$0xff] }
 0x3b2   : > { %v3313_v21 = vadd.f32 %v3176_v22, %v2893_v42  ;;  %v2888_v44 = vpack.c.bf16 %v2870_v23, %v2868_v56  ;;  %v3277_v32 = vadd.f32 %v3276_v58, %v3227_v2  ;;  %v1498_v63 = vmul.f32 0.5, %v6441_v31  ;;  %v2901_v23 = vld [vmem:[#allocation3 + $0xe8] sm:$0xff]  ;;  %v2902_v42 = vld [vmem:[#allocation3 + $0xb8] sm:$0xff] }
 0x3b3   : > { %3158 = vmatmul.bf16.gmra.mxu0 %v2889_v53  ;;  %3256 = vmatmul.bf16.gmra.mxu2 %v2889_v53  ;;  %v2808_v50 = vmul.f32 %v2807_v48, %v2783_v61  ;;  %v3314_v34 = vadd.f32 %v3274_v30, %v2894_v6  ;;  %v2728_v51 = vmul.f32 %v2727_v39, %v2703_v10  ;;  %v1496_v27 = vmul.f32 0.5, %v6881_v12  ;;  %v2903_v61 = vld [vmem:[#allocation3 + $0x60] sm:$0xff]  ;;  %v2904_v10 = vld [vmem:[#allocation3 + $0xf0] sm:$0xff]  ;;  %v2906_v2 = vld [vmem:[#allocation3 + $0x78] sm:$0xff] }
 0x3b4   : > { %3345 = vst [vmem:[#allocation3 + $0xd8] sm:$0xff] %v3313_v21  ;;  %v3316_v0 = vadd.f32 %v3277_v32, %v2896_v11 }
 0x3b5   : > { %3346 = vst [vmem:[#allocation3 + $0x18] sm:$0xff] %v3314_v34  ;;  %v3833_v17 = vclamps-f32 %v2808_v50, 1.0  ;;  %v3831_v26 = vclamps-f32 %v2728_v51, 1.0  ;;  %v2905_v34 = vld [vmem:[#allocation3 + $0x8] sm:$0xff] }
 0x3b6   : > { %v3178_v25 = vpop.f32.mrf.mxu1  ;;  %3348 = vst [vmem:[#allocation3 + $0x68] sm:$0xff] %v3316_v0  ;;  %v3131_v55 = vpop.f32.mrf.mxu0 }
 0x3b7   : > { %v3179_v62 = vadd.f32 %v3178_v25, %v3129_v28  ;;  %v2842_v49 = vadd.f32 1.0, %v3833_v17  ;;  %v2840_v16 = vadd.f32 1.0, %v3831_v26  ;;  %v3229_v3 = vpop.f32.mrf.mxu2  ;;  %v2907_v26 = vld [vmem:[#allocation3 + $0x38] sm:$0xff] }
 0x3b8   : > { %v3278_v9 = vpop.f32.mrf.mxu3 }
 0x3b9   : > { %v3315_v19 = vadd.f32 %v3179_v62, %v2895_v15  ;;  %v2874_v46 = vmul.f32 %v2842_v49, %v1498_v63  ;;  %v2872_v38 = vmul.f32 %v2840_v16, %v1496_v27  ;;  %v3279_v47 = vadd.f32 %v3278_v9, %v3229_v3  ;;  %v2908_v63 = vld [vmem:[#allocation3 + $0x58] sm:$0xff]  ;;  %v2910_v9 = vld [vmem:[#allocation3 + $0xc8] sm:$0xff] }
 0x3ba   : > { %3202 = vmatmul.bf16.gmra.mxu1 %v2888_v44  ;;  %3300 = vmatmul.bf16.gmra.mxu3 %v2888_v44 }
 0x3bb   : > { %3347 = vst [vmem:[#allocation3 + $0x50] sm:$0xff] %v3315_v19  ;;  %v2890_v18 = vpack.c.bf16 %v2874_v46, %v2872_v38  ;;  %v3318_v36 = vadd.f32 %v3279_v47, %v2898_v41 }
 0x3bd   : > { %3350 = vst [vmem:[#allocation3 + $0x48] sm:$0xff] %v3318_v36 }
 0x3be   : > { %v3180_v57 = vpop.f32.mrf.mxu1  ;;  %v3134_v31 = vpop.f32.mrf.mxu0 }
 0x3bf   : > { %v3181_v7 = vadd.f32 %v3180_v57, %v3131_v55  ;;  %v3232_v53 = vpop.f32.mrf.mxu2  ;;  %v2909_v55 = vld [vmem:[#allocation3 + $0x40] sm:$0xff] }
 0x3c1   : > { %v3317_v60 = vadd.f32 %v3181_v7, %v2897_v24 }
 0x3c3   : > { %3349 = vst [vmem:[#allocation3 + $0x30] sm:$0xff] %v3317_v60  ;;  %v2911_v60 = vld [vmem:[#allocation3 + $0xe0] sm:$0xff] }
 0x3c5   : > { %v3281_v5 = vpop.f32.mrf.mxu3 }
 0x3c6   : > { %v3183_v45 = vpop.f32.mrf.mxu1  ;;  %v3282_v35 = vadd.f32 %v3281_v5, %v3232_v53  ;;  %v3136_v29 = vpop.f32.mrf.mxu0 }
 0x3c7   : > { %v3184_v8 = vadd.f32 %v3183_v45, %v3134_v31  ;;  %v3234_v54 = vpop.f32.mrf.mxu2 }
 0x3c8   : > { %v3320_v20 = vadd.f32 %v3282_v35, %v2900_v43  ;;  %v2913_v35 = vld [vmem:[#allocation3 + $0x70] sm:$0xff] }
 0x3c9   : > { %v3319_v40 = vadd.f32 %v3184_v8, %v2899_v37  ;;  %v2912_v8 = vld [vmem:[#allocation3 + $0x90] sm:$0xff] }
 0x3ca   : > { %3207 = vmatmul.bf16.gmra.mxu1 %v2890_v18  ;;  %3305 = vmatmul.bf16.gmra.mxu3 %v2890_v18  ;;  %3352 = vst [vmem:[#allocation3 + $0x88] sm:$0xff] %v3320_v20 }
 0x3cb   : > { %3351 = vst [vmem:[#allocation3 + $0x80] sm:$0xff] %v3319_v40 }
 0x3cd   : > { %v3283_v13 = vpop.f32.mrf.mxu3 }
 0x3ce   : > { %v3185_v1 = vpop.f32.mrf.mxu1  ;;  %v3284_v52 = vadd.f32 %v3283_v13, %v3234_v54  ;;  %v2915_v13 = vld [vmem:[#allocation3 + $0xa8] sm:$0xff] }
 0x3cf   : > { %v3186_v14 = vadd.f32 %v3185_v1, %v3136_v29 }
 0x3d0   : > { %v3322_v22 = vadd.f32 %v3284_v52, %v2902_v42 }
 0x3d1   : > { %v3321_v48 = vadd.f32 %v3186_v14, %v2901_v23  ;;  %v2914_v14 = vld [vmem:[#allocation3 + $0xc0] sm:$0xff] }
 0x3d2   : > { %3354 = vst [vmem:[#allocation3 + $0xb8] sm:$0xff] %v3322_v22 }
 0x3d3   : > { %3353 = vst [vmem:[#allocation3 + $0xe8] sm:$0xff] %v3321_v48 }
 0x3f0   : > { %v3139_v59 = vpop.f32.mrf.mxu0 }
 0x3f6   : > { %v3237_v6 = vpop.f32.mrf.mxu2 }
 0x3f8   : > { %v3141_v4 = vpop.f32.mrf.mxu0 }
 0x3fe   : > { %v3239_v56 = vpop.f32.mrf.mxu2 }
 0x400   : > { %v3144_v21 = vpop.f32.mrf.mxu0 }
 0x406   : > { %v3242_v17 = vpop.f32.mrf.mxu2 }
 0x407   : > { %v3188_v30 = vpop.f32.mrf.mxu1 }
 0x408   : > { %v3189_v39 = vadd.f32 %v3188_v30, %v3139_v59  ;;  %v3146_v62 = vpop.f32.mrf.mxu0 }
 0x40a   : > { %v3323_v33 = vadd.f32 %v3189_v39, %v2903_v61  ;;  %v2917_v39 = vld [vmem:[#allocation3 + $0x10] sm:$0xff] }
 0x40c   : > { %3355 = vst [vmem:[#allocation3 + $0x60] sm:$0xff] %v3323_v33 }
 0x40d   : > { %v3286_v50 = vpop.f32.mrf.mxu3 }
 0x40e   : > { %v3287_v44 = vadd.f32 %v3286_v50, %v3237_v6  ;;  %v3244_v0 = vpop.f32.mrf.mxu2 }
 0x40f   : > { %v3190_v51 = vpop.f32.mrf.mxu1 }
 0x410   : > { %v3324_v28 = vadd.f32 %v3287_v44, %v2904_v10  ;;  %v3191_v15 = vadd.f32 %v3190_v51, %v3141_v4  ;;  %v3149_v27 = vpop.f32.mrf.mxu0  ;;  %v2918_v51 = vld [vmem:[#allocation3 + $0x28] sm:$0xff] }
 0x412   : > { %3356 = vst [vmem:[#allocation3 + $0xf0] sm:$0xff] %v3324_v28  ;;  %v3325_v25 = vadd.f32 %v3191_v15, %v2905_v34  ;;  %v2919_v15 = vld [vmem:[#allocation3 + $0xa0] sm:$0xff] }
 0x414   : > { %3357 = vst [vmem:[#allocation3 + $0x8] sm:$0xff] %v3325_v25 }
 0x415   : > { %v3288_v11 = vpop.f32.mrf.mxu3 }
 0x416   : > { %v3289_v58 = vadd.f32 %v3288_v11, %v3239_v56  ;;  %v3247_v41 = vpop.f32.mrf.mxu2  ;;  %v2916_v56 = vld [vmem:[#allocation3 + $0xd0] sm:$0xff] }
 0x417   : > { %v3193_v32 = vpop.f32.mrf.mxu1 }
 0x418   : > { %v3326_v19 = vadd.f32 %v3289_v58, %v2906_v2  ;;  %v3194_v49 = vadd.f32 %v3193_v32, %v3144_v21  ;;  %v3151_v36 = vpop.f32.mrf.mxu0 }
 0x41a   : > { %3358 = vst [vmem:[#allocation3 + $0x78] sm:$0xff] %v3326_v19  ;;  %v3327_v16 = vadd.f32 %v3194_v49, %v2907_v26  ;;  %v2920_v26 = vld [vmem:[#allocation3 + $0xf8] sm:$0xff] }
 0x41c   : > { %3359 = vst [vmem:[#allocation3 + $0x38] sm:$0xff] %v3327_v16 }
 0x41d   : > { %v3291_v12 = vpop.f32.mrf.mxu3 }
 0x41e   : > { %v3292_v46 = vadd.f32 %v3291_v12, %v3242_v17  ;;  %v3249_v43 = vpop.f32.mrf.mxu2 }
 0x41f   : > { %v3195_v24 = vpop.f32.mrf.mxu1 }
 0x420   : > { %v3328_v57 = vadd.f32 %v3292_v46, %v2908_v63  ;;  %v3196_v7 = vadd.f32 %v3195_v24, %v3146_v62  ;;  %v3154_v23 = vpop.f32.mrf.mxu0 }
 0x422   : > { %3360 = vst [vmem:[#allocation3 + $0x58] sm:$0xff] %v3328_v57  ;;  %v3329_v3 = vadd.f32 %v3196_v7, %v2909_v55  ;;  %v2922_v55 = vld [vmem:[#allocation3 + $0x98] sm:$0xff] }
 0x424   : > { %3361 = vst [vmem:[#allocation3 + $0x40] sm:$0xff] %v3329_v3 }
 0x425   : > { %v3293_v38 = vpop.f32.mrf.mxu3 }
 0x426   : > { %v3294_v47 = vadd.f32 %v3293_v38, %v3244_v0  ;;  %v3252_v48 = vpop.f32.mrf.mxu2  ;;  %v2921_v0 = vld [vmem:[#allocation3 + $0x20] sm:$0xff] }
 0x427   : > { %v3198_v18 = vpop.f32.mrf.mxu1 }
 0x428   : > { %v3330_v31 = vadd.f32 %v3294_v47, %v2910_v9  ;;  %v3199_v37 = vadd.f32 %v3198_v18, %v3149_v27  ;;  %v3156_v4 = vpop.f32.mrf.mxu0 }
 0x42a   : > { %3362 = vst [vmem:[#allocation3 + $0xc8] sm:$0xff] %v3330_v31  ;;  %v3331_v45 = vadd.f32 %v3199_v37, %v2911_v60 }
 0x42c   : > { %3363 = vst [vmem:[#allocation3 + $0xe0] sm:$0xff] %v3331_v45 }
 0x42d   : > { %v3296_v53 = vpop.f32.mrf.mxu3 }
 0x42e   : > { %v3297_v5 = vadd.f32 %v3296_v53, %v3247_v41  ;;  %v3254_v50 = vpop.f32.mrf.mxu2 }
 0x42f   : > { %v3200_v40 = vpop.f32.mrf.mxu1 }
 0x430   : > { %v3332_v20 = vadd.f32 %v3297_v5, %v2912_v8  ;;  %v3201_v29 = vadd.f32 %v3200_v40, %v3151_v36  ;;  %v3159_v34 = vpop.f32.mrf.mxu0 }
 0x432   : > { %3364 = vst [vmem:[#allocation3 + $0x90] sm:$0xff] %v3332_v20  ;;  %v3333_v1 = vadd.f32 %v3201_v29, %v2913_v35 }
 0x434   : > { %3365 = vst [vmem:[#allocation3 + $0x70] sm:$0xff] %v3333_v1 }
 0x435   : > { %v3298_v54 = vpop.f32.mrf.mxu3 }
 0x436   : > { %v3299_v42 = vadd.f32 %v3298_v54, %v3249_v43  ;;  %v3257_v58 = vpop.f32.mrf.mxu2 }
 0x437   : > { %v3203_v52 = vpop.f32.mrf.mxu1 }
 0x438   : > { %v3334_v22 = vadd.f32 %v3299_v42, %v2914_v14  ;;  %v3204_v59 = vadd.f32 %v3203_v52, %v3154_v23  ;;  %v3161_v49 = vpop.f32.mrf.mxu0 }
 0x43a   : > { %3366 = vst [vmem:[#allocation3 + $0xc0] sm:$0xff] %v3334_v22  ;;  %v3335_v6 = vadd.f32 %v3204_v59, %v2915_v13 }
 0x43c   : > { %3367 = vst [vmem:[#allocation3 + $0xa8] sm:$0xff] %v3335_v6 }
 0x43d   : > { %v3301_v61 = vpop.f32.mrf.mxu3 }
 0x43e   : > { %v3302_v30 = vadd.f32 %v3301_v61, %v3252_v48  ;;  %v3259_v46 = vpop.f32.mrf.mxu2 }
 0x43f   : > { %v3205_v21 = vpop.f32.mrf.mxu1 }
 0x440   : > { %v3336_v33 = vadd.f32 %v3302_v30, %v2916_v56  ;;  %v3206_v10 = vadd.f32 %v3205_v21, %v3156_v4 }
 0x442   : > { %3368 = vst [vmem:[#allocation3 + $0xd0] sm:$0xff] %v3336_v33  ;;  %v3337_v44 = vadd.f32 %v3206_v10, %v2917_v39 }
 0x444   : > { %3369 = vst [vmem:[#allocation3 + $0x10] sm:$0xff] %v3337_v44 }
 0x445   : > { %v3303_v17 = vpop.f32.mrf.mxu3 }
 0x446   : > { %v3304_v28 = vadd.f32 %v3303_v17, %v3254_v50 }
 0x447   : > { %v3208_v25 = vpop.f32.mrf.mxu1 }
 0x448   : > { %v3338_v62 = vadd.f32 %v3304_v28, %v2918_v51  ;;  %v3209_v2 = vadd.f32 %v3208_v25, %v3159_v34 }
 0x44a   : > { %3370 = vst [vmem:[#allocation3 + $0x28] sm:$0xff] %v3338_v62  ;;  %v3339_v11 = vadd.f32 %v3209_v2, %v2919_v15 }
 0x44c   : > { %3371 = vst [vmem:[#allocation3 + $0xa0] sm:$0xff] %v3339_v11 }
 0x44d   : > { %v3306_v32 = vpop.f32.mrf.mxu3 }
 0x44e   : > { %v3307_v19 = vadd.f32 %v3306_v32, %v3257_v58 }
 0x44f   : > { %v3210_v16 = vpop.f32.mrf.mxu1 }
 0x450   : > { %v3340_v63 = vadd.f32 %v3307_v19, %v2920_v26  ;;  %v3211_v12 = vadd.f32 %v3210_v16, %v3161_v49 }
 0x452   : > { %3372 = vst [vmem:[#allocation3 + $0xf8] sm:$0xff] %v3340_v63  ;;  %v3341_v27 = vadd.f32 %v3211_v12, %v2921_v0 }
 0x454   : > { %3373 = vst [vmem:[#allocation3 + $0x20] sm:$0xff] %v3341_v27 }
 0x455   : > { %v3308_v24 = vpop.f32.mrf.mxu3 }
 0x456   : > { %v3309_v57 = vadd.f32 %v3308_v24, %v3259_v46  ;;  %3378 = sbr.rel (%p3962_p0) target bundleno = 1152 (0x480), region = 86 }
 0x458   : > { %v3342_v7 = vadd.f32 %v3309_v57, %v2922_v55 }
 0x45a   : > { %3374 = vst [vmem:[#allocation3 + $0x98] sm:$0xff] %v3342_v7 }
 0x45b   : > { %v3379_v3 = vld [vmem:[#allocation3 + $0xb0] sm:$0xff]  ;;  %v3411_v41 = vld [vmem:[%s6769_s4] sm:$0x3]  ;;  %v3381_v60 = vld [vmem:[#allocation3 + $0xd8] sm:$0xff] }
 0x45c   : > { %v3380_v9 = vld [vmem:[#allocation3] sm:$0xff]  ;;  %v6676_v38 = vperm.slane %v3411_v41, 0  ;;  %v6678_v47 = vperm.slane %v3411_v41, 1  ;;  %v3382_v18 = vld [vmem:[#allocation3 + $0x18] sm:$0xff]  ;;  %v3383_v36 = vld [vmem:[#allocation3 + $0x50] sm:$0xff] }
 0x45d   : > { %v3384_v8 = vld [vmem:[#allocation3 + $0x68] sm:$0xff]  ;;  %v3385_v43 = vld [vmem:[#allocation3 + $0x30] sm:$0xff]  ;;  %v3387_v20 = vld [vmem:[#allocation3 + $0x80] sm:$0xff] }
 0x45e   : > { %v3417_v31 = vadd.f32 %v6676_v38, %v3379_v3  ;;  %v3418_v37 = vadd.f32 %v6678_v47, %v3380_v9  ;;  %v3419_v45 = vadd.f32 %v6676_v38, %v3381_v60  ;;  %v3420_v53 = vadd.f32 %v6678_v47, %v3382_v18  ;;  %v3386_v35 = vld [vmem:[#allocation3 + $0x48] sm:$0xff]  ;;  %v3390_v42 = vld [vmem:[#allocation3 + $0xb8] sm:$0xff]  ;;  %v3391_v52 = vld [vmem:[#allocation3 + $0x60] sm:$0xff] }
 0x45f   : > { %v3421_v5 = vadd.f32 %v6676_v38, %v3383_v36  ;;  %v3422_v40 = vadd.f32 %v6678_v47, %v3384_v8  ;;  %v3423_v29 = vadd.f32 %v6676_v38, %v3385_v43  ;;  %v3388_v23 = vld [vmem:[#allocation3 + $0x88] sm:$0xff]  ;;  %v3424_v1 = vadd.f32 %v6678_v47, %v3386_v35  ;;  %v3392_v22 = vld [vmem:[#allocation3 + $0xf0] sm:$0xff]  ;;  %v3394_v56 = vld [vmem:[#allocation3 + $0x78] sm:$0xff] }
 0x460   : > { %3449 = vst [vmem:[%s4432_s8] sm:$0xff] %v3417_v31  ;;  %v3389_v14 = vld [vmem:[#allocation3 + $0xe8] sm:$0xff]  ;;  %v3425_v54 = vadd.f32 %v6676_v38, %v3387_v20  ;;  %v3426_v13 = vadd.f32 %v6678_v47, %v3388_v23  ;;  %v3428_v59 = vadd.f32 %v6678_v47, %v3390_v42  ;;  %v3429_v4 = vadd.f32 %v6676_v38, %v3391_v52  ;;  %v3395_v30 = vld [vmem:[#allocation3 + $0x38] sm:$0xff]  ;;  %v3397_v10 = vld [vmem:[#allocation3 + $0x40] sm:$0xff] }
 0x461   : > { %3450 = vst [vmem:[%s4432_s8 + $0x8] sm:$0xff] %v3418_v37  ;;  %v3427_v48 = vadd.f32 %v6676_v38, %v3389_v14  ;;  %v3393_v6 = vld [vmem:[#allocation3 + $0x8] sm:$0xff]  ;;  %v3430_v61 = vadd.f32 %v6678_v47, %v3392_v22  ;;  %v3396_v21 = vld [vmem:[#allocation3 + $0x58] sm:$0xff]  ;;  %v3432_v33 = vadd.f32 %v6678_v47, %v3394_v56  ;;  %v3433_v50 = vadd.f32 %v6676_v38, %v3395_v30  ;;  %v3399_v51 = vld [vmem:[#allocation3 + $0xe0] sm:$0xff] }
 0x462   : > { %3451 = vst [vmem:[%s4432_s8 + $0x10] sm:$0xff] %v3419_v45  ;;  %v3431_v39 = vadd.f32 %v6676_v38, %v3393_v6  ;;  %v3398_v44 = vld [vmem:[#allocation3 + $0xc8] sm:$0xff]  ;;  %v3434_v34 = vadd.f32 %v6678_v47, %v3396_v21  ;;  %v3435_v17 = vadd.f32 %v6676_v38, %v3397_v10  ;;  %v3400_v28 = vld [vmem:[#allocation3 + $0x90] sm:$0xff]  ;;  %v3437_v62 = vadd.f32 %v6676_v38, %v3399_v51  ;;  %v3402_v2 = vld [vmem:[#allocation3 + $0xc0] sm:$0xff] }
 0x463   : > { %3452 = vst [vmem:[%s4432_s8 + $0x18] sm:$0xff] %v3420_v53  ;;  %v3436_v15 = vadd.f32 %v6678_v47, %v3398_v44  ;;  %v3401_v25 = vld [vmem:[#allocation3 + $0x70] sm:$0xff]  ;;  %v3438_v11 = vadd.f32 %v6678_v47, %v3400_v28  ;;  %v3403_v58 = vld [vmem:[#allocation3 + $0xa8] sm:$0xff]  ;;  %v3440_v19 = vadd.f32 %v6678_v47, %v3402_v2  ;;  %v3407_v12 = vld [vmem:[#allocation3 + $0xa0] sm:$0xff] }
 0x464   : > { %3453 = vst [vmem:[%s4432_s8 + $0x20] sm:$0xff] %v3421_v5  ;;  %v3439_v26 = vadd.f32 %v6676_v38, %v3401_v25  ;;  %v3404_v32 = vld [vmem:[#allocation3 + $0xd0] sm:$0xff]  ;;  %v3441_v0 = vadd.f32 %v6676_v38, %v3403_v58  ;;  %v3406_v16 = vld [vmem:[#allocation3 + $0x28] sm:$0xff]  ;;  %v3408_v46 = vld [vmem:[#allocation3 + $0xf8] sm:$0xff]  ;;  %v3445_v57 = vadd.f32 %v6676_v38, %v3407_v12 }
 0x465   : > { %3454 = vst [vmem:[%s4432_s8 + $0x28] sm:$0xff] %v3422_v40  ;;  %v3405_v49 = vld [vmem:[#allocation3 + $0x10] sm:$0xff]  ;;  %v3442_v63 = vadd.f32 %v6678_v47, %v3404_v32  ;;  %v3444_v55 = vadd.f32 %v6678_v47, %v3406_v16  ;;  %v3409_v24 = vld [vmem:[#allocation3 + $0x20] sm:$0xff]  ;;  %v3410_v7 = vld [vmem:[#allocation3 + $0x98] sm:$0xff]  ;;  %v3446_v3 = vadd.f32 %v6678_v47, %v3408_v46 }
 0x466   : > { %3455 = vst [vmem:[%s4432_s8 + $0x30] sm:$0xff] %v3423_v29  ;;  %v3443_v27 = vadd.f32 %v6676_v38, %v3405_v49  ;;  %v3447_v41 = vadd.f32 %v6676_v38, %v3409_v24  ;;  %v3448_v9 = vadd.f32 %v6678_v47, %v3410_v7 }
 0x467   : > { %3456 = vst [vmem:[%s4432_s8 + $0x38] sm:$0xff] %v3424_v1 }
 0x468   : > { %3457 = vst [vmem:[%s4432_s8 + $0x40] sm:$0xff] %v3425_v54 }
 0x469   : > { %3458 = vst [vmem:[%s4432_s8 + $0x48] sm:$0xff] %v3426_v13 }
 0x46a   : > { %3459 = vst [vmem:[%s4432_s8 + $0x50] sm:$0xff] %v3427_v48 }
 0x46b   : > { %3460 = vst [vmem:[%s4432_s8 + $0x58] sm:$0xff] %v3428_v59 }
 0x46c   : > { %3461 = vst [vmem:[%s4432_s8 + $0x60] sm:$0xff] %v3429_v4 }
 0x46d   : > { %3462 = vst [vmem:[%s4432_s8 + $0x68] sm:$0xff] %v3430_v61 }
 0x46e   : > { %3463 = vst [vmem:[%s4432_s8 + $0x70] sm:$0xff] %v3431_v39 }
 0x46f   : > { %3464 = vst [vmem:[%s4432_s8 + $0x78] sm:$0xff] %v3432_v33 }
 0x470   : > { %3465 = vst [vmem:[%s4432_s8 + $0x80] sm:$0xff] %v3433_v50 }
 0x471   : > { %3466 = vst [vmem:[%s4432_s8 + $0x88] sm:$0xff] %v3434_v34 }
 0x472   : > { %3467 = vst [vmem:[%s4432_s8 + $0x90] sm:$0xff] %v3435_v17 }
 0x473   : > { %3468 = vst [vmem:[%s4432_s8 + $0x98] sm:$0xff] %v3436_v15 }
 0x474   : > { %3469 = vst [vmem:[%s4432_s8 + $0xa0] sm:$0xff] %v3437_v62 }
 0x475   : > { %3470 = vst [vmem:[%s4432_s8 + $0xa8] sm:$0xff] %v3438_v11 }
 0x476   : > { %3471 = vst [vmem:[%s4432_s8 + $0xb0] sm:$0xff] %v3439_v26 }
 0x477   : > { %3472 = vst [vmem:[%s4432_s8 + $0xb8] sm:$0xff] %v3440_v19 }
 0x478   : > { %3473 = vst [vmem:[%s4432_s8 + $0xc0] sm:$0xff] %v3441_v0 }
 0x479   : > { %3474 = vst [vmem:[%s4432_s8 + $0xc8] sm:$0xff] %v3442_v63 }
 0x47a   : > { %3475 = vst [vmem:[%s4432_s8 + $0xd0] sm:$0xff] %v3443_v27 }
 0x47b   : > { %3476 = vst [vmem:[%s4432_s8 + $0xd8] sm:$0xff] %v3444_v55 }
 0x47c   : > { %3477 = vst [vmem:[%s4432_s8 + $0xe0] sm:$0xff] %v3445_v57 }
 0x47d   : > { %3478 = vst [vmem:[%s4432_s8 + $0xe8] sm:$0xff] %v3446_v3 }
 0x47e   : > { %3479 = vst [vmem:[%s4432_s8 + $0xf0] sm:$0xff] %v3447_v41 }
 0x47f   : > { %3480 = vst [vmem:[%s4432_s8 + $0xf8] sm:$0xff] %v3448_v9 }
 0x480 PF: > { %s15_s24 = sadd.s32 1, %s4259_s24   ;;  %s6882_s18 = smov %s4239_s19 }
 0x481   : > { %p12_p1 = scmp.ge.s32.totalorder %s15_s24, 6   ;;  %s6883_s19 = smov %s4342_s29 }
 0x482   : > { %s6884_s20 = smov %s4251_s22  ;;  %s6885_s21 = smov %s4255_s23 }
 0x483   : > { %s6886_s22 = smov %s6889_s25  ;;  %s6887_s23 = smov %s6893_s26 }
 0x484   :  { %14 = sbr.rel (!%p12_p1) target bundleno = 4 (0x4), region = 130 }

// kernel: mlp_block.1
= control target key start
LH: loop header
LB: loop body
LE: loop exit
PB: predicated region body
PF: predicated region fallthrough
CT: control target
= control target key end

     0   :  { %s4293_s18 = smov 0   ;;  %s4295_s19 = smov 0   ;;  %s6765_s0 = inlined_call_operand.vmem [shape: f32[256,256], index: 0, kind: input, shape index: {}]   ;;  %s6766_s1 = inlined_call_operand.vmem [shape: bf16[256,512], index: 1, kind: input, shape index: {}]   ;;  %s6767_s2 = inlined_call_operand.vmem [shape: f32[1,512], index: 2, kind: input, shape index: {}]   ;;  %s6768_s3 = inlined_call_operand.vmem [shape: bf16[512,256], index: 3, kind: input, shape index: {}]   ;;  %s6769_s4 = inlined_call_operand.vmem [shape: f32[1,256], index: 4, kind: input, shape index: {}]   ;;  %s6770_s5 = inlined_call_operand.vmem [shape: f32[256,256], index: 5, kind: output, shape index: {}]  }
   0x1   :  { %s4297_s20 = smov 0   ;;  %s4299_s21 = smov 0  }
   0x2   :  { %s4301_s22 = smov 0   ;;  %s4303_s23 = smov 0  }
   0x3   :  { %s4305_s24 = smov 0  }
   0x4 LB: > { %s24_s25 = sadd.s32 1, %s4251_s22  ;;  %s27_s26 = sadd.s32 1, %s4255_s23  ;;  %s4259_s24 = sphi %s4305_s24, %s15_s24   ;;  %s4255_s23 = sphi %s4303_s23, %s6887_s23   ;;  %s4251_s22 = sphi %s4301_s22, %s6886_s22   ;;  %s4247_s21 = sphi %s4299_s21, %s6885_s21   ;;  %s4243_s20 = sphi %s4297_s20, %s6884_s20   ;;  %s4239_s19 = sphi %s4295_s19, %s6883_s19   ;;  %s4235_s18 = sphi %s4293_s18, %s6882_s18  }
   0x5   : > { %p25_p0 = scmp.ge.s32.totalorder %s24_s25, 2  ;;  %s60_s27 = sadd.s32 1, %s4239_s19 }
   0x6   : > { %p67_p1 = scmp.ne.s32.totalorder %s4239_s19, %s4235_s18  ;;  %p68_p2 = scmp.eq.s32.totalorder %s4259_s24, 0 }
   0x7   : > { %s6889_s25 = smov (%p25_p0, %s24_s25), 0  ;;  %s6891_s26 = smov (!%p25_p0, %s27_s26), %s4255_s23 }
   0x8   : > { %s57_s28 = ssub.s32 %s4251_s22, %s6889_s25  ;;  %p69_p3 = por %p68_p2, %p67_p1 }
   0x9   : > { %p29_p4 = scmp.ge.s32.totalorder %s6891_s26, 2  ;;  %p58_p5 = scmp.eq.s32.totalorder %s57_s28, 0 }
   0xa   : > { %p3593_p6 = scmp.ge.s32.totalorder %s4259_s24, 4 }
   0xb   : > { %s6893_s26 = smov (%p29_p4, %s6891_s26), 0 }
   0xc   : > { %s4342_s29 = scalar_select %p58_p5, %s4239_s19, %s60_s27  }
   0xd   : > { %195 = sbr.rel (%p3593_p6) target bundleno = 54 (0x36), region = 20 }
  0x12   : > { %208 = sbr.rel (!%p69_p3) target bundleno = 54 (0x36), region = 28  ;;  %s210_s30 = sand.u32 (%p69_p3), 1, %s4239_s19  }
  0x13   : > { %s3965_s6 = sshll.u32 (%p69_p3), %s4251_s22, 3  ;;  %s3594_s7 = sshll.u32 (%p69_p3), %s210_s30, 8 }
  0x14   : > { %s4350_s10 = scalar_lea.vmem (%p69_p3), %s6766_s1, %s3965_s6  ;;  %s4355_s11 = scalar_lea.vmem (%p69_p3), [#allocation4], %s3594_s7 }
  0x15   : > { %v306_v0 = vld [vmem:[%s4350_s10] sm:$0xff] (%p69_p3)  ;;  %v308_v1 = vld [vmem:[%s4350_s10 + $0x10] sm:$0xff] (%p69_p3) }
  0x16   : > { %v310_v2 = vld [vmem:[%s4350_s10 + $0x20] sm:$0xff] (%p69_p3)  ;;  %307 = vst [vmem:[%s4355_s11] sm:$0xff] (%p69_p3), %v306_v0  ;;  %v312_v3 = vld [vmem:[%s4350_s10 + $0x30] sm:$0xff] (%p69_p3) }
  0x17   : > { %309 = vst [vmem:[%s4355_s11 + $0x8] sm:$0xff] %v308_v1  ;;  %v314_v4 = vld [vmem:[%s4350_s10 + $0x40] sm:$0xff]  ;;  %v316_v5 = vld [vmem:[%s4350_s10 + $0x50] sm:$0xff] }
  0x18   : > { %311 = vst [vmem:[%s4355_s11 + $0x10] sm:$0xff] %v310_v2  ;;  %v318_v6 = vld [vmem:[%s4350_s10 + $0x60] sm:$0xff]  ;;  %v320_v7 = vld [vmem:[%s4350_s10 + $0x70] sm:$0xff] }
  0x19   : > { %313 = vst [vmem:[%s4355_s11 + $0x18] sm:$0xff] %v312_v3  ;;  %v322_v8 = vld [vmem:[%s4350_s10 + $0x80] sm:$0xff]  ;;  %v324_v9 = vld [vmem:[%s4350_s10 + $0x90] sm:$0xff] }
  0x1a   : > { %315 = vst [vmem:[%s4355_s11 + $0x20] sm:$0xff] %v314_v4  ;;  %v326_v10 = vld [vmem:[%s4350_s10 + $0xa0] sm:$0xff]  ;;  %v328_v11 = vld [vmem:[%s4350_s10 + $0xb0] sm:$0xff] }
  0x1b   : > { %317 = vst [vmem:[%s4355_s11 + $0x28] sm:$0xff] %v316_v5  ;;  %v330_v12 = vld [vmem:[%s4350_s10 + $0xc0] sm:$0xff]  ;;  %v332_v13 = vld [vmem:[%s4350_s10 + $0xd0] sm:$0xff] }
  0x1c   : > { %319 = vst [vmem:[%s4355_s11 + $0x30] sm:$0xff] %v318_v6  ;;  %v334_v14 = vld [vmem:[%s4350_s10 + $0xe0] sm:$0xff]  ;;  %v336_v15 = vld [vmem:[%s4350_s10 + $0xf0] sm:$0xff] }
  0x1d   : > { %321 = vst [vmem:[%s4355_s11 + $0x38] sm:$0xff] %v320_v7  ;;  %v338_v16 = vld [vmem:[%s4350_s10 + $0x100] sm:$0xff]  ;;  %v340_v17 = vld [vmem:[%s4350_s10 + $0x110] sm:$0xff] }
  0x1e   : > { %323 = vst [vmem:[%s4355_s11 + $0x40] sm:$0xff] %v322_v8  ;;  %v342_v18 = vld [vmem:[%s4350_s10 + $0x120] sm:$0xff]  ;;  %v344_v19 = vld [vmem:[%s4350_s10 + $0x130] sm:$0xff] }
  0x1f   : > { %325 = vst [vmem:[%s4355_s11 + $0x48] sm:$0xff] %v324_v9  ;;  %v346_v20 = vld [vmem:[%s4350_s10 + $0x140] sm:$0xff]  ;;  %v348_v21 = vld [vmem:[%s4350_s10 + $0x150] sm:$0xff] }
  0x20   : > { %327 = vst [vmem:[%s4355_s11 + $0x50] sm:$0xff] %v326_v10  ;;  %v350_v22 = vld [vmem:[%s4350_s10 + $0x160] sm:$0xff]  ;;  %v352_v23 = vld [vmem:[%s4350_s10 + $0x170] sm:$0xff] }
  0x21   : > { %329 = vst [vmem:[%s4355_s11 + $0x58] sm:$0xff] %v328_v11  ;;  %v354_v24 = vld [vmem:[%s4350_s10 + $0x180] sm:$0xff]  ;;  %v356_v25 = vld [vmem:[%s4350_s10 + $0x190] sm:$0xff] }
  0x22   : > { %331 = vst [vmem:[%s4355_s11 + $0x60] sm:$0xff] %v330_v12  ;;  %v358_v26 = vld [vmem:[%s4350_s10 + $0x1a0] sm:$0xff]  ;;  %v360_v27 = vld [vmem:[%s4350_s10 + $0x1b0] sm:$0xff] }
  0x23   : > { %333 = vst [vmem:[%s4355_s11 + $0x68] sm:$0xff] %v332_v13  ;;  %v362_v28 = vld [vmem:[%s4350_s10 + $0x1c0] sm:$0xff]  ;;  %v364_v29 = vld [vmem:[%s4350_s10 + $0x1d0] sm:$0xff] }
  0x24   : > { %335 = vst [vmem:[%s4355_s11 + $0x70] sm:$0xff] %v334_v14  ;;  %v366_v30 = vld [vmem:[%s4350_s10 + $0x1e0] sm:$0xff]  ;;  %v368_v31 = vld [vmem:[%s4350_s10 + $0x1f0] sm:$0xff] }
  0x25   : > { %337 = vst [vmem:[%s4355_s11 + $0x78] sm:$0xff] %v336_v15 }
  0x26   : > { %339 = vst [vmem:[%s4355_s11 + $0x80] sm:$0xff] %v338_v16 }
  0x27   : > { %341 = vst [vmem:[%s4355_s11 + $0x88] sm:$0xff] %v340_v17 }
  0x28   : > { %343 = vst [vmem:[%s4355_s11 + $0x90] sm:$0xff] %v342_v18 }
  0x29   : > { %345 = vst [vmem:[%s4355_s11 + $0x98] sm:$0xff] %v344_v19 }
  0x2a   : > { %347 = vst [vmem:[%s4355_s11 + $0xa0] sm:$0xff] %v346_v20 }
  0x2b   : > { %349 = vst [vmem:[%s4355_s11 + $0xa8] sm:$0xff] %v348_v21 }
  0x2c   : > { %351 = vst [vmem:[%s4355_s11 + $0xb0] sm:$0xff] %v350_v22 }
  0x2d   : > { %353 = vst [vmem:[%s4355_s11 + $0xb8] sm:$0xff] %v352_v23 }
  0x2e   : > { %355 = vst [vmem:[%s4355_s11 + $0xc0] sm:$0xff] %v354_v24 }
  0x2f   : > { %357 = vst [vmem:[%s4355_s11 + $0xc8] sm:$0xff] %v356_v25 }
  0x30   : > { %359 = vst [vmem:[%s4355_s11 + $0xd0] sm:$0xff] %v358_v26 }
  0x31   : > { %361 = vst [vmem:[%s4355_s11 + $0xd8] sm:$0xff] %v360_v27 }
  0x32   : > { %363 = vst [vmem:[%s4355_s11 + $0xe0] sm:$0xff] %v362_v28 }
  0x33   : > { %365 = vst [vmem:[%s4355_s11 + $0xe8] sm:$0xff] %v364_v29 }
  0x34   : > { %367 = vst [vmem:[%s4355_s11 + $0xf0] sm:$0xff] %v366_v30 }
  0x35   : > { %369 = vst [vmem:[%s4355_s11 + $0xf8] sm:$0xff] %v368_v31 }
  0x36 PF: > { %p3597_p7 = scmp.ge.s32.totalorder %s4259_s24, 1  ;;  %p392_p8 = scmp.lt.s32.totalorder %s4259_s24, 5 }
  0x38   : > { %p393_p9 = pnand %p3597_p7, %p392_p8 }
  0x3a   : > { %396 = sbr.rel (%p393_p9) target bundleno = 1152 (0x480), region = 74 }
  0x3f   : > { %s399_s12 = sand.u32 1, %s4235_s18   ;;  %s3599_s13 = sshll.u32 %s4247_s21, 4 }
  0x40   : > { %s3598_s14 = sshll.u32 %s399_s12, 8  ;;  %p444_p10 = scmp.lt.s32.totalorder %s3599_s13, 31 }
  0x41   : > { %s3602_s15 = sshll.u32 %s4243_s20, 1  ;;  %s3603_s16 = sshll.u32 %s4243_s20, 5 }
  0x42   : > { %s6895_s13 = smov (!%p444_p10, %s3599_s13), 31  ;;  %p452_p11 = scmp.lt.s32.totalorder %s3602_s15, 3 }
  0x43   : > { %s3966_s17 = sshll.u32 %s6895_s13, 4  ;;  %p457_p12 = scmp.lt.s32.totalorder %s3603_s16, 63 }
  0x44   : > { %s4427_s30 = scalar_lea.vmem %s6765_s0, %s3966_s17  ;;  %s4432_s8 = scalar_lea.vmem %s6770_s5, %s3966_s17 }
  0x45   : > { %s6897_s15 = smov (!%p452_p11, %s3602_s15), 3  ;;  %s6899_s16 = smov (!%p457_p12, %s3603_s16), 63 }
  0x46   : > { %s454_s9 = scalar_lea.vmem %s6767_s2, %s6897_s15  ;;  %s3967_s10 = sshll.u32 %s6899_s16, 3 }
  0x47   : > { %s4443_s13 = scalar_lea.vmem %s6768_s3, %s3967_s10  ;;  %s4445_s27 = scalar_lea.vmem [#allocation4], %s3598_s14 }
  0x48   : > { %p3609_p13 = scmp.ne.s32.totalorder %s4243_s20, 0 }
  0x4a   : > { %473 = sbr.rel (%p3609_p13) target bundleno = 414 (0x19e), region = 82 }
  0x4f   : > { %v4449_v32 = vld [vmem:[%s4427_s30 + $0x40] sm:$0xff]  ;;  %v4452_v33 = vld [vmem:[%s4427_s30 + $0x48] sm:$0xff]  ;;  %v4473_v41 = vld [vmem:[%s4427_s30 + $0x50] sm:$0xff]  ;;  %v4261_v16 = vmov 256.0  }
  0x50   : > { %v4455_v34 = vld [vmem:[%s4427_s30 + $0x20] sm:$0xff]  ;;  %v518_v35 = vadd.f32 %v4452_v33, %v4449_v32  ;;  %v4460_v36 = vld [vmem:[%s4427_s30 + $0x28] sm:$0xff]  ;;  %v4476_v42 = vld [vmem:[%s4427_s30 + $0x58] sm:$0xff]  ;;  %4107 = vrcp.f32 %v4261_v16 }
  0x51   : > { %v4463_v37 = vld [vmem:[%s4427_s30] sm:$0xff]  ;;  %v4466_v38 = vld [vmem:[%s4427_s30 + $0x8] sm:$0xff]  ;;  %v512_v39 = vadd.f32 %v4460_v36, %v4455_v34  ;;  %v4479_v43 = vld [vmem:[%s4427_s30 + $0x30] sm:$0xff]  ;;  %v521_v47 = vadd.f32 %v4476_v42, %v4473_v41 }
  0x52   : > { %v506_v40 = vadd.f32 %v4466_v38, %v4463_v37  ;;  %519 = vadd.xlane.f32.xlu2 %v518_v35  ;;  %v4482_v44 = vld [vmem:[%s4427_s30 + $0x38] sm:$0xff]  ;;  %v4485_v45 = vld [vmem:[%s4427_s30 + $0x10] sm:$0xff]  ;;  %v4497_v50 = vld [vmem:[%s4427_s30 + $0x80] sm:$0xff] }
  0x53   : > { %513 = vadd.xlane.f32.xlu1 %v512_v39  ;;  %v4488_v46 = vld [vmem:[%s4427_s30 + $0x18] sm:$0xff]  ;;  %v515_v48 = vadd.f32 %v4482_v44, %v4479_v43  ;;  %v4500_v51 = vld [vmem:[%s4427_s30 + $0x88] sm:$0xff]  ;;  %v4503_v52 = vld [vmem:[%s4427_s30 + $0x60] sm:$0xff] }
  0x54   : > { %507 = vadd.xlane.f32.xlu0 %v506_v40  ;;  %v509_v49 = vadd.f32 %v4488_v46, %v4485_v45  ;;  %v4506_v53 = vld [vmem:[%s4427_s30 + $0x68] sm:$0xff]  ;;  %v4509_v54 = vld [vmem:[%s4427_s30 + $0x70] sm:$0xff]  ;;  %v4512_v55 = vld [vmem:[%s4427_s30 + $0x78] sm:$0xff]  ;;  %v530_v56 = vadd.f32 %v4500_v51, %v4497_v50 }
  0x55   : > { %v524_v57 = vadd.f32 %v4506_v53, %v4503_v52  ;;  %v527_v58 = vadd.f32 %v4512_v55, %v4509_v54  ;;  %v4521_v59 = vld [vmem:[%s4427_s30 + $0xb0] sm:$0xff]  ;;  %v4524_v60 = vld [vmem:[%s4427_s30 + $0xb8] sm:$0xff]  ;;  %v4533_v63 = vld [vmem:[%s4427_s30 + $0xa0] sm:$0xff] }
  0x56   : > { %v4527_v61 = vld [vmem:[%s4427_s30 + $0x90] sm:$0xff]  ;;  %v4530_v62 = vld [vmem:[%s4427_s30 + $0x98] sm:$0xff]  ;;  %v4536_v0 = vld [vmem:[%s4427_s30 + $0xa8] sm:$0xff]  ;;  %v539_v1 = vadd.f32 %v4524_v60, %v4521_v59  ;;  %v4108_v17 = vpop.eup %4107 }
  0x57   : > { %v533_v2 = vadd.f32 %v4530_v62, %v4527_v61  ;;  %v536_v3 = vadd.f32 %v4536_v0, %v4533_v63  ;;  %v4545_v4 = vld [vmem:[%s4427_s30 + $0xe0] sm:$0xff]  ;;  %v4548_v5 = vld [vmem:[%s4427_s30 + $0xe8] sm:$0xff]  ;;  %v4557_v8 = vld [vmem:[%s4427_s30 + $0xd0] sm:$0xff]  ;;  %v555_v18 = vmul.f32 256.0, %v4108_v17  ;;  %vm559_vm0 = vweird.f32 %v4108_v17 }
  0x58   : > { %v4551_v6 = vld [vmem:[%s4427_s30 + $0xc0] sm:$0xff]  ;;  %v4554_v7 = vld [vmem:[%s4427_s30 + $0xc8] sm:$0xff]  ;;  %v4560_v9 = vld [vmem:[%s4427_s30 + $0xd8] sm:$0xff]  ;;  %v548_v10 = vadd.f32 %v4548_v5, %v4545_v4 }
  0x59   : > { %v542_v11 = vadd.f32 %v4554_v7, %v4551_v6  ;;  %v545_v12 = vadd.f32 %v4560_v9, %v4557_v8  ;;  %v4569_v13 = vld [vmem:[%s4427_s30 + $0xf0] sm:$0xff]  ;;  %v4572_v14 = vld [vmem:[%s4427_s30 + $0xf8] sm:$0xff]  ;;  %v556_v19 = vsub.f32 1.0, %v555_v18 }
  0x5a   : > { %522 = vadd.xlane.f32.xlu2 %v521_v47  ;;  %v551_v15 = vadd.f32 %v4572_v14, %v4569_v13 }
  0x5b   : > { %516 = vadd.xlane.f32.xlu1 %v515_v48  ;;  %v557_v20 = vmul.f32 %v4108_v17, %v556_v19 }
  0x5c   : > { %510 = vadd.xlane.f32.xlu0 %v509_v49 }
  0x5d   : > { %v558_v21 = vadd.f32 %v4108_v17, %v557_v20 }
  0x5f   : > { %v4576_v22 = vsel %vm559_vm0, %v4108_v17, %v558_v21 }
  0x62   : > { %531 = vadd.xlane.f32.xlu2 %v530_v56 }
  0x63   : > { %528 = vadd.xlane.f32.xlu1 %v527_v58 }
  0x64   : > { %525 = vadd.xlane.f32.xlu0 %v524_v57 }
  0x6a   : > { %540 = vadd.xlane.f32.xlu2 %v539_v1 }
  0x6b   : > { %537 = vadd.xlane.f32.xlu1 %v536_v3 }
  0x6c   : > { %534 = vadd.xlane.f32.xlu0 %v533_v2 }
  0x72   : > { %549 = vadd.xlane.f32.xlu2 %v548_v10 }
  0x73   : > { %546 = vadd.xlane.f32.xlu1 %v545_v12 }
  0x74   : > { %543 = vadd.xlane.f32.xlu0 %v542_v11 }
  0x7c   : > { %552 = vadd.xlane.f32.xlu0 %v551_v15 }
  0xc5   : > { %v520_v23 = vpop.xlane.xlu2 %519 }
  0xc6   : > { %v514_v24 = vpop.xlane.xlu1 %513  ;;  %v565_v12 = vmul.f32 %v4576_v22, %v520_v23 }
  0xc7   : > { %v508_v25 = vpop.xlane.xlu0 %507  ;;  %v563_v26 = vmul.f32 %v4576_v22, %v514_v24 }
  0xc8   : > { %v561_v27 = vmul.f32 %v4576_v22, %v508_v25  ;;  %v4635_v19 = vsub.f32 %v4449_v32, %v565_v12  ;;  %v4638_v20 = vsub.f32 %v4452_v33, %v565_v12 }
  0xc9   : > { %v4581_v28 = vsub.f32 %v4455_v34, %v563_v26  ;;  %v4584_v29 = vsub.f32 %v4460_v36, %v563_v26 }
  0xca   : > { %v4587_v30 = vsub.f32 %v4463_v37, %v561_v27  ;;  %v4590_v31 = vsub.f32 %v4466_v38, %v561_v27 }
  0xcb   : > { %v613_v35 = vmul.f32 %v4581_v28, %v4581_v28  ;;  %v614_v39 = vmul.f32 %v4584_v29, %v4584_v29 }
  0xcc   : > { %v609_v40 = vmul.f32 %v4587_v30, %v4587_v30  ;;  %v610_v34 = vmul.f32 %v4590_v31, %v4590_v31 }
  0xcd   : > { %v523_v36 = vpop.xlane.xlu2 %522  ;;  %v647_v47 = vadd.f32 %v614_v39, %v613_v35 }
  0xce   : > { %v641_v48 = vadd.f32 %v610_v34, %v609_v40  ;;  %v566_v37 = vmul.f32 %v4576_v22, %v523_v36  ;;  %v517_v49 = vpop.xlane.xlu1 %516 }
  0xcf   : > { %v511_v38 = vpop.xlane.xlu0 %510  ;;  %v564_v56 = vmul.f32 %v4576_v22, %v517_v49  ;;  %648 = vadd.xlane.f32.xlu0 %v647_v47 }
  0xd0   : > { %v562_v57 = vmul.f32 %v4576_v22, %v511_v38  ;;  %642 = vadd.xlane.f32.xlu1 %v641_v48  ;;  %v4604_v58 = vsub.f32 %v4473_v41, %v566_v37  ;;  %v4607_v1 = vsub.f32 %v4476_v42, %v566_v37 }
  0xd1   : > { %v4610_v2 = vsub.f32 %v4479_v43, %v564_v56  ;;  %v4613_v3 = vsub.f32 %v4482_v44, %v564_v56 }
  0xd2   : > { %v4616_v10 = vsub.f32 %v4485_v45, %v562_v57  ;;  %v4619_v11 = vsub.f32 %v4488_v46, %v562_v57  ;;  %v619_v41 = vmul.f32 %v4604_v58, %v4604_v58  ;;  %v620_v42 = vmul.f32 %v4607_v1, %v4607_v1 }
  0xd3   : > { %v615_v43 = vmul.f32 %v4610_v2, %v4610_v2  ;;  %v616_v44 = vmul.f32 %v4613_v3, %v4613_v3 }
  0xd4   : > { %v611_v45 = vmul.f32 %v4616_v10, %v4616_v10  ;;  %v612_v46 = vmul.f32 %v4619_v11, %v4619_v11  ;;  %v656_v15 = vadd.f32 %v620_v42, %v619_v41 }
  0xd5   : > { %v532_v16 = vpop.xlane.xlu2 %531  ;;  %v650_v17 = vadd.f32 %v616_v44, %v615_v43 }
  0xd6   : > { %v644_v18 = vadd.f32 %v612_v46, %v611_v45  ;;  %v569_v21 = vmul.f32 %v4576_v22, %v532_v16  ;;  %v529_v24 = vpop.xlane.xlu1 %528 }
  0xd7   : > { %v526_v23 = vpop.xlane.xlu0 %525  ;;  %657 = vadd.xlane.f32.xlu0 %v656_v15  ;;  %v568_v32 = vmul.f32 %v4576_v22, %v529_v24 }
  0xd8   : > { %v567_v25 = vmul.f32 %v4576_v22, %v526_v23  ;;  %651 = vadd.xlane.f32.xlu1 %v650_v17  ;;  %v4643_v26 = vsub.f32 %v4497_v50, %v569_v21  ;;  %v4646_v27 = vsub.f32 %v4500_v51, %v569_v21  ;;  %645 = vadd.xlane.f32.xlu2 %v644_v18 }
  0xd9   : > { %v617_v50 = vmul.f32 %v4635_v19, %v4635_v19  ;;  %v618_v51 = vmul.f32 %v4638_v20, %v4638_v20  ;;  %v4671_v36 = vsub.f32 %v4512_v55, %v568_v32 }
  0xda   : > { %v4650_v33 = vsub.f32 %v4503_v52, %v567_v25  ;;  %v4653_v35 = vsub.f32 %v4506_v53, %v567_v25  ;;  %v625_v39 = vmul.f32 %v4643_v26, %v4643_v26  ;;  %v626_v40 = vmul.f32 %v4646_v27, %v4646_v27 }
  0xdb   : > { %v4668_v53 = vsub.f32 %v4509_v54, %v568_v32  ;;  %v653_v56 = vadd.f32 %v618_v51, %v617_v50  ;;  %v624_v43 = vmul.f32 %v4671_v36, %v4671_v36 }
  0xdc   : > { %v621_v34 = vmul.f32 %v4650_v33, %v4650_v33  ;;  %v622_v52 = vmul.f32 %v4653_v35, %v4653_v35  ;;  %v665_v47 = vadd.f32 %v626_v40, %v625_v39 }
  0xdd   : > { %v541_v48 = vpop.xlane.xlu2 %540  ;;  %v623_v42 = vmul.f32 %v4668_v53, %v4668_v53 }
  0xde   : > { %v659_v37 = vadd.f32 %v622_v52, %v621_v34  ;;  %v572_v49 = vmul.f32 %v4576_v22, %v541_v48  ;;  %v538_v57 = vpop.xlane.xlu1 %537 }
  0xdf   : > { %v535_v38 = vpop.xlane.xlu0 %534  ;;  %666 = vadd.xlane.f32.xlu0 %v665_v47  ;;  %v571_v41 = vmul.f32 %v4576_v22, %v538_v57  ;;  %v662_v17 = vadd.f32 %v624_v43, %v623_v42 }
  0xe0   : > { %v570_v12 = vmul.f32 %v4576_v22, %v535_v38  ;;  %660 = vadd.xlane.f32.xlu1 %v659_v37  ;;  %v4677_v54 = vsub.f32 %v4521_v59, %v572_v49  ;;  %v4680_v55 = vsub.f32 %v4524_v60, %v572_v49  ;;  %654 = vadd.xlane.f32.xlu2 %v653_v56 }
  0xe1   : > { %v4697_v46 = vsub.f32 %v4533_v63, %v571_v41 }
  0xe2   : > { %v4687_v44 = vsub.f32 %v4527_v61, %v570_v12  ;;  %v4690_v45 = vsub.f32 %v4530_v62, %v570_v12  ;;  %v631_v59 = vmul.f32 %v4677_v54, %v4677_v54  ;;  %v632_v60 = vmul.f32 %v4680_v55, %v4680_v55 }
  0xe3   : > { %v4704_v61 = vsub.f32 %v4536_v0, %v571_v41  ;;  %v629_v32 = vmul.f32 %v4697_v46, %v4697_v46 }
  0xe4   : > { %v627_v15 = vmul.f32 %v4687_v44, %v4687_v44  ;;  %v628_v16 = vmul.f32 %v4690_v45, %v4690_v45  ;;  %v674_v62 = vadd.f32 %v632_v60, %v631_v59 }
  0xe5   : > { %v550_v18 = vpop.xlane.xlu2 %549  ;;  %v630_v50 = vmul.f32 %v4704_v61, %v4704_v61 }
  0xe6   : > { %v668_v21 = vadd.f32 %v628_v16, %v627_v15  ;;  %v575_v23 = vmul.f32 %v4576_v22, %v550_v18  ;;  %v547_v25 = vpop.xlane.xlu1 %546 }
  0xe7   : > { %v544_v24 = vpop.xlane.xlu0 %543  ;;  %675 = vadd.xlane.f32.xlu0 %v674_v62  ;;  %v574_v40 = vmul.f32 %v4576_v22, %v547_v25  ;;  %v671_v37 = vadd.f32 %v630_v50, %v629_v32 }
  0xe8   : > { %v573_v63 = vmul.f32 %v4576_v22, %v544_v24  ;;  %669 = vadd.xlane.f32.xlu1 %v668_v21  ;;  %v4711_v39 = vsub.f32 %v4545_v4, %v575_v23  ;;  %v4714_v0 = vsub.f32 %v4548_v5, %v575_v23  ;;  %663 = vadd.xlane.f32.xlu2 %v662_v17 }
  0xe9   : > { %v4734_v48 = vsub.f32 %v4557_v8, %v574_v40 }
  0xea   : > { %v4720_v51 = vsub.f32 %v4551_v6, %v573_v63  ;;  %v4723_v34 = vsub.f32 %v4554_v7, %v573_v63  ;;  %v637_v52 = vmul.f32 %v4711_v39, %v4711_v39  ;;  %v638_v4 = vmul.f32 %v4714_v0, %v4714_v0 }
  0xeb   : > { %v4737_v6 = vsub.f32 %v4560_v9, %v574_v40  ;;  %v635_v57 = vmul.f32 %v4734_v48, %v4734_v48 }
  0xec   : > { %v633_v5 = vmul.f32 %v4720_v51, %v4720_v51  ;;  %v634_v47 = vmul.f32 %v4723_v34, %v4723_v34  ;;  %v683_v7 = vadd.f32 %v638_v4, %v637_v52 }
  0xed   : > { %v636_v12 = vmul.f32 %v4737_v6, %v4737_v6 }
  0xee   : > { %v677_v49 = vadd.f32 %v634_v47, %v633_v5 }
  0xef   : > { %v553_v38 = vpop.xlane.xlu0 %552  ;;  %684 = vadd.xlane.f32.xlu0 %v683_v7  ;;  %v680_v43 = vadd.f32 %v636_v12, %v635_v57 }
  0xf0   : > { %v576_v56 = vmul.f32 %v4576_v22, %v553_v38  ;;  %678 = vadd.xlane.f32.xlu1 %v677_v49  ;;  %672 = vadd.xlane.f32.xlu2 %v671_v37 }
  0xf2   : > { %v4745_v8 = vsub.f32 %v4569_v13, %v576_v56  ;;  %v4748_v9 = vsub.f32 %v4572_v14, %v576_v56 }
  0xf4   : > { %v639_v41 = vmul.f32 %v4745_v8, %v4745_v8  ;;  %v640_v42 = vmul.f32 %v4748_v9, %v4748_v9 }
  0xf6   : > { %v686_v59 = vadd.f32 %v640_v42, %v639_v41 }
  0xf8   : > { %687 = vadd.xlane.f32.xlu1 %v686_v59  ;;  %681 = vadd.xlane.f32.xlu2 %v680_v43 }
 0x142   : > { %v649_v15 = vpop.xlane.xlu0 %648 }
 0x143   : > { %v643_v60 = vpop.xlane.xlu1 %642  ;;  %v691_v13 = vmul.f32 %v649_v15, %v4576_v22 }
 0x144   : > { %v689_v16 = vmul.f32 %v643_v60, %v4576_v22 }
 0x145   : > { %v707_v17 = vadd.f32 1e-05, %v691_v13 }
 0x146   : > { %v705_v62 = vadd.f32 1e-05, %v689_v16 }
 0x147   : > { %vm747_vm4 = vweird.f32 %v707_v17 }
 0x148   : > { %4109 = vrsqrt.f32 %v705_v62  ;;  %vm727_vm2 = vweird.f32 %v705_v62 }
 0x149   : > { %4111 = vrsqrt.f32 %v707_v17 }
 0x14a   : > { %v658_v18 = vpop.xlane.xlu0 %657 }
 0x14b   : > { %v652_v14 = vpop.xlane.xlu1 %651  ;;  %v646_v23 = vpop.xlane.xlu2 %645  ;;  %v694_v24 = vmul.f32 %v658_v18, %v4576_v22 }
 0x14c   : > { %v692_v21 = vmul.f32 %v652_v14, %v4576_v22  ;;  %v690_v25 = vmul.f32 %v646_v23, %v4576_v22 }
 0x14d   : > { %v4761_v40 = vadd.f32 1e-05, %v694_v24 }
 0x14e   : > { %v4110_v63 = vpop.eup %4109  ;;  %v4759_v32 = vadd.f32 1e-05, %v692_v21  ;;  %v4763_v4 = vadd.f32 1e-05, %v690_v25 }
 0x14f   : > { %v4112_v50 = vpop.eup %4111  ;;  %v722_v52 = vmul.f32 %v4110_v63, %v705_v62  ;;  %vm728_vm1 = vweird.f32 %v4110_v63  ;;  %vm777_vm8 = vweird.f32 %v4761_v40 }
 0x150   : > { %v742_v5 = vmul.f32 %v4112_v50, %v707_v17  ;;  %4113 = vrsqrt.f32 %v4759_v32  ;;  %vm748_vm3 = vweird.f32 %v4112_v50  ;;  %vm757_vm5 = vweird.f32 %v4759_v32  ;;  %vm729_vm6 = vmor %vm727_vm2, %vm728_vm1 }
 0x151   : > { %v723_v47 = vmul.f32 %v4110_v63, %v722_v52  ;;  %4115 = vrsqrt.f32 %v4763_v4  ;;  %vm749_vm7 = vmor %vm747_vm4, %vm748_vm3  ;;  %vm737_vm13 = vweird.f32 %v4763_v4 }
 0x152   : > { %v743_v7 = vmul.f32 %v4112_v50, %v742_v5  ;;  %4117 = vrsqrt.f32 %v4761_v40  ;;  %v667_v38 = vpop.xlane.xlu0 %666 }
 0x153   : > { %v724_v37 = vmul.f32 0.5, %v723_v47  ;;  %v661_v49 = vpop.xlane.xlu1 %660  ;;  %v655_v57 = vpop.xlane.xlu2 %654  ;;  %v697_v43 = vmul.f32 %v667_v38, %v4576_v22 }
 0x154   : > { %v744_v56 = vmul.f32 0.5, %v743_v7  ;;  %v695_v12 = vmul.f32 %v661_v49, %v4576_v22  ;;  %v693_v42 = vmul.f32 %v655_v57, %v4576_v22 }
 0x155   : > { %v725_v41 = vsub.f32 1.5, %v724_v37  ;;  %v4780_v5 = vadd.f32 1e-05, %v697_v43 }
 0x156   : > { %v4114_v59 = vpop.eup %4113  ;;  %v745_v60 = vsub.f32 1.5, %v744_v56  ;;  %v4771_v15 = vadd.f32 1e-05, %v695_v12  ;;  %v4776_v24 = vadd.f32 1e-05, %v693_v42 }
 0x157   : > { %v4116_v16 = vpop.eup %4115  ;;  %v726_v13 = vmul.f32 %v4110_v63, %v725_v41  ;;  %v752_v14 = vmul.f32 %v4114_v59, %v4759_v32  ;;  %vm758_vm9 = vweird.f32 %v4114_v59 }
 0x158   : > { %v4118_v18 = vpop.eup %4117  ;;  %v746_v21 = vmul.f32 %v4112_v50, %v745_v60  ;;  %v732_v23 = vmul.f32 %v4116_v16, %v4763_v4  ;;  %4119 = vrsqrt.f32 %v4771_v15  ;;  %vm738_vm10 = vweird.f32 %v4116_v16  ;;  %vm759_vm12 = vmor %vm757_vm5, %vm758_vm9 }
 0x159   : > { %v730_v62 = vsel %vm729_vm6, %v4110_v63, %v726_v13  ;;  %v753_v25 = vmul.f32 %v4114_v59, %v752_v14  ;;  %v772_v52 = vmul.f32 %v4118_v18, %v4761_v40  ;;  %4121 = vrsqrt.f32 %v4776_v24  ;;  %vm739_vm14 = vmor %vm737_vm13, %vm738_vm10 }
 0x15a   : > { %v881_v17 = vmul.f32 %v730_v62, %v4587_v30  ;;  %v882_v47 = vmul.f32 %v730_v62, %v4590_v31  ;;  %v750_v7 = vsel %vm749_vm7, %v4112_v50, %v746_v21  ;;  %v733_v37 = vmul.f32 %v4116_v16, %v732_v23  ;;  %v676_v60 = vpop.xlane.xlu0 %675 }
 0x15b   : > { %v885_v49 = vmul.f32 %v750_v7, %v4581_v28  ;;  %v886_v38 = vmul.f32 %v750_v7, %v4584_v29  ;;  %v754_v56 = vmul.f32 0.5, %v753_v25  ;;  %v773_v57 = vmul.f32 %v4118_v18, %v772_v52  ;;  %v670_v12 = vpop.xlane.xlu1 %669  ;;  %v664_v42 = vpop.xlane.xlu2 %663 }
 0x15c   : > { %v913_v63 = vpack.c.bf16 %v882_v47, %v881_v17  ;;  %v734_v41 = vmul.f32 0.5, %v733_v37  ;;  %4123 = vrsqrt.f32 %v4780_v5  ;;  %v696_v29 = vmul.f32 %v664_v42, %v4576_v22 }
 0x15d   : > { %v915_v43 = vpack.c.bf16 %v886_v38, %v885_v49  ;;  %v755_v30 = vsub.f32 1.5, %v754_v56  ;;  %v774_v31 = vmul.f32 0.5, %v773_v57  ;;  %vm778_vm11 = vweird.f32 %v4118_v18 }
 0x15e   : > { %v4788_v50 = vpop.eup %4119  ;;  %929 = vst [vmem:[#allocation2] sm:$0xff] %v913_v63  ;;  %v735_v28 = vsub.f32 1.5, %v734_v41  ;;  %v4797_v62 = vadd.f32 1e-05, %v696_v29  ;;  %v698_v25 = vmul.f32 %v670_v12, %v4576_v22  ;;  %v700_v7 = vmul.f32 %v676_v60, %v4576_v22  ;;  %vm779_vm15 = vmor %vm777_vm8, %vm778_vm11 }
 0x15f   : > { %931 = vst [vmem:[#allocation2 + $0x10] sm:$0xff] %v915_v43  ;;  %v756_v13 = vmul.f32 %v4114_v59, %v755_v30  ;;  %v775_v14 = vsub.f32 1.5, %v774_v31  ;;  %v782_v21 = vmul.f32 %v4788_v50, %v4771_v15  ;;  %v4122_v37 = vpop.eup %4121  ;;  %vm767_vm0 = vweird.f32 %v4776_v24 }
 0x160   : > { %v736_v23 = vmul.f32 %v4116_v16, %v735_v28  ;;  %4125 = vrsqrt.f32 %v4797_v62  ;;  %v762_v57 = vmul.f32 %v4122_v37, %v4776_v24  ;;  %vm787_vm1 = vweird.f32 %v4771_v15 }
 0x161   : > { %v760_v52 = vsel %vm759_vm12, %v4114_v59, %v756_v13  ;;  %v776_v17 = vmul.f32 %v4118_v18, %v775_v14  ;;  %v783_v47 = vmul.f32 %v4788_v50, %v782_v21  ;;  %vm788_vm2 = vweird.f32 %v4788_v50 }
 0x162   : > { %v887_v49 = vmul.f32 %v760_v52, %v4610_v2  ;;  %v888_v32 = vmul.f32 %v760_v52, %v4613_v3  ;;  %v740_v38 = vsel %vm739_vm14, %v4116_v16, %v736_v23  ;;  %v4124_v12 = vpop.eup %4123  ;;  %v763_v40 = vmul.f32 %v4122_v37, %v762_v57  ;;  %vm789_vm4 = vmor %vm787_vm1, %vm788_vm2 }
 0x163   : > { %v883_v4 = vmul.f32 %v740_v38, %v4616_v10  ;;  %v884_v59 = vmul.f32 %v740_v38, %v4619_v11  ;;  %v780_v56 = vsel %vm779_vm15, %v4118_v18, %v776_v17  ;;  %v784_v41 = vmul.f32 0.5, %v783_v47  ;;  %v673_v43 = vpop.xlane.xlu2 %672  ;;  %v679_v10 = vpop.xlane.xlu1 %678 }
 0x164   : > { %v916_v63 = vpack.c.bf16 %v888_v32, %v887_v49  ;;  %v891_v2 = vmul.f32 %v780_v56, %v4604_v58  ;;  %v892_v3 = vmul.f32 %v780_v56, %v4607_v1  ;;  %v802_v42 = vmul.f32 %v4124_v12, %v4780_v5  ;;  %v685_v49 = vpop.xlane.xlu0 %684 }
 0x165   : > { %v914_v16 = vpack.c.bf16 %v884_v59, %v883_v4  ;;  %v4818_v18 = vadd.f32 1e-05, %v698_v25  ;;  %v764_v58 = vmul.f32 0.5, %v763_v40  ;;  %v785_v1 = vsub.f32 1.5, %v784_v41 }
 0x166   : > { %932 = vst [vmem:[#allocation2 + $0x18] sm:$0xff] %v916_v63  ;;  %v918_v11 = vpack.c.bf16 %v892_v3, %v891_v2  ;;  %v803_v30 = vmul.f32 %v4124_v12, %v802_v42  ;;  %v4820_v31 = vadd.f32 1e-05, %v700_v7  ;;  %v4126_v28 = vpop.eup %4125  ;;  %vm768_vm3 = vweird.f32 %v4122_v37 }
 0x167   : > { %930 = vst [vmem:[#allocation2 + $0x8] sm:$0xff] %v914_v16  ;;  %4127 = vrsqrt.f32 %v4818_v18  ;;  %v699_v29 = vmul.f32 %v673_v43, %v4576_v22  ;;  %v701_v60 = vmul.f32 %v679_v10, %v4576_v22  ;;  %v765_v13 = vsub.f32 1.5, %v764_v58  ;;  %vm769_vm7 = vmor %vm767_vm0, %vm768_vm3 }
 0x168   : > { %934 = vst [vmem:[#allocation2 + $0x28] sm:$0xff] %v918_v11  ;;  %v786_v14 = vmul.f32 %v4788_v50, %v785_v1  ;;  %v804_v21 = vmul.f32 0.5, %v803_v30  ;;  %v792_v23 = vmul.f32 %v4126_v28, %v4797_v62  ;;  %vm807_vm5 = vweird.f32 %v4780_v5 }
 0x169   : > { %vm808_vm6 = vweird.f32 %v4124_v12  ;;  %4129 = vrsqrt.f32 %v4820_v31  ;;  %v4833_v25 = vadd.f32 1e-05, %v699_v29  ;;  %v766_v52 = vmul.f32 %v4122_v37, %v765_v13 }
 0x16a   : > { %v790_v17 = vsel %vm789_vm4, %v4788_v50, %v786_v14  ;;  %v805_v47 = vsub.f32 1.5, %v804_v21  ;;  %v793_v7 = vmul.f32 %v4126_v28, %v792_v23  ;;  %vm797_vm8 = vweird.f32 %v4797_v62  ;;  %vm809_vm9 = vmor %vm807_vm5, %vm808_vm6 }
 0x16b   : > { %v893_v15 = vmul.f32 %v790_v17, %v4650_v33  ;;  %v894_v32 = vmul.f32 %v790_v17, %v4653_v35  ;;  %4131 = vrsqrt.f32 %v4833_v25  ;;  %v770_v38 = vsel %vm769_vm7, %v4122_v37, %v766_v52  ;;  %v682_v3 = vpop.xlane.xlu2 %681  ;;  %v688_v30 = vpop.xlane.xlu1 %687 }
 0x16c   : > { %v806_v4 = vmul.f32 %v4124_v12, %v805_v47  ;;  %v794_v59 = vmul.f32 0.5, %v793_v7  ;;  %v4843_v56 = vadd.f32 1e-05, %v701_v60  ;;  %v889_v57 = vmul.f32 %v770_v38, %v4635_v19 }
 0x16d   : > { %v4128_v50 = vpop.eup %4127  ;;  %v890_v63 = vmul.f32 %v770_v38, %v4638_v20  ;;  %v919_v24 = vpack.c.bf16 %v894_v32, %v893_v15  ;;  %v703_v33 = vmul.f32 %v685_v49, %v4576_v22  ;;  %vm798_vm10 = vweird.f32 %v4126_v28 }
 0x16e   : > { %v810_v35 = vsel %vm809_vm9, %v4124_v12, %v806_v4  ;;  %v795_v2 = vsub.f32 1.5, %v794_v59  ;;  %v812_v37 = vmul.f32 %v4128_v50, %v4818_v18  ;;  %4133 = vrsqrt.f32 %v4843_v56  ;;  %vm799_vm12 = vmor %vm797_vm8, %vm798_vm10 }
 0x16f   : > { %v4130_v16 = vpop.eup %4129  ;;  %v917_v40 = vpack.c.bf16 %v890_v63, %v889_v57  ;;  %935 = vst [vmem:[#allocation2 + $0x30] sm:$0xff] %v919_v24  ;;  %v897_v19 = vmul.f32 %v810_v35, %v4643_v26  ;;  %v898_v20 = vmul.f32 %v810_v35, %v4646_v27  ;;  %vm817_vm11 = vweird.f32 %v4818_v18 }
 0x170   : > { %v796_v41 = vmul.f32 %v4126_v28, %v795_v2  ;;  %v813_v5 = vmul.f32 %v4128_v50, %v812_v37  ;;  %v832_v12 = vmul.f32 %v4130_v16, %v4820_v31  ;;  %vm837_vm13 = vweird.f32 %v4820_v31 }
 0x171   : > { %v4132_v42 = vpop.eup %4131  ;;  %933 = vst [vmem:[#allocation2 + $0x20] sm:$0xff] %v917_v40  ;;  %v921_v43 = vpack.c.bf16 %v898_v20, %v897_v19  ;;  %v4861_v26 = vadd.f32 1e-05, %v703_v33  ;;  %v702_v27 = vmul.f32 %v682_v3, %v4576_v22  ;;  %vm818_vm14 = vweird.f32 %v4128_v50 }
 0x172   : > { %v800_v10 = vsel %vm799_vm12, %v4126_v28, %v796_v41  ;;  %v814_v11 = vmul.f32 0.5, %v813_v5  ;;  %v833_v58 = vmul.f32 %v4130_v16, %v832_v12  ;;  %v822_v1 = vmul.f32 %v4132_v42, %v4833_v25  ;;  %vm819_vm0 = vmor %vm817_vm11, %vm818_vm14 }
 0x173   : > { %937 = vst [vmem:[#allocation2 + $0x40] sm:$0xff] %v921_v43  ;;  %v895_v29 = vmul.f32 %v800_v10, %v4668_v53  ;;  %v896_v60 = vmul.f32 %v800_v10, %v4671_v36  ;;  %4135 = vrsqrt.f32 %v4861_v26  ;;  %vm838_vm15 = vweird.f32 %v4130_v16 }
 0x174   : > { %v815_v62 = vsub.f32 1.5, %v814_v11  ;;  %v834_v13 = vmul.f32 0.5, %v833_v58  ;;  %v823_v14 = vmul.f32 %v4132_v42, %v822_v1  ;;  %v4134_v21 = vpop.eup %4133  ;;  %v4868_v28 = vadd.f32 1e-05, %v702_v27  ;;  %vm839_vm2 = vmor %vm837_vm13, %vm838_vm15 }
 0x175   : > { %v920_v23 = vpack.c.bf16 %v896_v60, %v895_v29  ;;  %v704_v52 = vmul.f32 %v688_v30, %v4576_v22  ;;  %v842_v53 = vmul.f32 %v4134_v21, %v4843_v56  ;;  %v4262_v49 = vmov 0.0  }
 0x176   : > { %v816_v17 = vmul.f32 %v4128_v50, %v815_v62  ;;  %v835_v47 = vsub.f32 1.5, %v834_v13  ;;  %v824_v7 = vmul.f32 0.5, %v823_v14  ;;  %945 = vst [vmem:[#allocation3 + $0xb0] sm:$0xff] %v4262_v49  ;;  %vm828_vm1 = vweird.f32 %v4132_v42 }
 0x177   : > { %936 = vst [vmem:[#allocation2 + $0x38] sm:$0xff] %v920_v23  ;;  %4137 = vrsqrt.f32 %v4868_v28  ;;  %v4877_v36 = vadd.f32 1e-05, %v704_v52  ;;  %v843_v38 = vmul.f32 %v4134_v21, %v842_v53  ;;  %vm827_vm3 = vweird.f32 %v4833_v25 }
 0x178   : > { %v820_v15 = vsel %vm819_vm0, %v4128_v50, %v816_v17  ;;  %v836_v22 = vmul.f32 %v4130_v16, %v835_v47  ;;  %v825_v32 = vsub.f32 1.5, %v824_v7  ;;  %946 = vst [vmem:[#allocation3] sm:$0xff] %v4262_v49  ;;  %vm829_vm4 = vmor %vm827_vm3, %vm828_vm1  ;;  %vm848_vm5 = vweird.f32 %v4134_v21 }
 0x179   : > { %v4136_v4 = vpop.eup %4135  ;;  %v899_v59 = vmul.f32 %v820_v15, %v4687_v44  ;;  %v900_v57 = vmul.f32 %v820_v15, %v4690_v45  ;;  %4139 = vrsqrt.f32 %v4877_v36  ;;  %947 = vst [vmem:[#allocation3 + $0xd8] sm:$0xff] %v4262_v49  ;;  %v844_v63 = vmul.f32 0.5, %v843_v38 }
 0x17a   : > { %v840_v18 = vsel %vm839_vm2, %v4130_v16, %v836_v22  ;;  %v826_v50 = vmul.f32 %v4132_v42, %v825_v32  ;;  %v862_v24 = vmul.f32 %v4136_v4, %v4861_v26  ;;  %948 = vst [vmem:[#allocation3 + $0x18] sm:$0xff] %v4262_v49  ;;  %vm847_vm6 = vweird.f32 %v4843_v56 }
 0x17b   : > { %v922_v44 = vpack.c.bf16 %v900_v57, %v899_v59  ;;  %v903_v45 = vmul.f32 %v840_v18, %v4677_v54  ;;  %v904_v33 = vmul.f32 %v840_v18, %v4680_v55  ;;  %949 = vst [vmem:[#allocation3 + $0x50] sm:$0xff] %v4262_v49  ;;  %v845_v25 = vsub.f32 1.5, %v844_v63  ;;  %vm849_vm7 = vmor %vm847_vm6, %vm848_vm5 }
 0x17c   : > { %v830_v31 = vsel %vm829_vm4, %v4132_v42, %v826_v50  ;;  %v863_v35 = vmul.f32 %v4136_v4, %v862_v24  ;;  %950 = vst [vmem:[#allocation3 + $0x68] sm:$0xff] %v4262_v49  ;;  %vm867_vm8 = vweird.f32 %v4861_v26  ;;  %vm868_vm9 = vweird.f32 %v4136_v4 }
 0x17d   : > { %v4138_v2 = vpop.eup %4137  ;;  %938 = vst [vmem:[#allocation2 + $0x48] sm:$0xff] %v922_v44  ;;  %v924_v37 = vpack.c.bf16 %v904_v33, %v903_v45  ;;  %v901_v3 = vmul.f32 %v830_v31, %v4697_v46  ;;  %v902_v16 = vmul.f32 %v830_v31, %v4704_v61  ;;  %v846_v54 = vmul.f32 %v4134_v21, %v845_v25  ;;  %vm869_vm10 = vmor %vm867_vm8, %vm868_vm9 }
 0x17e   : > { %v864_v55 = vmul.f32 0.5, %v863_v35  ;;  %v852_v40 = vmul.f32 %v4138_v2, %v4868_v28  ;;  %951 = vst [vmem:[#allocation3 + $0x30] sm:$0xff] %v4262_v49  ;;  %vm858_vm11 = vweird.f32 %v4138_v2  ;;  %vm857_vm12 = vweird.f32 %v4868_v28 }
 0x17f   : > { %v4140_v19 = vpop.eup %4139  ;;  %940 = vst [vmem:[#allocation2 + $0x58] sm:$0xff] %v924_v37  ;;  %v923_v20 = vpack.c.bf16 %v902_v16, %v901_v3  ;;  %v850_v41 = vsel %vm849_vm7, %v4134_v21, %v846_v54  ;;  %vm859_vm14 = vmor %vm857_vm12, %vm858_vm11  ;;  %vm877_vm15 = vweird.f32 %v4877_v36 }
 0x180   : > { %v865_v46 = vsub.f32 1.5, %v864_v55  ;;  %v853_v5 = vmul.f32 %v4138_v2, %v852_v40  ;;  %v872_v61 = vmul.f32 %v4140_v19, %v4877_v36  ;;  %952 = vst [vmem:[#allocation3 + $0x48] sm:$0xff] %v4262_v49  ;;  %v905_v56 = vmul.f32 %v850_v41, %v4720_v51 }
 0x181   : > { %939 = vst [vmem:[#allocation2 + $0x50] sm:$0xff] %v923_v20  ;;  %v906_v12 = vmul.f32 %v850_v41, %v4723_v34  ;;  %vm878_vm13 = vweird.f32 %v4140_v19 }
 0x182   : > { %v866_v42 = vmul.f32 %v4136_v4, %v865_v46  ;;  %v854_v43 = vmul.f32 0.5, %v853_v5  ;;  %v873_v27 = vmul.f32 %v4140_v19, %v872_v61  ;;  %953 = vst [vmem:[#allocation3 + $0x80] sm:$0xff] %v4262_v49  ;;  %vm879_vm0 = vmor %vm877_vm15, %vm878_vm13 }
 0x183   : > { %v925_v10 = vpack.c.bf16 %v906_v12, %v905_v56  ;;  %954 = vst [vmem:[#allocation3 + $0x88] sm:$0xff] %v4262_v49 }
 0x184   : > { %v870_v11 = vsel %vm869_vm10, %v4136_v4, %v866_v42  ;;  %v855_v58 = vsub.f32 1.5, %v854_v43  ;;  %v874_v1 = vmul.f32 0.5, %v873_v27  ;;  %955 = vst [vmem:[#allocation3 + $0xe8] sm:$0xff] %v4262_v49 }
 0x185   : > { %941 = vst [vmem:[#allocation2 + $0x60] sm:$0xff] %v925_v10  ;;  %v909_v51 = vmul.f32 %v870_v11, %v4711_v39  ;;  %v910_v34 = vmul.f32 %v870_v11, %v4714_v0 }
 0x186   : > { %v856_v30 = vmul.f32 %v4138_v2, %v855_v58  ;;  %v875_v29 = vsub.f32 1.5, %v874_v1  ;;  %956 = vst [vmem:[#allocation3 + $0xb8] sm:$0xff] %v4262_v49 }
 0x187   : > { %v927_v26 = vpack.c.bf16 %v910_v34, %v909_v51  ;;  %957 = vst [vmem:[#allocation3 + $0x60] sm:$0xff] %v4262_v49 }
 0x188   : > { %v860_v60 = vsel %vm859_vm14, %v4138_v2, %v856_v30  ;;  %v876_v62 = vmul.f32 %v4140_v19, %v875_v29  ;;  %958 = vst [vmem:[#allocation3 + $0xf0] sm:$0xff] %v4262_v49 }
 0x189   : > { %943 = vst [vmem:[#allocation2 + $0x70] sm:$0xff] %v927_v26  ;;  %v907_v39 = vmul.f32 %v860_v60, %v4734_v48  ;;  %v908_v0 = vmul.f32 %v860_v60, %v4737_v6 }
 0x18a   : > { %v880_v13 = vsel %vm879_vm0, %v4140_v19, %v876_v62  ;;  %959 = vst [vmem:[#allocation3 + $0x8] sm:$0xff] %v4262_v49 }
 0x18b   : > { %v926_v14 = vpack.c.bf16 %v908_v0, %v907_v39  ;;  %v911_v21 = vmul.f32 %v880_v13, %v4745_v8  ;;  %v912_v23 = vmul.f32 %v880_v13, %v4748_v9  ;;  %960 = vst [vmem:[#allocation3 + $0x78] sm:$0xff] %v4262_v49 }
 0x18c   : > { %961 = vst [vmem:[#allocation3 + $0x38] sm:$0xff] %v4262_v49 }
 0x18d   : > { %942 = vst [vmem:[#allocation2 + $0x68] sm:$0xff] %v926_v14  ;;  %v928_v28 = vpack.c.bf16 %v912_v23, %v911_v21 }
 0x18e   : > { %962 = vst [vmem:[#allocation3 + $0x58] sm:$0xff] %v4262_v49 }
 0x18f   : > { %944 = vst [vmem:[#allocation2 + $0x78] sm:$0xff] %v928_v28 }
 0x190   : > { %963 = vst [vmem:[#allocation3 + $0x40] sm:$0xff] %v4262_v49 }
 0x191   : > { %964 = vst [vmem:[#allocation3 + $0xc8] sm:$0xff] %v4262_v49 }
 0x192   : > { %965 = vst [vmem:[#allocation3 + $0xe0] sm:$0xff] %v4262_v49 }
 0x193   : > { %966 = vst [vmem:[#allocation3 + $0x90] sm:$0xff] %v4262_v49 }
 0x194   : > { %967 = vst [vmem:[#allocation3 + $0x70] sm:$0xff] %v4262_v49 }
 0x195   : > { %968 = vst [vmem:[#allocation3 + $0xc0] sm:$0xff] %v4262_v49 }
 0x196   : > { %969 = vst [vmem:[#allocation3 + $0xa8] sm:$0xff] %v4262_v49 }
 0x197   : > { %970 = vst [vmem:[#allocation3 + $0xd0] sm:$0xff] %v4262_v49 }
 0x198   : > { %971 = vst [vmem:[#allocation3 + $0x10] sm:$0xff] %v4262_v49 }
 0x199   : > { %972 = vst [vmem:[#allocation3 + $0x28] sm:$0xff] %v4262_v49 }
 0x19a   : > { %973 = vst [vmem:[#allocation3 + $0xa0] sm:$0xff] %v4262_v49 }
 0x19b   : > { %974 = vst [vmem:[#allocation3 + $0xf8] sm:$0xff] %v4262_v49 }
 0x19c   : > { %975 = vst [vmem:[#allocation3 + $0x20] sm:$0xff] %v4262_v49 }
 0x19d   : > { %976 = vst [vmem:[#allocation3 + $0x98] sm:$0xff] %v4262_v49 }
 0x19e PF: > { %v3732_v48 = vld [vmem:[%s4445_s27 + $0x70] sm:$0xf]  ;;  %v4000_v6 = vld [vmem:[%s4445_s27 + $0x74] sm:$0xf0]  ;;  %v3999_v17 = vld [vmem:[%s4445_s27 + $0x74] sm:$0xf] }
 0x19f   : > { %v3796_v8 = vld [vmem:[%s4445_s27 + $0xf0] sm:$0xf]  ;;  %v3733_v9 = vor.u32 %v4000_v6, %v3732_v48  ;;  %v4016_v52 = vld [vmem:[%s4445_s27 + $0xf4] sm:$0xf0]  ;;  %v3734_v47 = vld [vmem:[%s4445_s27 + $0x78] sm:$0xf0] }
 0x1a0   : > { %v3797_v7 = vor.u32 %v4016_v52, %v3796_v8  ;;  %v3737_v53 = vor.u32 %v3999_v17, %v3734_v47  ;;  %v4015_v49 = vld [vmem:[%s4445_s27 + $0xf4] sm:$0xf]  ;;  %v3798_v36 = vld [vmem:[%s4445_s27 + $0xf8] sm:$0xf0]  ;;  %v3724_v15 = vld [vmem:[%s4445_s27 + $0x60] sm:$0xf] }
 0x1a1   : > { %1271 = vmatpush.bf16.msra.mxu0 %v3733_v9  ;;  %v3801_v22 = vor.u32 %v4015_v49, %v3798_v36  ;;  %v3998_v32 = vld [vmem:[%s4445_s27 + $0x64] sm:$0xf0]  ;;  %v3788_v38 = vld [vmem:[%s4445_s27 + $0xe0] sm:$0xf]  ;;  %v3997_v18 = vld [vmem:[%s4445_s27 + $0x64] sm:$0xf] }
 0x1a2   : > { %v4014_v4 = vld [vmem:[%s4445_s27 + $0xe4] sm:$0xf0]  ;;  %1320 = vmatpush.bf16.msra.mxu1 %v3797_v7  ;;  %1369 = vmatpush.bf16.msra.mxu2 %v3737_v53  ;;  %v3725_v59 = vor.u32 %v3998_v32, %v3724_v15  ;;  %v3726_v50 = vld [vmem:[%s4445_s27 + $0x68] sm:$0xf0]  ;;  %v4013_v63 = vld [vmem:[%s4445_s27 + $0xe4] sm:$0xf] }
 0x1a3   : > { %v3789_v57 = vor.u32 %v4014_v4, %v3788_v38  ;;  %1418 = vmatpush.bf16.msra.mxu3 %v3801_v22  ;;  %v3729_v24 = vor.u32 %v3997_v18, %v3726_v50  ;;  %v3790_v44 = vld [vmem:[%s4445_s27 + $0xe8] sm:$0xf0]  ;;  %v3716_v45 = vld [vmem:[%s4445_s27 + $0x50] sm:$0xf]  ;;  %v3996_v33 = vld [vmem:[%s4445_s27 + $0x54] sm:$0xf0] }
 0x1a4   : > { %v3793_v31 = vor.u32 %v4013_v63, %v3790_v44  ;;  %v3780_v25 = vld [vmem:[%s4445_s27 + $0xd0] sm:$0xf]  ;;  %v4012_v35 = vld [vmem:[%s4445_s27 + $0xd4] sm:$0xf0]  ;;  %v3995_v2 = vld [vmem:[%s4445_s27 + $0x54] sm:$0xf]  ;;  %v3717_v37 = vor.u32 %v3996_v33, %v3716_v45 }
 0x1a5   : > { %1272 = vmatpush.bf16.msra.mxu0 %v3725_v59  ;;  %v3718_v3 = vld [vmem:[%s4445_s27 + $0x58] sm:$0xf0]  ;;  %v4011_v16 = vld [vmem:[%s4445_s27 + $0xd4] sm:$0xf]  ;;  %v3781_v55 = vor.u32 %v4012_v35, %v3780_v25  ;;  %v3708_v19 = vld [vmem:[%s4445_s27 + $0x40] sm:$0xf] }
 0x1a6   : > { %v3782_v54 = vld [vmem:[%s4445_s27 + $0xd8] sm:$0xf0]  ;;  %1321 = vmatpush.bf16.msra.mxu1 %v3789_v57  ;;  %1370 = vmatpush.bf16.msra.mxu2 %v3729_v24  ;;  %v3721_v40 = vor.u32 %v3995_v2, %v3718_v3  ;;  %v3994_v20 = vld [vmem:[%s4445_s27 + $0x44] sm:$0xf0]  ;;  %v3772_v41 = vld [vmem:[%s4445_s27 + $0xc0] sm:$0xf] }
 0x1a7   : > { %1419 = vmatpush.bf16.msra.mxu3 %v3793_v31  ;;  %v3785_v46 = vor.u32 %v4011_v16, %v3782_v54  ;;  %v4010_v5 = vld [vmem:[%s4445_s27 + $0xc4] sm:$0xf0]  ;;  %v3993_v61 = vld [vmem:[%s4445_s27 + $0x44] sm:$0xf]  ;;  %v3710_v56 = vld [vmem:[%s4445_s27 + $0x48] sm:$0xf0]  ;;  %v3709_v43 = vor.u32 %v3994_v20, %v3708_v19 }
 0x1a8   : > { %v4009_v12 = vld [vmem:[%s4445_s27 + $0xc4] sm:$0xf]  ;;  %v3774_v42 = vld [vmem:[%s4445_s27 + $0xc8] sm:$0xf0]  ;;  %v3773_v27 = vor.u32 %v4010_v5, %v3772_v41  ;;  %v3713_v10 = vor.u32 %v3993_v61, %v3710_v56  ;;  %v3700_v11 = vld [vmem:[%s4445_s27 + $0x30] sm:$0xf] }
 0x1a9   : > { %1273 = vmatpush.bf16.msra.mxu0 %v3717_v37  ;;  %v3992_v58 = vld [vmem:[%s4445_s27 + $0x34] sm:$0xf0]  ;;  %v3764_v1 = vld [vmem:[%s4445_s27 + $0xb0] sm:$0xf]  ;;  %v3777_v51 = vor.u32 %v4009_v12, %v3774_v42  ;;  %v3991_v30 = vld [vmem:[%s4445_s27 + $0x34] sm:$0xf] }
 0x1aa   : > { %1322 = vmatpush.bf16.msra.mxu1 %v3781_v55  ;;  %1371 = vmatpush.bf16.msra.mxu2 %v3721_v40  ;;  %v4008_v34 = vld [vmem:[%s4445_s27 + $0xb4] sm:$0xf0]  ;;  %v3702_v29 = vld [vmem:[%s4445_s27 + $0x38] sm:$0xf0]  ;;  %v4007_v26 = vld [vmem:[%s4445_s27 + $0xb4] sm:$0xf]  ;;  %v3701_v62 = vor.u32 %v3992_v58, %v3700_v11 }
 0x1ab   : > { %1420 = vmatpush.bf16.msra.mxu3 %v3785_v46  ;;  %v3766_v60 = vld [vmem:[%s4445_s27 + $0xb8] sm:$0xf0]  ;;  %v3765_v39 = vor.u32 %v4008_v34, %v3764_v1  ;;  %v3705_v0 = vor.u32 %v3991_v30, %v3702_v29  ;;  %v3692_v13 = vld [vmem:[%s4445_s27 + $0x20] sm:$0xf]  ;;  %v3990_v14 = vld [vmem:[%s4445_s27 + $0x24] sm:$0xf0] }
 0x1ac   : > { %v3756_v21 = vld [vmem:[%s4445_s27 + $0xa0] sm:$0xf]  ;;  %v3769_v23 = vor.u32 %v4007_v26, %v3766_v60  ;;  %v4006_v28 = vld [vmem:[%s4445_s27 + $0xa4] sm:$0xf0]  ;;  %v3989_v48 = vld [vmem:[%s4445_s27 + $0x24] sm:$0xf]  ;;  %v3693_v52 = vor.u32 %v3990_v14, %v3692_v13 }
 0x1ad   : > { %1274 = vmatpush.bf16.msra.mxu0 %v3709_v43  ;;  %v3694_v6 = vld [vmem:[%s4445_s27 + $0x28] sm:$0xf0]  ;;  %v4005_v8 = vld [vmem:[%s4445_s27 + $0xa4] sm:$0xf]  ;;  %v3757_v17 = vor.u32 %v4006_v28, %v3756_v21  ;;  %v3684_v7 = vld [vmem:[%s4445_s27 + $0x10] sm:$0xf] }
 0x1ae   : > { %1323 = vmatpush.bf16.msra.mxu1 %v3773_v27  ;;  %1372 = vmatpush.bf16.msra.mxu2 %v3713_v10  ;;  %v3758_v9 = vld [vmem:[%s4445_s27 + $0xa8] sm:$0xf0]  ;;  %v3697_v47 = vor.u32 %v3989_v48, %v3694_v6  ;;  %v3988_v53 = vld [vmem:[%s4445_s27 + $0x14] sm:$0xf0]  ;;  %v3748_v49 = vld [vmem:[%s4445_s27 + $0x90] sm:$0xf] }
 0x1af   : > { %1421 = vmatpush.bf16.msra.mxu3 %v3777_v51  ;;  %v3761_v36 = vor.u32 %v4005_v8, %v3758_v9  ;;  %v4004_v15 = vld [vmem:[%s4445_s27 + $0x94] sm:$0xf0]  ;;  %v3987_v22 = vld [vmem:[%s4445_s27 + $0x14] sm:$0xf]  ;;  %v3686_v32 = vld [vmem:[%s4445_s27 + $0x18] sm:$0xf0]  ;;  %v3685_v59 = vor.u32 %v3988_v53, %v3684_v7 }
 0x1b0   : > { %v4003_v38 = vld [vmem:[%s4445_s27 + $0x94] sm:$0xf]  ;;  %v3750_v4 = vld [vmem:[%s4445_s27 + $0x98] sm:$0xf0]  ;;  %v3749_v57 = vor.u32 %v4004_v15, %v3748_v49  ;;  %v3689_v18 = vor.u32 %v3987_v22, %v3686_v32  ;;  %v3676_v50 = vld [vmem:[%s4445_s27] sm:$0xf] }
 0x1b1   : > { %1275 = vmatpush.bf16.msra.mxu0 %v3701_v62  ;;  %v3986_v63 = vld [vmem:[%s4445_s27 + $0x4] sm:$0xf0]  ;;  %v3740_v24 = vld [vmem:[%s4445_s27 + $0x80] sm:$0xf]  ;;  %v3753_v44 = vor.u32 %v4003_v38, %v3750_v4  ;;  %v3985_v33 = vld [vmem:[%s4445_s27 + $0x4] sm:$0xf] }
 0x1b2   : > { %1324 = vmatpush.bf16.msra.mxu1 %v3765_v39  ;;  %1373 = vmatpush.bf16.msra.mxu2 %v3705_v0  ;;  %v4002_v45 = vld [vmem:[%s4445_s27 + $0x84] sm:$0xf0]  ;;  %v3678_v31 = vld [vmem:[%s4445_s27 + $0x8] sm:$0xf0]  ;;  %v4001_v25 = vld [vmem:[%s4445_s27 + $0x84] sm:$0xf]  ;;  %v3677_v2 = vor.u32 %v3986_v63, %v3676_v50 }
 0x1b3   : > { %1422 = vmatpush.bf16.msra.mxu3 %v3769_v23  ;;  %v3742_v35 = vld [vmem:[%s4445_s27 + $0x88] sm:$0xf0]  ;;  %v3612_v37 = vld [vmem:[#allocation2] sm:$0xf]  ;;  %v3970_v3 = vld [vmem:[#allocation2 + $0x4] sm:$0xf0]  ;;  %v3741_v16 = vor.u32 %v4002_v45, %v3740_v24  ;;  %v3681_v54 = vor.u32 %v3985_v33, %v3678_v31 }
 0x1b4   : > { %v3969_v55 = vld [vmem:[#allocation2 + $0x4] sm:$0xf]  ;;  %v3614_v40 = vld [vmem:[#allocation2 + $0x8] sm:$0xf0]  ;;  %v3745_v19 = vor.u32 %v4001_v25, %v3742_v35  ;;  %v3613_v20 = vor.u32 %v3970_v3, %v3612_v37  ;;  %v3620_v46 = vld [vmem:[#allocation2 + $0x10] sm:$0xf] }
 0x1b5   : > { %1276 = vmatpush.bf16.msra.mxu0 %v3693_v52  ;;  %v3617_v41 = vor.u32 %v3969_v55, %v3614_v40  ;;  %v3972_v5 = vld [vmem:[#allocation2 + $0x14] sm:$0xf0]  ;;  %v3971_v61 = vld [vmem:[#allocation2 + $0x14] sm:$0xf]  ;;  %v3622_v56 = vld [vmem:[#allocation2 + $0x18] sm:$0xf0] }
 0x1b6   : > { %1325 = vmatpush.bf16.msra.mxu1 %v3757_v17  ;;  %1374 = vmatpush.bf16.msra.mxu2 %v3697_v47  ;;  %v3621_v12 = vor.u32 %v3972_v5, %v3620_v46  ;;  %v3625_v42 = vor.u32 %v3971_v61, %v3622_v56  ;;  %v3628_v43 = vld [vmem:[#allocation2 + $0x20] sm:$0xf]  ;;  %v3974_v27 = vld [vmem:[#allocation2 + $0x24] sm:$0xf0]  ;;  %v3973_v10 = vld [vmem:[#allocation2 + $0x24] sm:$0xf] }
 0x1b7   : > { %1423 = vmatpush.bf16.msra.mxu3 %v3761_v36  ;;  %v3630_v11 = vld [vmem:[#allocation2 + $0x28] sm:$0xf0]  ;;  %v3629_v58 = vor.u32 %v3974_v27, %v3628_v43  ;;  %v4031_v51 = vld [vmem:[%s4443_s13 + $0x74] sm:$0xf]  ;;  %v3894_v34 = vld [vmem:[%s4443_s13 + $0x78] sm:$0xf0] }
 0x1b8   : > { %v3633_v1 = vor.u32 %v3973_v10, %v3630_v11  ;;  %v4047_v30 = vld [vmem:[%s4443_s13 + $0xf4] sm:$0xf]  ;;  %v3897_v29 = vor.u32 %v4031_v51, %v3894_v34  ;;  %v3958_v26 = vld [vmem:[%s4443_s13 + $0xf8] sm:$0xf0]  ;;  %v3892_v60 = vld [vmem:[%s4443_s13 + $0x70] sm:$0xf] }
 0x1b9   : > { %1277 = vmatpush.bf16.msra.mxu0 %v3685_v59  ;;  %v4032_v62 = vld [vmem:[%s4443_s13 + $0x74] sm:$0xf0]  ;;  %v3961_v39 = vor.u32 %v4047_v30, %v3958_v26  ;;  %v3956_v13 = vld [vmem:[%s4443_s13 + $0xf0] sm:$0xf]  ;;  %v3975_v48 = vld [vmem:[#allocation2 + $0x34] sm:$0xf] }
 0x1ba   : > { %1326 = vmatpush.bf16.msra.mxu1 %v3749_v57  ;;  %1375 = vmatpush.bf16.msra.mxu2 %v3689_v18  ;;  %v3893_v0 = vor.u32 %v4032_v62, %v3892_v60  ;;  %v4048_v14 = vld [vmem:[%s4443_s13 + $0xf4] sm:$0xf0]  ;;  %v3636_v23 = vld [vmem:[#allocation2 + $0x30] sm:$0xf]  ;;  %v3638_v6 = vld [vmem:[#allocation2 + $0x38] sm:$0xf0] }
 0x1bb   : > { %1424 = vmatpush.bf16.msra.mxu3 %v3753_v44  ;;  %v3957_v21 = vor.u32 %v4048_v14, %v3956_v13  ;;  %v3976_v28 = vld [vmem:[#allocation2 + $0x34] sm:$0xf0]  ;;  %v3641_v9 = vor.u32 %v3975_v48, %v3638_v6  ;;  %v4029_v52 = vld [vmem:[%s4443_s13 + $0x64] sm:$0xf]  ;;  %v3886_v17 = vld [vmem:[%s4443_s13 + $0x68] sm:$0xf0] }
 0x1bc   : > { %v3637_v8 = vor.u32 %v3976_v28, %v3636_v23  ;;  %v4045_v47 = vld [vmem:[%s4443_s13 + $0xe4] sm:$0xf]  ;;  %v3889_v7 = vor.u32 %v4029_v52, %v3886_v17  ;;  %v3950_v53 = vld [vmem:[%s4443_s13 + $0xe8] sm:$0xf0]  ;;  %v3884_v49 = vld [vmem:[%s4443_s13 + $0x60] sm:$0xf] }
 0x1bd   : > { %1278 = vmatpush.bf16.msra.mxu0 %v3677_v2  ;;  %v4030_v36 = vld [vmem:[%s4443_s13 + $0x64] sm:$0xf0]  ;;  %v3953_v15 = vor.u32 %v4045_v47, %v3950_v53  ;;  %v3948_v32 = vld [vmem:[%s4443_s13 + $0xe0] sm:$0xf]  ;;  %v3977_v18 = vld [vmem:[#allocation2 + $0x44] sm:$0xf] }
 0x1be   : > { %1327 = vmatpush.bf16.msra.mxu1 %v3741_v16  ;;  %1376 = vmatpush.bf16.msra.mxu2 %v3681_v54  ;;  %v3885_v22 = vor.u32 %v4030_v36, %v3884_v49  ;;  %v4046_v38 = vld [vmem:[%s4443_s13 + $0xe4] sm:$0xf0]  ;;  %v3644_v59 = vld [vmem:[#allocation2 + $0x40] sm:$0xf]  ;;  %v3646_v50 = vld [vmem:[#allocation2 + $0x48] sm:$0xf0] }
 0x1bf   : > { %1425 = vmatpush.bf16.msra.mxu3 %v3745_v19  ;;  %v3949_v4 = vor.u32 %v4046_v38, %v3948_v32  ;;  %v3978_v57 = vld [vmem:[#allocation2 + $0x44] sm:$0xf0]  ;;  %v3649_v24 = vor.u32 %v3977_v18, %v3646_v50  ;;  %v4027_v44 = vld [vmem:[%s4443_s13 + $0x54] sm:$0xf]  ;;  %v3878_v45 = vld [vmem:[%s4443_s13 + $0x58] sm:$0xf0] }
 0x1c0   : > { %1279 = vmatmul.bf16.vlgmr.msra.gmra.mxu0 %v3613_v20  ;;  %v3645_v63 = vor.u32 %v3978_v57, %v3644_v59  ;;  %v4043_v33 = vld [vmem:[%s4443_s13 + $0xd4] sm:$0xf]  ;;  %v3881_v31 = vor.u32 %v4027_v44, %v3878_v45  ;;  %v3942_v25 = vld [vmem:[%s4443_s13 + $0xd8] sm:$0xf0]  ;;  %v3876_v35 = vld [vmem:[%s4443_s13 + $0x50] sm:$0xf] }
 0x1c1   : > { %1328 = vmatmul.bf16.vlgmr.msra.gmra.mxu1 %v3617_v41  ;;  %1377 = vmatmul.bf16.vlgmr.msra.gmra.mxu2 %v3613_v20  ;;  %v4028_v2 = vld [vmem:[%s4443_s13 + $0x54] sm:$0xf0]  ;;  %v3945_v37 = vor.u32 %v4043_v33, %v3942_v25  ;;  %v3940_v16 = vld [vmem:[%s4443_s13 + $0xd0] sm:$0xf]  ;;  %v3979_v20 = vld [vmem:[#allocation2 + $0x54] sm:$0xf] }
 0x1c2   : > { %1426 = vmatmul.bf16.vlgmr.msra.gmra.mxu3 %v3617_v41  ;;  %3213 = vmatpush.bf16.msrb.mxu2 %v3897_v29  ;;  %v3877_v3 = vor.u32 %v4028_v2, %v3876_v35  ;;  %v4044_v54 = vld [vmem:[%s4443_s13 + $0xd4] sm:$0xf0]  ;;  %v3652_v40 = vld [vmem:[#allocation2 + $0x50] sm:$0xf]  ;;  %v3654_v41 = vld [vmem:[#allocation2 + $0x58] sm:$0xf0] }
 0x1c3   : > { %3262 = vmatpush.bf16.msrb.mxu3 %v3961_v39  ;;  %3115 = vmatpush.bf16.msrb.mxu0 %v3893_v0  ;;  %v3941_v55 = vor.u32 %v4044_v54, %v3940_v16  ;;  %v3980_v19 = vld [vmem:[#allocation2 + $0x54] sm:$0xf0]  ;;  %v3657_v5 = vor.u32 %v3979_v20, %v3654_v41  ;;  %v4025_v61 = vld [vmem:[%s4443_s13 + $0x44] sm:$0xf]  ;;  %v3870_v56 = vld [vmem:[%s4443_s13 + $0x48] sm:$0xf0] }
 0x1c4   : > { %3164 = vmatpush.bf16.msrb.mxu1 %v3957_v21  ;;  %v3653_v46 = vor.u32 %v3980_v19, %v3652_v40  ;;  %v3934_v43 = vld [vmem:[%s4443_s13 + $0xc8] sm:$0xf0]  ;;  %v3868_v27 = vld [vmem:[%s4443_s13 + $0x40] sm:$0xf]  ;;  %v4026_v10 = vld [vmem:[%s4443_s13 + $0x44] sm:$0xf0] }
 0x1c5   : > { %v4042_v51 = vld [vmem:[%s4443_s13 + $0xc4] sm:$0xf0]  ;;  %v3660_v30 = vld [vmem:[#allocation2 + $0x60] sm:$0xf]  ;;  %v3981_v26 = vld [vmem:[#allocation2 + $0x64] sm:$0xf] }
 0x1c6   : > { %3214 = vmatpush.bf16.msrb.mxu2 %v3889_v7  ;;  %v3982_v29 = vld [vmem:[#allocation2 + $0x64] sm:$0xf0]  ;;  %v3662_v60 = vld [vmem:[#allocation2 + $0x68] sm:$0xf0]  ;;  %v3668_v0 = vld [vmem:[#allocation2 + $0x70] sm:$0xf] }
 0x1c7   : > { %3263 = vmatpush.bf16.msrb.mxu3 %v3953_v15  ;;  %3116 = vmatpush.bf16.msrb.mxu0 %v3885_v22  ;;  %v3661_v62 = vor.u32 %v3982_v29, %v3660_v30  ;;  %v3665_v39 = vor.u32 %v3981_v26, %v3662_v60  ;;  %v3984_v13 = vld [vmem:[#allocation2 + $0x74] sm:$0xf0]  ;;  %v3983_v14 = vld [vmem:[#allocation2 + $0x74] sm:$0xf]  ;;  %v3670_v21 = vld [vmem:[#allocation2 + $0x78] sm:$0xf0] }
 0x1c8   : > { %3165 = vmatpush.bf16.msrb.mxu1 %v3949_v4  ;;  %v3669_v23 = vor.u32 %v3984_v13, %v3668_v0  ;;  %v3673_v28 = vor.u32 %v3983_v14, %v3670_v21  ;;  %v1025_v48 = vld [vmem:[%s454_s9] sm:$0x3]  ;;  %v3862_v16 = vld [vmem:[%s4443_s13 + $0x38] sm:$0xf0]  ;;  %v3924_v29 = vld [vmem:[%s4443_s13 + $0xb0] sm:$0xf] }
 0x1c9   : > { %v5041_v6 = vperm.slane %v1025_v48, 0  ;;  %v5049_v7 = vperm.slane %v1025_v48, 1  ;;  %v4040_v60 = vld [vmem:[%s4443_s13 + $0xb4] sm:$0xf0]  ;;  %p3962_p0 = scmp.ne.s32.totalorder %s4243_s20, 1 }
 0x1ca   : > { %3215 = vmatpush.bf16.msrb.mxu2 %v3881_v31  ;;  %v3925_v0 = vor.u32 %v4040_v60, %v3924_v29 }
 0x1cb   : > { %3264 = vmatpush.bf16.msrb.mxu3 %v3945_v37  ;;  %3117 = vmatpush.bf16.msrb.mxu0 %v3877_v3  ;;  %v4023_v3 = vld [vmem:[%s4443_s13 + $0x34] sm:$0xf] }
 0x1cc   : > { %3166 = vmatpush.bf16.msrb.mxu1 %v3941_v55  ;;  %v3865_v55 = vor.u32 %v4023_v3, %v3862_v16  ;;  %v4021_v3 = vld [vmem:[%s4443_s13 + $0x24] sm:$0xf]  ;;  %v3854_v16 = vld [vmem:[%s4443_s13 + $0x28] sm:$0xf0] }
 0x1d0   : > { %1284 = vmatmul.bf16.gmra.mxu0 %v3621_v12 }
 0x1d1   : > { %1333 = vmatmul.bf16.gmra.mxu1 %v3625_v42  ;;  %1382 = vmatmul.bf16.gmra.mxu2 %v3621_v12  ;;  %v4041_v12 = vld [vmem:[%s4443_s13 + $0xc4] sm:$0xf] }
 0x1d2   : > { %1431 = vmatmul.bf16.gmra.mxu3 %v3625_v42  ;;  %v3873_v42 = vor.u32 %v4025_v61, %v3870_v56  ;;  %v3937_v11 = vor.u32 %v4041_v12, %v3934_v43  ;;  %v4039_v61 = vld [vmem:[%s4443_s13 + $0xb4] sm:$0xf]  ;;  %v3926_v12 = vld [vmem:[%s4443_s13 + $0xb8] sm:$0xf0] }
 0x1d3   : > { %v3929_v43 = vor.u32 %v4039_v61, %v3926_v12  ;;  %v3857_v12 = vor.u32 %v4021_v3, %v3854_v16 }
 0x1d4   : > { %3216 = vmatpush.bf16.msrb.mxu2 %v3873_v42  ;;  %3265 = vmatpush.bf16.msrb.mxu3 %v3937_v11 }
 0x1d8   : > { %3217 = vmatpush.bf16.msrb.mxu2 %v3865_v55  ;;  %3266 = vmatpush.bf16.msrb.mxu3 %v3929_v43  ;;  %v4037_v55 = vld [vmem:[%s4443_s13 + $0xa4] sm:$0xf] }
 0x1dc   : > { %3218 = vmatpush.bf16.msrb.mxu2 %v3857_v12 }
 0x1e0   : > { %1289 = vmatmul.bf16.gmra.mxu0 %v3629_v58 }
 0x1e1   : > { %1338 = vmatmul.bf16.gmra.mxu1 %v3633_v1  ;;  %1387 = vmatmul.bf16.gmra.mxu2 %v3629_v58  ;;  %v3869_v58 = vor.u32 %v4026_v10, %v3868_v27  ;;  %v3860_v27 = vld [vmem:[%s4443_s13 + $0x30] sm:$0xf]  ;;  %v4024_v10 = vld [vmem:[%s4443_s13 + $0x34] sm:$0xf0] }
 0x1e2   : > { %1436 = vmatmul.bf16.gmra.mxu3 %v3633_v1  ;;  %v3932_v1 = vld [vmem:[%s4443_s13 + $0xc0] sm:$0xf] }
 0x1e3   : > { %v3933_v34 = vor.u32 %v4042_v51, %v3932_v1  ;;  %3118 = vmatpush.bf16.msrb.mxu0 %v3869_v58  ;;  %v3861_v51 = vor.u32 %v4024_v10, %v3860_v27  ;;  %v3852_v10 = vld [vmem:[%s4443_s13 + $0x20] sm:$0xf] }
 0x1e5   : > { %3167 = vmatpush.bf16.msrb.mxu1 %v3933_v34 }
 0x1e7   : > { %3119 = vmatpush.bf16.msrb.mxu0 %v3861_v51  ;;  %v4022_v51 = vld [vmem:[%s4443_s13 + $0x24] sm:$0xf0] }
 0x1e9   : > { %3168 = vmatpush.bf16.msrb.mxu1 %v3925_v0  ;;  %v3853_v0 = vor.u32 %v4022_v51, %v3852_v10 }
 0x1eb   : > { %3120 = vmatpush.bf16.msrb.mxu0 %v3853_v0  ;;  %v3908_v0 = vld [vmem:[%s4443_s13 + $0x90] sm:$0xf] }
 0x1f0   : > { %1294 = vmatmul.bf16.gmra.mxu0 %v3637_v8 }
 0x1f1   : > { %1343 = vmatmul.bf16.gmra.mxu1 %v3641_v9  ;;  %1392 = vmatmul.bf16.gmra.mxu2 %v3637_v8 }
 0x1f2   : > { %1441 = vmatmul.bf16.gmra.mxu3 %v3641_v9 }
 0x200   : > { %1299 = vmatmul.bf16.gmra.mxu0 %v3645_v63 }
 0x201   : > { %1348 = vmatmul.bf16.gmra.mxu1 %v3649_v24  ;;  %1397 = vmatmul.bf16.gmra.mxu2 %v3645_v63 }
 0x202   : > { %1446 = vmatmul.bf16.gmra.mxu3 %v3649_v24 }
 0x210   : > { %1304 = vmatmul.bf16.gmra.mxu0 %v3653_v46 }
 0x211   : > { %1353 = vmatmul.bf16.gmra.mxu1 %v3657_v5  ;;  %1402 = vmatmul.bf16.gmra.mxu2 %v3653_v46 }
 0x212   : > { %1451 = vmatmul.bf16.gmra.mxu3 %v3657_v5 }
 0x220   : > { %1309 = vmatmul.bf16.gmra.mxu0 %v3661_v62 }
 0x221   : > { %1358 = vmatmul.bf16.gmra.mxu1 %v3665_v39  ;;  %1407 = vmatmul.bf16.gmra.mxu2 %v3661_v62 }
 0x222   : > { %1456 = vmatmul.bf16.gmra.mxu3 %v3665_v39 }
 0x230   : > { %1314 = vmatmul.bf16.gmra.mxu0 %v3669_v23 }
 0x231   : > { %1363 = vmatmul.bf16.gmra.mxu1 %v3673_v28  ;;  %1412 = vmatmul.bf16.gmra.mxu2 %v3669_v23 }
 0x232   : > { %1461 = vmatmul.bf16.gmra.mxu3 %v3673_v28 }
 0x23d   : > { %v1280_v8 = vpop.f32.mrf.mxu0 }
 0x23e   : > { %v1281_v9 = vadd.f32 %v1280_v8, %v5041_v6  ;;  %v1329_v52 = vpop.f32.mrf.mxu1 }
 0x240   : > { %v5044_v17 = vadd.f32 %v1329_v52, %v1281_v9 }
 0x242   : > { %v5047_v47 = vmul.f32 0.70710677, %v5044_v17 }
 0x244   : > { %v1378_v53 = vpop.f32.mrf.mxu2  ;;  %v1531_v36 = vmul.f32 %v5047_v47, %v5047_v47 }
 0x245   : > { %v1282_v49 = vpop.f32.mrf.mxu0  ;;  %v1379_v22 = vadd.f32 %v1378_v53, %v5049_v7  ;;  %v1427_v32 = vpop.f32.mrf.mxu3 }
 0x246   : > { %v1283_v15 = vadd.f32 %v1282_v49, %v5041_v6  ;;  %v1331_v38 = vpop.f32.mrf.mxu1  ;;  %v5057_v59 = vmin.f32 %v1531_v36, 16.0 }
 0x247   : > { %v5059_v57 = vadd.f32 %v1427_v32, %v1379_v22 }
 0x248   : > { %v5055_v4 = vadd.f32 %v1331_v38, %v1283_v15  ;;  %v1544_v24 = vmul.f32 3.8918573e-05, %v5057_v59  ;;  %v1533_v8 = vmul.f32 2.1237322e-06, %v5057_v59 }
 0x249   : > { %v5069_v45 = vmul.f32 0.70710677, %v5059_v57 }
 0x24a   : > { %v5062_v18 = vmul.f32 0.70710677, %v5055_v4  ;;  %v1545_v25 = vadd.f32 0.001143296, %v1544_v24  ;;  %v1534_v15 = vadd.f32 0.00028619796, %v1533_v8 }
 0x24b   : > { %v1571_v37 = vmul.f32 %v5069_v45, %v5069_v45 }
 0x24c   : > { %v1380_v50 = vpop.f32.mrf.mxu2  ;;  %v1611_v63 = vmul.f32 %v5062_v18, %v5062_v18  ;;  %v1546_v40 = vmul.f32 %v1545_v25, %v5057_v59  ;;  %v1535_v24 = vmul.f32 %v1534_v15, %v5057_v59 }
 0x24d   : > { %v1381_v44 = vadd.f32 %v1380_v50, %v5049_v7  ;;  %v1429_v31 = vpop.f32.mrf.mxu3  ;;  %v5085_v41 = vmin.f32 %v1571_v37, 16.0  ;;  %v1285_v27 = vpop.f32.mrf.mxu0 }
 0x24e   : > { %v5071_v33 = vmin.f32 %v1611_v63, 16.0  ;;  %v1547_v56 = vadd.f32 0.014752088, %v1546_v40  ;;  %v3918_v40 = vld [vmem:[%s4443_s13 + $0xa8] sm:$0xf0] }
 0x24f   : > { %v5074_v2 = vadd.f32 %v1429_v31, %v1381_v44  ;;  %v1584_v42 = vmul.f32 3.8918573e-05, %v5085_v41  ;;  %v1573_v44 = vmul.f32 2.1237322e-06, %v5085_v41 }
 0x250   : > { %v1624_v35 = vmul.f32 3.8918573e-05, %v5071_v33  ;;  %v1548_v1 = vmul.f32 %v1547_v56, %v5057_v59  ;;  %v1613_v9 = vmul.f32 2.1237322e-06, %v5071_v33 }
 0x251   : > { %v5083_v20 = vmul.f32 0.70710677, %v5074_v2  ;;  %v1585_v34 = vadd.f32 0.001143296, %v1584_v42  ;;  %v3921_v42 = vor.u32 %v4037_v55, %v3918_v40 }
 0x252   : > { %v1625_v54 = vadd.f32 0.001143296, %v1624_v35  ;;  %v1549_v62 = vadd.f32 0.112945676, %v1548_v1  ;;  %v1614_v22 = vadd.f32 0.00028619796, %v1613_v9  ;;  %v1334_v9 = vpop.f32.mrf.mxu1 }
 0x253   : > { %v1651_v46 = vmul.f32 %v5083_v20, %v5083_v20  ;;  %v1586_v13 = vmul.f32 %v1585_v34, %v5085_v41  ;;  %3267 = vmatpush.bf16.msrb.mxu3 %v3921_v42  ;;  %v3916_v34 = vld [vmem:[%s4443_s13 + $0xa0] sm:$0xf] }
 0x254   : > { %v1626_v19 = vmul.f32 %v1625_v54, %v5071_v33  ;;  %v1550_v23 = vmul.f32 %v1549_v62, %v5057_v59  ;;  %v1615_v31 = vmul.f32 %v1614_v22, %v5071_v33  ;;  %v1383_v22 = vpop.f32.mrf.mxu2 }
 0x255   : > { %v5094_v11 = vmin.f32 %v1651_v46, 16.0  ;;  %v1587_v28 = vadd.f32 0.014752088, %v1586_v13  ;;  %v1574_v46 = vadd.f32 0.00028619796, %v1573_v44 }
 0x256   : > { %v1627_v5 = vadd.f32 0.014752088, %v1626_v19  ;;  %v1551_v53 = vadd.f32 0.4994258, %v1550_v23  ;;  %v1536_v19 = vadd.f32 0.0036580483, %v1535_v24 }
 0x257   : > { %v1664_v30 = vmul.f32 3.8918573e-05, %v5094_v11  ;;  %v1588_v49 = vmul.f32 %v1587_v28, %v5085_v41  ;;  %v1653_v61 = vmul.f32 2.1237322e-06, %v5094_v11  ;;  %v1575_v1 = vmul.f32 %v1574_v46, %v5085_v41  ;;  %v4019_v24 = vld [vmem:[%s4443_s13 + $0x14] sm:$0xf]  ;;  %v1432_v46 = vpop.f32.mrf.mxu3 }
 0x258   : > { %v1628_v58 = vmul.f32 %v1627_v5, %v5071_v33  ;;  %v1552_v50 = vmul.f32 %v1551_v53, %v5057_v59  ;;  %v1616_v5 = vadd.f32 0.0036580483, %v1615_v31  ;;  %v3846_v44 = vld [vmem:[%s4443_s13 + $0x18] sm:$0xf0] }
 0x259   : > { %v1665_v39 = vadd.f32 0.001143296, %v1664_v30  ;;  %v1589_v63 = vadd.f32 0.112945676, %v1588_v49  ;;  %v4038_v30 = vld [vmem:[%s4443_s13 + $0xa4] sm:$0xf0]  ;;  %v3849_v55 = vor.u32 %v4019_v24, %v3846_v44 }
 0x25a   : > { %v1629_v26 = vadd.f32 0.112945676, %v1628_v58  ;;  %v5117_v37 = vadd.f32 1.0, %v1552_v50  ;;  %v1537_v58 = vmul.f32 %v1536_v19, %v5057_v59  ;;  %v1617_v29 = vmul.f32 %v1616_v5, %v5071_v33  ;;  %v5153_v50 = vpop.f32.mrf.mxu0  ;;  %v4035_v5 = vld [vmem:[%s4443_s13 + $0x94] sm:$0xf] }
 0x25b   : > { %v1666_v21 = vmul.f32 %v1665_v39, %v5094_v11  ;;  %v1590_v54 = vmul.f32 %v1589_v63, %v5085_v41  ;;  %v3917_v13 = vor.u32 %v4038_v30, %v3916_v34  ;;  %v1576_v23 = vadd.f32 0.0036580483, %v1575_v1  ;;  %3219 = vmatpush.bf16.msrb.mxu2 %v3849_v55  ;;  %v4020_v1 = vld [vmem:[%s4443_s13 + $0x14] sm:$0xf0] }
 0x25c   : > { %v1630_v14 = vmul.f32 %v1629_v26, %v5071_v33  ;;  %v1654_v26 = vadd.f32 0.00028619796, %v1653_v61  ;;  %v1618_v28 = vadd.f32 0.05243302, %v1617_v29  ;;  %v3910_v61 = vld [vmem:[%s4443_s13 + $0x98] sm:$0xf0]  ;;  %vm1559_vm4 = vweird.f32 %v5117_v37 }
 0x25d   : > { %v1667_v48 = vadd.f32 0.014752088, %v1666_v21  ;;  %v1591_v43 = vadd.f32 0.4994258, %v1590_v54  ;;  %v1538_v21 = vadd.f32 0.05243302, %v1537_v58  ;;  %3169 = vmatpush.bf16.msrb.mxu1 %v3917_v13  ;;  %v1577_v15 = vmul.f32 %v1576_v23, %v5085_v41 }
 0x25e   : > { %v1631_v52 = vadd.f32 0.4994258, %v1630_v14  ;;  %v3844_v58 = vld [vmem:[%s4443_s13 + $0x10] sm:$0xf]  ;;  %v1565_v34 = vand.u32 2147483648, %v5117_v37  ;;  %v3913_v29 = vor.u32 %v4035_v5, %v3910_v61  ;;  %v1288_v5 = vadd.f32 %v5153_v50, %v5041_v6 }
 0x25f   : > { %v1668_v36 = vmul.f32 %v1667_v48, %v5094_v11  ;;  %v1592_v39 = vmul.f32 %v1591_v43, %v5085_v41  ;;  %v1655_v48 = vmul.f32 %v1654_v26, %v5094_v11  ;;  %v1578_v16 = vadd.f32 0.05243302, %v1577_v15  ;;  %v5168_v43 = vpop.f32.mrf.mxu1  ;;  %v4036_v13 = vld [vmem:[%s4443_s13 + $0x94] sm:$0xf0] }
 0x260   : > { %v1632_v32 = vmul.f32 %v1631_v52, %v5071_v33  ;;  %3268 = vmatpush.bf16.msrb.mxu3 %v3913_v29  ;;  %v5241_v50 = vmul.f32 0.5, %v5055_v4 }
 0x261   : > { %v1669_v38 = vadd.f32 0.112945676, %v1668_v36  ;;  %v5147_v49 = vadd.f32 1.0, %v1592_v39  ;;  %v1539_v36 = vmul.f32 %v1538_v21, %v5057_v59  ;;  %v1579_v10 = vmul.f32 %v1578_v16, %v5085_v41  ;;  %v5183_v39 = vpop.f32.mrf.mxu2 }
 0x262   : > { %v5114_v25 = vadd.f32 1.0, %v1632_v32  ;;  %v1619_v32 = vmul.f32 %v1618_v28, %v5071_v33  ;;  %v1566_v16 = vor.u32 1.1754944e-38, %v1565_v34 }
 0x263   : > { %v1670_v35 = vmul.f32 %v1669_v38, %v5094_v11  ;;  %v1656_v38 = vadd.f32 0.0036580483, %v1655_v48  ;;  %v1540_v3 = vadd.f32 0.18741608, %v1539_v36  ;;  %v3845_v48 = vor.u32 %v4020_v1, %v3844_v58 }
 0x264   : > { %4141 = vrcp.f32 %v5114_v25  ;;  %v1620_v54 = vadd.f32 0.18741608, %v1619_v32  ;;  %v1645_v23 = vand.u32 2147483648, %v5114_v25  ;;  %vm1639_vm3 = vweird.f32 %v5114_v25 }
 0x265   : > { %v1671_v56 = vadd.f32 0.4994258, %v1670_v35  ;;  %4143 = vrcp.f32 %v5117_v37  ;;  %v1286_v35 = vadd.f32 %v1285_v27, %v5041_v6  ;;  %v1657_v19 = vmul.f32 %v1656_v38, %v5094_v11  ;;  %3121 = vmatpush.bf16.msrb.mxu0 %v3845_v48  ;;  %v4017_v48 = vld [vmem:[%s4443_s13 + $0x4] sm:$0xf] }
 0x266   : > { %v1541_v27 = vmul.f32 %v1540_v3, %v5057_v59  ;;  %v1621_v30 = vmul.f32 %v1620_v54, %v5071_v33  ;;  %v5192_v33 = vpop.f32.mrf.mxu0  ;;  %v1563_v36 = vand.u32 2147483647, %v5117_v37  ;;  %v1384_v32 = vadd.f32 %v1383_v22, %v5049_v7 }
 0x267   : > { %v1672_v60 = vmul.f32 %v1671_v56, %v5094_v11  ;;  %v5166_v42 = vadd.f32 %v1334_v9, %v1286_v35  ;;  %v1580_v9 = vadd.f32 0.18741608, %v1579_v10  ;;  %v3909_v38 = vor.u32 %v4036_v13, %v3908_v0 }
 0x268   : > { %v1646_v35 = vor.u32 1.1754944e-38, %v1645_v23  ;;  %vm1564_vm8 = vcmp.eq.f32.partialorder %v1563_v36, 8.507059e+37  ;;  %vm1599_vm9 = vweird.f32 %v5147_v49  ;;  %v1605_v0 = vand.u32 2147483648, %v5147_v49 }
 0x269   : > { %v5141_v8 = vadd.f32 1.0, %v1672_v60  ;;  %v1658_v60 = vadd.f32 0.05243302, %v1657_v19  ;;  %v5190_v28 = vmul.f32 0.70710677, %v5166_v42  ;;  %3170 = vmatpush.bf16.msrb.mxu1 %v3909_v38  ;;  %v1581_v54 = vmul.f32 %v1580_v9, %v5085_v41  ;;  %v1388_v29 = vpop.f32.mrf.mxu2 }
 0x26a   : > { %v5135_v62 = vpop.eup %4141  ;;  %v5225_v19 = vadd.f32 %v1432_v46, %v1384_v32  ;;  %v5234_v41 = vmul.f32 0.5, %v5044_v17  ;;  %v5246_v17 = vadd.f32 %v5168_v43, %v1288_v5  ;;  %v3838_v9 = vld [vmem:[%s4443_s13 + $0x8] sm:$0xf0]  ;;  %v1386_v32 = vadd.f32 %v5183_v39, %v5049_v7 }
 0x26b   : > { %v5138_v14 = vpop.eup %4143  ;;  %v1635_v52 = vmul.f32 %v5135_v62, %v5114_v25  ;;  %4145 = vrcp.f32 %v5141_v8  ;;  %vm1640_vm2 = vweird.f32 %v5135_v62  ;;  %v1659_v24 = vmul.f32 %v1658_v60, %v5094_v11 }
 0x26c   : > { %v1555_v53 = vmul.f32 %v5138_v14, %v5117_v37  ;;  %4147 = vrcp.f32 %v5147_v49  ;;  %vm1560_vm1 = vweird.f32 %v5138_v14  ;;  %vm5202_vm5 = vmor %vm1639_vm3, %vm1640_vm2  ;;  %v1691_v3 = vmul.f32 %v5190_v28, %v5190_v28 }
 0x26d   : > { %v1636_v63 = vsub.f32 1.0, %v1635_v52  ;;  %vm5209_vm6 = vmor %vm1559_vm4, %vm1560_vm1  ;;  %v1582_v46 = vadd.f32 1.1283791, %v1581_v54  ;;  %v5252_v4 = vmul.f32 0.70710677, %v5225_v19  ;;  %vm1679_vm12 = vweird.f32 %v5141_v8 }
 0x26e   : > { %v1556_v31 = vsub.f32 1.0, %v1555_v53  ;;  %v1643_v53 = vand.u32 2147483647, %v5114_v25  ;;  %v1622_v25 = vadd.f32 1.1283791, %v1621_v30  ;;  %v5237_v1 = vmin.f32 %v1691_v3, 16.0 }
 0x26f   : > { %v1637_v40 = vmul.f32 %v5135_v62, %v1636_v63  ;;  %v1683_v13 = vand.u32 2147483647, %v5141_v8  ;;  %v5272_v15 = vmul.f32 0.70710677, %v5246_v17  ;;  %v1291_v63 = vadd.f32 %v5192_v33, %v5041_v6  ;;  %v3836_v54 = vld [vmem:[%s4443_s13] sm:$0xf] }
 0x270   : > { %v1557_v12 = vmul.f32 %v5138_v14, %v1556_v31  ;;  %v1542_v31 = vadd.f32 1.1283791, %v1541_v27  ;;  %vm1644_vm7 = vcmp.eq.f32.partialorder %v1643_v53, 8.507059e+37  ;;  %v1660_v27 = vadd.f32 0.18741608, %v1659_v24 }
 0x271   : > { %v5163_v56 = vpop.eup %4145  ;;  %v1638_v26 = vadd.f32 %v5135_v62, %v1637_v40  ;;  %v5223_v40 = vpop.f32.mrf.mxu3  ;;  %v1693_v23 = vmul.f32 2.1237322e-06, %v5237_v1  ;;  %v4033_v24 = vld [vmem:[%s4443_s13 + $0x84] sm:$0xf]  ;;  %vm1684_vm0 = vcmp.eq.f32.partialorder %v1683_v13, 8.507059e+37 }
 0x272   : > { %v5174_v51 = vpop.eup %4147  ;;  %v1675_v59 = vmul.f32 %v5163_v56, %v5141_v8  ;;  %v1558_v21 = vadd.f32 %v5138_v14, %v1557_v12  ;;  %v1623_v12 = vmul.f32 %v1622_v25, %v5062_v18  ;;  %v1543_v58 = vmul.f32 %v1542_v31, %v5047_v47  ;;  %v1292_v47 = vpop.f32.mrf.mxu0 }
 0x273   : > { %v1595_v52 = vmul.f32 %v5174_v51, %v5147_v49  ;;  %v1642_v37 = vsel %vm5202_vm5, %v5135_v62, %v1638_v26  ;;  %v1603_v18 = vand.u32 2147483647, %v5147_v49  ;;  %v1661_v60 = vmul.f32 %v1660_v27, %v5094_v11  ;;  %v3900_v27 = vld [vmem:[%s4443_s13 + $0x80] sm:$0xf] }
 0x274   : > { %v1676_v44 = vsub.f32 1.0, %v1675_v59  ;;  %v1562_v22 = vsel %vm5209_vm6, %v5138_v14, %v1558_v21  ;;  %v1647_v62 = vsel %vm1644_vm7, %v1646_v35, %v1642_v37  ;;  %v5229_v14 = vpop.f32.mrf.mxu1  ;;  %vm1680_vm10 = vweird.f32 %v5163_v56 }
 0x275   : > { %v1596_v55 = vsub.f32 1.0, %v1595_v52  ;;  %v1567_v61 = vsel %vm1564_vm8, %v1566_v16, %v1562_v22  ;;  %v1648_v30 = vmul.f32 %v1647_v62, %v1623_v12  ;;  %v1685_v21 = vand.u32 2147483648, %v5141_v8  ;;  %vm5267_vm14 = vmor %vm1679_vm12, %vm1680_vm10 }
 0x276   : > { %v1677_v10 = vmul.f32 %v5163_v56, %v1676_v44  ;;  %v1568_v26 = vmul.f32 %v1567_v61, %v1543_v58  ;;  %vm1600_vm11 = vweird.f32 %v5174_v51  ;;  %vm5263_vm13 = vcmp.eq.f32.partialorder %v1603_v18, 8.507059e+37  ;;  %v3902_v44 = vld [vmem:[%s4443_s13 + $0x88] sm:$0xf0] }
 0x277   : > { %v1597_v34 = vmul.f32 %v5174_v51, %v1596_v55  ;;  %v3804_v11 = vclamps-f32 %v1648_v30, 1.0  ;;  %v1662_v38 = vadd.f32 1.1283791, %v1661_v60  ;;  %v1389_v25 = vadd.f32 %v1388_v29, %v5049_v7  ;;  %vm5288_vm15 = vmor %vm1599_vm9, %vm1600_vm11  ;;  %v4018_v55 = vld [vmem:[%s4443_s13 + $0x4] sm:$0xf0]  ;;  %v1390_v29 = vpop.f32.mrf.mxu2 }
 0x278   : > { %v1678_v59 = vadd.f32 %v5163_v56, %v1677_v10  ;;  %v3802_v52 = vclamps-f32 %v1568_v26, 1.0  ;;  %v1606_v31 = vor.u32 1.1754944e-38, %v1605_v0  ;;  %v1694_v22 = vadd.f32 0.00028619796, %v1693_v23  ;;  %v4034_v10 = vld [vmem:[%s4443_s13 + $0x84] sm:$0xf0] }
 0x279   : > { %v1598_v43 = vadd.f32 %v5174_v51, %v1597_v34  ;;  %v1437_v37 = vpop.f32.mrf.mxu3  ;;  %v3841_v35 = vor.u32 %v4017_v48, %v3838_v9  ;;  %v2813_v16 = vadd.f32 1.0, %v3804_v11  ;;  %v1731_v49 = vmul.f32 %v5252_v4, %v5252_v4 }
 0x27a   : > { %v1682_v8 = vsel %vm5267_vm14, %v5163_v56, %v1678_v59  ;;  %v1686_v56 = vor.u32 1.1754944e-38, %v1685_v21  ;;  %v2811_v62 = vadd.f32 1.0, %v3802_v52  ;;  %v5300_v61 = vadd.f32 %v5223_v40, %v1386_v32  ;;  %v1295_v60 = vpop.f32.mrf.mxu0 }
 0x27b   : > { %v1602_v3 = vsel %vm5288_vm15, %v5174_v51, %v1598_v43  ;;  %3220 = vmatpush.bf16.msrb.mxu2 %v3841_v35  ;;  %v3905_v12 = vor.u32 %v4033_v24, %v3902_v44  ;;  %v1663_v58 = vmul.f32 %v1662_v38, %v5083_v20  ;;  %v1771_v51 = vmul.f32 %v5272_v15, %v5272_v15 }
 0x27c   : > { %v1341_v33 = vpop.f32.mrf.mxu1  ;;  %v1687_v5 = vsel %vm1684_vm0, %v1686_v56, %v1682_v8  ;;  %v5308_v34 = vadd.f32 %v5229_v14, %v1291_v63  ;;  %v5310_v30 = vadd.f32 %v1437_v37, %v1389_v25  ;;  %v1583_v26 = vmul.f32 %v1582_v46, %v5069_v45 }
 0x27d   : > { %v1607_v40 = vsel %vm5263_vm13, %v1606_v31, %v1602_v3  ;;  %v1293_v18 = vadd.f32 %v1292_v47, %v5041_v6  ;;  %3269 = vmatpush.bf16.msrb.mxu3 %v3905_v12  ;;  %v3837_v59 = vor.u32 %v4018_v55, %v3836_v54  ;;  %v2845_v20 = vmul.f32 %v2813_v16, %v5241_v50 }
 0x27e   : > { %v1688_v0 = vmul.f32 %v1687_v5, %v1663_v58  ;;  %v5317_v13 = vmin.f32 %v1731_v49, 16.0  ;;  %v3901_v14 = vor.u32 %v4034_v10, %v3900_v27  ;;  %v2843_v21 = vmul.f32 %v2811_v62, %v5234_v41 }
 0x27f   : > { %v1695_v23 = vmul.f32 %v1694_v22, %v5237_v1  ;;  %v5322_v45 = vmul.f32 0.70710677, %v5300_v61  ;;  %3122 = vmatpush.bf16.msrb.mxu0 %v3837_v59  ;;  %v1608_v46 = vmul.f32 %v1607_v40, %v1583_v26  ;;  %v5324_v43 = vmin.f32 %v1771_v51, 16.0  ;;  %v1393_v56 = vpop.f32.mrf.mxu2 }
 0x280   : > { %v5327_v47 = vmul.f32 0.70710677, %v5308_v34  ;;  %v5330_v50 = vmul.f32 0.70710677, %v5310_v30  ;;  %3171 = vmatpush.bf16.msrb.mxu1 %v3901_v14  ;;  %v5332_v11 = vadd.f32 %v1341_v33, %v1293_v18  ;;  %v1391_v41 = vadd.f32 %v1390_v29, %v5049_v7 }
 0x281   : > { %v3805_v48 = vclamps-f32 %v1688_v0, 1.0  ;;  %v1733_v9 = vmul.f32 2.1237322e-06, %v5317_v13  ;;  %v1439_v52 = vpop.f32.mrf.mxu3  ;;  %v2875_v53 = vpack.c.bf16 %v2845_v20, %v2843_v21  ;;  %v1696_v36 = vadd.f32 0.0036580483, %v1695_v23 }
 0x282   : > { %v1811_v32 = vmul.f32 %v5322_v45, %v5322_v45  ;;  %v3803_v8 = vclamps-f32 %v1608_v46, 1.0  ;;  %v1773_v63 = vmul.f32 2.1237322e-06, %v5324_v43  ;;  %v1851_v25 = vmul.f32 %v5327_v47, %v5327_v47  ;;  %v1297_v16 = vpop.f32.mrf.mxu0 }
 0x283   : > { %v1891_v37 = vmul.f32 %v5330_v50, %v5330_v50  ;;  %3123 = vmatmul.bf16.vlgmr.msrb.gmra.mxu0 %v2875_v53  ;;  %3221 = vmatmul.bf16.vlgmr.msrb.gmra.mxu2 %v2875_v53  ;;  %v5344_v24 = vmul.f32 0.70710677, %v5332_v11  ;;  %v5346_v44 = vadd.f32 %v1439_v52, %v1391_v41  ;;  %v2814_v39 = vadd.f32 1.0, %v3805_v48 }
 0x284   : > { %v1344_v38 = vpop.f32.mrf.mxu1  ;;  %v1734_v31 = vadd.f32 0.00028619796, %v1733_v9  ;;  %v1470_v22 = vmul.f32 0.5, %v5074_v2  ;;  %v1697_v33 = vmul.f32 %v1696_v36, %v5237_v1  ;;  %v5350_v35 = vmin.f32 %v1811_v32, 16.0 }
 0x285   : > { %v1296_v3 = vadd.f32 %v1295_v60, %v5041_v6  ;;  %v2812_v49 = vadd.f32 1.0, %v3803_v8  ;;  %v1774_v54 = vadd.f32 0.00028619796, %v1773_v63  ;;  %v5353_v55 = vmin.f32 %v1851_v25, 16.0 }
 0x286   : > { %v5355_v62 = vmin.f32 %v1891_v37, 16.0  ;;  %v1931_v5 = vmul.f32 %v5344_v24, %v5344_v24  ;;  %v5360_v12 = vmul.f32 0.70710677, %v5346_v44  ;;  %v1394_v2 = vadd.f32 %v1393_v56, %v5049_v7 }
 0x287   : > { %v1468_v27 = vmul.f32 0.5, %v5059_v57  ;;  %v2846_v10 = vmul.f32 %v2814_v39, %v1470_v22  ;;  %v1735_v58 = vmul.f32 %v1734_v31, %v5317_v13  ;;  %v1298_v51 = vadd.f32 %v1297_v16, %v5041_v6  ;;  %v1395_v22 = vpop.f32.mrf.mxu2 }
 0x288   : > { %6789 = vst [vmem:[#allocation5_spill] sm:$0xff] %v5355_v62  ;;  %v1698_v29 = vadd.f32 0.05243302, %v1697_v33  ;;  %v1813_v26 = vmul.f32 2.1237322e-06, %v5350_v35  ;;  %v5367_v40 = vadd.f32 %v1344_v38, %v1296_v3  ;;  %v1775_v60 = vmul.f32 %v1774_v54, %v5324_v43 }
 0x289   : > { %v2844_v18 = vmul.f32 %v2812_v49, %v1468_v27  ;;  %v1853_v59 = vmul.f32 2.1237322e-06, %v5353_v55  ;;  %v1893_v20 = vmul.f32 2.1237322e-06, %v5355_v62  ;;  %v1442_v0 = vpop.f32.mrf.mxu3  ;;  %v5372_v14 = vmin.f32 %v1931_v5, 16.0 }
 0x28a   : > { %v1971_v57 = vmul.f32 %v5360_v12, %v5360_v12  ;;  %v5376_v21 = vadd.f32 %v1442_v0, %v1394_v2  ;;  %v1736_v46 = vadd.f32 0.0036580483, %v1735_v58  ;;  %v1814_v9 = vadd.f32 0.00028619796, %v1813_v26 }
 0x28b   : > { %v2876_v48 = vpack.c.bf16 %v2846_v10, %v2844_v18  ;;  %v5381_v52 = vmul.f32 0.70710677, %v5367_v40  ;;  %v1699_v53 = vmul.f32 %v1698_v29, %v5237_v1  ;;  %v1776_v36 = vadd.f32 0.0036580483, %v1775_v60 }
 0x28c   : > { %v1346_v23 = vpop.f32.mrf.mxu1  ;;  %v1854_v32 = vadd.f32 0.00028619796, %v1853_v59  ;;  %v1894_v38 = vadd.f32 0.00028619796, %v1893_v20  ;;  %v1933_v8 = vmul.f32 2.1237322e-06, %v5372_v14  ;;  %v1737_v37 = vmul.f32 %v1736_v46, %v5317_v13  ;;  %v1300_v59 = vpop.f32.mrf.mxu0 }
 0x28d   : > { %v5378_v41 = vadd.f32 %v1346_v23, %v1298_v51  ;;  %3172 = vmatmul.bf16.vlgmr.msrb.gmra.mxu1 %v2876_v48  ;;  %3270 = vmatmul.bf16.vlgmr.msrb.gmra.mxu3 %v2876_v48  ;;  %v5385_v63 = vmin.f32 %v1971_v57, 16.0  ;;  %v5388_v25 = vmul.f32 0.70710677, %v5376_v21  ;;  %v1815_v31 = vmul.f32 %v1814_v9, %v5350_v35 }
 0x28e   : > { %v2011_v56 = vmul.f32 %v5381_v52, %v5381_v52  ;;  %v1700_v33 = vadd.f32 0.18741608, %v1699_v53  ;;  %v1777_v3 = vmul.f32 %v1776_v36, %v5324_v43  ;;  %v1855_v16 = vmul.f32 %v1854_v32, %v5353_v55 }
 0x28f   : > { %v5392_v39 = vmul.f32 0.70710677, %v5378_v41  ;;  %v1895_v49 = vmul.f32 %v1894_v38, %v5355_v62  ;;  %v1934_v54 = vadd.f32 0.00028619796, %v1933_v8  ;;  %v1973_v5 = vmul.f32 2.1237322e-06, %v5385_v63 }
 0x290   : > { %v2051_v2 = vmul.f32 %v5388_v25, %v5388_v25  ;;  %v1738_v27 = vadd.f32 0.05243302, %v1737_v37  ;;  %v1396_v58 = vadd.f32 %v1395_v22, %v5049_v7  ;;  %v1816_v51 = vadd.f32 0.0036580483, %v1815_v31 }
 0x291   : > { %v2091_v10 = vmul.f32 %v5392_v39, %v5392_v39  ;;  %v5406_v29 = vmin.f32 %v2011_v56, 16.0  ;;  %v1701_v26 = vmul.f32 %v1700_v33, %v5237_v1  ;;  %v1778_v18 = vadd.f32 0.05243302, %v1777_v3  ;;  %v1444_v46 = vpop.f32.mrf.mxu3 }
 0x292   : > { %v1856_v60 = vadd.f32 0.0036580483, %v1855_v16  ;;  %v1896_v20 = vadd.f32 0.0036580483, %v1895_v49  ;;  %v1935_v0 = vmul.f32 %v1934_v54, %v5372_v14  ;;  %v1974_v57 = vadd.f32 0.00028619796, %v1973_v5 }
 0x293   : > { %v5410_v23 = vmin.f32 %v2051_v2, 16.0  ;;  %v1739_v48 = vmul.f32 %v1738_v27, %v5317_v13  ;;  %v5413_v9 = vmin.f32 %v2091_v10, 16.0  ;;  %v5415_v53 = vadd.f32 %v1444_v46, %v1396_v58  ;;  %v1398_v46 = vpop.f32.mrf.mxu2 }
 0x294   : > { %v1817_v36 = vmul.f32 %v1816_v51, %v5350_v35  ;;  %v2013_v32 = vmul.f32 2.1237322e-06, %v5406_v29  ;;  %v1301_v38 = vadd.f32 %v1300_v59, %v5041_v6  ;;  %v5421_v8 = vmul.f32 0.5, %v5166_v42  ;;  %v1349_v42 = vpop.f32.mrf.mxu1 }
 0x295   : > { %6790 = vst [vmem:[#allocation6_spill] sm:$0xff] %v5410_v23  ;;  %v1702_v37 = vadd.f32 1.1283791, %v1701_v26  ;;  %v1779_v31 = vmul.f32 %v1778_v18, %v5324_v43  ;;  %v1857_v56 = vmul.f32 %v1856_v60, %v5353_v55  ;;  %v1897_v22 = vmul.f32 %v1896_v20, %v5355_v62 }
 0x296   : > { %6791 = vst [vmem:[#allocation7_spill] sm:$0xff] %v5413_v9  ;;  %v1936_v33 = vadd.f32 0.0036580483, %v1935_v0  ;;  %v1975_v3 = vmul.f32 %v1974_v57, %v5385_v63  ;;  %v2053_v16 = vmul.f32 2.1237322e-06, %v5410_v23  ;;  %v5433_v2 = vmul.f32 0.5, %v5225_v19 }
 0x297   : > { %v1740_v49 = vadd.f32 0.18741608, %v1739_v48  ;;  %v2093_v54 = vmul.f32 2.1237322e-06, %v5413_v9  ;;  %v5430_v5 = vmul.f32 0.70710677, %v5415_v53  ;;  %v5435_v58 = vadd.f32 %v1349_v42, %v1301_v38 }
 0x298   : > { %v1818_v27 = vadd.f32 0.05243302, %v1817_v36  ;;  %v2014_v10 = vadd.f32 0.00028619796, %v2013_v32  ;;  %v5438_v51 = vmul.f32 0.5, %v5246_v17  ;;  %v5441_v18 = vmul.f32 0.5, %v5300_v61 }
 0x299   : > { %v1780_v26 = vadd.f32 0.18741608, %v1779_v31  ;;  %v1858_v60 = vadd.f32 0.05243302, %v1857_v56  ;;  %v1898_v59 = vadd.f32 0.05243302, %v1897_v22  ;;  %v1937_v20 = vmul.f32 %v1936_v33, %v5372_v14 }
 0x29a   : > { %v1976_v0 = vadd.f32 0.0036580483, %v1975_v3  ;;  %v2054_v57 = vadd.f32 0.00028619796, %v2053_v16  ;;  %v5445_v19 = vmul.f32 %v1702_v37, %v5190_v28  ;;  %v1741_v48 = vmul.f32 %v1740_v49, %v5317_v13 }
 0x29b   : > { %v2094_v36 = vadd.f32 0.00028619796, %v2093_v54  ;;  %v2131_v17 = vmul.f32 %v5430_v5, %v5430_v5  ;;  %v1819_v32 = vmul.f32 %v1818_v27, %v5350_v35  ;;  %v5452_v61 = vmul.f32 0.5, %v5308_v34 }
 0x29c   : > { %v2015_v38 = vmul.f32 %v2014_v10, %v5406_v29  ;;  %v5456_v31 = vmul.f32 0.70710677, %v5435_v58  ;;  %v1781_v56 = vmul.f32 %v1780_v26, %v5324_v43  ;;  %v1859_v28 = vmul.f32 %v1858_v60, %v5353_v55 }
 0x29d   : > { %6792 = vst [vmem:[#allocation8_spill] sm:$0xff] %v5452_v61  ;;  %v5461_v37 = vmul.f32 0.5, %v5310_v30  ;;  %v1399_v22 = vadd.f32 %v1398_v46, %v5049_v7  ;;  %v1899_v33 = vmul.f32 %v1898_v59, %v5355_v62  ;;  %v1938_v3 = vadd.f32 0.05243302, %v1937_v20  ;;  %v1447_v59 = vpop.f32.mrf.mxu3 }
 0x29e   : > { %v1977_v34 = vmul.f32 %v1976_v0, %v5385_v63  ;;  %v2055_v16 = vmul.f32 %v2054_v57, %v5410_v23  ;;  %v1742_v49 = vadd.f32 1.1283791, %v1741_v48  ;;  %v2095_v54 = vmul.f32 %v2094_v36, %v5413_v9 }
 0x29f   : > { %6793 = vst [vmem:[#allocation9_spill] sm:$0xff] %v5461_v37  ;;  %v5468_v42 = vmin.f32 %v2131_v17, 16.0  ;;  %v1704_v27 = vmul.f32 3.8918573e-05, %v5237_v1  ;;  %v1820_v10 = vadd.f32 0.18741608, %v1819_v32  ;;  %v2171_v60 = vmul.f32 %v5456_v31, %v5456_v31  ;;  %v1302_v37 = vpop.f32.mrf.mxu0 }
 0x2a0   : > { %v5472_v30 = vmul.f32 0.5, %v5332_v11  ;;  %v2016_v26 = vadd.f32 0.0036580483, %v2015_v38  ;;  %v1782_v20 = vadd.f32 1.1283791, %v1781_v56  ;;  %v5477_v57 = vmul.f32 0.5, %v5346_v44 }
 0x2a1   : > { %v1860_v0 = vadd.f32 0.18741608, %v1859_v28  ;;  %v5479_v46 = vadd.f32 %v1447_v59, %v1399_v22  ;;  %v1900_v48 = vadd.f32 0.18741608, %v1899_v33  ;;  %v1939_v36 = vmul.f32 %v1938_v3, %v5372_v14 }
 0x2a2   : > { %6794 = vst [vmem:[#allocation10_spill] sm:$0xff] %v5472_v30  ;;  %v1978_v17 = vadd.f32 0.05243302, %v1977_v34  ;;  %v2056_v32 = vadd.f32 0.0036580483, %v2055_v16  ;;  %v5483_v11 = vmul.f32 %v1742_v49, %v5252_v4  ;;  %v1821_v56 = vmul.f32 %v1820_v10, %v5350_v35 }
 0x2a3   : > { %6795 = vst [vmem:[#allocation11_spill] sm:$0xff] %v5477_v57  ;;  %v2096_v38 = vadd.f32 0.0036580483, %v2095_v54  ;;  %v2133_v30 = vmul.f32 2.1237322e-06, %v5468_v42  ;;  %v5488_v44 = vmul.f32 0.5, %v5367_v40  ;;  %v2017_v28 = vmul.f32 %v2016_v26, %v5406_v29 }
 0x2a4   : > { %v1705_v61 = vadd.f32 0.001143296, %v1704_v27  ;;  %v5491_v22 = vmin.f32 %v2171_v60, 16.0  ;;  %v1861_v33 = vmul.f32 %v1860_v0, %v5353_v55  ;;  %v5495_v3 = vmul.f32 0.70710677, %v5479_v46 }
 0x2a5   : > { %6796 = vst [vmem:[#allocation12_spill] sm:$0xff] %v5488_v44  ;;  %v1303_v4 = vadd.f32 %v1302_v37, %v5041_v6  ;;  %v1901_v16 = vmul.f32 %v1900_v48, %v5355_v62  ;;  %v1940_v49 = vadd.f32 0.18741608, %v1939_v36  ;;  %v1979_v54 = vmul.f32 %v1978_v17, %v5385_v63  ;;  %v1351_v48 = vpop.f32.mrf.mxu1 }
 0x2a6   : > { %v1706_v34 = vmul.f32 %v1705_v61, %v5237_v1  ;;  %v5502_v40 = vmul.f32 0.5, %v5376_v21  ;;  %v2057_v27 = vmul.f32 %v2056_v32, %v5410_v23  ;;  %v2097_v10 = vmul.f32 %v2096_v38, %v5413_v9 }
 0x2a7   : > { %v2134_v26 = vadd.f32 0.00028619796, %v2133_v30  ;;  %v5507_v59 = vmul.f32 %v1782_v20, %v5272_v15  ;;  %v2018_v37 = vadd.f32 0.05243302, %v2017_v28  ;;  %v2173_v61 = vmul.f32 2.1237322e-06, %v5491_v22 }
 0x2a8   : > { %6797 = vst [vmem:[#allocation13_spill] sm:$0xff] %v5502_v40  ;;  %v1707_v60 = vadd.f32 0.014752088, %v1706_v34  ;;  %v2184_v0 = vmul.f32 3.8918573e-05, %v5491_v22  ;;  %v2211_v21 = vmul.f32 %v5495_v3, %v5495_v3  ;;  %v5513_v40 = vadd.f32 %v1351_v48, %v1303_v4 }
 0x2a9   : > { %v1822_v36 = vadd.f32 1.1283791, %v1821_v56  ;;  %v1862_v17 = vadd.f32 1.1283791, %v1861_v33  ;;  %v1902_v32 = vadd.f32 1.1283791, %v1901_v16  ;;  %v1941_v30 = vmul.f32 %v1940_v49, %v5372_v14 }
 0x2aa   : > { %v1980_v38 = vadd.f32 0.18741608, %v1979_v54  ;;  %v1708_v15 = vmul.f32 %v1707_v60, %v5237_v1  ;;  %v2058_v20 = vadd.f32 0.05243302, %v2057_v27  ;;  %v2098_v28 = vadd.f32 0.05243302, %v2097_v10 }
 0x2ab   : > { %v2135_v34 = vmul.f32 %v2134_v26, %v5468_v42  ;;  %v1784_v44 = vmul.f32 3.8918573e-05, %v5324_v43  ;;  %v2019_v56 = vmul.f32 %v2018_v37, %v5406_v29  ;;  %v2174_v33 = vadd.f32 0.00028619796, %v2173_v61 }
 0x2ac   : > { %v2185_v57 = vadd.f32 0.001143296, %v2184_v0  ;;  %v1709_v62 = vadd.f32 0.112945676, %v1708_v15  ;;  %v5521_v4 = vmul.f32 %v1822_v36, %v5322_v45  ;;  %v5524_v16 = vmul.f32 0.5, %v5378_v41 }
 0x2ad   : > { %v5526_v49 = vmin.f32 %v2211_v21, 16.0  ;;  %v5529_v54 = vmul.f32 0.70710677, %v5513_v40  ;;  %v5532_v27 = vmul.f32 %v1862_v17, %v5327_v47  ;;  %v5535_v10 = vmul.f32 %v1902_v32, %v5330_v50  ;;  %v1400_v17 = vpop.f32.mrf.mxu2 }
 0x2ae   : > { %6798 = vst [vmem:[#allocation14_spill] sm:$0xff] %v5524_v16  ;;  %v1942_v26 = vadd.f32 1.1283791, %v1941_v30  ;;  %v1981_v60 = vmul.f32 %v1980_v38, %v5385_v63  ;;  %v2059_v45 = vmul.f32 %v2058_v20, %v5410_v23  ;;  %v2136_v37 = vadd.f32 0.0036580483, %v2135_v34 }
 0x2af   : > { %v1710_v41 = vmul.f32 %v1709_v62, %v5237_v1  ;;  %v1785_v61 = vadd.f32 0.001143296, %v1784_v44  ;;  %v2020_v0 = vadd.f32 0.18741608, %v2019_v56  ;;  %v2099_v48 = vmul.f32 %v2098_v28, %v5413_v9 }
 0x2b0   : > { %v2175_v36 = vmul.f32 %v2174_v33, %v5491_v22  ;;  %v2186_v47 = vmul.f32 %v2185_v57, %v5491_v22  ;;  %v5544_v50 = vmul.f32 0.5, %v5415_v53  ;;  %v2224_v21 = vmul.f32 3.8918573e-05, %v5526_v49 }
 0x2b1   : > { %v2251_v32 = vmul.f32 %v5529_v54, %v5529_v54  ;;  %v1711_v30 = vadd.f32 0.4994258, %v1710_v41  ;;  %v1982_v38 = vadd.f32 1.1283791, %v1981_v60  ;;  %v5550_v62 = vmul.f32 0.5, %v5435_v58 }
 0x2b2   : > { %6799 = vst [vmem:[#allocation15_spill] sm:$0xff] %v5544_v50  ;;  %v1786_v44 = vmul.f32 %v1785_v61, %v5324_v43  ;;  %v1744_v15 = vmul.f32 3.8918573e-05, %v5317_v13  ;;  %v2060_v20 = vadd.f32 0.18741608, %v2059_v45  ;;  %v2137_v57 = vmul.f32 %v2136_v37, %v5468_v42  ;;  %v1449_v37 = vpop.f32.mrf.mxu3 }
 0x2b3   : > { %v1401_v53 = vadd.f32 %v1400_v17, %v5049_v7  ;;  %v1712_v28 = vmul.f32 %v1711_v30, %v5237_v1  ;;  %v2021_v34 = vmul.f32 %v2020_v0, %v5406_v29  ;;  %v2100_v56 = vadd.f32 0.18741608, %v2099_v48 }
 0x2b4   : > { %v2176_v33 = vadd.f32 0.0036580483, %v2175_v36  ;;  %v2187_v41 = vadd.f32 0.014752088, %v2186_v47  ;;  %v2213_v60 = vmul.f32 2.1237322e-06, %v5526_v49  ;;  %v5564_v45 = vmul.f32 %v1942_v26, %v5344_v24 }
 0x2b5   : > { %v2225_v58 = vadd.f32 0.001143296, %v2224_v21  ;;  %v5559_v50 = vmin.f32 %v2251_v32, 16.0  ;;  %v5561_v61 = vadd.f32 1.0, %v1712_v28  ;;  %v1787_v16 = vadd.f32 0.014752088, %v1786_v44 }
 0x2b6   : > { %v1745_v17 = vadd.f32 0.001143296, %v1744_v15  ;;  %v1824_v1 = vmul.f32 3.8918573e-05, %v5350_v35  ;;  %v5568_v0 = vmul.f32 %v1982_v38, %v5360_v12  ;;  %v2138_v48 = vadd.f32 0.05243302, %v2137_v57 }
 0x2b7   : > { %v5570_v36 = vadd.f32 %v1449_v37, %v1401_v53  ;;  %4149 = vrcp.f32 %v5561_v61  ;;  %v2022_v47 = vadd.f32 1.1283791, %v2021_v34  ;;  %v2061_v21 = vmul.f32 %v2060_v20, %v5410_v23 }
 0x2b8   : > { %v2188_v32 = vmul.f32 %v2187_v41, %v5491_v22  ;;  %v5576_v24 = vmul.f32 0.5, %v5479_v46  ;;  %v2101_v26 = vmul.f32 %v2100_v56, %v5413_v9  ;;  %v2177_v30 = vmul.f32 %v2176_v33, %v5491_v22 }
 0x2b9   : > { %v1788_v12 = vmul.f32 %v1787_v16, %v5324_v43  ;;  %v1746_v38 = vmul.f32 %v1745_v17, %v5317_v13  ;;  %v2214_v44 = vadd.f32 0.00028619796, %v2213_v60  ;;  %v2226_v15 = vmul.f32 %v2225_v58, %v5526_v49  ;;  %v1305_v17 = vpop.f32.mrf.mxu0 }
 0x2ba   : > { %6800 = vst [vmem:[#allocation16_spill] sm:$0xff] %v5576_v24  ;;  %v2253_v57 = vmul.f32 2.1237322e-06, %v5559_v50  ;;  %v1825_v53 = vadd.f32 0.001143296, %v1824_v1  ;;  %v2139_v20 = vmul.f32 %v2138_v48, %v5468_v42  ;;  %v5589_v56 = vmul.f32 %v2022_v47, %v5381_v52 }
 0x2bb   : > { %v5586_v28 = vmul.f32 0.70710677, %v5570_v36  ;;  %v1789_v46 = vadd.f32 0.112945676, %v1788_v12  ;;  %v1747_v34 = vadd.f32 0.014752088, %v1746_v38  ;;  %v2215_v12 = vmul.f32 %v2214_v44, %v5526_v49 }
 0x2bc   : > { %6801 = vst [vmem:[#allocation17_spill] sm:$0xff] %v5589_v56  ;;  %v2062_v33 = vadd.f32 1.1283791, %v2061_v21  ;;  %v2189_v16 = vadd.f32 0.112945676, %v2188_v32  ;;  %v5592_v41 = vmul.f32 0.5, %v5513_v40  ;;  %v1826_v48 = vmul.f32 %v1825_v53, %v5350_v35 }
 0x2bd   : > { %v5594_v60 = vpop.eup %4149  ;;  %v2178_v58 = vadd.f32 0.05243302, %v2177_v30  ;;  %v2264_v37 = vmul.f32 3.8918573e-05, %v5559_v50  ;;  %v1790_v1 = vmul.f32 %v1789_v46, %v5324_v43  ;;  %v2227_v38 = vadd.f32 0.014752088, %v2226_v15 }
 0x2be   : > { %6802 = vst [vmem:[#allocation18_spill] sm:$0xff] %v5592_v41  ;;  %v1715_v52 = vmul.f32 %v5594_v60, %v5561_v61  ;;  %v1748_v47 = vmul.f32 %v1747_v34, %v5317_v13  ;;  %v2102_v40 = vadd.f32 1.1283791, %v2101_v26  ;;  %v2140_v21 = vadd.f32 0.18741608, %v2139_v20 }
 0x2bf   : > { %v2254_v32 = vadd.f32 0.00028619796, %v2253_v57  ;;  %v2291_v30 = vmul.f32 %v5586_v28, %v5586_v28  ;;  %v2190_v56 = vmul.f32 %v2189_v16, %v5491_v22  ;;  %v1306_v46 = vadd.f32 %v1305_v17, %v5041_v6  ;;  %v1354_v16 = vpop.f32.mrf.mxu1 }
 0x2c0   : > { %v1716_v23 = vsub.f32 1.0, %v1715_v52  ;;  %v1791_v53 = vadd.f32 0.4994258, %v1790_v1  ;;  %v5608_v44 = vmul.f32 %v2062_v33, %v5388_v25  ;;  %v2265_v15 = vadd.f32 0.001143296, %v2264_v37 }
 0x2c1   : > { %v1749_v41 = vadd.f32 0.112945676, %v1748_v47  ;;  %v1827_v24 = vadd.f32 0.014752088, %v1826_v48  ;;  %v2179_v34 = vmul.f32 %v2178_v58, %v5491_v22  ;;  %v2216_v26 = vadd.f32 0.0036580483, %v2215_v12 }
 0x2c2   : > { %v2228_v57 = vmul.f32 %v2227_v38, %v5526_v49  ;;  %v1792_v20 = vmul.f32 %v1791_v53, %v5324_v43  ;;  %v5613_v9 = vmin.f32 %v2291_v30, 16.0  ;;  %v1717_v17 = vmul.f32 %v5594_v60, %v1716_v23 }
 0x2c3   : > { %v1750_v1 = vmul.f32 %v1749_v41, %v5317_v13  ;;  %v1828_v25 = vmul.f32 %v1827_v24, %v5350_v35  ;;  %v2141_v33 = vmul.f32 %v2140_v21, %v5468_v42  ;;  %v2191_v37 = vadd.f32 0.4994258, %v2190_v56 }
 0x2c4   : > { %v5619_v48 = vadd.f32 %v1354_v16, %v1306_v46  ;;  %v5621_v58 = vadd.f32 1.0, %v1792_v20  ;;  %v5624_v12 = vmul.f32 %v2102_v40, %v5392_v39  ;;  %v2255_v43 = vmul.f32 %v2254_v32, %v5559_v50 }
 0x2c5   : > { %v2266_v38 = vmul.f32 %v2265_v15, %v5559_v50  ;;  %v1751_v52 = vadd.f32 0.4994258, %v1750_v1  ;;  %v2180_v23 = vadd.f32 0.18741608, %v2179_v34  ;;  %v2229_v47 = vadd.f32 0.112945676, %v2228_v57 }
 0x2c6   : > { %4151 = vrcp.f32 %v5621_v58  ;;  %v1829_v24 = vadd.f32 0.112945676, %v1828_v25  ;;  %v2217_v41 = vmul.f32 %v2216_v26, %v5526_v49  ;;  %v2304_v56 = vmul.f32 3.8918573e-05, %v5613_v9 }
 0x2c7   : > { %v1718_v21 = vadd.f32 %v5594_v60, %v1717_v17  ;;  %vm1720_vm1 = vweird.f32 %v5594_v60  ;;  %v2142_v39 = vadd.f32 1.1283791, %v2141_v33  ;;  %v2192_v40 = vmul.f32 %v2191_v37, %v5491_v22 }
 0x2c8   : > { %v5635_v32 = vmul.f32 0.70710677, %v5619_v48  ;;  %v1725_v30 = vand.u32 2147483648, %v5561_v61  ;;  %v2256_v46 = vadd.f32 0.0036580483, %v2255_v43  ;;  %vm1719_vm2 = vweird.f32 %v5561_v61 }
 0x2c9   : > { %v1723_v53 = vand.u32 2147483647, %v5561_v61  ;;  %v1752_v15 = vmul.f32 %v1751_v52, %v5317_v13  ;;  %v2230_v34 = vmul.f32 %v2229_v47, %v5526_v49  ;;  %v2267_v26 = vadd.f32 0.014752088, %v2266_v38  ;;  %vm5645_vm3 = vmor %vm1719_vm2, %vm1720_vm1 }
 0x2ca   : > { %v5643_v57 = vmul.f32 0.5, %v5570_v36  ;;  %v1830_v16 = vmul.f32 %v1829_v24, %v5350_v35  ;;  %v2181_v17 = vmul.f32 %v2180_v23, %v5491_v22  ;;  %v2305_v1 = vadd.f32 0.001143296, %v2304_v56 }
 0x2cb   : > { %v1722_v61 = vsel %vm5645_vm3, %v5594_v60, %v1718_v21  ;;  %v5654_v13 = vadd.f32 1.0, %v1752_v15  ;;  %v5656_v33 = vadd.f32 1.0, %v2192_v40  ;;  %v2218_v36 = vadd.f32 0.05243302, %v2217_v41 }
 0x2cc   : > { %v4152_v25 = vpop.eup %4151  ;;  %v2331_v37 = vmul.f32 %v5635_v32, %v5635_v32  ;;  %v1726_v43 = vor.u32 1.1754944e-38, %v1725_v30  ;;  %v5661_v38 = vmul.f32 %v2142_v39, %v5430_v5  ;;  %v2257_v22 = vmul.f32 %v2256_v46, %v5559_v50 }
 0x2cd   : > { %vm1724_vm4 = vcmp.eq.f32.partialorder %v1723_v53, 8.507059e+37  ;;  %v1795_v52 = vmul.f32 %v4152_v25, %v5621_v58  ;;  %v2231_v23 = vadd.f32 0.4994258, %v2230_v34  ;;  %v2268_v60 = vmul.f32 %v2267_v26, %v5559_v50 }
 0x2ce   : > { %v1727_v47 = vsel %vm1724_vm4, %v1726_v43, %v1722_v61  ;;  %v1831_v24 = vadd.f32 0.4994258, %v1830_v16  ;;  %v2182_v56 = vadd.f32 1.1283791, %v2181_v17  ;;  %v2306_v41 = vmul.f32 %v2305_v1, %v5613_v9 }
 0x2cf   : > { %v1796_v21 = vsub.f32 1.0, %v1795_v52  ;;  %4153 = vrcp.f32 %v5654_v13  ;;  %v2219_v5 = vmul.f32 %v2218_v36, %v5526_v49  ;;  %v5670_v39 = vmin.f32 %v2331_v37, 16.0 }
 0x2d0   : > { %4155 = vrcp.f32 %v5656_v33  ;;  %v1805_v40 = vand.u32 2147483648, %v5621_v58  ;;  %v1728_v30 = vmul.f32 %v1727_v47, %v5445_v19  ;;  %vm1800_vm5 = vweird.f32 %v4152_v25 }
 0x2d1   : > { %v1797_v46 = vmul.f32 %v4152_v25, %v1796_v21  ;;  %v1803_v53 = vand.u32 2147483647, %v5621_v58  ;;  %v2232_v15 = vmul.f32 %v2231_v23, %v5526_v49  ;;  %v2269_v34 = vadd.f32 0.112945676, %v2268_v60 }
 0x2d2   : > { %v2293_v26 = vmul.f32 2.1237322e-06, %v5613_v9  ;;  %v1832_v20 = vmul.f32 %v1831_v24, %v5350_v35  ;;  %v2258_v16 = vadd.f32 0.05243302, %v2257_v22  ;;  %v2307_v17 = vadd.f32 0.014752088, %v2306_v41 }
 0x2d3   : > { %v1798_v1 = vadd.f32 %v4152_v25, %v1797_v46  ;;  %vm1799_vm6 = vweird.f32 %v5621_v58  ;;  %v5680_v61 = vmul.f32 %v2182_v56, %v5456_v31  ;;  %v2205_v19 = vand.u32 2147483648, %v5656_v33 }
 0x2d4   : > { %v2344_v36 = vmul.f32 3.8918573e-05, %v5670_v39  ;;  %vm1801_vm7 = vmor %vm1799_vm6, %vm1800_vm5  ;;  %v1806_v37 = vor.u32 1.1754944e-38, %v1805_v40  ;;  %v3806_v52 = vclamps-f32 %v1728_v30, 1.0  ;;  %vm1804_vm8 = vcmp.eq.f32.partialorder %v1803_v53, 8.507059e+37 }
 0x2d5   : > { %v5684_v43 = vpop.eup %4153  ;;  %v1802_v23 = vsel %vm1801_vm7, %v4152_v25, %v1798_v1  ;;  %v5686_v35 = vadd.f32 1.0, %v1832_v20  ;;  %v2220_v60 = vadd.f32 0.18741608, %v2219_v5  ;;  %v5690_v58 = vadd.f32 1.0, %v2232_v15  ;;  %v1403_v15 = vpop.f32.mrf.mxu2 }
 0x2d6   : > { %v5688_v22 = vpop.eup %4155  ;;  %v2270_v31 = vmul.f32 %v2269_v34, %v5559_v50  ;;  %v1807_v47 = vsel %vm1804_vm8, %v1806_v37, %v1802_v23  ;;  %v2203_v24 = vand.u32 2147483647, %v5656_v33  ;;  %v2308_v56 = vmul.f32 %v2307_v17, %v5613_v9  ;;  %v1307_v34 = vpop.f32.mrf.mxu0 }
 0x2d7   : > { %v1808_v41 = vmul.f32 %v1807_v47, %v5507_v59  ;;  %v1755_v25 = vmul.f32 %v5684_v43, %v5654_v13  ;;  %v2259_v21 = vmul.f32 %v2258_v16, %v5559_v50  ;;  %v2294_v40 = vadd.f32 0.00028619796, %v2293_v26 }
 0x2d8   : > { %v2345_v30 = vadd.f32 0.001143296, %v2344_v36  ;;  %4157 = vrcp.f32 %v5686_v35  ;;  %v5700_v5 = vor.u32 1.1754944e-38, %v2205_v19  ;;  %v2815_v53 = vadd.f32 1.0, %v3806_v52 }
 0x2d9   : > { %v3808_v46 = vclamps-f32 %v1808_v41, 1.0  ;;  %v1756_v20 = vsub.f32 1.0, %v1755_v25  ;;  %v2195_v17 = vmul.f32 %v5688_v22, %v5656_v33  ;;  %v2221_v59 = vmul.f32 %v2220_v60, %v5526_v49 }
 0x2da   : > { %4159 = vrcp.f32 %v5690_v58  ;;  %v2271_v1 = vadd.f32 0.4994258, %v2270_v31  ;;  %v2309_v16 = vadd.f32 0.112945676, %v2308_v56  ;;  %v1864_v19 = vmul.f32 3.8918573e-05, %v5353_v55 }
 0x2db   : > { %v2817_v26 = vadd.f32 1.0, %v3808_v46  ;;  %v1757_v36 = vmul.f32 %v5684_v43, %v1756_v20  ;;  %v2346_v37 = vmul.f32 %v2345_v30, %v5670_v39  ;;  %v1404_v52 = vadd.f32 %v1403_v15, %v5049_v7 }
 0x2dc   : > { %v1308_v23 = vadd.f32 %v1307_v34, %v5041_v6  ;;  %vm1760_vm9 = vweird.f32 %v5684_v43  ;;  %v2847_v47 = vmul.f32 %v2815_v53, %v5421_v8  ;;  %v1765_v31 = vand.u32 2147483648, %v5654_v13  ;;  %v1452_v8 = vpop.f32.mrf.mxu3 }
 0x2dd   : > { %v2849_v49 = vmul.f32 %v2817_v26, %v5438_v51  ;;  %v1758_v60 = vadd.f32 %v5684_v43, %v1757_v36  ;;  %v2260_v41 = vadd.f32 0.18741608, %v2259_v21  ;;  %v2295_v25 = vmul.f32 %v2294_v40, %v5613_v9  ;;  %v1356_v40 = vpop.f32.mrf.mxu1 }
 0x2de   : > { %v5716_v56 = vpop.eup %4157  ;;  %vm1759_vm10 = vweird.f32 %v5654_v13  ;;  %v1763_v30 = vand.u32 2147483647, %v5654_v13  ;;  %v2196_v46 = vsub.f32 1.0, %v2195_v17  ;;  %v2272_v15 = vmul.f32 %v2271_v1, %v5559_v50 }
 0x2df   : > { %v2877_v34 = vpack.c.bf16 %v2849_v49, %v2847_v47  ;;  %vm5722_vm11 = vmor %vm1759_vm10, %vm1760_vm9  ;;  %v1865_v53 = vadd.f32 0.001143296, %v1864_v19  ;;  %v2222_v26 = vadd.f32 1.1283791, %v2221_v59  ;;  %v5728_v21 = vadd.f32 %v1452_v8, %v1404_v52 }
 0x2e0   : > { %v5726_v20 = vpop.eup %4159  ;;  %v1762_v13 = vsel %vm5722_vm11, %v5684_v43, %v1758_v60  ;;  %v1835_v17 = vmul.f32 %v5716_v56, %v5686_v35  ;;  %v2310_v1 = vmul.f32 %v2309_v16, %v5613_v9  ;;  %v2347_v36 = vadd.f32 0.014752088, %v2346_v37 }
 0x2e1   : > { %3128 = vmatmul.bf16.gmra.mxu0 %v2877_v34  ;;  %3226 = vmatmul.bf16.gmra.mxu2 %v2877_v34  ;;  %v5736_v47 = vadd.f32 %v1356_v40, %v1308_v23  ;;  %v1766_v19 = vor.u32 1.1754944e-38, %v1765_v31  ;;  %vm2199_vm12 = vweird.f32 %v5656_v33  ;;  %vm2200_vm13 = vweird.f32 %v5688_v22 }
 0x2e2   : > { %v2261_v59 = vmul.f32 %v2260_v41, %v5559_v50  ;;  %v2296_v52 = vadd.f32 0.0036580483, %v2295_v25  ;;  %vm1764_vm14 = vcmp.eq.f32.partialorder %v1763_v30, 8.507059e+37  ;;  %v2197_v43 = vmul.f32 %v5688_v22, %v2196_v46  ;;  %vm5784_vm4 = vmor %vm2199_vm12, %vm2200_vm13 }
 0x2e3   : > { %v5742_v49 = vadd.f32 1.0, %v2272_v15  ;;  %v1767_v60 = vsel %vm1764_vm14, %v1766_v19, %v1762_v13  ;;  %v1866_v16 = vmul.f32 %v1865_v53, %v5353_v55  ;;  %v5746_v37 = vmul.f32 %v2222_v26, %v5495_v3 }
 0x2e4   : > { %v2235_v23 = vmul.f32 %v5726_v20, %v5690_v58  ;;  %v5751_v31 = vmul.f32 0.70710677, %v5728_v21  ;;  %v1836_v34 = vsub.f32 1.0, %v1835_v17  ;;  %v2311_v50 = vadd.f32 0.4994258, %v2310_v1 }
 0x2e5   : > { %v2348_v41 = vmul.f32 %v2347_v36, %v5670_v39  ;;  %v5755_v25 = vmul.f32 0.70710677, %v5736_v47  ;;  %v1845_v30 = vand.u32 2147483648, %v5686_v35  ;;  %vm5760_vm15 = vcmp.eq.f32.partialorder %v2203_v24, 8.507059e+37 }
 0x2e6   : > { %v1768_v46 = vmul.f32 %v1767_v60, %v5483_v11  ;;  %v1837_v15 = vmul.f32 %v5716_v56, %v1836_v34  ;;  %vm1840_vm0 = vweird.f32 %v5716_v56  ;;  %v1843_v8 = vand.u32 2147483647, %v5686_v35 }
 0x2e7   : > { %v2198_v51 = vadd.f32 %v5688_v22, %v2197_v43  ;;  %4161 = vrcp.f32 %v5742_v49  ;;  %v2297_v53 = vmul.f32 %v2296_v52, %v5613_v9  ;;  %v1867_v26 = vadd.f32 0.014752088, %v1866_v16 }
 0x2e8   : > { %v2236_v40 = vsub.f32 1.0, %v2235_v23  ;;  %v2371_v24 = vmul.f32 %v5751_v31, %v5751_v31  ;;  %v1838_v13 = vadd.f32 %v5716_v56, %v1837_v15  ;;  %vm1839_vm1 = vweird.f32 %v5686_v35 }
 0x2e9   : > { %v2312_v11 = vmul.f32 %v2311_v50, %v5613_v9  ;;  %v2333_v17 = vmul.f32 2.1237322e-06, %v5670_v39  ;;  %v2411_v1 = vmul.f32 %v5755_v25, %v5755_v25  ;;  %vm1841_vm2 = vmor %vm1839_vm1, %vm1840_vm0  ;;  %v1846_v36 = vor.u32 1.1754944e-38, %v1845_v30 }
 0x2ea   : > { %v2349_v19 = vadd.f32 0.112945676, %v2348_v41  ;;  %v3807_v52 = vclamps-f32 %v1768_v46, 1.0  ;;  %v1842_v43 = vsel %vm1841_vm2, %v5716_v56, %v1838_v13  ;;  %vm1844_vm3 = vcmp.eq.f32.partialorder %v1843_v8, 8.507059e+37 }
 0x2eb   : > { %v2243_v60 = vand.u32 2147483647, %v5690_v58  ;;  %v2298_v16 = vadd.f32 0.05243302, %v2297_v53  ;;  %v1847_v23 = vsel %vm1844_vm3, %v1846_v36, %v1842_v43  ;;  %v1868_v34 = vmul.f32 %v1867_v26, %v5353_v55 }
 0x2ec   : > { %v2202_v50 = vsel %vm5784_vm4, %v5688_v22, %v2198_v51  ;;  %v2237_v56 = vmul.f32 %v5726_v20, %v2236_v40  ;;  %v5794_v41 = vmin.f32 %v2371_v24, 16.0  ;;  %v1848_v33 = vmul.f32 %v1847_v23, %v5521_v4 }
 0x2ed   : > { %v5797_v30 = vpop.eup %4161  ;;  %v5799_v46 = vadd.f32 1.0, %v2312_v11  ;;  %v2334_v15 = vadd.f32 0.00028619796, %v2333_v17  ;;  %v5801_v8 = vmin.f32 %v2411_v1, 16.0  ;;  %v1869_v53 = vadd.f32 0.112945676, %v1868_v34 }
 0x2ee   : > { %v2245_v26 = vand.u32 2147483648, %v5690_v58  ;;  %v2350_v13 = vmul.f32 %v2349_v19, %v5670_v39  ;;  %v3809_v36 = vclamps-f32 %v1848_v33, 1.0  ;;  %v2816_v22 = vadd.f32 1.0, %v3807_v52 }
 0x2ef   : > { %v2207_v51 = vsel %vm5760_vm15, %v5700_v5, %v2202_v50  ;;  %vm2240_vm5 = vweird.f32 %v5726_v20  ;;  %v2262_v4 = vadd.f32 1.1283791, %v2261_v59  ;;  %v2299_v40 = vmul.f32 %v2298_v16, %v5613_v9 }
 0x2f0   : > { %v2275_v24 = vmul.f32 %v5797_v30, %v5742_v49  ;;  %v2384_v11 = vmul.f32 3.8918573e-05, %v5794_v41  ;;  %v2818_v17 = vadd.f32 1.0, %v3809_v36  ;;  %v1870_v1 = vmul.f32 %v1869_v53, %v5353_v55 }
 0x2f1   : > { %v2238_v19 = vadd.f32 %v5726_v20, %v2237_v56  ;;  %4163 = vrcp.f32 %v5799_v46  ;;  %v2335_v3 = vmul.f32 %v2334_v15, %v5670_v39  ;;  %v2424_v5 = vmul.f32 3.8918573e-05, %v5801_v8 }
 0x2f2   : > { %v2351_v52 = vadd.f32 0.4994258, %v2350_v13  ;;  %v2848_v59 = vmul.f32 %v2816_v22, %v5433_v2  ;;  %v2850_v43 = vmul.f32 %v2818_v17, %v5441_v18  ;;  %v1944_v35 = vmul.f32 3.8918573e-05, %v5372_v14  ;;  %v1454_v2 = vpop.f32.mrf.mxu3 }
 0x2f3   : > { %v2208_v16 = vmul.f32 %v2207_v51, %v5680_v61  ;;  %vm2239_vm6 = vweird.f32 %v5690_v58  ;;  %vm5823_vm7 = vcmp.eq.f32.partialorder %v2243_v60, 8.507059e+37  ;;  %v2300_v34 = vadd.f32 0.18741608, %v2299_v40 }
 0x2f4   : > { %v2276_v50 = vsub.f32 1.0, %v2275_v24  ;;  %v2385_v56 = vadd.f32 0.001143296, %v2384_v11  ;;  %v2878_v33 = vpack.c.bf16 %v2850_v43, %v2848_v59  ;;  %v1871_v15 = vadd.f32 0.4994258, %v1870_v1  ;;  %vm5829_vm8 = vmor %vm2239_vm6, %vm2240_vm5  ;;  %v1405_v24 = vpop.f32.mrf.mxu2 }
 0x2f5   : > { %v2246_v18 = vor.u32 1.1754944e-38, %v2245_v26  ;;  %v5834_v61 = vmul.f32 %v2262_v4, %v5529_v54  ;;  %v2336_v58 = vadd.f32 0.0036580483, %v2335_v3  ;;  %v2425_v60 = vadd.f32 0.001143296, %v2424_v5 }
 0x2f6   : > { %v2242_v53 = vsel %vm5829_vm8, %v5726_v20, %v2238_v19  ;;  %v2352_v13 = vmul.f32 %v2351_v52, %v5670_v39  ;;  %3177 = vmatmul.bf16.gmra.mxu1 %v2878_v33  ;;  %3275 = vmatmul.bf16.gmra.mxu3 %v2878_v33  ;;  %v1872_v36 = vmul.f32 %v1871_v15, %v5353_v55  ;;  %v1945_v22 = vadd.f32 0.001143296, %v1944_v35  ;;  %v6817_v35 = vld [vmem:[#allocation5_spill] sm:$0xff] }
 0x2f7   : > { %v5841_v51 = vpop.eup %4163  ;;  %v2283_v26 = vand.u32 2147483647, %v5742_v49  ;;  %v2285_v54 = vand.u32 2147483648, %v5742_v49  ;;  %v2301_v4 = vmul.f32 %v2300_v34, %v5613_v9  ;;  %v5847_v40 = vmul.f32 0.5, %v5619_v48 }
 0x2f8   : > { %v3818_v20 = vclamps-f32 %v2208_v16, 1.0  ;;  %v2277_v11 = vmul.f32 %v5797_v30, %v2276_v50  ;;  %v2386_v17 = vmul.f32 %v2385_v56, %v5794_v41  ;;  %v5851_v1 = vadd.f32 1.0, %v1872_v36 }
 0x2f9   : > { %v2247_v55 = vsel %vm5823_vm7, %v2246_v18, %v2242_v53  ;;  %v2337_v19 = vmul.f32 %v2336_v58, %v5670_v39  ;;  %v2426_v3 = vmul.f32 %v2425_v60, %v5801_v8  ;;  %v1946_v9 = vmul.f32 %v1945_v22, %v5372_v14  ;;  %v1310_v22 = vpop.f32.mrf.mxu0 }
 0x2fa   : > { %v2315_v48 = vmul.f32 %v5841_v51, %v5799_v46  ;;  %v5860_v5 = vadd.f32 1.0, %v2352_v13  ;;  %v1406_v52 = vadd.f32 %v1405_v24, %v5049_v7  ;;  %4165 = vrcp.f32 %v5851_v1 }
 0x2fb   : > { %vm2279_vm9 = vweird.f32 %v5742_v49  ;;  %vm5865_vm10 = vcmp.eq.f32.partialorder %v2283_v26, 8.507059e+37  ;;  %v2302_v43 = vadd.f32 1.1283791, %v2301_v4  ;;  %v1904_v16 = vmul.f32 3.8918573e-05, %v6817_v35 }
 0x2fc   : > { %v2827_v23 = vadd.f32 1.0, %v3818_v20  ;;  %v2278_v34 = vadd.f32 %v5797_v30, %v2277_v11  ;;  %vm2280_vm11 = vweird.f32 %v5797_v30  ;;  %v2387_v50 = vadd.f32 0.014752088, %v2386_v17 }
 0x2fd   : > { %v2248_v56 = vmul.f32 %v2247_v55, %v5746_v37  ;;  %v2338_v33 = vadd.f32 0.05243302, %v2337_v19  ;;  %v2427_v15 = vadd.f32 0.014752088, %v2426_v3  ;;  %v1947_v18 = vadd.f32 0.014752088, %v1946_v9  ;;  %vm5878_vm12 = vmor %vm2279_vm9, %vm2280_vm11 }
 0x2fe   : > { %v2286_v58 = vor.u32 1.1754944e-38, %v2285_v54  ;;  %v2316_v60 = vsub.f32 1.0, %v2315_v48  ;;  %4167 = vrcp.f32 %v5860_v5  ;;  %v5874_v53 = vadd.f32 %v1454_v2, %v1406_v52 }
 0x2ff   : > { %v5883_v36 = vmul.f32 %v2302_v43, %v5586_v28  ;;  %v2325_v37 = vand.u32 2147483648, %v5799_v46  ;;  %v1948_v26 = vmul.f32 %v1947_v18, %v5372_v14  ;;  %v1905_v54 = vadd.f32 0.001143296, %v1904_v16 }
 0x300   : > { %v5887_v4 = vpop.eup %4165  ;;  %v5890_v24 = vmul.f32 %v2827_v23, %v5550_v62  ;;  %v2282_v49 = vsel %vm5878_vm12, %v5797_v30, %v2278_v34  ;;  %v2373_v20 = vmul.f32 2.1237322e-06, %v5794_v41  ;;  %v2388_v28 = vmul.f32 %v2387_v50, %v5794_v41 }
 0x301   : > { %v3819_v11 = vclamps-f32 %v2248_v56, 1.0  ;;  %vm2319_vm13 = vweird.f32 %v5799_v46  ;;  %v2323_v17 = vand.u32 2147483647, %v5799_v46  ;;  %v2339_v55 = vmul.f32 %v2338_v33, %v5670_v39 }
 0x302   : > { %v2428_v19 = vmul.f32 %v2427_v15, %v5801_v8  ;;  %v2317_v62 = vmul.f32 %v5841_v51, %v2316_v60  ;;  %v5903_v3 = vmul.f32 0.70710677, %v5874_v53  ;;  %v1311_v30 = vadd.f32 %v1310_v22, %v5041_v6  ;;  %v1359_v15 = vpop.f32.mrf.mxu1 }
 0x303   : > { %v1875_v9 = vmul.f32 %v5887_v4, %v5851_v1  ;;  %v2287_v48 = vsel %vm5865_vm10, %v2286_v58, %v2282_v49  ;;  %v2326_v52 = vor.u32 1.1754944e-38, %v2325_v37  ;;  %v1949_v43 = vadd.f32 0.112945676, %v1948_v26 }
 0x304   : > { %v1906_v16 = vmul.f32 %v1905_v54, %v6817_v35  ;;  %v5911_v23 = vpop.eup %4167  ;;  %vm2320_vm14 = vweird.f32 %v5841_v51  ;;  %v2374_v34 = vadd.f32 0.00028619796, %v2373_v20  ;;  %v2389_v50 = vadd.f32 0.112945676, %v2388_v28 }
 0x305   : > { %v2413_v56 = vmul.f32 2.1237322e-06, %v5801_v8  ;;  %v2429_v33 = vadd.f32 0.112945676, %v2428_v19  ;;  %v1876_v2 = vsub.f32 1.0, %v1875_v9  ;;  %v1950_v18 = vmul.f32 %v1949_v43, %v5372_v14  ;;  %vm5943_vm0 = vmor %vm2319_vm13, %vm2320_vm14 }
 0x306   : > { %v1907_v60 = vadd.f32 0.014752088, %v1906_v16  ;;  %v2318_v59 = vadd.f32 %v5841_v51, %v2317_v62  ;;  %v2340_v58 = vadd.f32 0.18741608, %v2339_v55  ;;  %v2451_v13 = vmul.f32 %v5903_v3, %v5903_v3 }
 0x307   : > { %v5919_v37 = vadd.f32 %v1359_v15, %v1311_v30  ;;  %vm5921_vm15 = vcmp.eq.f32.partialorder %v2323_v17, 8.507059e+37  ;;  %v2355_v26 = vmul.f32 %v5911_v23, %v5860_v5  ;;  %v1951_v54 = vadd.f32 0.4994258, %v1950_v18 }
 0x308   : > { %v1908_v49 = vmul.f32 %v1907_v60, %v6817_v35  ;;  %v1984_v20 = vmul.f32 3.8918573e-05, %v5385_v63  ;;  %v5929_v28 = vadd.f32 1.0, %v3819_v11  ;;  %v2375_v55 = vmul.f32 %v2374_v34, %v5794_v41 }
 0x309   : > { %v2390_v19 = vmul.f32 %v2389_v50, %v5794_v41  ;;  %v2414_v62 = vadd.f32 0.00028619796, %v2413_v56  ;;  %v2430_v17 = vmul.f32 %v2429_v33, %v5801_v8  ;;  %v1877_v30 = vmul.f32 %v5887_v4, %v1876_v2 }
 0x30a   : > { %v1952_v9 = vmul.f32 %v1951_v54, %v5372_v14  ;;  %v1909_v43 = vadd.f32 0.112945676, %v1908_v49  ;;  %v5937_v16 = vmul.f32 %v2287_v48, %v5834_v61  ;;  %v2341_v34 = vmul.f32 %v2340_v58, %v5670_v39 }
 0x30b   : > { %v5948_v50 = vmin.f32 %v2451_v13, 16.0  ;;  %v5951_v56 = vmul.f32 0.70710677, %v5919_v37  ;;  %v2322_v14 = vsel %vm5943_vm0, %v5841_v51, %v2318_v59  ;;  %v2356_v61 = vsub.f32 1.0, %v2355_v26 }
 0x30c   : > { %v5956_v48 = vadd.f32 1.0, %v1952_v9  ;;  %v1985_v33 = vadd.f32 0.001143296, %v1984_v20  ;;  %v2376_v46 = vadd.f32 0.0036580483, %v2375_v55  ;;  %v2415_v2 = vmul.f32 %v2414_v62, %v5801_v8 }
 0x30d   : > { %v2391_v15 = vadd.f32 0.4994258, %v2390_v19  ;;  %v1910_v18 = vmul.f32 %v1909_v43, %v6817_v35  ;;  %v2431_v39 = vadd.f32 0.4994258, %v2430_v17  ;;  %v1878_v60 = vadd.f32 %v5887_v4, %v1877_v30 }
 0x30e   : > { %vm1880_vm1 = vweird.f32 %v5887_v4  ;;  %4169 = vrcp.f32 %v5956_v48  ;;  %v3820_v58 = vclamps-f32 %v5937_v16, 1.0  ;;  %v2464_v51 = vmul.f32 3.8918573e-05, %v5948_v50 }
 0x30f   : > { %v2491_v59 = vmul.f32 %v5951_v56, %v5951_v56  ;;  %v1885_v13 = vand.u32 2147483648, %v5851_v1  ;;  %vm1879_vm2 = vweird.f32 %v5851_v1  ;;  %v1883_v26 = vand.u32 2147483647, %v5851_v1 }
 0x310   : > { %v1911_v54 = vadd.f32 0.4994258, %v1910_v18  ;;  %v1986_v49 = vmul.f32 %v1985_v33, %v5385_v63  ;;  %v5973_v20 = vsel %vm5921_vm15, %v2326_v52, %v2322_v14  ;;  %v5975_v55 = vadd.f32 1.1283791, %v2341_v34  ;;  %vm5979_vm3 = vmor %vm1879_vm2, %vm1880_vm1 }
 0x311   : > { %v2357_v19 = vmul.f32 %v5911_v23, %v2356_v61  ;;  %v2377_v62 = vmul.f32 %v2376_v46, %v5794_v41  ;;  %v2392_v30 = vmul.f32 %v2391_v15, %v5794_v41  ;;  %v2416_v1 = vadd.f32 0.0036580483, %v2415_v2 }
 0x312   : > { %v2432_v9 = vmul.f32 %v2431_v39, %v5801_v8  ;;  %v1882_v52 = vsel %vm5979_vm3, %v5887_v4, %v1878_v60  ;;  %v2465_v22 = vadd.f32 0.001143296, %v2464_v51  ;;  %v5988_v43 = vmin.f32 %v2491_v59, 16.0 }
 0x313   : > { %v1886_v11 = vor.u32 1.1754944e-38, %v1885_v13  ;;  %v1912_v34 = vmul.f32 %v1911_v54, %v6817_v35  ;;  %vm2359_vm4 = vweird.f32 %v5860_v5  ;;  %v2363_v61 = vand.u32 2147483647, %v5860_v5 }
 0x314   : > { %v4170_v14 = vpop.eup %4169  ;;  %vm1884_vm5 = vcmp.eq.f32.partialorder %v1883_v26, 8.507059e+37  ;;  %v1987_v33 = vadd.f32 0.014752088, %v1986_v49  ;;  %v2358_v46 = vadd.f32 %v5911_v23, %v2357_v19  ;;  %vm2360_vm6 = vweird.f32 %v5911_v23 }
 0x315   : > { %v1887_v15 = vsel %vm1884_vm5, %v1886_v11, %v1882_v52  ;;  %v1955_v4 = vmul.f32 %v4170_v14, %v5956_v48  ;;  %v2378_v2 = vadd.f32 0.05243302, %v2377_v62  ;;  %v5996_v18 = vadd.f32 1.0, %v2392_v30  ;;  %vm6013_vm7 = vmor %vm2359_vm4, %vm2360_vm6 }
 0x316   : > { %v2417_v39 = vmul.f32 %v2416_v1, %v5801_v8  ;;  %v5999_v35 = vadd.f32 1.0, %v2432_v9  ;;  %v2466_v60 = vmul.f32 %v2465_v22, %v5948_v50  ;;  %v2504_v51 = vmul.f32 3.8918573e-05, %v5988_v43 }
 0x317   : > { %v1956_v59 = vsub.f32 1.0, %v1955_v4  ;;  %v6003_v13 = vadd.f32 1.0, %v1912_v34  ;;  %v1888_v26 = vmul.f32 %v1887_v15, %v5532_v27  ;;  %v1965_v54 = vand.u32 2147483648, %v5956_v48 }
 0x318   : > { %v1988_v49 = vmul.f32 %v1987_v33, %v5385_v63  ;;  %v2024_v19 = vmul.f32 3.8918573e-05, %v5406_v29  ;;  %vm1960_vm8 = vweird.f32 %v4170_v14  ;;  %v1963_v30 = vand.u32 2147483647, %v5956_v48 }
 0x319   : > { %v1957_v17 = vmul.f32 %v4170_v14, %v1956_v59  ;;  %4171 = vrcp.f32 %v6003_v13  ;;  %v2362_v27 = vsel %vm6013_vm7, %v5911_v23, %v2358_v46  ;;  %v2365_v1 = vand.u32 2147483648, %v5860_v5 }
 0x31a   : > { %v2379_v9 = vmul.f32 %v2378_v2, %v5794_v41  ;;  %v2418_v52 = vadd.f32 0.05243302, %v2417_v39  ;;  %4173 = vrcp.f32 %v5999_v35  ;;  %v2505_v22 = vadd.f32 0.001143296, %v2504_v51 }
 0x31b   : > { %v1958_v11 = vadd.f32 %v4170_v14, %v1957_v17  ;;  %vm1959_vm9 = vweird.f32 %v5956_v48  ;;  %4175 = vrcp.f32 %v5996_v18  ;;  %v2467_v34 = vadd.f32 0.014752088, %v2466_v60 }
 0x31c   : > { %vm1961_vm10 = vmor %vm1959_vm9, %vm1960_vm8  ;;  %v1966_v33 = vor.u32 1.1754944e-38, %v1965_v54  ;;  %v1989_v15 = vadd.f32 0.112945676, %v1988_v49  ;;  %v3810_v4 = vclamps-f32 %v1888_v26, 1.0  ;;  %vm1964_vm11 = vcmp.eq.f32.partialorder %v1963_v30, 8.507059e+37 }
 0x31d   : > { %v1962_v59 = vsel %vm1961_vm10, %v4170_v14, %v1958_v11  ;;  %v2025_v23 = vadd.f32 0.001143296, %v2024_v19  ;;  %v2366_v5 = vor.u32 1.1754944e-38, %v2365_v1  ;;  %v2380_v46 = vadd.f32 0.18741608, %v2379_v9 }
 0x31e   : > { %v2419_v2 = vmul.f32 %v2418_v52, %v5801_v8  ;;  %v1967_v39 = vsel %vm1964_vm11, %v1966_v33, %v1962_v59  ;;  %vm2364_vm12 = vcmp.eq.f32.partialorder %v2363_v61, 8.507059e+37  ;;  %v2506_v48 = vmul.f32 %v2505_v22, %v5988_v43 }
 0x31f   : > { %v6028_v62 = vpop.eup %4171  ;;  %v1968_v51 = vmul.f32 %v1967_v39, %v5564_v45  ;;  %v1990_v60 = vmul.f32 %v1989_v15, %v5385_v63  ;;  %v6035_v26 = vmul.f32 %v5973_v20, %v5883_v36  ;;  %v2367_v14 = vsel %vm2364_vm12, %v2366_v5, %v2362_v27 }
 0x320   : > { %v2468_v54 = vmul.f32 %v2467_v34, %v5948_v50  ;;  %v1915_v49 = vmul.f32 %v6028_v62, %v6003_v13  ;;  %v6040_v19 = vpop.eup %4173  ;;  %v2819_v61 = vadd.f32 1.0, %v3810_v4  ;;  %v2026_v1 = vmul.f32 %v2025_v23, %v5406_v29  ;;  %v6828_v23 = vld [vmem:[#allocation8_spill] sm:$0xff] }
 0x321   : > { %v3812_v17 = vclamps-f32 %v1968_v51, 1.0  ;;  %v1991_v30 = vadd.f32 0.4994258, %v1990_v60  ;;  %v6043_v45 = vpop.eup %4175  ;;  %v2343_v9 = vmul.f32 %v5975_v55, %v5635_v32  ;;  %v2381_v36 = vmul.f32 %v2380_v46, %v5794_v41  ;;  %v6829_v55 = vld [vmem:[#allocation10_spill] sm:$0xff]  ;;  %v1312_v51 = vpop.f32.mrf.mxu0 }
 0x322   : > { %v2420_v20 = vadd.f32 0.18741608, %v2419_v2  ;;  %v1916_v27 = vsub.f32 1.0, %v1915_v49  ;;  %v2453_v52 = vmul.f32 2.1237322e-06, %v5948_v50  ;;  %v2435_v15 = vmul.f32 %v6040_v19, %v5999_v35 }
 0x323   : > { %v2507_v22 = vadd.f32 0.014752088, %v2506_v48  ;;  %v2821_v11 = vadd.f32 1.0, %v3812_v17  ;;  %v1992_v34 = vmul.f32 %v1991_v30, %v5385_v63  ;;  %v6050_v33 = vmul.f32 %v2367_v14, %v2343_v9 }
 0x324   : > { %v2469_v4 = vadd.f32 0.112945676, %v2468_v54  ;;  %v1917_v59 = vmul.f32 %v6028_v62, %v1916_v27  ;;  %v2851_v32 = vmul.f32 %v2819_v61, %v6828_v23  ;;  %v2027_v46 = vadd.f32 0.014752088, %v2026_v1  ;;  %v1361_v23 = vpop.f32.mrf.mxu1 }
 0x325   : > { %v2853_v41 = vmul.f32 %v2821_v11, %v6829_v55  ;;  %v6057_v5 = vadd.f32 1.0, %v1992_v34  ;;  %v6059_v2 = vadd.f32 1.1283791, %v2381_v36  ;;  %v2395_v63 = vmul.f32 %v6043_v45, %v5996_v18 }
 0x326   : > { %v2403_v39 = vand.u32 2147483647, %v5996_v18  ;;  %v2421_v48 = vmul.f32 %v2420_v20, %v5801_v8  ;;  %v2454_v60 = vadd.f32 0.00028619796, %v2453_v52  ;;  %v2508_v14 = vmul.f32 %v2507_v22, %v5988_v43 }
 0x327   : > { %v2879_v54 = vpack.c.bf16 %v2853_v41, %v2851_v32  ;;  %4177 = vrcp.f32 %v6057_v5  ;;  %v2470_v49 = vmul.f32 %v2469_v4, %v5948_v50  ;;  %v2493_v17 = vmul.f32 2.1237322e-06, %v5988_v43 }
 0x328   : > { %v1918_v61 = vadd.f32 %v6028_v62, %v1917_v59  ;;  %vm1920_vm13 = vweird.f32 %v6028_v62  ;;  %v2436_v30 = vsub.f32 1.0, %v2435_v15  ;;  %v1313_v8 = vadd.f32 %v1312_v51, %v5041_v6 }
 0x329   : > { %3133 = vmatmul.bf16.gmra.mxu0 %v2879_v54  ;;  %3231 = vmatmul.bf16.gmra.mxu2 %v2879_v54  ;;  %v1925_v1 = vand.u32 2147483648, %v6003_v13  ;;  %v2028_v9 = vmul.f32 %v2027_v46, %v5406_v29  ;;  %v2405_v36 = vand.u32 2147483648, %v5996_v18  ;;  %v6075_v20 = vadd.f32 1.1283791, %v2421_v48 }
 0x32a   : > { %vm1919_vm14 = vweird.f32 %v6003_v13  ;;  %v1923_v27 = vand.u32 2147483647, %v6003_v13  ;;  %v2396_v52 = vsub.f32 1.0, %v2395_v63  ;;  %vm2439_vm15 = vweird.f32 %v5999_v35 }
 0x32b   : > { %v2455_v22 = vmul.f32 %v2454_v60, %v5948_v50  ;;  %v2509_v11 = vadd.f32 0.112945676, %v2508_v14  ;;  %vm6083_vm0 = vmor %vm1919_vm14, %vm1920_vm13  ;;  %v2443_v15 = vand.u32 2147483647, %v5999_v35  ;;  %v2471_v4 = vadd.f32 0.4994258, %v2470_v49 }
 0x32c   : > { %v2494_v59 = vadd.f32 0.00028619796, %v2493_v17  ;;  %v1922_v13 = vsel %vm6083_vm0, %v6028_v62, %v1918_v61  ;;  %v2437_v55 = vmul.f32 %v6040_v19, %v2436_v30  ;;  %v6092_v41 = vadd.f32 %v1361_v23, %v1313_v8 }
 0x32d   : > { %v4178_v32 = vpop.eup %4177  ;;  %v1926_v46 = vor.u32 1.1754944e-38, %v1925_v1  ;;  %v2029_v63 = vadd.f32 0.112945676, %v2028_v9  ;;  %vm2399_vm1 = vweird.f32 %v5996_v18  ;;  %vm2400_vm2 = vweird.f32 %v6043_v45 }
 0x32e   : > { %v2445_v48 = vand.u32 2147483648, %v5999_v35  ;;  %vm1924_vm3 = vcmp.eq.f32.partialorder %v1923_v27, 8.507059e+37  ;;  %v1995_v51 = vmul.f32 %v4178_v32, %v6057_v5  ;;  %v2397_v60 = vmul.f32 %v6043_v45, %v2396_v52  ;;  %v1408_v52 = vpop.f32.mrf.mxu2  ;;  %vm6142_vm12 = vmor %vm2399_vm1, %vm2400_vm2 }
 0x32f   : > { %v2456_v14 = vadd.f32 0.0036580483, %v2455_v22  ;;  %v2510_v62 = vmul.f32 %v2509_v11, %v5988_v43  ;;  %v1927_v54 = vsel %vm1924_vm3, %v1926_v46, %v1922_v13  ;;  %vm2440_vm4 = vweird.f32 %v6040_v19 }
 0x330   : > { %v2472_v49 = vmul.f32 %v2471_v4, %v5948_v50  ;;  %v2495_v17 = vmul.f32 %v2494_v59, %v5988_v43  ;;  %v1996_v61 = vsub.f32 1.0, %v1995_v51  ;;  %v2438_v30 = vadd.f32 %v6040_v19, %v2437_v55  ;;  %vm6125_vm8 = vmor %vm2439_vm15, %vm2440_vm4 }
 0x331   : > { %v6105_v8 = vmul.f32 0.70710677, %v6092_v41  ;;  %v2005_v1 = vand.u32 2147483648, %v6057_v5  ;;  %v2030_v9 = vmul.f32 %v2029_v63, %v5406_v29  ;;  %vm6109_vm5 = vcmp.eq.f32.partialorder %v2403_v39, 8.507059e+37 }
 0x332   : > { %v1928_v22 = vmul.f32 %v1927_v54, %v5535_v10  ;;  %v1997_v11 = vmul.f32 %v4178_v32, %v1996_v61  ;;  %vm2000_vm6 = vweird.f32 %v4178_v32  ;;  %v2003_v34 = vand.u32 2147483647, %v6057_v5 }
 0x333   : > { %v2398_v4 = vadd.f32 %v6043_v45, %v2397_v60  ;;  %vm6116_vm7 = vcmp.eq.f32.partialorder %v2443_v15, 8.507059e+37  ;;  %v2457_v23 = vmul.f32 %v2456_v14, %v5948_v50  ;;  %v2511_v13 = vadd.f32 0.4994258, %v2510_v62 }
 0x334   : > { %v6129_v10 = vadd.f32 1.0, %v2472_v49  ;;  %v2496_v55 = vadd.f32 0.0036580483, %v2495_v17  ;;  %v1998_v46 = vadd.f32 %v4178_v32, %v1997_v11  ;;  %vm1999_vm9 = vweird.f32 %v6057_v5 }
 0x335   : > { %v2442_v15 = vsel %vm6125_vm8, %v6040_v19, %v2438_v30  ;;  %v1409_v63 = vadd.f32 %v1408_v52, %v5049_v7  ;;  %v2571_v51 = vmul.f32 %v6105_v8, %v6105_v8  ;;  %vm2001_vm10 = vmor %vm1999_vm9, %vm2000_vm6  ;;  %v2006_v35 = vor.u32 1.1754944e-38, %v2005_v1  ;;  %v1457_v30 = vpop.f32.mrf.mxu3 }
 0x336   : > { %v3811_v60 = vclamps-f32 %v1928_v22, 1.0  ;;  %v2002_v14 = vsel %vm2001_vm10, %v4178_v32, %v1998_v46  ;;  %vm2004_vm11 = vcmp.eq.f32.partialorder %v2003_v34, 8.507059e+37  ;;  %v2031_v62 = vadd.f32 0.4994258, %v2030_v9 }
 0x337   : > { %v2446_v19 = vor.u32 1.1754944e-38, %v2445_v48  ;;  %v2458_v54 = vadd.f32 0.05243302, %v2457_v23  ;;  %v2512_v49 = vmul.f32 %v2511_v13, %v5988_v43  ;;  %v2007_v17 = vsel %vm2004_vm11, %v2006_v35, %v2002_v14  ;;  %v6840_v13 = vld [vmem:[#allocation7_spill] sm:$0xff]  ;;  %v1315_v14 = vpop.f32.mrf.mxu0 }
 0x338   : > { %v2402_v61 = vsel %vm6142_vm12, %v6043_v45, %v2398_v4  ;;  %4179 = vrcp.f32 %v6129_v10  ;;  %v2497_v32 = vmul.f32 %v2496_v55, %v5988_v43  ;;  %v2008_v1 = vmul.f32 %v2007_v17, %v5568_v0  ;;  %v6842_v35 = vld [vmem:[#allocation11_spill] sm:$0xff] }
 0x339   : > { %v2406_v9 = vor.u32 1.1754944e-38, %v2405_v36  ;;  %v2423_v48 = vmul.f32 %v6075_v20, %v5755_v25  ;;  %v2447_v52 = vsel %vm6116_vm7, %v2446_v19, %v2442_v15  ;;  %v6159_v22 = vadd.f32 %v1457_v30, %v1409_v63  ;;  %v6841_v63 = vld [vmem:[#allocation9_spill] sm:$0xff]  ;;  %v1410_v19 = vpop.f32.mrf.mxu2 }
 0x33a   : > { %v6161_v11 = vmin.f32 %v2571_v51, 16.0  ;;  %v3813_v45 = vclamps-f32 %v2008_v1, 1.0  ;;  %v2820_v34 = vadd.f32 1.0, %v3811_v60  ;;  %v2032_v4 = vmul.f32 %v2031_v62, %v5406_v29  ;;  %v6844_v1 = vld [vmem:[#allocation18_spill] sm:$0xff] }
 0x33b   : > { %v3821_v23 = vclamps-f32 %v6035_v26, 1.0  ;;  %v2407_v0 = vsel %vm6109_vm5, %v2406_v9, %v2402_v61  ;;  %v2459_v18 = vmul.f32 %v2458_v54, %v5948_v50  ;;  %v6168_v36 = vadd.f32 1.0, %v2512_v49  ;;  %v6843_v49 = vld [vmem:[#allocation16_spill] sm:$0xff] }
 0x33c   : > { %v2448_v25 = vmul.f32 %v2447_v52, %v2423_v48  ;;  %v2498_v20 = vadd.f32 0.05243302, %v2497_v32  ;;  %v2822_v59 = vadd.f32 1.0, %v3813_v45  ;;  %v2104_v39 = vmul.f32 3.8918573e-05, %v6840_v13 }
 0x33d   : > { %v2829_v55 = vadd.f32 1.0, %v3820_v58  ;;  %v3822_v46 = vclamps-f32 %v6050_v33, 1.0  ;;  %v2383_v29 = vmul.f32 %v6059_v2, %v5751_v31  ;;  %v6177_v26 = vmul.f32 0.70710677, %v6159_v22 }
 0x33e   : > { %v6179_v27 = vpop.eup %4179  ;;  %v2584_v15 = vmul.f32 3.8918573e-05, %v6161_v11  ;;  %v2852_v51 = vmul.f32 %v2820_v34, %v6841_v63  ;;  %v2854_v60 = vmul.f32 %v2822_v59, %v6842_v35  ;;  %v6184_v62 = vadd.f32 1.0, %v2032_v4  ;;  %v1459_v63 = vpop.f32.mrf.mxu3 }
 0x33f   : > { %v2830_v16 = vadd.f32 1.0, %v3821_v23  ;;  %v2408_v58 = vmul.f32 %v2407_v0, %v2383_v29  ;;  %v2460_v33 = vadd.f32 0.18741608, %v2459_v18  ;;  %4181 = vrcp.f32 %v6168_v36 }
 0x340   : > { %v3824_v31 = vclamps-f32 %v2448_v25, 1.0  ;;  %v2499_v2 = vmul.f32 %v2498_v20, %v5988_v43  ;;  %v2880_v5 = vpack.c.bf16 %v2854_v60, %v2852_v51  ;;  %v2105_v54 = vadd.f32 0.001143296, %v2104_v39  ;;  %v1364_v25 = vpop.f32.mrf.mxu1 }
 0x341   : > { %v6190_v17 = vmul.f32 %v5929_v28, %v6843_v49  ;;  %v2831_v61 = vadd.f32 1.0, %v3822_v46  ;;  %v2475_v32 = vmul.f32 %v6179_v27, %v6129_v10  ;;  %v1316_v30 = vadd.f32 %v1315_v14, %v5041_v6  ;;  %v6845_v46 = vld [vmem:[#allocation6_spill] sm:$0xff] }
 0x342   : > { %v6196_v9 = vmul.f32 %v2829_v55, %v6844_v1  ;;  %v2531_v48 = vmul.f32 %v6177_v26, %v6177_v26  ;;  %v2585_v52 = vadd.f32 0.001143296, %v2584_v15  ;;  %3182 = vmatmul.bf16.gmra.mxu1 %v2880_v5  ;;  %3280 = vmatmul.bf16.gmra.mxu3 %v2880_v5  ;;  %4183 = vrcp.f32 %v6184_v62 }
 0x343   : > { %v6202_v28 = vmul.f32 %v2830_v16, %v5643_v57  ;;  %v1489_v45 = vmul.f32 0.5, %v5736_v47  ;;  %v2461_v34 = vmul.f32 %v2460_v33, %v5948_v50  ;;  %v1411_v4 = vadd.f32 %v1410_v19, %v5049_v7 }
 0x344   : > { %v3823_v23 = vclamps-f32 %v2408_v58, 1.0  ;;  %v2833_v0 = vadd.f32 1.0, %v3824_v31  ;;  %v2500_v18 = vadd.f32 0.18741608, %v2499_v2  ;;  %v2106_v20 = vmul.f32 %v2105_v54, %v6840_v13 }
 0x345   : > { %v6208_v59 = vpop.eup %4181  ;;  %v6211_v39 = vmul.f32 %v2831_v61, %v5847_v40  ;;  %v2476_v55 = vsub.f32 1.0, %v2475_v32  ;;  %v6213_v57 = vadd.f32 %v1364_v25, %v1316_v30  ;;  %v2064_v47 = vmul.f32 3.8918573e-05, %v6845_v46 }
 0x346   : > { %v6217_v50 = vmul.f32 0.5, %v5874_v53  ;;  %v6219_v29 = vmin.f32 %v2531_v48, 16.0  ;;  %v2586_v15 = vmul.f32 %v2585_v52, %v6161_v11  ;;  %v2107_v51 = vadd.f32 0.014752088, %v2106_v20 }
 0x347   : > { %v2462_v35 = vadd.f32 1.1283791, %v2461_v34  ;;  %v6223_v60 = vmul.f32 0.5, %v5919_v37  ;;  %v6225_v40 = vadd.f32 %v1459_v63, %v1411_v4  ;;  %v2065_v14 = vadd.f32 0.001143296, %v2064_v47 }
 0x348   : > { %v6227_v16 = vpop.eup %4183  ;;  %v6229_v58 = vadd.f32 1.0, %v3823_v23  ;;  %v6231_v33 = vmul.f32 %v2833_v0, %v1489_v45  ;;  %v2501_v53 = vmul.f32 %v2500_v18, %v5988_v43  ;;  %v2515_v31 = vmul.f32 %v6208_v59, %v6168_v36 }
 0x349   : > { %v2477_v2 = vmul.f32 %v6179_v27, %v2476_v55  ;;  %v2483_v5 = vand.u32 2147483647, %v6129_v10  ;;  %v6239_v37 = vmul.f32 0.70710677, %v6213_v57  ;;  %v2108_v19 = vmul.f32 %v2107_v51, %v6840_v13  ;;  %v1413_v51 = vpop.f32.mrf.mxu2 }
 0x34a   : > { %v2485_v54 = vand.u32 2147483648, %v6129_v10  ;;  %v2544_v49 = vmul.f32 3.8918573e-05, %v6219_v29  ;;  %v2587_v61 = vadd.f32 0.014752088, %v2586_v15  ;;  %v2066_v32 = vmul.f32 %v2065_v14, %v6845_v46 }
 0x34b   : > { %v2463_v43 = vmul.f32 %v2462_v35, %v5903_v3  ;;  %vm2479_vm13 = vweird.f32 %v6129_v10  ;;  %v6248_v30 = vmul.f32 0.70710677, %v6225_v40  ;;  %v2035_v1 = vmul.f32 %v6227_v16, %v6184_v62 }
 0x34c   : > { %vm2480_vm14 = vweird.f32 %v6179_v27  ;;  %v2502_v48 = vadd.f32 1.1283791, %v2501_v53  ;;  %v2516_v52 = vsub.f32 1.0, %v2515_v31  ;;  %v2144_v45 = vmul.f32 3.8918573e-05, %v5468_v42 }
 0x34d   : > { %v2478_v34 = vadd.f32 %v6179_v27, %v2477_v2  ;;  %v2651_v4 = vmul.f32 %v6239_v37, %v6239_v37  ;;  %v2109_v3 = vadd.f32 0.112945676, %v2108_v19  ;;  %v2067_v23 = vadd.f32 0.014752088, %v2066_v32  ;;  %vm6270_vm0 = vmor %vm2479_vm13, %vm2480_vm14 }
 0x34e   : > { %vm6257_vm15 = vcmp.eq.f32.partialorder %v2483_v5, 8.507059e+37  ;;  %v2486_v18 = vor.u32 1.1754944e-38, %v2485_v54  ;;  %v2545_v25 = vadd.f32 0.001143296, %v2544_v49  ;;  %v2588_v20 = vmul.f32 %v2587_v61, %v6161_v11 }
 0x34f   : > { %v2611_v55 = vmul.f32 %v6248_v30, %v6248_v30  ;;  %v2036_v47 = vsub.f32 1.0, %v2035_v1  ;;  %v2110_v15 = vmul.f32 %v2109_v3, %v6840_v13  ;;  %v2068_v63 = vmul.f32 %v2067_v23, %v6845_v46 }
 0x350   : > { %v6275_v35 = vmul.f32 %v2502_v48, %v5951_v56  ;;  %v2517_v14 = vmul.f32 %v6208_v59, %v2516_v52  ;;  %v2533_v53 = vmul.f32 2.1237322e-06, %v6219_v29  ;;  %v2145_v31 = vadd.f32 0.001143296, %v2144_v45 }
 0x351   : > { %v2482_v2 = vsel %vm6270_vm0, %v6179_v27, %v2478_v34  ;;  %v6282_v5 = vmin.f32 %v2651_v4, 16.0  ;;  %v2111_v19 = vadd.f32 0.4994258, %v2110_v15  ;;  %v2069_v10 = vadd.f32 0.112945676, %v2068_v63 }
 0x352   : > { %v2523_v54 = vand.u32 2147483647, %v6168_v36  ;;  %v2546_v49 = vmul.f32 %v2545_v25, %v6219_v29  ;;  %v2573_v56 = vmul.f32 2.1237322e-06, %v6161_v11  ;;  %v2589_v61 = vadd.f32 0.112945676, %v2588_v20 }
 0x353   : > { %vm2519_vm1 = vweird.f32 %v6168_v36  ;;  %v2525_v32 = vand.u32 2147483648, %v6168_v36  ;;  %v6289_v1 = vmin.f32 %v2611_v55, 16.0  ;;  %v2037_v48 = vmul.f32 %v6227_v16, %v2036_v47 }
 0x354   : > { %v2112_v27 = vmul.f32 %v2111_v19, %v6840_v13  ;;  %v2487_v52 = vsel %vm6257_vm15, %v2486_v18, %v2482_v2  ;;  %vm2520_vm2 = vweird.f32 %v6208_v59  ;;  %v2070_v45 = vmul.f32 %v2069_v10, %v6845_v46 }
 0x355   : > { %v2146_v34 = vmul.f32 %v2145_v31, %v5468_v42  ;;  %v6299_v4 = vadd.f32 %v6208_v59, %v2517_v14  ;;  %v2534_v3 = vadd.f32 0.00028619796, %v2533_v53  ;;  %v2664_v23 = vmul.f32 3.8918573e-05, %v6282_v5  ;;  %v1317_v14 = vpop.f32.mrf.mxu0  ;;  %vm6333_vm6 = vmor %vm2519_vm1, %vm2520_vm2 }
 0x356   : > { %v6302_v25 = vadd.f32 1.0, %v2112_v27  ;;  %v2547_v20 = vadd.f32 0.014752088, %v2546_v49  ;;  %v2574_v55 = vadd.f32 0.00028619796, %v2573_v56  ;;  %v2590_v13 = vmul.f32 %v2589_v61, %v6161_v11 }
 0x357   : > { %v2071_v0 = vadd.f32 0.4994258, %v2070_v45  ;;  %v2624_v18 = vmul.f32 3.8918573e-05, %v6289_v1  ;;  %v2038_v47 = vadd.f32 %v6227_v16, %v2037_v48  ;;  %vm2040_vm3 = vweird.f32 %v6227_v16  ;;  %v1366_v45 = vpop.f32.mrf.mxu1 }
 0x358   : > { %4185 = vrcp.f32 %v6302_v25  ;;  %v6309_v15 = vmul.f32 %v2487_v52, %v2463_v43  ;;  %v2045_v63 = vand.u32 2147483648, %v6184_v62  ;;  %v2147_v31 = vadd.f32 0.014752088, %v2146_v34 }
 0x359   : > { %v2072_v53 = vmul.f32 %v2071_v0, %v6845_v46  ;;  %v2535_v2 = vmul.f32 %v2534_v3, %v6219_v29  ;;  %v2665_v19 = vadd.f32 0.001143296, %v2664_v23  ;;  %vm2039_vm4 = vweird.f32 %v6184_v62 }
 0x35a   : > { %v2043_v10 = vand.u32 2147483647, %v6184_v62  ;;  %v2548_v49 = vmul.f32 %v2547_v20, %v6219_v29  ;;  %v2575_v56 = vmul.f32 %v2574_v55, %v6161_v11  ;;  %vm6318_vm5 = vmor %vm2039_vm4, %vm2040_vm3  ;;  %v1318_v61 = vadd.f32 %v1317_v14, %v5041_v6 }
 0x35b   : > { %v6323_v48 = vadd.f32 1.0, %v2072_v53  ;;  %v2591_v46 = vadd.f32 0.4994258, %v2590_v13  ;;  %v2625_v27 = vadd.f32 0.001143296, %v2624_v18  ;;  %v2042_v52 = vsel %vm6318_vm5, %v6227_v16, %v2038_v47 }
 0x35c   : > { %v1414_v62 = vadd.f32 %v1413_v51, %v5049_v7  ;;  %v2046_v6 = vor.u32 1.1754944e-38, %v2045_v63  ;;  %v6337_v3 = vadd.f32 %v1366_v45, %v1318_v61  ;;  %v2148_v23 = vmul.f32 %v2147_v31, %v5468_v42  ;;  %v1462_v51 = vpop.f32.mrf.mxu3 }
 0x35d   : > { %4187 = vrcp.f32 %v6323_v48  ;;  %v2522_v16 = vsel %vm6333_vm6, %v6208_v59, %v6299_v4  ;;  %v2526_v55 = vor.u32 1.1754944e-38, %v2525_v32  ;;  %v2666_v13 = vmul.f32 %v2665_v19, %v6282_v5 }
 0x35e   : > { %v4186_v20 = vpop.eup %4185  ;;  %vm2044_vm7 = vcmp.eq.f32.partialorder %v2043_v10, 8.507059e+37  ;;  %v2549_v18 = vadd.f32 0.112945676, %v2548_v49  ;;  %v2536_v14 = vadd.f32 0.0036580483, %v2535_v2  ;;  %v2626_v53 = vmul.f32 %v2625_v27, %v6289_v1  ;;  %v6857_v2 = vld [vmem:[#allocation17_spill] sm:$0xff] }
 0x35f   : > { %v2047_v47 = vsel %vm2044_vm7, %v2046_v6, %v2042_v52  ;;  %v2115_v63 = vmul.f32 %v4186_v20, %v6302_v25  ;;  %v6349_v31 = vadd.f32 %v1462_v51, %v1414_v62  ;;  %v6352_v43 = vmul.f32 0.70710677, %v6337_v3 }
 0x360   : > { %vm6356_vm8 = vcmp.eq.f32.partialorder %v2523_v54, 8.507059e+37  ;;  %v2576_v32 = vadd.f32 0.0036580483, %v2575_v56  ;;  %v2592_v4 = vmul.f32 %v2591_v46, %v6161_v11  ;;  %v2149_v10 = vadd.f32 0.112945676, %v2148_v23 }
 0x361   : > { %6854 = vst [vmem:[#allocation5_spill] sm:$0xff] %v6349_v31  ;;  %v2116_v19 = vsub.f32 1.0, %v2115_v63  ;;  %v2667_v49 = vadd.f32 0.014752088, %v2666_v13  ;;  %v2048_v61 = vmul.f32 %v2047_v47, %v6857_v2  ;;  %v2125_v27 = vand.u32 2147483648, %v6302_v25 }
 0x362   : > { %v2731_v52 = vmul.f32 %v6352_v43, %v6352_v43  ;;  %v2550_v36 = vmul.f32 %v2549_v18, %v6219_v29  ;;  %vm2120_vm9 = vweird.f32 %v4186_v20  ;;  %v2123_v56 = vand.u32 2147483647, %v6302_v25 }
 0x363   : > { %v6365_v62 = vpop.eup %4187  ;;  %v2117_v54 = vmul.f32 %v4186_v20, %v2116_v19  ;;  %v2627_v45 = vadd.f32 0.014752088, %v2626_v53  ;;  %v6370_v46 = vmul.f32 0.70710677, %v6349_v31  ;;  %v6376_v23 = vadd.f32 1.0, %v2592_v4 }
 0x364   : > { %v6372_v34 = vmin.f32 %v2731_v52, 16.0  ;;  %v2075_v6 = vmul.f32 %v6365_v62, %v6323_v48  ;;  %vm2119_vm10 = vweird.f32 %v6302_v25  ;;  %v2150_v18 = vmul.f32 %v2149_v10, %v5468_v42 }
 0x365   : > { %6858 = vst [vmem:[#allocation8_spill] sm:$0xff] %v6370_v46  ;;  %v2118_v13 = vadd.f32 %v4186_v20, %v2117_v54  ;;  %v2577_v47 = vmul.f32 %v2576_v32, %v6161_v11  ;;  %v2668_v63 = vmul.f32 %v2667_v49, %v6282_v5  ;;  %v3814_v51 = vclamps-f32 %v2048_v61, 1.0  ;;  %vm2121_vm11 = vmor %vm2119_vm10, %vm2120_vm9 }
 0x366   : > { %v2126_v53 = vor.u32 1.1754944e-38, %v2125_v27  ;;  %vm2124_vm12 = vcmp.eq.f32.partialorder %v2123_v56, 8.507059e+37  ;;  %v2744_v2 = vmul.f32 3.8918573e-05, %v6372_v34  ;;  %v2151_v52 = vadd.f32 0.4994258, %v2150_v18 }
 0x367   : > { %v2122_v19 = vsel %vm2121_vm11, %v4186_v20, %v2118_v13  ;;  %v2628_v4 = vmul.f32 %v2627_v45, %v6289_v1  ;;  %v2691_v25 = vmul.f32 %v6370_v46, %v6370_v46  ;;  %v2076_v54 = vsub.f32 1.0, %v2075_v6 }
 0x368   : > { %v2127_v0 = vsel %vm2124_vm12, %v2126_v53, %v2122_v19  ;;  %v2551_v10 = vadd.f32 0.4994258, %v2550_v36  ;;  %4189 = vrcp.f32 %v6376_v23  ;;  %v2745_v49 = vadd.f32 0.001143296, %v2744_v2 }
 0x369   : > { %v2128_v32 = vmul.f32 %v2127_v0, %v5624_v12  ;;  %v6390_v20 = vsel %vm6356_vm8, %v2526_v55, %v2522_v16  ;;  %v2578_v61 = vadd.f32 0.05243302, %v2577_v47  ;;  %v2653_v27 = vmul.f32 2.1237322e-06, %v6282_v5 }
 0x36a   : > { %v2152_v56 = vmul.f32 %v2151_v52, %v5468_v42  ;;  %v2669_v45 = vadd.f32 0.112945676, %v2668_v63  ;;  %v2823_v18 = vadd.f32 1.0, %v3814_v51  ;;  %v2746_v6 = vmul.f32 %v2745_v49, %v6372_v34  ;;  %v6859_v52 = vld [vmem:[#allocation12_spill] sm:$0xff] }
 0x36b   : > { %v3816_v13 = vclamps-f32 %v2128_v32, 1.0  ;;  %v2629_v36 = vadd.f32 0.112945676, %v2628_v4  ;;  %v6395_v53 = vmin.f32 %v2691_v25, 16.0  ;;  %v2077_v12 = vmul.f32 %v6365_v62, %v2076_v54  ;;  %v6860_v25 = vld [vmem:[#allocation14_spill] sm:$0xff] }
 0x36c   : > { %v6398_v0 = vadd.f32 1.0, %v2152_v56  ;;  %v6401_v16 = vmul.f32 %v2536_v14, %v6219_v29  ;;  %v2552_v55 = vmul.f32 %v2551_v10, %v6219_v29  ;;  %v2747_v47 = vadd.f32 0.014752088, %v2746_v6 }
 0x36d   : > { %v2825_v59 = vadd.f32 1.0, %v3816_v13  ;;  %v2579_v42 = vmul.f32 %v2578_v61, %v6161_v11  ;;  %v2613_v63 = vmul.f32 2.1237322e-06, %v6289_v1  ;;  %v2654_v51 = vadd.f32 0.00028619796, %v2653_v27 }
 0x36e   : > { %4191 = vrcp.f32 %v6398_v0  ;;  %v6407_v19 = vpop.eup %4189  ;;  %v2670_v2 = vmul.f32 %v2669_v45, %v6282_v5  ;;  %v2855_v4 = vmul.f32 %v2823_v18, %v6859_v52  ;;  %v2748_v54 = vmul.f32 %v2747_v47, %v6372_v34 }
 0x36f   : > { %v2857_v14 = vmul.f32 %v2825_v59, %v6860_v25  ;;  %v2630_v10 = vmul.f32 %v2629_v36, %v6289_v1  ;;  %v2704_v32 = vmul.f32 3.8918573e-05, %v6395_v53  ;;  %v2078_v49 = vadd.f32 %v6365_v62, %v2077_v12  ;;  %v1415_v36 = vpop.f32.mrf.mxu2 }
 0x370   : > { %vm2080_vm13 = vweird.f32 %v6365_v62  ;;  %v6417_v61 = vadd.f32 1.0, %v2552_v55  ;;  %v2749_v56 = vadd.f32 0.112945676, %v2748_v54  ;;  %v2085_v45 = vand.u32 2147483648, %v6323_v48 }
 0x371   : > { %v2881_v27 = vpack.c.bf16 %v2857_v14, %v2855_v4  ;;  %v2595_v13 = vmul.f32 %v6407_v19, %v6376_v23  ;;  %v2614_v18 = vadd.f32 0.00028619796, %v2613_v63  ;;  %vm2079_vm14 = vweird.f32 %v6323_v48 }
 0x372   : > { %v2083_v6 = vand.u32 2147483647, %v6323_v48  ;;  %v2580_v59 = vadd.f32 0.18741608, %v2579_v42  ;;  %v2671_v47 = vadd.f32 0.4994258, %v2670_v2  ;;  %v2750_v12 = vmul.f32 %v2749_v56, %v6372_v34  ;;  %vm6427_vm15 = vmor %vm2079_vm14, %vm2080_vm13 }
 0x373   : > { %3138 = vmatmul.bf16.gmra.mxu0 %v2881_v27  ;;  %3236 = vmatmul.bf16.gmra.mxu2 %v2881_v27  ;;  %v1416_v52 = vadd.f32 %v1415_v36, %v5049_v7  ;;  %v2631_v4 = vadd.f32 0.4994258, %v2630_v10  ;;  %v2655_v25 = vmul.f32 %v2654_v51, %v6282_v5  ;;  %v2705_v48 = vadd.f32 0.001143296, %v2704_v32  ;;  %v1464_v10 = vpop.f32.mrf.mxu3 }
 0x374   : > { %v4192_v63 = vpop.eup %4191  ;;  %v2082_v42 = vsel %vm6427_vm15, %v6365_v62, %v2078_v49  ;;  %v2733_v2 = vmul.f32 2.1237322e-06, %v6372_v34  ;;  %v2751_v14 = vadd.f32 0.4994258, %v2750_v12  ;;  %v2086_v54 = vor.u32 1.1754944e-38, %v2085_v45 }
 0x375   : > { %v2155_v27 = vmul.f32 %v4192_v63, %v6398_v0  ;;  %4193 = vrcp.f32 %v6417_v61  ;;  %v2596_v56 = vsub.f32 1.0, %v2595_v13  ;;  %v2615_v7 = vmul.f32 %v2614_v18, %v6289_v1 }
 0x376   : > { %vm2084_vm0 = vcmp.eq.f32.partialorder %v2083_v6, 8.507059e+37  ;;  %v2672_v51 = vmul.f32 %v2671_v47, %v6282_v5  ;;  %v6441_v31 = vadd.f32 %v1464_v10, %v1416_v52  ;;  %v2581_v62 = vmul.f32 %v2580_v59, %v6161_v11 }
 0x377   : > { %v2087_v32 = vsel %vm2084_vm0, %v2086_v54, %v2082_v42  ;;  %v2156_v36 = vsub.f32 1.0, %v2155_v27  ;;  %v2632_v49 = vmul.f32 %v2631_v4, %v6289_v1  ;;  %v2656_v45 = vadd.f32 0.0036580483, %v2655_v25 }
 0x378   : > { %v2752_v12 = vmul.f32 %v2751_v14, %v6372_v34  ;;  %v2706_v55 = vmul.f32 %v2705_v48, %v6395_v53  ;;  %v2734_v13 = vadd.f32 0.00028619796, %v2733_v2  ;;  %v2165_v18 = vand.u32 2147483648, %v6398_v0 }
 0x379   : > { %v2157_v46 = vmul.f32 %v4192_v63, %v2156_v36  ;;  %vm2599_vm1 = vweird.f32 %v6376_v23  ;;  %v2088_v6 = vmul.f32 %v2087_v32, %v5608_v44  ;;  %vm2160_vm2 = vweird.f32 %v4192_v63 }
 0x37a   : > { %v2163_v47 = vand.u32 2147483647, %v6398_v0  ;;  %v6452_v11 = vmul.f32 0.70710677, %v6441_v31  ;;  %v2597_v59 = vmul.f32 %v6407_v19, %v2596_v56  ;;  %v2603_v52 = vand.u32 2147483647, %v6376_v23 }
 0x37b   : > { %v2616_v4 = vadd.f32 0.0036580483, %v2615_v7  ;;  %v6456_v25 = vadd.f32 1.0, %v2672_v51  ;;  %v6458_v48 = vpop.eup %4193  ;;  %v2657_v42 = vmul.f32 %v2656_v45, %v6282_v5  ;;  %v6461_v2 = vadd.f32 1.0, %v2752_v12 }
 0x37c   : > { %v2158_v44 = vadd.f32 %v4192_v63, %v2157_v46  ;;  %vm2159_vm3 = vweird.f32 %v6398_v0  ;;  %v2707_v14 = vadd.f32 0.014752088, %v2706_v55  ;;  %v2735_v54 = vmul.f32 %v2734_v13, %v6372_v34 }
 0x37d   : > { %vm2161_vm4 = vmor %vm2159_vm3, %vm2160_vm2  ;;  %v2166_v27 = vor.u32 1.1754944e-38, %v2165_v18  ;;  %v2771_v56 = vmul.f32 %v6452_v11, %v6452_v11  ;;  %v6467_v7 = vadd.f32 1.0, %v2632_v49  ;;  %v3815_v10 = vclamps-f32 %v2088_v6, 1.0 }
 0x37e   : > { %v2162_v51 = vsel %vm2161_vm4, %v4192_v63, %v2158_v44  ;;  %vm2164_vm5 = vcmp.eq.f32.partialorder %v2163_v47, 8.507059e+37  ;;  %4195 = vrcp.f32 %v6456_v25  ;;  %v2883_v46 = vpack.c.bf16 %v6196_v9, %v5890_v24 }
 0x37f   : > { %v2167_v32 = vsel %vm2164_vm5, %v2166_v27, %v2162_v51  ;;  %v6470_v36 = vmin.f32 %v2771_v56, 16.0  ;;  %v2598_v0 = vadd.f32 %v6407_v19, %v2597_v59  ;;  %vm2600_vm6 = vweird.f32 %v6407_v19 }
 0x380   : > { %4197 = vrcp.f32 %v6461_v2  ;;  %v2168_v49 = vmul.f32 %v2167_v32, %v5661_v38  ;;  %v2605_v45 = vand.u32 2147483648, %v6376_v23  ;;  %v2708_v63 = vmul.f32 %v2707_v14, %v6395_v53  ;;  %vm6488_vm7 = vmor %vm2599_vm1, %vm2600_vm6 }
 0x381   : > { %v2736_v12 = vadd.f32 0.0036580483, %v2735_v54  ;;  %v2784_v55 = vmul.f32 3.8918573e-05, %v6470_v36  ;;  %v2617_v13 = vmul.f32 %v2616_v4, %v6289_v1  ;;  %4199 = vrcp.f32 %v6467_v7 }
 0x382   : > { %v3817_v24 = vclamps-f32 %v2168_v49, 1.0  ;;  %v2824_v9 = vadd.f32 1.0, %v3815_v10  ;;  %v2528_v18 = vmul.f32 %v6390_v20, %v6275_v35  ;;  %v2538_v6 = vadd.f32 0.05243302, %v6401_v16  ;;  %v6865_v10 = vld [vmem:[#allocation13_spill] sm:$0xff] }
 0x383   : > { %v2658_v47 = vadd.f32 0.05243302, %v2657_v42  ;;  %v2785_v59 = vadd.f32 0.001143296, %v2784_v55  ;;  %3143 = vmatmul.bf16.gmra.mxu0 %v2883_v46  ;;  %3241 = vmatmul.bf16.gmra.mxu2 %v2883_v46  ;;  %v2555_v4 = vmul.f32 %v6458_v48, %v6417_v61  ;;  %v2582_v44 = vadd.f32 1.1283791, %v2581_v62 }
 0x384   : > { %v2602_v35 = vsel %vm6488_vm7, %v6407_v19, %v2598_v0  ;;  %v2826_v20 = vadd.f32 1.0, %v3817_v24  ;;  %v6497_v16 = vpop.eup %4195  ;;  %v2606_v23 = vor.u32 1.1754944e-38, %v2605_v45  ;;  %v2709_v14 = vadd.f32 0.112945676, %v2708_v63  ;;  %v6866_v62 = vld [vmem:[#allocation15_spill] sm:$0xff] }
 0x385   : > { %v2737_v54 = vmul.f32 %v2736_v12, %v6372_v34  ;;  %v2786_v42 = vmul.f32 %v2785_v59, %v6470_v36  ;;  %vm2604_vm8 = vcmp.eq.f32.partialorder %v2603_v52, 8.507059e+37  ;;  %v2618_v56 = vadd.f32 0.05243302, %v2617_v13 }
 0x386   : > { %v6501_v27 = vpop.eup %4197  ;;  %v2856_v51 = vmul.f32 %v2824_v9, %v6865_v10  ;;  %v2858_v32 = vmul.f32 %v2826_v20, %v6866_v62  ;;  %v6506_v46 = vmul.f32 0.5, %v6092_v41  ;;  %v2607_v19 = vsel %vm2604_vm8, %v2606_v23, %v2602_v35 }
 0x387   : > { %v2659_v0 = vmul.f32 %v2658_v47, %v6282_v5  ;;  %v2787_v49 = vadd.f32 0.014752088, %v2786_v42  ;;  %v6509_v45 = vpop.eup %4199  ;;  %v3826_v63 = vclamps-f32 %v2528_v18, 1.0  ;;  %v2583_v12 = vmul.f32 %v2582_v44, %v6105_v8 }
 0x388   : > { %v2675_v52 = vmul.f32 %v6497_v16, %v6456_v25  ;;  %v2882_v55 = vpack.c.bf16 %v2858_v32, %v2856_v51  ;;  %v2710_v13 = vmul.f32 %v2709_v14, %v6395_v53  ;;  %v2738_v24 = vadd.f32 0.05243302, %v2737_v54 }
 0x389   : > { %v2755_v41 = vmul.f32 %v6501_v27, %v6461_v2  ;;  %v2788_v9 = vmul.f32 %v2787_v49, %v6470_v36  ;;  %v2539_v38 = vmul.f32 %v2538_v6, %v6219_v29  ;;  %v2556_v47 = vsub.f32 1.0, %v2555_v4 }
 0x38a   : > { %v2608_v59 = vmul.f32 %v2607_v19, %v2583_v12  ;;  %v2619_v18 = vmul.f32 %v2618_v56, %v6289_v1  ;;  %3187 = vmatmul.bf16.gmra.mxu1 %v2882_v55  ;;  %3285 = vmatmul.bf16.gmra.mxu3 %v2882_v55  ;;  %v6867_v8 = vclamps-f32 %v6309_v15, 1.0  ;;  %v2635_v35 = vmul.f32 %v6509_v45, %v6467_v7 }
 0x38b   : > { %v2660_v20 = vadd.f32 0.18741608, %v2659_v0  ;;  %v2789_v23 = vadd.f32 0.112945676, %v2788_v9  ;;  %v2835_v14 = vadd.f32 1.0, %v3826_v63  ;;  %v2676_v54 = vsub.f32 1.0, %v2675_v52 }
 0x38c   : > { %v6522_v44 = vadd.f32 1.0, %v6867_v8  ;;  %v2693_v42 = vmul.f32 2.1237322e-06, %v6395_v53  ;;  %v2773_v6 = vmul.f32 2.1237322e-06, %v6470_v36  ;;  %v2739_v56 = vmul.f32 %v2738_v24, %v6372_v34 }
 0x38d   : > { %v2711_v4 = vadd.f32 0.4994258, %v2710_v13  ;;  %v2756_v10 = vsub.f32 1.0, %v2755_v41  ;;  %v2790_v51 = vmul.f32 %v2789_v23, %v6470_v36  ;;  %v2540_v15 = vadd.f32 0.18741608, %v2539_v38 }
 0x38e   : > { %v2557_v62 = vmul.f32 %v6458_v48, %v2556_v47  ;;  %v3828_v32 = vclamps-f32 %v2608_v59, 1.0  ;;  %v2620_v19 = vadd.f32 0.18741608, %v2619_v18  ;;  %v2636_v49 = vsub.f32 1.0, %v2635_v35 }
 0x38f   : > { %v2661_v0 = vmul.f32 %v2660_v20, %v6282_v5  ;;  %v2791_v63 = vadd.f32 0.4994258, %v2790_v51  ;;  %v2885_v12 = vpack.c.bf16 %v6231_v33, %v6211_v39  ;;  %v6535_v52 = vmul.f32 %v2835_v14, %v6223_v60 }
 0x390   : > { %v2677_v55 = vmul.f32 %v6497_v16, %v2676_v54  ;;  %v2694_v13 = vadd.f32 0.00028619796, %v2693_v42  ;;  %v2774_v24 = vadd.f32 0.00028619796, %v2773_v6  ;;  %v2712_v41 = vmul.f32 %v2711_v4, %v6395_v53 }
 0x391   : > { %v2740_v9 = vadd.f32 0.18741608, %v2739_v56  ;;  %v2757_v38 = vmul.f32 %v6501_v27, %v2756_v10  ;;  %v2792_v47 = vmul.f32 %v2791_v63, %v6470_v36  ;;  %v2541_v5 = vmul.f32 %v2540_v15, %v6219_v29 }
 0x392   : > { %v6543_v59 = vadd.f32 %v6458_v48, %v2557_v62  ;;  %v2565_v39 = vand.u32 2147483648, %v6417_v61  ;;  %v2837_v60 = vadd.f32 1.0, %v3828_v32  ;;  %v2621_v33 = vmul.f32 %v2620_v19, %v6289_v1 }
 0x393   : > { %v2637_v18 = vmul.f32 %v6509_v45, %v2636_v49  ;;  %v2662_v8 = vadd.f32 1.1283791, %v2661_v0  ;;  %v6548_v35 = vadd.f32 1.0, %v2792_v47  ;;  %3148 = vmatmul.bf16.gmra.mxu0 %v2885_v12  ;;  %3246 = vmatmul.bf16.gmra.mxu2 %v2885_v12  ;;  %vm2560_vm9 = vweird.f32 %v6458_v48 }
 0x394   : > { %v2678_v20 = vadd.f32 %v6497_v16, %v2677_v55  ;;  %vm2680_vm10 = vweird.f32 %v6497_v16  ;;  %v2695_v29 = vmul.f32 %v2694_v13, %v6395_v53  ;;  %v2775_v23 = vmul.f32 %v2774_v24, %v6470_v36 }
 0x395   : > { %v6555_v14 = vadd.f32 1.0, %v2712_v41  ;;  %v2741_v1 = vmul.f32 %v2740_v9, %v6372_v34  ;;  %v2758_v54 = vadd.f32 %v6501_v27, %v2757_v38  ;;  %vm2760_vm11 = vweird.f32 %v6501_v27 }
 0x396   : > { %vm2679_vm12 = vweird.f32 %v6456_v25  ;;  %v2685_v42 = vand.u32 2147483648, %v6456_v25  ;;  %v2765_v6 = vand.u32 2147483648, %v6461_v2  ;;  %v2884_v4 = vpack.c.bf16 %v6202_v28, %v6190_v17 }
 0x397   : > { %vm6565_vm13 = vmor %vm2679_vm12, %vm2680_vm10  ;;  %v2683_v10 = vand.u32 2147483647, %v6456_v25  ;;  %vm2759_vm14 = vweird.f32 %v6461_v2  ;;  %v2763_v34 = vand.u32 2147483647, %v6461_v2  ;;  %4201 = vrcp.f32 %v6548_v35 }
 0x398   : > { %v2638_v51 = vadd.f32 %v6509_v45, %v2637_v18  ;;  %vm2640_vm15 = vweird.f32 %v6509_v45  ;;  %v2682_v17 = vsel %vm6565_vm13, %v6497_v16, %v2678_v20  ;;  %vm6578_vm0 = vmor %vm2759_vm14, %vm2760_vm11  ;;  %v2776_v15 = vadd.f32 0.0036580483, %v2775_v23 }
 0x399   : > { %v2696_v25 = vadd.f32 0.0036580483, %v2695_v29  ;;  %4203 = vrcp.f32 %v6555_v14  ;;  %v2742_v62 = vadd.f32 1.1283791, %v2741_v1  ;;  %v2762_v2 = vsel %vm6578_vm0, %v6501_v27, %v2758_v54 }
 0x39a   : > { %v2869_v32 = vmul.f32 %v2837_v60, %v6506_v46  ;;  %v2645_v19 = vand.u32 2147483648, %v6467_v7  ;;  %v2686_v49 = vor.u32 1.1754944e-38, %v2685_v42  ;;  %v2766_v0 = vor.u32 1.1754944e-38, %v2765_v6  ;;  %3192 = vmatmul.bf16.gmra.mxu1 %v2884_v4  ;;  %3290 = vmatmul.bf16.gmra.mxu3 %v2884_v4 }
 0x39b   : > { %vm2639_vm1 = vweird.f32 %v6467_v7  ;;  %v2643_v16 = vand.u32 2147483647, %v6467_v7  ;;  %vm2684_vm2 = vcmp.eq.f32.partialorder %v2683_v10, 8.507059e+37  ;;  %vm2764_vm3 = vcmp.eq.f32.partialorder %v2763_v34, 8.507059e+37 }
 0x39c   : > { %v2622_v63 = vadd.f32 1.1283791, %v2621_v33  ;;  %vm6592_vm4 = vmor %vm2639_vm1, %vm2640_vm15  ;;  %v2687_v27 = vsel %vm2684_vm2, %v2686_v49, %v2682_v17  ;;  %v2767_v46 = vsel %vm2764_vm3, %v2766_v0, %v2762_v2  ;;  %v2777_v55 = vmul.f32 %v2776_v15, %v6470_v36  ;;  %v2891_v49 = vld [vmem:[#allocation3 + $0xb0] sm:$0xff]  ;;  %v3173_v0 = vpop.f32.mrf.mxu1 }
 0x39d   : > { %v6597_v13 = vpop.eup %4201  ;;  %v2642_v24 = vsel %vm6592_vm4, %v6509_v45, %v2638_v51  ;;  %v2663_v7 = vmul.f32 %v2662_v8, %v6239_v37  ;;  %v2697_v41 = vmul.f32 %v2696_v25, %v6395_v53  ;;  %v2743_v9 = vmul.f32 %v2742_v62, %v6352_v43 }
 0x39e   : > { %v2542_v38 = vadd.f32 1.1283791, %v2541_v5  ;;  %vm2559_vm5 = vweird.f32 %v6417_v61  ;;  %v2563_v47 = vand.u32 2147483647, %v6417_v61  ;;  %v2646_v60 = vor.u32 1.1754944e-38, %v2645_v19  ;;  %v3124_v19 = vpop.f32.mrf.mxu0 }
 0x39f   : > { %v6607_v33 = vpop.eup %4203  ;;  %vm6611_vm6 = vmor %vm2559_vm5, %vm2560_vm9  ;;  %vm2644_vm7 = vcmp.eq.f32.partialorder %v2643_v16, 8.507059e+37  ;;  %v2688_v37 = vmul.f32 %v2687_v27, %v2663_v7  ;;  %v2768_v45 = vmul.f32 %v2767_v46, %v2743_v9  ;;  %v2887_v8 = vpack.c.bf16 %v2869_v32, %v6535_v52  ;;  %v3222_v46 = vpop.f32.mrf.mxu2 }
 0x3a0   : > { %v2562_v43 = vsel %vm6611_vm6, %v6458_v48, %v6543_v59  ;;  %v2647_v5 = vsel %vm2644_vm7, %v2646_v60, %v2642_v24  ;;  %v2778_v20 = vadd.f32 0.05243302, %v2777_v55  ;;  %v2795_v29 = vmul.f32 %v6597_v13, %v6548_v35  ;;  %v2892_v55 = vld [vmem:[#allocation3] sm:$0xff]  ;;  %v3271_v24 = vpop.f32.mrf.mxu3 }
 0x3a1   : > { %v2566_v23 = vor.u32 1.1754944e-38, %v2565_v39  ;;  %v2623_v1 = vmul.f32 %v2622_v63, %v6248_v30  ;;  %v2698_v54 = vadd.f32 0.05243302, %v2697_v41  ;;  %v1488_v42 = vmul.f32 0.5, %v5728_v21 }
 0x3a2   : > { %v2866_v52 = vmul.f32 %v6522_v44, %v6217_v50  ;;  %vm2564_vm8 = vcmp.eq.f32.partialorder %v2563_v47, 8.507059e+37  ;;  %v2715_v48 = vmul.f32 %v6607_v33, %v6555_v14  ;;  %v3830_v4 = vclamps-f32 %v2688_v37, 1.0 }
 0x3a3   : > { %v2567_v59 = vsel %vm2564_vm8, %v2566_v23, %v2562_v43  ;;  %v2648_v6 = vmul.f32 %v2647_v5, %v2623_v1  ;;  %v3832_v56 = vclamps-f32 %v2768_v45, 1.0  ;;  %3153 = vmatmul.bf16.gmra.mxu0 %v2887_v8  ;;  %3251 = vmatmul.bf16.gmra.mxu2 %v2887_v8  ;;  %v2864_v61 = vmul.f32 %v6229_v58, %v1488_v42  ;;  %v2893_v42 = vld [vmem:[#allocation3 + $0xd8] sm:$0xff] }
 0x3a4   : > { %v2543_v30 = vmul.f32 %v2542_v38, %v6177_v26  ;;  %v2779_v39 = vmul.f32 %v2778_v20, %v6470_v36  ;;  %v2796_v21 = vsub.f32 1.0, %v2795_v29  ;;  %v2699_v10 = vmul.f32 %v2698_v54, %v6395_v53 }
 0x3a5   : > { %v2716_v44 = vsub.f32 1.0, %v2715_v48  ;;  %v2886_v34 = vpack.c.bf16 %v2866_v52, %v2864_v61  ;;  %v3829_v51 = vclamps-f32 %v2648_v6, 1.0  ;;  %v2839_v17 = vadd.f32 1.0, %v3830_v4  ;;  %v2894_v6 = vld [vmem:[#allocation3 + $0x18] sm:$0xff] }
 0x3a6   : > { %v2568_v50 = vmul.f32 %v2567_v59, %v2543_v30  ;;  %v2841_v28 = vadd.f32 1.0, %v3832_v56  ;;  %v2780_v15 = vadd.f32 0.18741608, %v2779_v39  ;;  %v2797_v25 = vmul.f32 %v6597_v13, %v2796_v21  ;;  %v3126_v54 = vpop.f32.mrf.mxu0 }
 0x3a7   : > { %v1495_v62 = vmul.f32 0.5, %v6213_v57  ;;  %v2700_v2 = vadd.f32 0.18741608, %v2699_v10  ;;  %v1497_v58 = vmul.f32 0.5, %v6337_v3  ;;  %v2717_v32 = vmul.f32 %v6607_v33, %v2716_v44  ;;  %v3224_v59 = vpop.f32.mrf.mxu2 }
 0x3a8   : > { %v3827_v26 = vclamps-f32 %v2568_v50, 1.0  ;;  %v2838_v16 = vadd.f32 1.0, %v3829_v51  ;;  %v3174_v27 = vadd.f32 %v3173_v0, %v3124_v19  ;;  %v2781_v57 = vmul.f32 %v2780_v15, %v6470_v36  ;;  %v3273_v4 = vpop.f32.mrf.mxu3  ;;  %v2895_v15 = vld [vmem:[#allocation3 + $0x50] sm:$0xff] }
 0x3a9   : > { %v2871_v63 = vmul.f32 %v2839_v17, %v1495_v62  ;;  %v2873_v12 = vmul.f32 %v2841_v28, %v1497_v58  ;;  %v2798_v7 = vadd.f32 %v6597_v13, %v2797_v25  ;;  %vm2800_vm9 = vweird.f32 %v6597_v13 }
 0x3aa   : > { %3197 = vmatmul.bf16.gmra.mxu1 %v2886_v34  ;;  %3295 = vmatmul.bf16.gmra.mxu3 %v2886_v34  ;;  %v3272_v3 = vadd.f32 %v3271_v24, %v3222_v46  ;;  %v2701_v41 = vmul.f32 %v2700_v2, %v6395_v53  ;;  %vm2720_vm10 = vweird.f32 %v6607_v33  ;;  %v2805_v9 = vand.u32 2147483648, %v6548_v35  ;;  %v2897_v24 = vld [vmem:[#allocation3 + $0x30] sm:$0xff] }
 0x3ab   : > { %v3311_v38 = vadd.f32 %v3174_v27, %v2891_v49  ;;  %v2718_v47 = vadd.f32 %v6607_v33, %v2717_v32  ;;  %vm2799_vm11 = vweird.f32 %v6548_v35  ;;  %v2803_v60 = vand.u32 2147483647, %v6548_v35 }
 0x3ac   : > { %v3312_v18 = vadd.f32 %v3272_v3, %v2892_v55  ;;  %v2836_v36 = vadd.f32 1.0, %v3827_v26  ;;  %v1494_v37 = vmul.f32 0.5, %v6225_v40  ;;  %v2725_v45 = vand.u32 2147483648, %v6555_v14  ;;  %vm6649_vm12 = vmor %vm2799_vm11, %vm2800_vm9 }
 0x3ad   : > { %v2889_v53 = vpack.c.bf16 %v2873_v12, %v2871_v63  ;;  %3343 = vst [vmem:[#allocation3 + $0xb0] sm:$0xff] %v3311_v38  ;;  %vm2719_vm13 = vweird.f32 %v6555_v14  ;;  %v2723_v43 = vand.u32 2147483647, %v6555_v14  ;;  %v2782_v5 = vadd.f32 1.1283791, %v2781_v57  ;;  %v6881_v12 = vld [vmem:[#allocation5_spill] sm:$0xff] }
 0x3ae   : > { %v2802_v35 = vsel %vm6649_vm12, %v6597_v13, %v2798_v7  ;;  %3344 = vst [vmem:[#allocation3] sm:$0xff] %v3312_v18  ;;  %v1492_v40 = vmul.f32 0.5, %v6159_v22  ;;  %vm6661_vm14 = vmor %vm2719_vm13, %vm2720_vm10  ;;  %v2806_v29 = vor.u32 1.1754944e-38, %v2805_v9  ;;  %v2870_v23 = vmul.f32 %v2838_v16, %v1494_v37  ;;  %v3175_v13 = vpop.f32.mrf.mxu1  ;;  %v3129_v28 = vpop.f32.mrf.mxu0  ;;  %v2899_v37 = vld [vmem:[#allocation3 + $0x80] sm:$0xff] }
 0x3af   : > { %v2702_v1 = vadd.f32 1.1283791, %v2701_v41  ;;  %v2722_v14 = vsel %vm6661_vm14, %v6607_v33, %v2718_v47  ;;  %vm2804_vm15 = vcmp.eq.f32.partialorder %v2803_v60, 8.507059e+37  ;;  %v2726_v52 = vor.u32 1.1754944e-38, %v2725_v45  ;;  %v6880_v33 = vld [vmem:[#allocation8_spill] sm:$0xff]  ;;  %v3227_v2 = vpop.f32.mrf.mxu2  ;;  %v2898_v41 = vld [vmem:[#allocation3 + $0x48] sm:$0xff] }
 0x3b0   : > { %v2807_v48 = vsel %vm2804_vm15, %v2806_v29, %v2802_v35  ;;  %v3176_v22 = vadd.f32 %v3175_v13, %v3126_v54  ;;  %v2868_v56 = vmul.f32 %v2836_v36, %v1492_v40  ;;  %vm2724_vm0 = vcmp.eq.f32.partialorder %v2723_v43, 8.507059e+37  ;;  %v3276_v58 = vpop.f32.mrf.mxu3  ;;  %v2900_v43 = vld [vmem:[#allocation3 + $0x88] sm:$0xff] }
 0x3b1   : > { %v2783_v61 = vmul.f32 %v2782_v5, %v6452_v11  ;;  %v3274_v30 = vadd.f32 %v3273_v4, %v3224_v59  ;;  %v2727_v39 = vsel %vm2724_vm0, %v2726_v52, %v2722_v14  ;;  %v2703_v10 = vmul.f32 %v2702_v1, %v6880_v33  ;;  %v2896_v11 = vld [vmem:[#allocation3 + $0x68] sm:$0xff] }
 0x3b2   : > { %v3313_v21 = vadd.f32 %v3176_v22, %v2893_v42  ;;  %v2888_v44 = vpack.c.bf16 %v2870_v23, %v2868_v56  ;;  %v3277_v32 = vadd.f32 %v3276_v58, %v3227_v2  ;;  %v1498_v63 = vmul.f32 0.5, %v6441_v31  ;;  %v2901_v23 = vld [vmem:[#allocation3 + $0xe8] sm:$0xff]  ;;  %v2902_v42 = vld [vmem:[#allocation3 + $0xb8] sm:$0xff] }
 0x3b3   : > { %3158 = vmatmul.bf16.gmra.mxu0 %v2889_v53  ;;  %3256 = vmatmul.bf16.gmra.mxu2 %v2889_v53  ;;  %v2808_v50 = vmul.f32 %v2807_v48, %v2783_v61  ;;  %v3314_v34 = vadd.f32 %v3274_v30, %v2894_v6  ;;  %v2728_v51 = vmul.f32 %v2727_v39, %v2703_v10  ;;  %v1496_v27 = vmul.f32 0.5, %v6881_v12  ;;  %v2903_v61 = vld [vmem:[#allocation3 + $0x60] sm:$0xff]  ;;  %v2904_v10 = vld [vmem:[#allocation3 + $0xf0] sm:$0xff]  ;;  %v2906_v2 = vld [vmem:[#allocation3 + $0x78] sm:$0xff] }
 0x3b4   : > { %3345 = vst [vmem:[#allocation3 + $0xd8] sm:$0xff] %v3313_v21  ;;  %v3316_v0 = vadd.f32 %v3277_v32, %v2896_v11 }
 0x3b5   : > { %3346 = vst [vmem:[#allocation3 + $0x18] sm:$0xff] %v3314_v34  ;;  %v3833_v17 = vclamps-f32 %v2808_v50, 1.0  ;;  %v3831_v26 = vclamps-f32 %v2728_v51, 1.0  ;;  %v2905_v34 = vld [vmem:[#allocation3 + $0x8] sm:$0xff] }
 0x3b6   : > { %v3178_v25 = vpop.f32.mrf.mxu1  ;;  %3348 = vst [vmem:[#allocation3 + $0x68] sm:$0xff] %v3316_v0  ;;  %v3131_v55 = vpop.f32.mrf.mxu0 }
 0x3b7   : > { %v3179_v62 = vadd.f32 %v3178_v25, %v3129_v28  ;;  %v2842_v49 = vadd.f32 1.0, %v3833_v17  ;;  %v2840_v16 = vadd.f32 1.0, %v3831_v26  ;;  %v3229_v3 = vpop.f32.mrf.mxu2  ;;  %v2907_v26 = vld [vmem:[#allocation3 + $0x38] sm:$0xff] }
 0x3b8   : > { %v3278_v9 = vpop.f32.mrf.mxu3 }
 0x3b9   : > { %v3315_v19 = vadd.f32 %v3179_v62, %v2895_v15  ;;  %v2874_v46 = vmul.f32 %v2842_v49, %v1498_v63  ;;  %v2872_v38 = vmul.f32 %v2840_v16, %v1496_v27  ;;  %v3279_v47 = vadd.f32 %v3278_v9, %v3229_v3  ;;  %v2908_v63 = vld [vmem:[#allocation3 + $0x58] sm:$0xff]  ;;  %v2910_v9 = vld [vmem:[#allocation3 + $0xc8] sm:$0xff] }
 0x3ba   : > { %3202 = vmatmul.bf16.gmra.mxu1 %v2888_v44  ;;  %3300 = vmatmul.bf16.gmra.mxu3 %v2888_v44 }
 0x3bb   : > { %3347 = vst [vmem:[#allocation3 + $0x50] sm:$0xff] %v3315_v19  ;;  %v2890_v18 = vpack.c.bf16 %v2874_v46, %v2872_v38  ;;  %v3318_v36 = vadd.f32 %v3279_v47, %v2898_v41 }
 0x3bd   : > { %3350 = vst [vmem:[#allocation3 + $0x48] sm:$0xff] %v3318_v36 }
 0x3be   : > { %v3180_v57 = vpop.f32.mrf.mxu1  ;;  %v3134_v31 = vpop.f32.mrf.mxu0 }
 0x3bf   : > { %v3181_v7 = vadd.f32 %v3180_v57, %v3131_v55  ;;  %v3232_v53 = vpop.f32.mrf.mxu2  ;;  %v2909_v55 = vld [vmem:[#allocation3 + $0x40] sm:$0xff] }
 0x3c1   : > { %v3317_v60 = vadd.f32 %v3181_v7, %v2897_v24 }
 0x3c3   : > { %3349 = vst [vmem:[#allocation3 + $0x30] sm:$0xff] %v3317_v60  ;;  %v2911_v60 = vld [vmem:[#allocation3 + $0xe0] sm:$0xff] }
 0x3c5   : > { %v3281_v5 = vpop.f32.mrf.mxu3 }
 0x3c6   : > { %v3183_v45 = vpop.f32.mrf.mxu1  ;;  %v3282_v35 = vadd.f32 %v3281_v5, %v3232_v53  ;;  %v3136_v29 = vpop.f32.mrf.mxu0 }
 0x3c7   : > { %v3184_v8 = vadd.f32 %v3183_v45, %v3134_v31  ;;  %v3234_v54 = vpop.f32.mrf.mxu2 }
 0x3c8   : > { %v3320_v20 = vadd.f32 %v3282_v35, %v2900_v43  ;;  %v2913_v35 = vld [vmem:[#allocation3 + $0x70] sm:$0xff] }
 0x3c9   : > { %v3319_v40 = vadd.f32 %v3184_v8, %v2899_v37  ;;  %v2912_v8 = vld [vmem:[#allocation3 + $0x90] sm:$0xff] }
 0x3ca   : > { %3207 = vmatmul.bf16.gmra.mxu1 %v2890_v18  ;;  %3305 = vmatmul.bf16.gmra.mxu3 %v2890_v18  ;;  %3352 = vst [vmem:[#allocation3 + $0x88] sm:$0xff] %v3320_v20 }
 0x3cb   : > { %3351 = vst [vmem:[#allocation3 + $0x80] sm:$0xff] %v3319_v40 }
 0x3cd   : > { %v3283_v13 = vpop.f32.mrf.mxu3 }
 0x3ce   : > { %v3185_v1 = vpop.f32.mrf.mxu1  ;;  %v3284_v52 = vadd.f32 %v3283_v13, %v3234_v54  ;;  %v2915_v13 = vld [vmem:[#allocation3 + $0xa8] sm:$0xff] }
 0x3cf   : > { %v3186_v14 = vadd.f32 %v3185_v1, %v3136_v29 }
 0x3d0   : > { %v3322_v22 = vadd.f32 %v3284_v52, %v2902_v42 }
 0x3d1   : > { %v3321_v48 = vadd.f32 %v3186_v14, %v2901_v23  ;;  %v2914_v14 = vld [vmem:[#allocation3 + $0xc0] sm:$0xff] }
 0x3d2   : > { %3354 = vst [vmem:[#allocation3 + $0xb8] sm:$0xff] %v3322_v22 }
 0x3d3   : > { %3353 = vst [vmem:[#allocation3 + $0xe8] sm:$0xff] %v3321_v48 }
 0x3f0   : > { %v3139_v59 = vpop.f32.mrf.mxu0 }
 0x3f6   : > { %v3237_v6 = vpop.f32.mrf.mxu2 }
 0x3f8   : > { %v3141_v4 = vpop.f32.mrf.mxu0 }
 0x3fe   : > { %v3239_v56 = vpop.f32.mrf.mxu2 }
 0x400   : > { %v3144_v21 = vpop.f32.mrf.mxu0 }
 0x406   : > { %v3242_v17 = vpop.f32.mrf.mxu2 }
 0x407   : > { %v3188_v30 = vpop.f32.mrf.mxu1 }
 0x408   : > { %v3189_v39 = vadd.f32 %v3188_v30, %v3139_v59  ;;  %v3146_v62 = vpop.f32.mrf.mxu0 }
 0x40a   : > { %v3323_v33 = vadd.f32 %v3189_v39, %v2903_v61  ;;  %v2917_v39 = vld [vmem:[#allocation3 + $0x10] sm:$0xff] }
 0x40c   : > { %3355 = vst [vmem:[#allocation3 + $0x60] sm:$0xff] %v3323_v33 }
 0x40d   : > { %v3286_v50 = vpop.f32.mrf.mxu3 }
 0x40e   : > { %v3287_v44 = vadd.f32 %v3286_v50, %v3237_v6  ;;  %v3244_v0 = vpop.f32.mrf.mxu2 }
 0x40f   : > { %v3190_v51 = vpop.f32.mrf.mxu1 }
 0x410   : > { %v3324_v28 = vadd.f32 %v3287_v44, %v2904_v10  ;;  %v3191_v15 = vadd.f32 %v3190_v51, %v3141_v4  ;;  %v3149_v27 = vpop.f32.mrf.mxu0  ;;  %v2918_v51 = vld [vmem:[#allocation3 + $0x28] sm:$0xff] }
 0x412   : > { %3356 = vst [vmem:[#allocation3 + $0xf0] sm:$0xff] %v3324_v28  ;;  %v3325_v25 = vadd.f32 %v3191_v15, %v2905_v34  ;;  %v2919_v15 = vld [vmem:[#allocation3 + $0xa0] sm:$0xff] }
 0x414   : > { %3357 = vst [vmem:[#allocation3 + $0x8] sm:$0xff] %v3325_v25 }
 0x415   : > { %v3288_v11 = vpop.f32.mrf.mxu3 }
 0x416   : > { %v3289_v58 = vadd.f32 %v3288_v11, %v3239_v56  ;;  %v3247_v41 = vpop.f32.mrf.mxu2  ;;  %v2916_v56 = vld [vmem:[#allocation3 + $0xd0] sm:$0xff] }
 0x417   : > { %v3193_v32 = vpop.f32.mrf.mxu1 }
 0x418   : > { %v3326_v19 = vadd.f32 %v3289_v58, %v2906_v2  ;;  %v3194_v49 = vadd.f32 %v3193_v32, %v3144_v21  ;;  %v3151_v36 = vpop.f32.mrf.mxu0 }
 0x41a   : > { %3358 = vst [vmem:[#allocation3 + $0x78] sm:$0xff] %v3326_v19  ;;  %v3327_v16 = vadd.f32 %v3194_v49, %v2907_v26  ;;  %v2920_v26 = vld [vmem:[#allocation3 + $0xf8] sm:$0xff] }
 0x41c   : > { %3359 = vst [vmem:[#allocation3 + $0x38] sm:$0xff] %v3327_v16 }
 0x41d   : > { %v3291_v12 = vpop.f32.mrf.mxu3 }
 0x41e   : > { %v3292_v46 = vadd.f32 %v3291_v12, %v3242_v17  ;;  %v3249_v43 = vpop.f32.mrf.mxu2 }
 0x41f   : > { %v3195_v24 = vpop.f32.mrf.mxu1 }
 0x420   : > { %v3328_v57 = vadd.f32 %v3292_v46, %v2908_v63  ;;  %v3196_v7 = vadd.f32 %v3195_v24, %v3146_v62  ;;  %v3154_v23 = vpop.f32.mrf.mxu0 }
 0x422   : > { %3360 = vst [vmem:[#allocation3 + $0x58] sm:$0xff] %v3328_v57  ;;  %v3329_v3 = vadd.f32 %v3196_v7, %v2909_v55  ;;  %v2922_v55 = vld [vmem:[#allocation3 + $0x98] sm:$0xff] }
 0x424   : > { %3361 = vst [vmem:[#allocation3 + $0x40] sm:$0xff] %v3329_v3 }
 0x425   : > { %v3293_v38 = vpop.f32.mrf.mxu3 }
 0x426   : > { %v3294_v47 = vadd.f32 %v3293_v38, %v3244_v0  ;;  %v3252_v48 = vpop.f32.mrf.mxu2  ;;  %v2921_v0 = vld [vmem:[#allocation3 + $0x20] sm:$0xff] }
 0x427   : > { %v3198_v18 = vpop.f32.mrf.mxu1 }
 0x428   : > { %v3330_v31 = vadd.f32 %v3294_v47, %v2910_v9  ;;  %v3199_v37 = vadd.f32 %v3198_v18, %v3149_v27  ;;  %v3156_v4 = vpop.f32.mrf.mxu0 }
 0x42a   : > { %3362 = vst [vmem:[#allocation3 + $0xc8] sm:$0xff] %v3330_v31  ;;  %v3331_v45 = vadd.f32 %v3199_v37, %v2911_v60 }
 0x42c   : > { %3363 = vst [vmem:[#allocation3 + $0xe0] sm:$0xff] %v3331_v45 }
 0x42d   : > { %v3296_v53 = vpop.f32.mrf.mxu3 }
 0x42e   : > { %v3297_v5 = vadd.f32 %v3296_v53, %v3247_v41  ;;  %v3254_v50 = vpop.f32.mrf.mxu2 }
 0x42f   : > { %v3200_v40 = vpop.f32.mrf.mxu1 }
 0x430   : > { %v3332_v20 = vadd.f32 %v3297_v5, %v2912_v8  ;;  %v3201_v29 = vadd.f32 %v3200_v40, %v3151_v36  ;;  %v3159_v34 = vpop.f32.mrf.mxu0 }
 0x432   : > { %3364 = vst [vmem:[#allocation3 + $0x90] sm:$0xff] %v3332_v20  ;;  %v3333_v1 = vadd.f32 %v3201_v29, %v2913_v35 }
 0x434   : > { %3365 = vst [vmem:[#allocation3 + $0x70] sm:$0xff] %v3333_v1 }
 0x435   : > { %v3298_v54 = vpop.f32.mrf.mxu3 }
 0x436   : > { %v3299_v42 = vadd.f32 %v3298_v54, %v3249_v43  ;;  %v3257_v58 = vpop.f32.mrf.mxu2 }
 0x437   : > { %v3203_v52 = vpop.f32.mrf.mxu1 }
 0x438   : > { %v3334_v22 = vadd.f32 %v3299_v42, %v2914_v14  ;;  %v3204_v59 = vadd.f32 %v3203_v52, %v3154_v23  ;;  %v3161_v49 = vpop.f32.mrf.mxu0 }
 0x43a   : > { %3366 = vst [vmem:[#allocation3 + $0xc0] sm:$0xff] %v3334_v22  ;;  %v3335_v6 = vadd.f32 %v3204_v59, %v2915_v13 }
 0x43c   : > { %3367 = vst [vmem:[#allocation3 + $0xa8] sm:$0xff] %v3335_v6 }
 0x43d   : > { %v3301_v61 = vpop.f32.mrf.mxu3 }
 0x43e   : > { %v3302_v30 = vadd.f32 %v3301_v61, %v3252_v48  ;;  %v3259_v46 = vpop.f32.mrf.mxu2 }
 0x43f   : > { %v3205_v21 = vpop.f32.mrf.mxu1 }
 0x440   : > { %v3336_v33 = vadd.f32 %v3302_v30, %v2916_v56  ;;  %v3206_v10 = vadd.f32 %v3205_v21, %v3156_v4 }
 0x442   : > { %3368 = vst [vmem:[#allocation3 + $0xd0] sm:$0xff] %v3336_v33  ;;  %v3337_v44 = vadd.f32 %v3206_v10, %v2917_v39 }
 0x444   : > { %3369 = vst [vmem:[#allocation3 + $0x10] sm:$0xff] %v3337_v44 }
 0x445   : > { %v3303_v17 = vpop.f32.mrf.mxu3 }
 0x446   : > { %v3304_v28 = vadd.f32 %v3303_v17, %v3254_v50 }
 0x447   : > { %v3208_v25 = vpop.f32.mrf.mxu1 }
 0x448   : > { %v3338_v62 = vadd.f32 %v3304_v28, %v2918_v51  ;;  %v3209_v2 = vadd.f32 %v3208_v25, %v3159_v34 }
 0x44a   : > { %3370 = vst [vmem:[#allocation3 + $0x28] sm:$0xff] %v3338_v62  ;;  %v3339_v11 = vadd.f32 %v3209_v2, %v2919_v15 }
 0x44c   : > { %3371 = vst [vmem:[#allocation3 + $0xa0] sm:$0xff] %v3339_v11 }
 0x44d   : > { %v3306_v32 = vpop.f32.mrf.mxu3 }
 0x44e   : > { %v3307_v19 = vadd.f32 %v3306_v32, %v3257_v58 }
 0x44f   : > { %v3210_v16 = vpop.f32.mrf.mxu1 }
 0x450   : > { %v3340_v63 = vadd.f32 %v3307_v19, %v2920_v26  ;;  %v3211_v12 = vadd.f32 %v3210_v16, %v3161_v49 }
 0x452   : > { %3372 = vst [vmem:[#allocation3 + $0xf8] sm:$0xff] %v3340_v63  ;;  %v3341_v27 = vadd.f32 %v3211_v12, %v2921_v0 }
 0x454   : > { %3373 = vst [vmem:[#allocation3 + $0x20] sm:$0xff] %v3341_v27 }
 0x455   : > { %v3308_v24 = vpop.f32.mrf.mxu3 }
 0x456   : > { %v3309_v57 = vadd.f32 %v3308_v24, %v3259_v46  ;;  %3378 = sbr.rel (%p3962_p0) target bundleno = 1152 (0x480), region = 86 }
 0x458   : > { %v3342_v7 = vadd.f32 %v3309_v57, %v2922_v55 }
 0x45a   : > { %3374 = vst [vmem:[#allocation3 + $0x98] sm:$0xff] %v3342_v7 }
 0x45b   : > { %v3379_v3 = vld [vmem:[#allocation3 + $0xb0] sm:$0xff]  ;;  %v3411_v41 = vld [vmem:[%s6769_s4] sm:$0x3]  ;;  %v3381_v60 = vld [vmem:[#allocation3 + $0xd8] sm:$0xff] }
 0x45c   : > { %v3380_v9 = vld [vmem:[#allocation3] sm:$0xff]  ;;  %v6676_v38 = vperm.slane %v3411_v41, 0  ;;  %v6678_v47 = vperm.slane %v3411_v41, 1  ;;  %v3382_v18 = vld [vmem:[#allocation3 + $0x18] sm:$0xff]  ;;  %v3383_v36 = vld [vmem:[#allocation3 + $0x50] sm:$0xff] }
 0x45d   : > { %v3384_v8 = vld [vmem:[#allocation3 + $0x68] sm:$0xff]  ;;  %v3385_v43 = vld [vmem:[#allocation3 + $0x30] sm:$0xff]  ;;  %v3387_v20 = vld [vmem:[#allocation3 + $0x80] sm:$0xff] }
 0x45e   : > { %v3417_v31 = vadd.f32 %v6676_v38, %v3379_v3  ;;  %v3418_v37 = vadd.f32 %v6678_v47, %v3380_v9  ;;  %v3419_v45 = vadd.f32 %v6676_v38, %v3381_v60  ;;  %v3420_v53 = vadd.f32 %v6678_v47, %v3382_v18  ;;  %v3386_v35 = vld [vmem:[#allocation3 + $0x48] sm:$0xff]  ;;  %v3390_v42 = vld [vmem:[#allocation3 + $0xb8] sm:$0xff]  ;;  %v3391_v52 = vld [vmem:[#allocation3 + $0x60] sm:$0xff] }
 0x45f   : > { %v3421_v5 = vadd.f32 %v6676_v38, %v3383_v36  ;;  %v3422_v40 = vadd.f32 %v6678_v47, %v3384_v8  ;;  %v3423_v29 = vadd.f32 %v6676_v38, %v3385_v43  ;;  %v3388_v23 = vld [vmem:[#allocation3 + $0x88] sm:$0xff]  ;;  %v3424_v1 = vadd.f32 %v6678_v47, %v3386_v35  ;;  %v3392_v22 = vld [vmem:[#allocation3 + $0xf0] sm:$0xff]  ;;  %v3394_v56 = vld [vmem:[#allocation3 + $0x78] sm:$0xff] }
 0x460   : > { %3449 = vst [vmem:[%s4432_s8] sm:$0xff] %v3417_v31  ;;  %v3389_v14 = vld [vmem:[#allocation3 + $0xe8] sm:$0xff]  ;;  %v3425_v54 = vadd.f32 %v6676_v38, %v3387_v20  ;;  %v3426_v13 = vadd.f32 %v6678_v47, %v3388_v23  ;;  %v3428_v59 = vadd.f32 %v6678_v47, %v3390_v42  ;;  %v3429_v4 = vadd.f32 %v6676_v38, %v3391_v52  ;;  %v3395_v30 = vld [vmem:[#allocation3 + $0x38] sm:$0xff]  ;;  %v3397_v10 = vld [vmem:[#allocation3 + $0x40] sm:$0xff] }
 0x461   : > { %3450 = vst [vmem:[%s4432_s8 + $0x8] sm:$0xff] %v3418_v37  ;;  %v3427_v48 = vadd.f32 %v6676_v38, %v3389_v14  ;;  %v3393_v6 = vld [vmem:[#allocation3 + $0x8] sm:$0xff]  ;;  %v3430_v61 = vadd.f32 %v6678_v47, %v3392_v22  ;;  %v3396_v21 = vld [vmem:[#allocation3 + $0x58] sm:$0xff]  ;;  %v3432_v33 = vadd.f32 %v6678_v47, %v3394_v56  ;;  %v3433_v50 = vadd.f32 %v6676_v38, %v3395_v30  ;;  %v3399_v51 = vld [vmem:[#allocation3 + $0xe0] sm:$0xff] }
 0x462   : > { %3451 = vst [vmem:[%s4432_s8 + $0x10] sm:$0xff] %v3419_v45  ;;  %v3431_v39 = vadd.f32 %v6676_v38, %v3393_v6  ;;  %v3398_v44 = vld [vmem:[#allocation3 + $0xc8] sm:$0xff]  ;;  %v3434_v34 = vadd.f32 %v6678_v47, %v3396_v21  ;;  %v3435_v17 = vadd.f32 %v6676_v38, %v3397_v10  ;;  %v3400_v28 = vld [vmem:[#allocation3 + $0x90] sm:$0xff]  ;;  %v3437_v62 = vadd.f32 %v6676_v38, %v3399_v51  ;;  %v3402_v2 = vld [vmem:[#allocation3 + $0xc0] sm:$0xff] }
 0x463   : > { %3452 = vst [vmem:[%s4432_s8 + $0x18] sm:$0xff] %v3420_v53  ;;  %v3436_v15 = vadd.f32 %v6678_v47, %v3398_v44  ;;  %v3401_v25 = vld [vmem:[#allocation3 + $0x70] sm:$0xff]  ;;  %v3438_v11 = vadd.f32 %v6678_v47, %v3400_v28  ;;  %v3403_v58 = vld [vmem:[#allocation3 + $0xa8] sm:$0xff]  ;;  %v3440_v19 = vadd.f32 %v6678_v47, %v3402_v2  ;;  %v3407_v12 = vld [vmem:[#allocation3 + $0xa0] sm:$0xff] }
 0x464   : > { %3453 = vst [vmem:[%s4432_s8 + $0x20] sm:$0xff] %v3421_v5  ;;  %v3439_v26 = vadd.f32 %v6676_v38, %v3401_v25  ;;  %v3404_v32 = vld [vmem:[#allocation3 + $0xd0] sm:$0xff]  ;;  %v3441_v0 = vadd.f32 %v6676_v38, %v3403_v58  ;;  %v3406_v16 = vld [vmem:[#allocation3 + $0x28] sm:$0xff]  ;;  %v3408_v46 = vld [vmem:[#allocation3 + $0xf8] sm:$0xff]  ;;  %v3445_v57 = vadd.f32 %v6676_v38, %v3407_v12 }
 0x465   : > { %3454 = vst [vmem:[%s4432_s8 + $0x28] sm:$0xff] %v3422_v40  ;;  %v3405_v49 = vld [vmem:[#allocation3 + $0x10] sm:$0xff]  ;;  %v3442_v63 = vadd.f32 %v6678_v47, %v3404_v32  ;;  %v3444_v55 = vadd.f32 %v6678_v47, %v3406_v16  ;;  %v3409_v24 = vld [vmem:[#allocation3 + $0x20] sm:$0xff]  ;;  %v3410_v7 = vld [vmem:[#allocation3 + $0x98] sm:$0xff]  ;;  %v3446_v3 = vadd.f32 %v6678_v47, %v3408_v46 }
 0x466   : > { %3455 = vst [vmem:[%s4432_s8 + $0x30] sm:$0xff] %v3423_v29  ;;  %v3443_v27 = vadd.f32 %v6676_v38, %v3405_v49  ;;  %v3447_v41 = vadd.f32 %v6676_v38, %v3409_v24  ;;  %v3448_v9 = vadd.f32 %v6678_v47, %v3410_v7 }
 0x467   : > { %3456 = vst [vmem:[%s4432_s8 + $0x38] sm:$0xff] %v3424_v1 }
 0x468   : > { %3457 = vst [vmem:[%s4432_s8 + $0x40] sm:$0xff] %v3425_v54 }
 0x469   : > { %3458 = vst [vmem:[%s4432_s8 + $0x48] sm:$0xff] %v3426_v13 }
 0x46a   : > { %3459 = vst [vmem:[%s4432_s8 + $0x50] sm:$0xff] %v3427_v48 }
 0x46b   : > { %3460 = vst [vmem:[%s4432_s8 + $0x58] sm:$0xff] %v3428_v59 }
 0x46c   : > { %3461 = vst [vmem:[%s4432_s8 + $0x60] sm:$0xff] %v3429_v4 }
 0x46d   : > { %3462 = vst [vmem:[%s4432_s8 + $0x68] sm:$0xff] %v3430_v61 }
 0x46e   : > { %3463 = vst [vmem:[%s4432_s8 + $0x70] sm:$0xff] %v3431_v39 }
 0x46f   : > { %3464 = vst [vmem:[%s4432_s8 + $0x78] sm:$0xff] %v3432_v33 }
 0x470   : > { %3465 = vst [vmem:[%s4432_s8 + $0x80] sm:$0xff] %v3433_v50 }
 0x471   : > { %3466 = vst [vmem:[%s4432_s8 + $0x88] sm:$0xff] %v3434_v34 }
 0x472   : > { %3467 = vst [vmem:[%s4432_s8 + $0x90] sm:$0xff] %v3435_v17 }
 0x473   : > { %3468 = vst [vmem:[%s4432_s8 + $0x98] sm:$0xff] %v3436_v15 }
 0x474   : > { %3469 = vst [vmem:[%s4432_s8 + $0xa0] sm:$0xff] %v3437_v62 }
 0x475   : > { %3470 = vst [vmem:[%s4432_s8 + $0xa8] sm:$0xff] %v3438_v11 }
 0x476   : > { %3471 = vst [vmem:[%s4432_s8 + $0xb0] sm:$0xff] %v3439_v26 }
 0x477   : > { %3472 = vst [vmem:[%s4432_s8 + $0xb8] sm:$0xff] %v3440_v19 }
 0x478   : > { %3473 = vst [vmem:[%s4432_s8 + $0xc0] sm:$0xff] %v3441_v0 }
 0x479   : > { %3474 = vst [vmem:[%s4432_s8 + $0xc8] sm:$0xff] %v3442_v63 }
 0x47a   : > { %3475 = vst [vmem:[%s4432_s8 + $0xd0] sm:$0xff] %v3443_v27 }
 0x47b   : > { %3476 = vst [vmem:[%s4432_s8 + $0xd8] sm:$0xff] %v3444_v55 }
 0x47c   : > { %3477 = vst [vmem:[%s4432_s8 + $0xe0] sm:$0xff] %v3445_v57 }
 0x47d   : > { %3478 = vst [vmem:[%s4432_s8 + $0xe8] sm:$0xff] %v3446_v3 }
 0x47e   : > { %3479 = vst [vmem:[%s4432_s8 + $0xf0] sm:$0xff] %v3447_v41 }
 0x47f   : > { %3480 = vst [vmem:[%s4432_s8 + $0xf8] sm:$0xff] %v3448_v9 }
 0x480 PF: > { %s15_s24 = sadd.s32 1, %s4259_s24   ;;  %s6882_s18 = smov %s4239_s19 }
 0x481   : > { %p12_p1 = scmp.ge.s32.totalorder %s15_s24, 6   ;;  %s6883_s19 = smov %s4342_s29 }
 0x482   : > { %s6884_s20 = smov %s4251_s22  ;;  %s6885_s21 = smov %s4255_s23 }
 0x483   : > { %s6886_s22 = smov %s6889_s25  ;;  %s6887_s23 = smov %s6893_s26 }
 0x484   :  { %14 = sbr.rel (!%p12_p1) target bundleno = 4 (0x4), region = 130 }

</bundles_post_ra>
